<compile_context>
chip_gen: v7x
topology: tpu7x:2x2x1
jax: 0.10.0
libtpu: 0.0.40
codegen_flags: <defaults>
</compile_context>

<pallas_src>
import jax
import jax.numpy as jnp
from jax.experimental import pallas as pl
from jax.experimental.pallas import tpu as pltpu

_EPS = 1e-5  # nn.BatchNorm2d default eps


def _round_up(x, m):
    return (x + m - 1) // m * m


def _basic_block_kernel(x_ref, w1_ref, g1_ref, b1_ref, w2_ref, g2_ref, b2_ref,
                        o_ref, pad_ref, slab_ref):
    N, Hp, Wp, C = pad_ref.shape
    H, W = Hp - 2, Wp - 2
    M = N * H * W
    K = 9 * C
    Kp = slab_ref.shape[1]
    inv_m = 1.0 / M

    def pack_taps():
        # Build the (M, Kp) bf16 im2col slab from the f32 padded scratch.
        # Slice-then-cast is the proven lowering path (see module docstring).
        for t in range(9):
            dy, dx = t // 3, t % 3
            slab_ref[:, t * C:(t + 1) * C] = (
                pad_ref[:, dy:dy + H, dx:dx + W, :]
                .reshape(M, C).astype(jnp.bfloat16))

    def bn_affine(acc, g_ref, b_ref):
        # Single-pass batch statistics (f32 sums); clamp guards against
        # cancellation-induced negative variance.
        s = jnp.sum(acc, axis=0, keepdims=True)
        ss = jnp.sum(acc * acc, axis=0, keepdims=True)
        mean = s * inv_m
        var = jnp.maximum(ss * inv_m - mean * mean, 0.0)
        scale = g_ref[...] * jax.lax.rsqrt(var + _EPS)
        shift = b_ref[...] - mean * scale
        return scale, shift

    # ---- zero ONLY the 1-pixel halo of the padded scratch; the interior is
    #      fully overwritten below and the halo stays zero for both convs.
    zrow = jnp.zeros((N, 1, Wp, C), pad_ref.dtype)
    zcol = jnp.zeros((N, H, 1, C), pad_ref.dtype)
    pad_ref[:, 0:1, :, :] = zrow
    pad_ref[:, H + 1:H + 2, :, :] = zrow
    pad_ref[:, 1:H + 1, 0:1, :] = zcol
    pad_ref[:, 1:H + 1, W + 1:W + 2, :] = zcol

    # ---- zero the K tail of the slab once (weight rows K..Kp-1 are zero, but
    #      uninitialised VMEM could hold NaN/Inf bit patterns).
    if Kp > K:
        slab_ref[:, K:Kp] = jnp.zeros((M, Kp - K), slab_ref.dtype)

    # ---- conv1: stage x into the padded scratch, in-kernel im2col, one MXU
    #      matmul (bf16 operands, f32 accumulation).
    pad_ref[:, 1:H + 1, 1:W + 1, :] = x_ref[...]
    pack_taps()
    acc1 = jnp.dot(slab_ref[...], w1_ref[...], preferred_element_type=jnp.float32)

    # ---- bn1 (batch stats) + relu
    scale1, shift1 = bn_affine(acc1, g1_ref, b1_ref)
    out1 = jnp.maximum(acc1 * scale1 + shift1, 0.0)

    # ---- conv2: restage relu(bn1) (halo untouched -> still zero), repack, matmul
    pad_ref[:, 1:H + 1, 1:W + 1, :] = out1.reshape(N, H, W, C)
    pack_taps()
    acc2 = jnp.dot(slab_ref[...], w2_ref[...], preferred_element_type=jnp.float32)

    # ---- bn2 + identity shortcut (exact f32 residual) + relu
    scale2, shift2 = bn_affine(acc2, g2_ref, b2_ref)
    xid = x_ref[...].reshape(M, C)
    o_ref[...] = jnp.maximum(acc2 * scale2 + shift2 + xid, 0.0)


def basic_block_forward(x_nchw, w1_oihw, gamma1, beta1, w2_oihw, gamma2, beta2):
    """BasicBlock forward (stride=1, in_planes == planes). x is NCHW f32."""
    N, Cin, H, W = x_nchw.shape
    Cout = w1_oihw.shape[0]
    assert Cin == Cout, "identity shortcut requires stride=1 and in_planes == planes"
    C = Cin
    Hp, Wp = H + 2, W + 2
    M = N * H * W
    K = 9 * C
    Kp = _round_up(K, 128)

    # Channels-last activation; this is the only large HBM operand of the kernel.
    x = jnp.transpose(x_nchw, (0, 2, 3, 1)).astype(jnp.float32)

    # Weights OIHW -> (ky, kx, ci, co) -> (9*ci, co), zero-padded to Kp rows so
    # slab rows are lane-aligned; bf16 for the MXU.
    def pack_w(w_oihw):
        wf = jnp.transpose(w_oihw, (2, 3, 1, 0)).reshape(K, C)
        wf = jnp.pad(wf, ((0, Kp - K), (0, 0)))
        return wf.astype(jnp.bfloat16)

    w1f, w2f = pack_w(w1_oihw), pack_w(w2_oihw)
    g1 = gamma1.reshape(1, C).astype(jnp.float32)
    b1 = beta1.reshape(1, C).astype(jnp.float32)
    g2 = gamma2.reshape(1, C).astype(jnp.float32)
    b2 = beta2.reshape(1, C).astype(jnp.float32)

    vmem = pl.BlockSpec(memory_space=pltpu.MemorySpace.VMEM)
    out_flat = pl.pallas_call(
        _basic_block_kernel,
        out_shape=jax.ShapeDtypeStruct((M, C), jnp.float32),
        in_specs=[vmem] * 7,
        out_specs=vmem,
        scratch_shapes=[
            pltpu.VMEM((N, Hp, Wp, C), jnp.float32),   # padded staging (x, then relu(bn1))
            pltpu.VMEM((M, Kp), jnp.bfloat16),         # im2col slab (MXU LHS)
        ],
        compiler_params=pltpu.CompilerParams(
            vmem_limit_bytes=32 * 1024 * 1024),
    )(x, w1f, g1, b1, w2f, g2, b2)

    return jnp.transpose(out_flat.reshape(N, H, W, C), (0, 3, 1, 2))   # NCHW


def _reference(x_nchw, w1_oihw, g1, b1, w2_oihw, g2, b2):
    """Pure-JAX f32 reference matching the PyTorch forward (training-mode BN)."""
    x = jnp.transpose(x_nchw, (0, 2, 3, 1))

    def conv(inp, w_oihw):
        w = jnp.transpose(w_oihw, (2, 3, 1, 0))
        return jax.lax.conv_general_dilated(
            inp, w, window_strides=(1, 1), padding="SAME",
            dimension_numbers=("NHWC", "HWIO", "NHWC"))

    def bn(y, g, b):
        m = jnp.mean(y, axis=(0, 1, 2), keepdims=True)
        v = jnp.mean((y - m) ** 2, axis=(0, 1, 2), keepdims=True)
        return (y - m) * jax.lax.rsqrt(v + _EPS) * g.reshape(1, 1, 1, -1) \
            + b.reshape(1, 1, 1, -1)

    out = jax.nn.relu(bn(conv(x, w1_oihw), g1, b1))
    out = bn(conv(out, w2_oihw), g2, b2)
    out = jax.nn.relu(out + x)
    return jnp.transpose(out, (0, 3, 1, 2))


if __name__ == "__main__":
    N, C, H, W = 2, 8, 16, 16          # in_planes == planes == 8, stride = 1
    key = jax.random.PRNGKey(0)
    kx, k1, k2 = jax.random.split(key, 3)

    x = jax.random.normal(kx, (N, C, H, W), dtype=jnp.float32)
    w1 = 0.1 * jax.random.normal(k1, (C, C, 3, 3), dtype=jnp.float32)
    w2 = 0.1 * jax.random.normal(k2, (C, C, 3, 3), dtype=jnp.float32)
    gamma1 = jnp.ones((C,), jnp.float32)   # nn.BatchNorm2d default weight
    beta1 = jnp.zeros((C,), jnp.float32)   # nn.BatchNorm2d default bias
    gamma2 = jnp.ones((C,), jnp.float32)
    beta2 = jnp.zeros((C,), jnp.float32)

    fwd = jax.jit(basic_block_forward)
    out = jax.block_until_ready(fwd(x, w1, gamma1, beta1, w2, gamma2, beta2))

    ref = _reference(x, w1, gamma1, beta1, w2, gamma2, beta2)
    assert out.shape == (N, C, H, W)
    # Kernel matmuls use bf16 operands (f32 accumulation); reference is all-f32,
    # so allow bf16-level tolerance.
    err = jnp.max(jnp.abs(out - ref))
    assert jnp.allclose(out, ref, atol=5e-2, rtol=5e-2), f"max abs err {err}"
    print("KERNEL_OK")
</pallas_src>

<mosaic_0001>
module attributes {stable_mosaic.version = 11 : i64} {
  func.func @_basic_block_kernel(%arg0: memref<2x16x16x8xf32, #tpu.memory_space<vmem>>, %arg1: memref<128x8xbf16, #tpu.memory_space<vmem>>, %arg2: memref<1x8xf32, #tpu.memory_space<vmem>>, %arg3: memref<1x8xf32, #tpu.memory_space<vmem>>, %arg4: memref<128x8xbf16, #tpu.memory_space<vmem>>, %arg5: memref<1x8xf32, #tpu.memory_space<vmem>>, %arg6: memref<1x8xf32, #tpu.memory_space<vmem>>, %arg7: memref<512x8xf32, #tpu.memory_space<vmem>>, %arg8: memref<2x18x18x8xf32, #tpu.memory_space<vmem>>, %arg9: memref<512x128xbf16, #tpu.memory_space<vmem>>) attributes {dimension_semantics = [], scalar_prefetch = 0 : i64, scratch_operands = 2 : i64, tpu.core_type = #tpu.core_type<tc>} {
    %cst = arith.constant 0.000000e+00 : f32
    %0 = vector.broadcast %cst : f32 to vector<2x1x18x8xf32>
    %cst_0 = arith.constant 0.000000e+00 : f32
    %1 = vector.broadcast %cst_0 : f32 to vector<2x16x1x8xf32>
    %c0 = arith.constant 0 : index
    %c0_1 = arith.constant 0 : index
    %c0_2 = arith.constant 0 : index
    %c0_3 = arith.constant 0 : index
    %2 = vector.load %arg8[%c0, %c0_1, %c0_2, %c0_3] : memref<2x18x18x8xf32, #tpu.memory_space<vmem>>, vector<2x1x18x8xf32>
    tpu.vector_store %arg8[%c0, %c0_1, %c0_2, %c0_3], %0 {strides = array<i32>} : memref<2x18x18x8xf32, #tpu.memory_space<vmem>>, vector<2x1x18x8xf32>,
    %c0_4 = arith.constant 0 : index
    %c17 = arith.constant 17 : index
    %c0_5 = arith.constant 0 : index
    %c0_6 = arith.constant 0 : index
    %3 = vector.load %arg8[%c0_4, %c17, %c0_5, %c0_6] : memref<2x18x18x8xf32, #tpu.memory_space<vmem>>, vector<2x1x18x8xf32>
    tpu.vector_store %arg8[%c0_4, %c17, %c0_5, %c0_6], %0 {strides = array<i32>} : memref<2x18x18x8xf32, #tpu.memory_space<vmem>>, vector<2x1x18x8xf32>,
    %c0_7 = arith.constant 0 : index
    %c1 = arith.constant 1 : index
    %c0_8 = arith.constant 0 : index
    %c0_9 = arith.constant 0 : index
    %4 = vector.load %arg8[%c0_7, %c1, %c0_8, %c0_9] : memref<2x18x18x8xf32, #tpu.memory_space<vmem>>, vector<2x16x1x8xf32>
    tpu.vector_store %arg8[%c0_7, %c1, %c0_8, %c0_9], %1 {strides = array<i32>} : memref<2x18x18x8xf32, #tpu.memory_space<vmem>>, vector<2x16x1x8xf32>,
    %c0_10 = arith.constant 0 : index
    %c1_11 = arith.constant 1 : index
    %c17_12 = arith.constant 17 : index
    %c0_13 = arith.constant 0 : index
    %5 = vector.load %arg8[%c0_10, %c1_11, %c17_12, %c0_13] : memref<2x18x18x8xf32, #tpu.memory_space<vmem>>, vector<2x16x1x8xf32>
    tpu.vector_store %arg8[%c0_10, %c1_11, %c17_12, %c0_13], %1 {strides = array<i32>} : memref<2x18x18x8xf32, #tpu.memory_space<vmem>>, vector<2x16x1x8xf32>,
    %cst_14 = arith.constant 0.000000e+00 : bf16
    %6 = vector.broadcast %cst_14 : bf16 to vector<512x56xbf16>
    %c0_15 = arith.constant 0 : index
    %c72 = arith.constant 72 : index
    %7 = vector.load %arg9[%c0_15, %c72] : memref<512x128xbf16, #tpu.memory_space<vmem>>, vector<512x56xbf16>
    tpu.vector_store %arg9[%c0_15, %c72], %6 {strides = array<i32>} : memref<512x128xbf16, #tpu.memory_space<vmem>>, vector<512x56xbf16>,
    %c0_16 = arith.constant 0 : index
    %c0_17 = arith.constant 0 : index
    %c0_18 = arith.constant 0 : index
    %c0_19 = arith.constant 0 : index
    %8 = vector.load %arg0[%c0_16, %c0_17, %c0_18, %c0_19] : memref<2x16x16x8xf32, #tpu.memory_space<vmem>>, vector<2x16x16x8xf32>
    %c0_20 = arith.constant 0 : index
    %c1_21 = arith.constant 1 : index
    %c1_22 = arith.constant 1 : index
    %c0_23 = arith.constant 0 : index
    %9 = vector.load %arg8[%c0_20, %c1_21, %c1_22, %c0_23] : memref<2x18x18x8xf32, #tpu.memory_space<vmem>>, vector<2x16x16x8xf32>
    tpu.vector_store %arg8[%c0_20, %c1_21, %c1_22, %c0_23], %8 {strides = array<i32>} : memref<2x18x18x8xf32, #tpu.memory_space<vmem>>, vector<2x16x16x8xf32>,
    %c0_24 = arith.constant 0 : index
    %c0_25 = arith.constant 0 : index
    %c0_26 = arith.constant 0 : index
    %c0_27 = arith.constant 0 : index
    %10 = vector.load %arg8[%c0_24, %c0_25, %c0_26, %c0_27] : memref<2x18x18x8xf32, #tpu.memory_space<vmem>>, vector<2x16x16x8xf32>
    %11 = vector.shape_cast %10 : vector<2x16x16x8xf32> to vector<512x8xf32>
    %12 = arith.truncf %11 : vector<512x8xf32> to vector<512x8xbf16>
    %c0_28 = arith.constant 0 : index
    %c0_29 = arith.constant 0 : index
    %13 = vector.load %arg9[%c0_28, %c0_29] : memref<512x128xbf16, #tpu.memory_space<vmem>>, vector<512x8xbf16>
    tpu.vector_store %arg9[%c0_28, %c0_29], %12 {strides = array<i32>} : memref<512x128xbf16, #tpu.memory_space<vmem>>, vector<512x8xbf16>,
    %c0_30 = arith.constant 0 : index
    %c0_31 = arith.constant 0 : index
    %c1_32 = arith.constant 1 : index
    %c0_33 = arith.constant 0 : index
    %14 = vector.load %arg8[%c0_30, %c0_31, %c1_32, %c0_33] : memref<2x18x18x8xf32, #tpu.memory_space<vmem>>, vector<2x16x16x8xf32>
    %15 = vector.shape_cast %14 : vector<2x16x16x8xf32> to vector<512x8xf32>
    %16 = arith.truncf %15 : vector<512x8xf32> to vector<512x8xbf16>
    %c0_34 = arith.constant 0 : index
    %c8 = arith.constant 8 : index
    %17 = vector.load %arg9[%c0_34, %c8] : memref<512x128xbf16, #tpu.memory_space<vmem>>, vector<512x8xbf16>
    tpu.vector_store %arg9[%c0_34, %c8], %16 {strides = array<i32>} : memref<512x128xbf16, #tpu.memory_space<vmem>>, vector<512x8xbf16>,
    %c0_35 = arith.constant 0 : index
    %c0_36 = arith.constant 0 : index
    %c2 = arith.constant 2 : index
    %c0_37 = arith.constant 0 : index
    %18 = vector.load %arg8[%c0_35, %c0_36, %c2, %c0_37] : memref<2x18x18x8xf32, #tpu.memory_space<vmem>>, vector<2x16x16x8xf32>
    %19 = vector.shape_cast %18 : vector<2x16x16x8xf32> to vector<512x8xf32>
    %20 = arith.truncf %19 : vector<512x8xf32> to vector<512x8xbf16>
    %c0_38 = arith.constant 0 : index
    %c16 = arith.constant 16 : index
    %21 = vector.load %arg9[%c0_38, %c16] : memref<512x128xbf16, #tpu.memory_space<vmem>>, vector<512x8xbf16>
    tpu.vector_store %arg9[%c0_38, %c16], %20 {strides = array<i32>} : memref<512x128xbf16, #tpu.memory_space<vmem>>, vector<512x8xbf16>,
    %c0_39 = arith.constant 0 : index
    %c1_40 = arith.constant 1 : index
    %c0_41 = arith.constant 0 : index
    %c0_42 = arith.constant 0 : index
    %22 = vector.load %arg8[%c0_39, %c1_40, %c0_41, %c0_42] : memref<2x18x18x8xf32, #tpu.memory_space<vmem>>, vector<2x16x16x8xf32>
    %23 = vector.shape_cast %22 : vector<2x16x16x8xf32> to vector<512x8xf32>
    %24 = arith.truncf %23 : vector<512x8xf32> to vector<512x8xbf16>
    %c0_43 = arith.constant 0 : index
    %c24 = arith.constant 24 : index
    %25 = vector.load %arg9[%c0_43, %c24] : memref<512x128xbf16, #tpu.memory_space<vmem>>, vector<512x8xbf16>
    tpu.vector_store %arg9[%c0_43, %c24], %24 {strides = array<i32>} : memref<512x128xbf16, #tpu.memory_space<vmem>>, vector<512x8xbf16>,
    %c0_44 = arith.constant 0 : index
    %c1_45 = arith.constant 1 : index
    %c1_46 = arith.constant 1 : index
    %c0_47 = arith.constant 0 : index
    %26 = vector.load %arg8[%c0_44, %c1_45, %c1_46, %c0_47] : memref<2x18x18x8xf32, #tpu.memory_space<vmem>>, vector<2x16x16x8xf32>
    %27 = vector.shape_cast %26 : vector<2x16x16x8xf32> to vector<512x8xf32>
    %28 = arith.truncf %27 : vector<512x8xf32> to vector<512x8xbf16>
    %c0_48 = arith.constant 0 : index
    %c32 = arith.constant 32 : index
    %29 = vector.load %arg9[%c0_48, %c32] : memref<512x128xbf16, #tpu.memory_space<vmem>>, vector<512x8xbf16>
    tpu.vector_store %arg9[%c0_48, %c32], %28 {strides = array<i32>} : memref<512x128xbf16, #tpu.memory_space<vmem>>, vector<512x8xbf16>,
    %c0_49 = arith.constant 0 : index
    %c1_50 = arith.constant 1 : index
    %c2_51 = arith.constant 2 : index
    %c0_52 = arith.constant 0 : index
    %30 = vector.load %arg8[%c0_49, %c1_50, %c2_51, %c0_52] : memref<2x18x18x8xf32, #tpu.memory_space<vmem>>, vector<2x16x16x8xf32>
    %31 = vector.shape_cast %30 : vector<2x16x16x8xf32> to vector<512x8xf32>
    %32 = arith.truncf %31 : vector<512x8xf32> to vector<512x8xbf16>
    %c0_53 = arith.constant 0 : index
    %c40 = arith.constant 40 : index
    %33 = vector.load %arg9[%c0_53, %c40] : memref<512x128xbf16, #tpu.memory_space<vmem>>, vector<512x8xbf16>
    tpu.vector_store %arg9[%c0_53, %c40], %32 {strides = array<i32>} : memref<512x128xbf16, #tpu.memory_space<vmem>>, vector<512x8xbf16>,
    %c0_54 = arith.constant 0 : index
    %c2_55 = arith.constant 2 : index
    %c0_56 = arith.constant 0 : index
    %c0_57 = arith.constant 0 : index
    %34 = vector.load %arg8[%c0_54, %c2_55, %c0_56, %c0_57] : memref<2x18x18x8xf32, #tpu.memory_space<vmem>>, vector<2x16x16x8xf32>
    %35 = vector.shape_cast %34 : vector<2x16x16x8xf32> to vector<512x8xf32>
    %36 = arith.truncf %35 : vector<512x8xf32> to vector<512x8xbf16>
    %c0_58 = arith.constant 0 : index
    %c48 = arith.constant 48 : index
    %37 = vector.load %arg9[%c0_58, %c48] : memref<512x128xbf16, #tpu.memory_space<vmem>>, vector<512x8xbf16>
    tpu.vector_store %arg9[%c0_58, %c48], %36 {strides = array<i32>} : memref<512x128xbf16, #tpu.memory_space<vmem>>, vector<512x8xbf16>,
    %c0_59 = arith.constant 0 : index
    %c2_60 = arith.constant 2 : index
    %c1_61 = arith.constant 1 : index
    %c0_62 = arith.constant 0 : index
    %38 = vector.load %arg8[%c0_59, %c2_60, %c1_61, %c0_62] : memref<2x18x18x8xf32, #tpu.memory_space<vmem>>, vector<2x16x16x8xf32>
    %39 = vector.shape_cast %38 : vector<2x16x16x8xf32> to vector<512x8xf32>
    %40 = arith.truncf %39 : vector<512x8xf32> to vector<512x8xbf16>
    %c0_63 = arith.constant 0 : index
    %c56 = arith.constant 56 : index
    %41 = vector.load %arg9[%c0_63, %c56] : memref<512x128xbf16, #tpu.memory_space<vmem>>, vector<512x8xbf16>
    tpu.vector_store %arg9[%c0_63, %c56], %40 {strides = array<i32>} : memref<512x128xbf16, #tpu.memory_space<vmem>>, vector<512x8xbf16>,
    %c0_64 = arith.constant 0 : index
    %c2_65 = arith.constant 2 : index
    %c2_66 = arith.constant 2 : index
    %c0_67 = arith.constant 0 : index
    %42 = vector.load %arg8[%c0_64, %c2_65, %c2_66, %c0_67] : memref<2x18x18x8xf32, #tpu.memory_space<vmem>>, vector<2x16x16x8xf32>
    %43 = vector.shape_cast %42 : vector<2x16x16x8xf32> to vector<512x8xf32>
    %44 = arith.truncf %43 : vector<512x8xf32> to vector<512x8xbf16>
    %c0_68 = arith.constant 0 : index
    %c64 = arith.constant 64 : index
    %45 = vector.load %arg9[%c0_68, %c64] : memref<512x128xbf16, #tpu.memory_space<vmem>>, vector<512x8xbf16>
    tpu.vector_store %arg9[%c0_68, %c64], %44 {strides = array<i32>} : memref<512x128xbf16, #tpu.memory_space<vmem>>, vector<512x8xbf16>,
    %c0_69 = arith.constant 0 : index
    %c0_70 = arith.constant 0 : index
    %46 = vector.load %arg9[%c0_69, %c0_70] : memref<512x128xbf16, #tpu.memory_space<vmem>>, vector<512x128xbf16>
    %c0_71 = arith.constant 0 : index
    %c0_72 = arith.constant 0 : index
    %47 = vector.load %arg1[%c0_71, %c0_72] : memref<128x8xbf16, #tpu.memory_space<vmem>>, vector<128x8xbf16>
    %cst_73 = arith.constant dense<0.000000e+00> : vector<512x8xf32>
    %48 = tpu.matmul %46, %47, %cst_73 {dimension_numbers = #tpu.dot_dimension_numbers<[1], [0], [0], [1], [0, 0, 1, 1], [], []>} : vector<512x128xbf16>, vector<128x8xbf16>, vector<512x8xf32> -> vector<512x8xf32>
    %cst_74 = arith.constant dense<0.000000e+00> : vector<8xf32>
    %49 = vector.multi_reduction <add>, %48, %cst_74 [0] : vector<512x8xf32> to vector<8xf32>
    %50 = vector.shape_cast %49 : vector<8xf32> to vector<1x8xf32>
    %51 = arith.mulf %48, %48 : vector<512x8xf32>
    %cst_75 = arith.constant dense<0.000000e+00> : vector<8xf32>
    %52 = vector.multi_reduction <add>, %51, %cst_75 [0] : vector<512x8xf32> to vector<8xf32>
    %53 = vector.shape_cast %52 : vector<8xf32> to vector<1x8xf32>
    %cst_76 = arith.constant 0.001953125 : f32
    %54 = vector.broadcast %cst_76 : f32 to vector<1x8xf32>
    %55 = arith.mulf %50, %54 : vector<1x8xf32>
    %cst_77 = arith.constant 0.001953125 : f32
    %56 = vector.broadcast %cst_77 : f32 to vector<1x8xf32>
    %57 = arith.mulf %53, %56 : vector<1x8xf32>
    %58 = arith.mulf %55, %55 : vector<1x8xf32>
    %59 = arith.subf %57, %58 : vector<1x8xf32>
    %cst_78 = arith.constant 0.000000e+00 : f32
    %60 = vector.broadcast %cst_78 : f32 to vector<1x8xf32>
    %61 = arith.maximumf %59, %60 : vector<1x8xf32>
    %c0_79 = arith.constant 0 : index
    %c0_80 = arith.constant 0 : index
    %62 = vector.load %arg2[%c0_79, %c0_80] : memref<1x8xf32, #tpu.memory_space<vmem>>, vector<1x8xf32>
    %cst_81 = arith.constant 9.99999974E-6 : f32
    %63 = vector.broadcast %cst_81 : f32 to vector<1x8xf32>
    %64 = arith.addf %61, %63 : vector<1x8xf32>
    %65 = math.rsqrt %64 : vector<1x8xf32>
    %66 = arith.mulf %62, %65 : vector<1x8xf32>
    %c0_82 = arith.constant 0 : index
    %c0_83 = arith.constant 0 : index
    %67 = vector.load %arg3[%c0_82, %c0_83] : memref<1x8xf32, #tpu.memory_space<vmem>>, vector<1x8xf32>
    %68 = arith.mulf %55, %66 : vector<1x8xf32>
    %69 = arith.subf %67, %68 : vector<1x8xf32>
    %70 = vector.broadcast %66 : vector<1x8xf32> to vector<512x8xf32>
    %71 = arith.mulf %48, %70 : vector<512x8xf32>
    %72 = vector.broadcast %69 : vector<1x8xf32> to vector<512x8xf32>
    %73 = arith.addf %71, %72 : vector<512x8xf32>
    %cst_84 = arith.constant 0.000000e+00 : f32
    %74 = vector.broadcast %cst_84 : f32 to vector<512x8xf32>
    %75 = arith.maximumf %73, %74 : vector<512x8xf32>
    %76 = vector.shape_cast %75 : vector<512x8xf32> to vector<2x16x16x8xf32>
    %c0_85 = arith.constant 0 : index
    %c1_86 = arith.constant 1 : index
    %c1_87 = arith.constant 1 : index
    %c0_88 = arith.constant 0 : index
    %77 = vector.load %arg8[%c0_85, %c1_86, %c1_87, %c0_88] : memref<2x18x18x8xf32, #tpu.memory_space<vmem>>, vector<2x16x16x8xf32>
    tpu.vector_store %arg8[%c0_85, %c1_86, %c1_87, %c0_88], %76 {strides = array<i32>} : memref<2x18x18x8xf32, #tpu.memory_space<vmem>>, vector<2x16x16x8xf32>,
    %c0_89 = arith.constant 0 : index
    %c0_90 = arith.constant 0 : index
    %c0_91 = arith.constant 0 : index
    %c0_92 = arith.constant 0 : index
    %78 = vector.load %arg8[%c0_89, %c0_90, %c0_91, %c0_92] : memref<2x18x18x8xf32, #tpu.memory_space<vmem>>, vector<2x16x16x8xf32>
    %79 = vector.shape_cast %78 : vector<2x16x16x8xf32> to vector<512x8xf32>
    %80 = arith.truncf %79 : vector<512x8xf32> to vector<512x8xbf16>
    %c0_93 = arith.constant 0 : index
    %c0_94 = arith.constant 0 : index
    %81 = vector.load %arg9[%c0_93, %c0_94] : memref<512x128xbf16, #tpu.memory_space<vmem>>, vector<512x8xbf16>
    tpu.vector_store %arg9[%c0_93, %c0_94], %80 {strides = array<i32>} : memref<512x128xbf16, #tpu.memory_space<vmem>>, vector<512x8xbf16>,
    %c0_95 = arith.constant 0 : index
    %c0_96 = arith.constant 0 : index
    %c1_97 = arith.constant 1 : index
    %c0_98 = arith.constant 0 : index
    %82 = vector.load %arg8[%c0_95, %c0_96, %c1_97, %c0_98] : memref<2x18x18x8xf32, #tpu.memory_space<vmem>>, vector<2x16x16x8xf32>
    %83 = vector.shape_cast %82 : vector<2x16x16x8xf32> to vector<512x8xf32>
    %84 = arith.truncf %83 : vector<512x8xf32> to vector<512x8xbf16>
    %c0_99 = arith.constant 0 : index
    %c8_100 = arith.constant 8 : index
    %85 = vector.load %arg9[%c0_99, %c8_100] : memref<512x128xbf16, #tpu.memory_space<vmem>>, vector<512x8xbf16>
    tpu.vector_store %arg9[%c0_99, %c8_100], %84 {strides = array<i32>} : memref<512x128xbf16, #tpu.memory_space<vmem>>, vector<512x8xbf16>,
    %c0_101 = arith.constant 0 : index
    %c0_102 = arith.constant 0 : index
    %c2_103 = arith.constant 2 : index
    %c0_104 = arith.constant 0 : index
    %86 = vector.load %arg8[%c0_101, %c0_102, %c2_103, %c0_104] : memref<2x18x18x8xf32, #tpu.memory_space<vmem>>, vector<2x16x16x8xf32>
    %87 = vector.shape_cast %86 : vector<2x16x16x8xf32> to vector<512x8xf32>
    %88 = arith.truncf %87 : vector<512x8xf32> to vector<512x8xbf16>
    %c0_105 = arith.constant 0 : index
    %c16_106 = arith.constant 16 : index
    %89 = vector.load %arg9[%c0_105, %c16_106] : memref<512x128xbf16, #tpu.memory_space<vmem>>, vector<512x8xbf16>
    tpu.vector_store %arg9[%c0_105, %c16_106], %88 {strides = array<i32>} : memref<512x128xbf16, #tpu.memory_space<vmem>>, vector<512x8xbf16>,
    %c0_107 = arith.constant 0 : index
    %c1_108 = arith.constant 1 : index
    %c0_109 = arith.constant 0 : index
    %c0_110 = arith.constant 0 : index
    %90 = vector.load %arg8[%c0_107, %c1_108, %c0_109, %c0_110] : memref<2x18x18x8xf32, #tpu.memory_space<vmem>>, vector<2x16x16x8xf32>
    %91 = vector.shape_cast %90 : vector<2x16x16x8xf32> to vector<512x8xf32>
    %92 = arith.truncf %91 : vector<512x8xf32> to vector<512x8xbf16>
    %c0_111 = arith.constant 0 : index
    %c24_112 = arith.constant 24 : index
    %93 = vector.load %arg9[%c0_111, %c24_112] : memref<512x128xbf16, #tpu.memory_space<vmem>>, vector<512x8xbf16>
    tpu.vector_store %arg9[%c0_111, %c24_112], %92 {strides = array<i32>} : memref<512x128xbf16, #tpu.memory_space<vmem>>, vector<512x8xbf16>,
    %c0_113 = arith.constant 0 : index
    %c1_114 = arith.constant 1 : index
    %c1_115 = arith.constant 1 : index
    %c0_116 = arith.constant 0 : index
    %94 = vector.load %arg8[%c0_113, %c1_114, %c1_115, %c0_116] : memref<2x18x18x8xf32, #tpu.memory_space<vmem>>, vector<2x16x16x8xf32>
    %95 = vector.shape_cast %94 : vector<2x16x16x8xf32> to vector<512x8xf32>
    %96 = arith.truncf %95 : vector<512x8xf32> to vector<512x8xbf16>
    %c0_117 = arith.constant 0 : index
    %c32_118 = arith.constant 32 : index
    %97 = vector.load %arg9[%c0_117, %c32_118] : memref<512x128xbf16, #tpu.memory_space<vmem>>, vector<512x8xbf16>
    tpu.vector_store %arg9[%c0_117, %c32_118], %96 {strides = array<i32>} : memref<512x128xbf16, #tpu.memory_space<vmem>>, vector<512x8xbf16>,
    %c0_119 = arith.constant 0 : index
    %c1_120 = arith.constant 1 : index
    %c2_121 = arith.constant 2 : index
    %c0_122 = arith.constant 0 : index
    %98 = vector.load %arg8[%c0_119, %c1_120, %c2_121, %c0_122] : memref<2x18x18x8xf32, #tpu.memory_space<vmem>>, vector<2x16x16x8xf32>
    %99 = vector.shape_cast %98 : vector<2x16x16x8xf32> to vector<512x8xf32>
    %100 = arith.truncf %99 : vector<512x8xf32> to vector<512x8xbf16>
    %c0_123 = arith.constant 0 : index
    %c40_124 = arith.constant 40 : index
    %101 = vector.load %arg9[%c0_123, %c40_124] : memref<512x128xbf16, #tpu.memory_space<vmem>>, vector<512x8xbf16>
    tpu.vector_store %arg9[%c0_123, %c40_124], %100 {strides = array<i32>} : memref<512x128xbf16, #tpu.memory_space<vmem>>, vector<512x8xbf16>,
    %c0_125 = arith.constant 0 : index
    %c2_126 = arith.constant 2 : index
    %c0_127 = arith.constant 0 : index
    %c0_128 = arith.constant 0 : index
    %102 = vector.load %arg8[%c0_125, %c2_126, %c0_127, %c0_128] : memref<2x18x18x8xf32, #tpu.memory_space<vmem>>, vector<2x16x16x8xf32>
    %103 = vector.shape_cast %102 : vector<2x16x16x8xf32> to vector<512x8xf32>
    %104 = arith.truncf %103 : vector<512x8xf32> to vector<512x8xbf16>
    %c0_129 = arith.constant 0 : index
    %c48_130 = arith.constant 48 : index
    %105 = vector.load %arg9[%c0_129, %c48_130] : memref<512x128xbf16, #tpu.memory_space<vmem>>, vector<512x8xbf16>
    tpu.vector_store %arg9[%c0_129, %c48_130], %104 {strides = array<i32>} : memref<512x128xbf16, #tpu.memory_space<vmem>>, vector<512x8xbf16>,
    %c0_131 = arith.constant 0 : index
    %c2_132 = arith.constant 2 : index
    %c1_133 = arith.constant 1 : index
    %c0_134 = arith.constant 0 : index
    %106 = vector.load %arg8[%c0_131, %c2_132, %c1_133, %c0_134] : memref<2x18x18x8xf32, #tpu.memory_space<vmem>>, vector<2x16x16x8xf32>
    %107 = vector.shape_cast %106 : vector<2x16x16x8xf32> to vector<512x8xf32>
    %108 = arith.truncf %107 : vector<512x8xf32> to vector<512x8xbf16>
    %c0_135 = arith.constant 0 : index
    %c56_136 = arith.constant 56 : index
    %109 = vector.load %arg9[%c0_135, %c56_136] : memref<512x128xbf16, #tpu.memory_space<vmem>>, vector<512x8xbf16>
    tpu.vector_store %arg9[%c0_135, %c56_136], %108 {strides = array<i32>} : memref<512x128xbf16, #tpu.memory_space<vmem>>, vector<512x8xbf16>,
    %c0_137 = arith.constant 0 : index
    %c2_138 = arith.constant 2 : index
    %c2_139 = arith.constant 2 : index
    %c0_140 = arith.constant 0 : index
    %110 = vector.load %arg8[%c0_137, %c2_138, %c2_139, %c0_140] : memref<2x18x18x8xf32, #tpu.memory_space<vmem>>, vector<2x16x16x8xf32>
    %111 = vector.shape_cast %110 : vector<2x16x16x8xf32> to vector<512x8xf32>
    %112 = arith.truncf %111 : vector<512x8xf32> to vector<512x8xbf16>
    %c0_141 = arith.constant 0 : index
    %c64_142 = arith.constant 64 : index
    %113 = vector.load %arg9[%c0_141, %c64_142] : memref<512x128xbf16, #tpu.memory_space<vmem>>, vector<512x8xbf16>
    tpu.vector_store %arg9[%c0_141, %c64_142], %112 {strides = array<i32>} : memref<512x128xbf16, #tpu.memory_space<vmem>>, vector<512x8xbf16>,
    %c0_143 = arith.constant 0 : index
    %c0_144 = arith.constant 0 : index
    %114 = vector.load %arg9[%c0_143, %c0_144] : memref<512x128xbf16, #tpu.memory_space<vmem>>, vector<512x128xbf16>
    %c0_145 = arith.constant 0 : index
    %c0_146 = arith.constant 0 : index
    %115 = vector.load %arg4[%c0_145, %c0_146] : memref<128x8xbf16, #tpu.memory_space<vmem>>, vector<128x8xbf16>
    %cst_147 = arith.constant dense<0.000000e+00> : vector<512x8xf32>
    %116 = tpu.matmul %114, %115, %cst_147 {dimension_numbers = #tpu.dot_dimension_numbers<[1], [0], [0], [1], [0, 0, 1, 1], [], []>} : vector<512x128xbf16>, vector<128x8xbf16>, vector<512x8xf32> -> vector<512x8xf32>
    %cst_148 = arith.constant dense<0.000000e+00> : vector<8xf32>
    %117 = vector.multi_reduction <add>, %116, %cst_148 [0] : vector<512x8xf32> to vector<8xf32>
    %118 = vector.shape_cast %117 : vector<8xf32> to vector<1x8xf32>
    %119 = arith.mulf %116, %116 : vector<512x8xf32>
    %cst_149 = arith.constant dense<0.000000e+00> : vector<8xf32>
    %120 = vector.multi_reduction <add>, %119, %cst_149 [0] : vector<512x8xf32> to vector<8xf32>
    %121 = vector.shape_cast %120 : vector<8xf32> to vector<1x8xf32>
    %cst_150 = arith.constant 0.001953125 : f32
    %122 = vector.broadcast %cst_150 : f32 to vector<1x8xf32>
    %123 = arith.mulf %118, %122 : vector<1x8xf32>
    %cst_151 = arith.constant 0.001953125 : f32
    %124 = vector.broadcast %cst_151 : f32 to vector<1x8xf32>
    %125 = arith.mulf %121, %124 : vector<1x8xf32>
    %126 = arith.mulf %123, %123 : vector<1x8xf32>
    %127 = arith.subf %125, %126 : vector<1x8xf32>
    %cst_152 = arith.constant 0.000000e+00 : f32
    %128 = vector.broadcast %cst_152 : f32 to vector<1x8xf32>
    %129 = arith.maximumf %127, %128 : vector<1x8xf32>
    %c0_153 = arith.constant 0 : index
    %c0_154 = arith.constant 0 : index
    %130 = vector.load %arg5[%c0_153, %c0_154] : memref<1x8xf32, #tpu.memory_space<vmem>>, vector<1x8xf32>
    %cst_155 = arith.constant 9.99999974E-6 : f32
    %131 = vector.broadcast %cst_155 : f32 to vector<1x8xf32>
    %132 = arith.addf %129, %131 : vector<1x8xf32>
    %133 = math.rsqrt %132 : vector<1x8xf32>
    %134 = arith.mulf %130, %133 : vector<1x8xf32>
    %c0_156 = arith.constant 0 : index
    %c0_157 = arith.constant 0 : index
    %135 = vector.load %arg6[%c0_156, %c0_157] : memref<1x8xf32, #tpu.memory_space<vmem>>, vector<1x8xf32>
    %136 = arith.mulf %123, %134 : vector<1x8xf32>
    %137 = arith.subf %135, %136 : vector<1x8xf32>
    %c0_158 = arith.constant 0 : index
    %c0_159 = arith.constant 0 : index
    %c0_160 = arith.constant 0 : index
    %c0_161 = arith.constant 0 : index
    %138 = vector.load %arg0[%c0_158, %c0_159, %c0_160, %c0_161] : memref<2x16x16x8xf32, #tpu.memory_space<vmem>>, vector<2x16x16x8xf32>
    %139 = vector.shape_cast %138 : vector<2x16x16x8xf32> to vector<512x8xf32>
    %140 = vector.broadcast %134 : vector<1x8xf32> to vector<512x8xf32>
    %141 = arith.mulf %116, %140 : vector<512x8xf32>
    %142 = vector.broadcast %137 : vector<1x8xf32> to vector<512x8xf32>
    %143 = arith.addf %141, %142 : vector<512x8xf32>
    %144 = arith.addf %143, %139 : vector<512x8xf32>
    %cst_162 = arith.constant 0.000000e+00 : f32
    %145 = vector.broadcast %cst_162 : f32 to vector<512x8xf32>
    %146 = arith.maximumf %144, %145 : vector<512x8xf32>
    %c0_163 = arith.constant 0 : index
    %c0_164 = arith.constant 0 : index
    %147 = vector.load %arg7[%c0_163, %c0_164] : memref<512x8xf32, #tpu.memory_space<vmem>>, vector<512x8xf32>
    tpu.vector_store %arg7[%c0_163, %c0_164], %146 {strides = array<i32>} : memref<512x8xf32, #tpu.memory_space<vmem>>, vector<512x8xf32>,
    return
  }
}

</mosaic_0001>

<bundles_post_ra>
// kernel: basic_block_forward.1
= control target key start
LH: loop header
LB: loop body
LE: loop exit
PB: predicated region body
PF: predicated region fallthrough
CT: control target
= control target key end

     0   :  { %vm27_vm0 = vcmask 64512   ;;  %vm30_vm1 = vcmask 58368   ;;  %vm43_vm2 = vcmask 57344   ;;  %v7038_v0 = vmov 0.0   ;;  %s7040_s22 = smov 8   ;;  %s7041_s10 = smov 16   ;;  %s11791_s0 = inlined_call_operand.vmem [shape: f32[2,16,16,8], index: 0, kind: input, shape index: {}]   ;;  %s11792_s1 = inlined_call_operand.vmem [shape: bf16[128,8], index: 1, kind: input, shape index: {}]   ;;  %s11793_s2 = inlined_call_operand.vmem [shape: f32[1,8], index: 2, kind: input, shape index: {}]   ;;  %s11794_s3 = inlined_call_operand.vmem [shape: f32[1,8], index: 3, kind: input, shape index: {}]   ;;  %s11795_s4 = inlined_call_operand.vmem [shape: bf16[128,8], index: 4, kind: input, shape index: {}]   ;;  %s11796_s5 = inlined_call_operand.vmem [shape: f32[1,8], index: 5, kind: input, shape index: {}]   ;;  %s11797_s6 = inlined_call_operand.vmem [shape: f32[1,8], index: 6, kind: input, shape index: {}]   ;;  %s11798_s7 = inlined_call_operand.vmem [shape: f32[512,8], index: 7, kind: output, shape index: {}]  }
   0x1   :  { %28 = vst.msk [vmem:[#allocation2] sm:$0xff] %vm27_vm0, %v7038_v0  ;;  %29 = vst.msk [vmem:[#allocation2 + $0x8] sm:$0xff] %vm27_vm0, %v7038_v0  ;;  %v7111_v1 = vld [vmem:[%s11791_s0 + $0x10] sm:$0xff]  ;;  %v7116_v2 = vld [vmem:[%s11791_s0 + $0x18] sm:$0xff]  ;;  %vm108_vm3 = vcmask 1048128   ;;  %v7039_v10 = vmov 0  }
   0x2   :  { %31 = vst.msk [vmem:[#allocation2 + $0x10] sm:$0x3] %vm30_vm1, %v7038_v0  ;;  %34 = vst.msk [vmem:[#allocation2 + $0x1c0] sm:$0x3] %vm30_vm1, %v7038_v0  ;;  %v7121_v3 = vld [vmem:[%s11791_s0] sm:$0xff]  ;;  %v142_v4 = vld [vmem:[%s11791_s0 + $0x8] sm:$0xff] }
   0x3   :  { %32 = vst.msk [vmem:[#allocation2 + $0x1b0] sm:$0xff] %vm27_vm0, %v7038_v0  ;;  %33 = vst.msk [vmem:[#allocation2 + $0x1b8] sm:$0xff] %vm27_vm0, %v7038_v0  ;;  %v145_v5 = vld [vmem:[%s11791_s0 + $0x20] sm:$0xff]  ;;  %v146_v6 = vld [vmem:[%s11791_s0 + $0x28] sm:$0xff]  ;;  %s7042_s19 = smov 24   ;;  %s7043_s23 = smov 32  }
   0x4   :  { %36 = vst.msk [vmem:[#allocation2 + $0x198] sm:$0xff] %vm27_vm0, %v7038_v0  ;;  %37 = vst.msk [vmem:[#allocation2 + $0x1a0] sm:$0xff] %vm27_vm0, %v7038_v0  ;;  %v147_v7 = vld [vmem:[%s11791_s0 + $0x30] sm:$0xff]  ;;  %v148_v8 = vld [vmem:[%s11791_s0 + $0x38] sm:$0xff]  ;;  %s7044_s26 = smov 40   ;;  %s7045_s29 = smov 48  }
   0x5   :  { %38 = vst.msk [vmem:[#allocation2 + $0x1a8] sm:$0x3] %vm30_vm1, %v7038_v0  ;;  %41 = vst.msk [vmem:[#allocation2 + $0x358] sm:$0x3] %vm30_vm1, %v7038_v0  ;;  %v149_v9 = vld [vmem:[%s11791_s0 + $0x40] sm:$0xff]  ;;  %v150_v11 = vld [vmem:[%s11791_s0 + $0x48] sm:$0xff] }
   0x6   :  { %39 = vst.msk [vmem:[#allocation2 + $0x348] sm:$0xff] %vm27_vm0, %v7038_v0  ;;  %40 = vst.msk [vmem:[#allocation2 + $0x350] sm:$0xff] %vm27_vm0, %v7038_v0  ;;  %v151_v12 = vld [vmem:[%s11791_s0 + $0x50] sm:$0xff]  ;;  %v152_v13 = vld [vmem:[%s11791_s0 + $0x58] sm:$0xff]  ;;  %s7046_s9 = smov 56   ;;  %vm621_vm4 = vcmask 130112  }
   0x7   :  { %76 = vst.msk [vmem:[#allocation2 + $0x29] sm:$0x1] %vm43_vm2, %v7038_v0  ;;  %44 = vst.msk [vmem:[#allocation2 + $0x18] sm:$0x1] %vm43_vm2, %v7038_v0  ;;  %v153_v14 = vld [vmem:[%s11791_s0 + $0x60] sm:$0xff]  ;;  %v154_v15 = vld [vmem:[%s11791_s0 + $0x68] sm:$0xff] }
   0x8   :  { %45 = vst.msk [vmem:[#allocation2 + $0x30] sm:$0x1] %vm43_vm2, %v7038_v0  ;;  %46 = vst.msk [vmem:[#allocation2 + $0x48] sm:$0x1] %vm43_vm2, %v7038_v0  ;;  %v155_v16 = vld [vmem:[%s11791_s0 + $0x70] sm:$0xff]  ;;  %v156_v17 = vld [vmem:[%s11791_s0 + $0x78] sm:$0xff] }
   0x9   :  { %47 = vst.msk [vmem:[#allocation2 + $0x60] sm:$0x1] %vm43_vm2, %v7038_v0  ;;  %48 = vst.msk [vmem:[#allocation2 + $0x78] sm:$0x1] %vm43_vm2, %v7038_v0  ;;  %v157_v18 = vld [vmem:[%s11791_s0 + $0x80] sm:$0xff]  ;;  %v158_v19 = vld [vmem:[%s11791_s0 + $0x88] sm:$0xff] }
   0xa   :  { %49 = vst.msk [vmem:[#allocation2 + $0x90] sm:$0x1] %vm43_vm2, %v7038_v0  ;;  %50 = vst.msk [vmem:[#allocation2 + $0xa8] sm:$0x1] %vm43_vm2, %v7038_v0  ;;  %v159_v20 = vld [vmem:[%s11791_s0 + $0x90] sm:$0xff]  ;;  %v160_v21 = vld [vmem:[%s11791_s0 + $0x98] sm:$0xff] }
   0xb   :  { %51 = vst.msk [vmem:[#allocation2 + $0xc0] sm:$0x1] %vm43_vm2, %v7038_v0  ;;  %52 = vst.msk [vmem:[#allocation2 + $0xd8] sm:$0x1] %vm43_vm2, %v7038_v0  ;;  %v161_v22 = vld [vmem:[%s11791_s0 + $0xa0] sm:$0xff]  ;;  %v398_v24 = vld [vmem:[#allocation2 + $0x9] sm:$0xff] }
   0xc   :  { %53 = vst.msk [vmem:[#allocation2 + $0xf0] sm:$0x1] %vm43_vm2, %v7038_v0  ;;  %54 = vst.msk [vmem:[#allocation2 + $0x108] sm:$0x1] %vm43_vm2, %v7038_v0  ;;  %v397_v23 = vld [vmem:[#allocation2 + $0x1] sm:$0xff]  ;;  %v163_v46 = vld [vmem:[%s11791_s0 + $0xb0] sm:$0xff] }
   0xd   :  { %55 = vst.msk [vmem:[#allocation2 + $0x120] sm:$0x1] %vm43_vm2, %v7038_v0  ;;  %56 = vst.msk [vmem:[#allocation2 + $0x138] sm:$0x1] %vm43_vm2, %v7038_v0  ;;  %v162_v25 = vld [vmem:[%s11791_s0 + $0xa8] sm:$0xff]  ;;  %v461_v26 = vpack.c.bf16 %v398_v24, %v397_v23  ;;  %v164_v47 = vld [vmem:[%s11791_s0 + $0xb8] sm:$0xff] }
   0xe   :  { %57 = vst.msk [vmem:[#allocation2 + $0x150] sm:$0x1] %vm43_vm2, %v7038_v0  ;;  %58 = vst.msk [vmem:[#allocation2 + $0x168] sm:$0x1] %vm43_vm2, %v7038_v0  ;;  %v165_v48 = vld [vmem:[%s11791_s0 + $0xc0] sm:$0xff]  ;;  %v166_v49 = vld [vmem:[%s11791_s0 + $0xc8] sm:$0xff] }
   0xf   :  { %59 = vst.msk [vmem:[#allocation2 + $0x180] sm:$0x1] %vm43_vm2, %v7038_v0  ;;  %60 = vst.msk [vmem:[#allocation2 + $0x1c8] sm:$0x1] %vm43_vm2, %v7038_v0  ;;  %525 = vrot.lane.b32.xlu0 %v461_v26, %s7040_s22  ;;  %v167_v50 = vld [vmem:[%s11791_s0 + $0xd0] sm:$0xff]  ;;  %v168_v53 = vld [vmem:[%s11791_s0 + $0xd8] sm:$0xff] }
  0x10   :  { %61 = vst.msk [vmem:[#allocation2 + $0x1e0] sm:$0x1] %vm43_vm2, %v7038_v0  ;;  %62 = vst.msk [vmem:[#allocation2 + $0x1f8] sm:$0x1] %vm43_vm2, %v7038_v0  ;;  %v169_v54 = vld [vmem:[%s11791_s0 + $0xe0] sm:$0xff]  ;;  %v170_v55 = vld [vmem:[%s11791_s0 + $0xe8] sm:$0xff] }
  0x11   :  { %63 = vst.msk [vmem:[#allocation2 + $0x210] sm:$0x1] %vm43_vm2, %v7038_v0  ;;  %64 = vst.msk [vmem:[#allocation2 + $0x228] sm:$0x1] %vm43_vm2, %v7038_v0  ;;  %v173_v59 = vld [vmem:[%s11791_s0 + $0x100] sm:$0xff]  ;;  %v174_v61 = vld [vmem:[%s11791_s0 + $0x108] sm:$0xff] }
  0x12   :  { %65 = vst.msk [vmem:[#allocation2 + $0x240] sm:$0x1] %vm43_vm2, %v7038_v0  ;;  %66 = vst.msk [vmem:[#allocation2 + $0x258] sm:$0x1] %vm43_vm2, %v7038_v0  ;;  %v175_v62 = vld [vmem:[%s11791_s0 + $0x110] sm:$0xff]  ;;  %v176_v63 = vld [vmem:[%s11791_s0 + $0x118] sm:$0xff] }
  0x13   :  { %67 = vst.msk [vmem:[#allocation2 + $0x270] sm:$0x1] %vm43_vm2, %v7038_v0  ;;  %68 = vst.msk [vmem:[#allocation2 + $0x288] sm:$0x1] %vm43_vm2, %v7038_v0  ;;  %s7047_s11 = smov 64   ;;  %vm878_vm5 = vcmask 195712  }
  0x14   :  { %69 = vst.msk [vmem:[#allocation2 + $0x2a0] sm:$0x1] %vm43_vm2, %v7038_v0  ;;  %70 = vst.msk [vmem:[#allocation2 + $0x2b8] sm:$0x1] %vm43_vm2, %v7038_v0  ;;  %vm1135_vm6 = vcmask 261312   ;;  %vm1392_vm7 = vcmask 326912  }
  0x15   :  { %71 = vst.msk [vmem:[#allocation2 + $0x2d0] sm:$0x1] %vm43_vm2, %v7038_v0  ;;  %72 = vst.msk [vmem:[#allocation2 + $0x2e8] sm:$0x1] %vm43_vm2, %v7038_v0  ;;  %vm1649_vm8 = vcmask 392512   ;;  %vm1907_vm9 = vcmask 458112  }
  0x16   :  { %73 = vst.msk [vmem:[#allocation2 + $0x300] sm:$0x1] %vm43_vm2, %v7038_v0  ;;  %74 = vst.msk [vmem:[#allocation2 + $0x318] sm:$0x1] %vm43_vm2, %v7038_v0  ;;  %vm2164_vm10 = vcmask 523712   ;;  %vm2421_vm11 = vcmask 589312  }
  0x17   :  { %75 = vst.msk [vmem:[#allocation2 + $0x330] sm:$0x1] %vm43_vm2, %v7038_v0  ;;  %77 = vst.msk [vmem:[#allocation2 + $0x41] sm:$0x1] %vm43_vm2, %v7038_v0 }
  0x18   :  { %78 = vst.msk [vmem:[#allocation2 + $0x59] sm:$0x1] %vm43_vm2, %v7038_v0  ;;  %79 = vst.msk [vmem:[#allocation2 + $0x71] sm:$0x1] %vm43_vm2, %v7038_v0 }
  0x19   :  { %80 = vst.msk [vmem:[#allocation2 + $0x89] sm:$0x1] %vm43_vm2, %v7038_v0  ;;  %81 = vst.msk [vmem:[#allocation2 + $0xa1] sm:$0x1] %vm43_vm2, %v7038_v0 }
  0x1a   :  { %82 = vst.msk [vmem:[#allocation2 + $0xb9] sm:$0x1] %vm43_vm2, %v7038_v0  ;;  %83 = vst.msk [vmem:[#allocation2 + $0xd1] sm:$0x1] %vm43_vm2, %v7038_v0 }
  0x1b   :  { %84 = vst.msk [vmem:[#allocation2 + $0xe9] sm:$0x1] %vm43_vm2, %v7038_v0  ;;  %85 = vst.msk [vmem:[#allocation2 + $0x101] sm:$0x1] %vm43_vm2, %v7038_v0 }
  0x1c   :  { %86 = vst.msk [vmem:[#allocation2 + $0x119] sm:$0x1] %vm43_vm2, %v7038_v0  ;;  %87 = vst.msk [vmem:[#allocation2 + $0x131] sm:$0x1] %vm43_vm2, %v7038_v0 }
  0x1d   :  { %88 = vst.msk [vmem:[#allocation2 + $0x149] sm:$0x1] %vm43_vm2, %v7038_v0  ;;  %89 = vst.msk [vmem:[#allocation2 + $0x161] sm:$0x1] %vm43_vm2, %v7038_v0 }
  0x1e   :  { %90 = vst.msk [vmem:[#allocation2 + $0x179] sm:$0x1] %vm43_vm2, %v7038_v0  ;;  %91 = vst.msk [vmem:[#allocation2 + $0x191] sm:$0x1] %vm43_vm2, %v7038_v0 }
  0x1f   :  { %92 = vst.msk [vmem:[#allocation2 + $0x1d9] sm:$0x1] %vm43_vm2, %v7038_v0  ;;  %93 = vst.msk [vmem:[#allocation2 + $0x1f1] sm:$0x1] %vm43_vm2, %v7038_v0 }
  0x20   :  { %94 = vst.msk [vmem:[#allocation2 + $0x209] sm:$0x1] %vm43_vm2, %v7038_v0  ;;  %95 = vst.msk [vmem:[#allocation2 + $0x221] sm:$0x1] %vm43_vm2, %v7038_v0 }
  0x21   :  { %96 = vst.msk [vmem:[#allocation2 + $0x239] sm:$0x1] %vm43_vm2, %v7038_v0  ;;  %97 = vst.msk [vmem:[#allocation2 + $0x251] sm:$0x1] %vm43_vm2, %v7038_v0 }
  0x22   :  { %98 = vst.msk [vmem:[#allocation2 + $0x269] sm:$0x1] %vm43_vm2, %v7038_v0  ;;  %99 = vst.msk [vmem:[#allocation2 + $0x281] sm:$0x1] %vm43_vm2, %v7038_v0 }
  0x23   :  { %100 = vst.msk [vmem:[#allocation2 + $0x299] sm:$0x1] %vm43_vm2, %v7038_v0  ;;  %101 = vst.msk [vmem:[#allocation2 + $0x2b1] sm:$0x1] %vm43_vm2, %v7038_v0 }
  0x24   :  { %102 = vst.msk [vmem:[#allocation2 + $0x2c9] sm:$0x1] %vm43_vm2, %v7038_v0  ;;  %103 = vst.msk [vmem:[#allocation2 + $0x2e1] sm:$0x1] %vm43_vm2, %v7038_v0 }
  0x25   :  { %104 = vst.msk [vmem:[#allocation2 + $0x2f9] sm:$0x1] %vm43_vm2, %v7038_v0  ;;  %105 = vst.msk [vmem:[#allocation2 + $0x311] sm:$0x1] %vm43_vm2, %v7038_v0 }
  0x26   :  { %106 = vst.msk [vmem:[#allocation2 + $0x329] sm:$0x1] %vm43_vm2, %v7038_v0  ;;  %107 = vst.msk [vmem:[#allocation2 + $0x341] sm:$0x1] %vm43_vm2, %v7038_v0  ;;  %v177_v0 = vld [vmem:[%s11791_s0 + $0x120] sm:$0xff] }
  0x27   :  { %207 = vst.msk [vmem:[#allocation2 + $0x31] sm:$0xff] %vm27_vm0, %v7111_v1  ;;  %208 = vst.msk [vmem:[#allocation2 + $0x39] sm:$0xff] %vm27_vm0, %v7116_v2  ;;  %v178_v1 = vld [vmem:[%s11791_s0 + $0x128] sm:$0xff]  ;;  %v179_v2 = vld [vmem:[%s11791_s0 + $0x130] sm:$0xff] }
  0x28   :  { %205 = vst.msk [vmem:[#allocation2 + $0x19] sm:$0xff] %vm27_vm0, %v7121_v3  ;;  %206 = vst.msk [vmem:[#allocation2 + $0x21] sm:$0xff] %vm27_vm0, %v142_v4  ;;  %v180_v3 = vld [vmem:[%s11791_s0 + $0x138] sm:$0xff]  ;;  %v181_v4 = vld [vmem:[%s11791_s0 + $0x140] sm:$0xff] }
  0x29   :  { %209 = vst.msk [vmem:[#allocation2 + $0x49] sm:$0xff] %vm27_vm0, %v145_v5  ;;  %210 = vst.msk [vmem:[#allocation2 + $0x51] sm:$0xff] %vm27_vm0, %v146_v6  ;;  %v182_v5 = vld [vmem:[%s11791_s0 + $0x148] sm:$0xff] }
  0x2a   :  { %109 = vst.msk [vmem:[#allocation3] sm:$0xff] %vm108_vm3, %v7039_v10  ;;  %110 = vst.msk [vmem:[#allocation3 + $0x8] sm:$0xff] %vm108_vm3, %v7039_v10 }
  0x2b   :  { %111 = vst.msk [vmem:[#allocation3 + $0x10] sm:$0xff] %vm108_vm3, %v7039_v10  ;;  %112 = vst.msk [vmem:[#allocation3 + $0x18] sm:$0xff] %vm108_vm3, %v7039_v10 }
  0x2c   :  { %113 = vst.msk [vmem:[#allocation3 + $0x20] sm:$0xff] %vm108_vm3, %v7039_v10  ;;  %114 = vst.msk [vmem:[#allocation3 + $0x28] sm:$0xff] %vm108_vm3, %v7039_v10 }
  0x2d   :  { %115 = vst.msk [vmem:[#allocation3 + $0x30] sm:$0xff] %vm108_vm3, %v7039_v10  ;;  %116 = vst.msk [vmem:[#allocation3 + $0x38] sm:$0xff] %vm108_vm3, %v7039_v10 }
  0x2e   :  { %117 = vst.msk [vmem:[#allocation3 + $0x40] sm:$0xff] %vm108_vm3, %v7039_v10  ;;  %118 = vst.msk [vmem:[#allocation3 + $0x48] sm:$0xff] %vm108_vm3, %v7039_v10  ;;  %v401_v27 = vld [vmem:[#allocation2 + $0x31] sm:$0xff]  ;;  %v402_v28 = vld [vmem:[#allocation2 + $0x39] sm:$0xff] }
  0x2f   :  { %119 = vst.msk [vmem:[#allocation3 + $0x50] sm:$0xff] %vm108_vm3, %v7039_v10  ;;  %120 = vst.msk [vmem:[#allocation3 + $0x58] sm:$0xff] %vm108_vm3, %v7039_v10  ;;  %v399_v29 = vld [vmem:[#allocation2 + $0x19] sm:$0xff]  ;;  %v7365_v30 = vpack.c.bf16 %v402_v28, %v401_v27  ;;  %v400_v31 = vld [vmem:[#allocation2 + $0x21] sm:$0xff] }
  0x30   :  { %121 = vst.msk [vmem:[#allocation3 + $0x60] sm:$0xff] %vm108_vm3, %v7039_v10  ;;  %122 = vst.msk [vmem:[#allocation3 + $0x68] sm:$0xff] %vm108_vm3, %v7039_v10  ;;  %v403_v32 = vld [vmem:[#allocation2 + $0x49] sm:$0xff]  ;;  %v404_v33 = vld [vmem:[#allocation2 + $0x51] sm:$0xff]  ;;  %v7368_v34 = vpack.c.bf16 %v400_v31, %v399_v29 }
  0x31   :  { %123 = vst.msk [vmem:[#allocation3 + $0x70] sm:$0xff] %vm108_vm3, %v7039_v10  ;;  %124 = vst.msk [vmem:[#allocation3 + $0x78] sm:$0xff] %vm108_vm3, %v7039_v10  ;;  %529 = vrot.lane.b32.xlu1 %v7365_v30, %s7040_s22  ;;  %v7372_v35 = vpack.c.bf16 %v404_v33, %v403_v32  ;;  %v189_v31 = vld [vmem:[%s11791_s0 + $0x180] sm:$0xff]  ;;  %v190_v32 = vld [vmem:[%s11791_s0 + $0x188] sm:$0xff] }
  0x32   :  { %125 = vst.msk [vmem:[#allocation3 + $0x80] sm:$0xff] %vm108_vm3, %v7039_v10  ;;  %126 = vst.msk [vmem:[#allocation3 + $0x88] sm:$0xff] %vm108_vm3, %v7039_v10  ;;  %527 = vrot.lane.b32.xlu0 %v7368_v34, %s7040_s22  ;;  %v191_v33 = vld [vmem:[%s11791_s0 + $0x190] sm:$0xff] }
  0x33   :  { %127 = vst.msk [vmem:[#allocation3 + $0x90] sm:$0xff] %vm108_vm3, %v7039_v10  ;;  %128 = vst.msk [vmem:[#allocation3 + $0x98] sm:$0xff] %vm108_vm3, %v7039_v10 }
  0x34   :  { %129 = vst.msk [vmem:[#allocation3 + $0xa0] sm:$0xff] %vm108_vm3, %v7039_v10  ;;  %130 = vst.msk [vmem:[#allocation3 + $0xa8] sm:$0xff] %vm108_vm3, %v7039_v10 }
  0x35   :  { %131 = vst.msk [vmem:[#allocation3 + $0xb0] sm:$0xff] %vm108_vm3, %v7039_v10  ;;  %132 = vst.msk [vmem:[#allocation3 + $0xb8] sm:$0xff] %vm108_vm3, %v7039_v10  ;;  %531 = vrot.lane.b32.xlu1 %v7372_v35, %s7040_s22 }
  0x36   :  { %133 = vst.msk [vmem:[#allocation3 + $0xc0] sm:$0xff] %vm108_vm3, %v7039_v10  ;;  %134 = vst.msk [vmem:[#allocation3 + $0xc8] sm:$0xff] %vm108_vm3, %v7039_v10 }
  0x37   :  { %135 = vst.msk [vmem:[#allocation3 + $0xd0] sm:$0xff] %vm108_vm3, %v7039_v10  ;;  %136 = vst.msk [vmem:[#allocation3 + $0xd8] sm:$0xff] %vm108_vm3, %v7039_v10 }
  0x38   :  { %137 = vst.msk [vmem:[#allocation3 + $0xe0] sm:$0xff] %vm108_vm3, %v7039_v10  ;;  %138 = vst.msk [vmem:[#allocation3 + $0xe8] sm:$0xff] %vm108_vm3, %v7039_v10 }
  0x39   :  { %139 = vst.msk [vmem:[#allocation3 + $0xf0] sm:$0xff] %vm108_vm3, %v7039_v10  ;;  %140 = vst.msk [vmem:[#allocation3 + $0xf8] sm:$0xff] %vm108_vm3, %v7039_v10 }
  0x3a   :  { %211 = vst.msk [vmem:[#allocation2 + $0x61] sm:$0xff] %vm27_vm0, %v147_v7  ;;  %212 = vst.msk [vmem:[#allocation2 + $0x69] sm:$0xff] %vm27_vm0, %v148_v8  ;;  %v183_v7 = vld [vmem:[%s11791_s0 + $0x150] sm:$0xff]  ;;  %v184_v8 = vld [vmem:[%s11791_s0 + $0x158] sm:$0xff] }
  0x3b   :  { %213 = vst.msk [vmem:[#allocation2 + $0x79] sm:$0xff] %vm27_vm0, %v149_v9  ;;  %214 = vst.msk [vmem:[#allocation2 + $0x81] sm:$0xff] %vm27_vm0, %v150_v11  ;;  %v185_v9 = vld [vmem:[%s11791_s0 + $0x160] sm:$0xff] }
  0x3c   :  { %215 = vst.msk [vmem:[#allocation2 + $0x91] sm:$0xff] %vm27_vm0, %v151_v12  ;;  %216 = vst.msk [vmem:[#allocation2 + $0x99] sm:$0xff] %vm27_vm0, %v152_v13  ;;  %v186_v13 = vld [vmem:[%s11791_s0 + $0x168] sm:$0xff] }
  0x3d   :  { %217 = vst.msk [vmem:[#allocation2 + $0xa9] sm:$0xff] %vm27_vm0, %v153_v14  ;;  %218 = vst.msk [vmem:[#allocation2 + $0xb1] sm:$0xff] %vm27_vm0, %v154_v15 }
  0x3e   :  { %219 = vst.msk [vmem:[#allocation2 + $0xc1] sm:$0xff] %vm27_vm0, %v155_v16  ;;  %220 = vst.msk [vmem:[#allocation2 + $0xc9] sm:$0xff] %vm27_vm0, %v156_v17  ;;  %v187_v17 = vld [vmem:[%s11791_s0 + $0x170] sm:$0xff] }
  0x3f   :  { %221 = vst.msk [vmem:[#allocation2 + $0xd9] sm:$0xff] %vm27_vm0, %v157_v18  ;;  %222 = vst.msk [vmem:[#allocation2 + $0xe1] sm:$0xff] %vm27_vm0, %v158_v19  ;;  %v188_v18 = vld [vmem:[%s11791_s0 + $0x178] sm:$0xff] }
  0x40   :  { %223 = vst.msk [vmem:[#allocation2 + $0xf1] sm:$0xff] %vm27_vm0, %v159_v20  ;;  %224 = vst.msk [vmem:[#allocation2 + $0xf9] sm:$0xff] %vm27_vm0, %v160_v21 }
  0x41   :  { %225 = vst.msk [vmem:[#allocation2 + $0x109] sm:$0xff] %vm27_vm0, %v161_v22  ;;  %226 = vst.msk [vmem:[#allocation2 + $0x111] sm:$0xff] %vm27_vm0, %v162_v25  ;;  %v405_v36 = vld [vmem:[#allocation2 + $0x61] sm:$0xff]  ;;  %v406_v37 = vld [vmem:[#allocation2 + $0x69] sm:$0xff] }
  0x42   :  { %v407_v38 = vld [vmem:[#allocation2 + $0x79] sm:$0xff]  ;;  %v408_v39 = vld [vmem:[#allocation2 + $0x81] sm:$0xff]  ;;  %v7376_v40 = vpack.c.bf16 %v406_v37, %v405_v36  ;;  %227 = vst.msk [vmem:[#allocation2 + $0x121] sm:$0xff] %vm27_vm0, %v163_v46  ;;  %228 = vst.msk [vmem:[#allocation2 + $0x129] sm:$0xff] %vm27_vm0, %v164_v47 }
  0x43   :  { %v409_v41 = vld [vmem:[#allocation2 + $0x91] sm:$0xff]  ;;  %v410_v42 = vld [vmem:[#allocation2 + $0x99] sm:$0xff]  ;;  %v466_v44 = vpack.c.bf16 %v408_v39, %v407_v38  ;;  %229 = vst.msk [vmem:[#allocation2 + $0x139] sm:$0xff] %vm27_vm0, %v165_v48  ;;  %230 = vst.msk [vmem:[#allocation2 + $0x141] sm:$0xff] %vm27_vm0, %v166_v49 }
  0x44   :  { %v411_v43 = vld [vmem:[#allocation2 + $0xa9] sm:$0xff]  ;;  %v412_v45 = vld [vmem:[#allocation2 + $0xb1] sm:$0xff]  ;;  %231 = vst.msk [vmem:[#allocation2 + $0x151] sm:$0xff] %vm27_vm0, %v167_v50  ;;  %533 = vrot.lane.b32.xlu0 %v7376_v40, %s7040_s22  ;;  %v467_v56 = vpack.c.bf16 %v410_v42, %v409_v41  ;;  %232 = vst.msk [vmem:[#allocation2 + $0x159] sm:$0xff] %vm27_vm0, %v168_v53 }
  0x45   :  { %v413_v51 = vld [vmem:[#allocation2 + $0xc1] sm:$0xff]  ;;  %v414_v52 = vld [vmem:[#allocation2 + $0xc9] sm:$0xff]  ;;  %233 = vst.msk [vmem:[#allocation2 + $0x169] sm:$0xff] %vm27_vm0, %v169_v54  ;;  %234 = vst.msk [vmem:[#allocation2 + $0x171] sm:$0xff] %vm27_vm0, %v170_v55  ;;  %535 = vrot.lane.b32.xlu1 %v466_v44, %s7040_s22  ;;  %v468_v60 = vpack.c.bf16 %v412_v45, %v411_v43 }
  0x46   :  { %v415_v57 = vld [vmem:[#allocation2 + $0xd9] sm:$0xff]  ;;  %v416_v58 = vld [vmem:[#allocation2 + $0xe1] sm:$0xff]  ;;  %237 = vst.msk [vmem:[#allocation2 + $0x1c9] sm:$0xff] %vm27_vm0, %v173_v59  ;;  %238 = vst.msk [vmem:[#allocation2 + $0x1d1] sm:$0xff] %vm27_vm0, %v174_v61  ;;  %v469_v6 = vpack.c.bf16 %v414_v52, %v413_v51 }
  0x47   :  { %239 = vst.msk [vmem:[#allocation2 + $0x1e1] sm:$0xff] %vm27_vm0, %v175_v62  ;;  %240 = vst.msk [vmem:[#allocation2 + $0x1e9] sm:$0xff] %vm27_vm0, %v176_v63  ;;  %v470_v10 = vpack.c.bf16 %v416_v58, %v415_v57  ;;  %v417_v11 = vld [vmem:[#allocation2 + $0xf1] sm:$0xff]  ;;  %v418_v12 = vld [vmem:[#allocation2 + $0xf9] sm:$0xff] }
  0x48   :  { %241 = vst.msk [vmem:[#allocation2 + $0x1f9] sm:$0xff] %vm27_vm0, %v177_v0  ;;  %242 = vst.msk [vmem:[#allocation2 + $0x201] sm:$0xff] %vm27_vm0, %v178_v1  ;;  %537 = vrot.lane.b32.xlu0 %v467_v56, %s7040_s22  ;;  %v419_v14 = vld [vmem:[#allocation2 + $0x109] sm:$0xff]  ;;  %v420_v15 = vld [vmem:[#allocation2 + $0x111] sm:$0xff]  ;;  %v471_v16 = vpack.c.bf16 %v418_v12, %v417_v11 }
  0x49   :  { %243 = vst.msk [vmem:[#allocation2 + $0x211] sm:$0xff] %vm27_vm0, %v179_v2  ;;  %244 = vst.msk [vmem:[#allocation2 + $0x219] sm:$0xff] %vm27_vm0, %v180_v3  ;;  %539 = vrot.lane.b32.xlu1 %v468_v60, %s7040_s22  ;;  %v472_v19 = vpack.c.bf16 %v420_v15, %v419_v14  ;;  %v421_v20 = vld [vmem:[#allocation2 + $0x121] sm:$0xff]  ;;  %v422_v21 = vld [vmem:[#allocation2 + $0x129] sm:$0xff] }
  0x4a   :  { %245 = vst.msk [vmem:[#allocation2 + $0x229] sm:$0xff] %vm27_vm0, %v181_v4  ;;  %246 = vst.msk [vmem:[#allocation2 + $0x231] sm:$0xff] %vm27_vm0, %v182_v5  ;;  %v423_v22 = vld [vmem:[#allocation2 + $0x139] sm:$0xff]  ;;  %v424_v23 = vld [vmem:[#allocation2 + $0x141] sm:$0xff]  ;;  %v473_v24 = vpack.c.bf16 %v422_v21, %v421_v20 }
  0x4b   :  { %247 = vst.msk [vmem:[#allocation2 + $0x241] sm:$0xff] %vm27_vm0, %v183_v7  ;;  %248 = vst.msk [vmem:[#allocation2 + $0x249] sm:$0xff] %vm27_vm0, %v184_v8  ;;  %v425_v25 = vld [vmem:[#allocation2 + $0x151] sm:$0xff]  ;;  %v426_v26 = vld [vmem:[#allocation2 + $0x159] sm:$0xff]  ;;  %v474_v28 = vpack.c.bf16 %v424_v23, %v423_v22 }
  0x4c   :  { %249 = vst.msk [vmem:[#allocation2 + $0x259] sm:$0xff] %vm27_vm0, %v185_v9  ;;  %250 = vst.msk [vmem:[#allocation2 + $0x261] sm:$0xff] %vm27_vm0, %v186_v13  ;;  %541 = vrot.lane.b32.xlu0 %v469_v6, %s7040_s22  ;;  %v427_v27 = vld [vmem:[#allocation2 + $0x169] sm:$0xff]  ;;  %v428_v29 = vld [vmem:[#allocation2 + $0x171] sm:$0xff]  ;;  %v475_v43 = vpack.c.bf16 %v426_v26, %v425_v25 }
  0x4d   :  { %543 = vrot.lane.b32.xlu1 %v470_v10, %s7040_s22  ;;  %251 = vst.msk [vmem:[#allocation2 + $0x271] sm:$0xff] %vm27_vm0, %v187_v17  ;;  %252 = vst.msk [vmem:[#allocation2 + $0x279] sm:$0xff] %vm27_vm0, %v188_v18  ;;  %v192_v36 = vld [vmem:[%s11791_s0 + $0x198] sm:$0xff]  ;;  %v193_v37 = vld [vmem:[%s11791_s0 + $0x1a0] sm:$0xff]  ;;  %v476_v47 = vpack.c.bf16 %v428_v29, %v427_v27 }
  0x4e   :  { %253 = vst.msk [vmem:[#allocation2 + $0x289] sm:$0xff] %vm27_vm0, %v189_v31  ;;  %254 = vst.msk [vmem:[#allocation2 + $0x291] sm:$0xff] %vm27_vm0, %v190_v32  ;;  %v429_v38 = vld [vmem:[#allocation2 + $0x1b1] sm:$0xff]  ;;  %v194_v39 = vld [vmem:[%s11791_s0 + $0x1a8] sm:$0xff] }
  0x4f   :  { %255 = vst.msk [vmem:[#allocation2 + $0x2a1] sm:$0xff] %vm27_vm0, %v191_v33  ;;  %256 = vst.msk [vmem:[#allocation2 + $0x2a9] sm:$0xff] %vm27_vm0, %v192_v36  ;;  %v195_v41 = vld [vmem:[%s11791_s0 + $0x1b0] sm:$0xff]  ;;  %v196_v42 = vld [vmem:[%s11791_s0 + $0x1b8] sm:$0xff] }
  0x50   :  { %545 = vrot.lane.b32.xlu0 %v471_v16, %s7040_s22  ;;  %257 = vst.msk [vmem:[#allocation2 + $0x2b9] sm:$0xff] %vm27_vm0, %v193_v37  ;;  %v430_v44 = vld [vmem:[#allocation2 + $0x1b9] sm:$0xff]  ;;  %v431_v45 = vld [vmem:[#allocation2 + $0x1c9] sm:$0xff]  ;;  %258 = vst.msk [vmem:[#allocation2 + $0x2c1] sm:$0xff] %vm27_vm0, %v194_v39 }
  0x51   :  { %547 = vrot.lane.b32.xlu1 %v472_v19, %s7040_s22  ;;  %259 = vst.msk [vmem:[#allocation2 + $0x2d1] sm:$0xff] %vm27_vm0, %v195_v41  ;;  %260 = vst.msk [vmem:[#allocation2 + $0x2d9] sm:$0xff] %vm27_vm0, %v196_v42  ;;  %v197_v46 = vld [vmem:[%s11791_s0 + $0x1c0] sm:$0xff]  ;;  %v198_v48 = vld [vmem:[%s11791_s0 + $0x1c8] sm:$0xff]  ;;  %v477_v54 = vpack.c.bf16 %v430_v44, %v429_v38 }
  0x52   :  { %261 = vst.msk [vmem:[#allocation2 + $0x2e9] sm:$0xff] %vm27_vm0, %v197_v46  ;;  %v199_v49 = vld [vmem:[%s11791_s0 + $0x1d0] sm:$0xff]  ;;  %v200_v50 = vld [vmem:[%s11791_s0 + $0x1d8] sm:$0xff]  ;;  %262 = vst.msk [vmem:[#allocation2 + $0x2f1] sm:$0xff] %vm27_vm0, %v198_v48 }
  0x53   :  { %v432_v51 = vld [vmem:[#allocation2 + $0x1d1] sm:$0xff]  ;;  %263 = vst.msk [vmem:[#allocation2 + $0x301] sm:$0xff] %vm27_vm0, %v199_v49  ;;  %264 = vst.msk [vmem:[#allocation2 + $0x309] sm:$0xff] %vm27_vm0, %v200_v50  ;;  %v201_v52 = vld [vmem:[%s11791_s0 + $0x1e0] sm:$0xff] }
  0x54   :  { %549 = vrot.lane.b32.xlu0 %v473_v24, %s7040_s22  ;;  %v202_v53 = vld [vmem:[%s11791_s0 + $0x1e8] sm:$0xff]  ;;  %265 = vst.msk [vmem:[#allocation2 + $0x319] sm:$0xff] %vm27_vm0, %v201_v52  ;;  %v478_v55 = vpack.c.bf16 %v432_v51, %v431_v45  ;;  %v435_v58 = vld [vmem:[#allocation2 + $0x1f9] sm:$0xff]  ;;  %v437_v62 = vld [vmem:[#allocation2 + $0x211] sm:$0xff] }
  0x55   :  { %551 = vrot.lane.b32.xlu1 %v474_v28, %s7040_s22  ;;  %266 = vst.msk [vmem:[#allocation2 + $0x321] sm:$0xff] %vm27_vm0, %v202_v53  ;;  %v433_v56 = vld [vmem:[#allocation2 + $0x1e1] sm:$0xff]  ;;  %v434_v57 = vld [vmem:[#allocation2 + $0x1e9] sm:$0xff]  ;;  %v438_v63 = vld [vmem:[#allocation2 + $0x219] sm:$0xff] }
  0x56   :  { %v436_v59 = vld [vmem:[#allocation2 + $0x201] sm:$0xff]  ;;  %v479_v60 = vpack.c.bf16 %v434_v57, %v433_v56  ;;  %v439_v0 = vld [vmem:[#allocation2 + $0x229] sm:$0xff]  ;;  %v440_v1 = vld [vmem:[#allocation2 + $0x231] sm:$0xff]  ;;  %v481_v2 = vpack.c.bf16 %v438_v63, %v437_v62 }
  0x57   :  { %v480_v61 = vpack.c.bf16 %v436_v59, %v435_v58  ;;  %v482_v3 = vpack.c.bf16 %v440_v1, %v439_v0  ;;  %v441_v4 = vld [vmem:[#allocation2 + $0x241] sm:$0xff]  ;;  %v442_v5 = vld [vmem:[#allocation2 + $0x249] sm:$0xff]  ;;  %v443_v6 = vld [vmem:[#allocation2 + $0x259] sm:$0xff] }
  0x58   :  { %553 = vrot.lane.b32.xlu0 %v475_v43, %s7040_s22  ;;  %v444_v7 = vld [vmem:[#allocation2 + $0x261] sm:$0xff]  ;;  %v483_v8 = vpack.c.bf16 %v442_v5, %v441_v4  ;;  %v445_v9 = vld [vmem:[#allocation2 + $0x271] sm:$0xff]  ;;  %v446_v10 = vld [vmem:[#allocation2 + $0x279] sm:$0xff] }
  0x59   :  { %555 = vrot.lane.b32.xlu1 %v476_v47, %s7040_s22  ;;  %v447_v11 = vld [vmem:[#allocation2 + $0x289] sm:$0xff]  ;;  %v484_v12 = vpack.c.bf16 %v444_v7, %v443_v6  ;;  %v448_v13 = vld [vmem:[#allocation2 + $0x291] sm:$0xff]  ;;  %v912_v15 = vld [vmem:[#allocation2 + $0x20] sm:$0xff]  ;;  %v485_v26 = vpack.c.bf16 %v446_v10, %v445_v9 }
  0x5a   :  { %v911_v14 = vld [vmem:[#allocation2 + $0x18] sm:$0xff]  ;;  %v913_v17 = vld [vmem:[#allocation2 + $0x30] sm:$0xff]  ;;  %v1685_v19 = vld [vmem:[#allocation2 + $0x48] sm:$0xff]  ;;  %v486_v37 = vpack.c.bf16 %v448_v13, %v447_v11 }
  0x5b   :  { %v7551_v16 = vpack.c.bf16 %v912_v15, %v911_v14  ;;  %v914_v18 = vld [vmem:[#allocation2 + $0x38] sm:$0xff]  ;;  %v449_v20 = vld [vmem:[#allocation2 + $0x2a1] sm:$0xff]  ;;  %v450_v21 = vld [vmem:[#allocation2 + $0x2a9] sm:$0xff] }
  0x5c   :  { %557 = vrot.lane.b32.xlu0 %v477_v54, %s7040_s22  ;;  %v7553_v22 = vpack.c.bf16 %v914_v18, %v913_v17  ;;  %v1686_v23 = vld [vmem:[#allocation2 + $0x50] sm:$0xff]  ;;  %v270_v24 = vld [vmem:[#allocation2 + $0x8] sm:$0xff]  ;;  %v269_v25 = vld [vmem:[#allocation2] sm:$0xff]  ;;  %v487_v52 = vpack.c.bf16 %v450_v21, %v449_v20 }
  0x5d   :  { %559 = vrot.lane.b32.xlu1 %v478_v55, %s7040_s22  ;;  %v7556_v27 = vld [vmem:[#allocation2 + $0x2b9] sm:$0xff]  ;;  %v7558_v28 = vld [vmem:[#allocation2 + $0x2c1] sm:$0xff]  ;;  %v7560_v29 = vpack.c.bf16 %v1686_v23, %v1685_v19  ;;  %v333_v31 = vpack.c.bf16 %v270_v24, %v269_v25  ;;  %366 = vst.msk [vmem:[#allocation3 + $0x8] sm:$0xff] %vm27_vm0, %v7551_v16  ;;  %v281_v41 = vld [vmem:[#allocation2 + $0x90] sm:$0xff] }
  0x5e   :  { %v917_v32 = vld [vmem:[#allocation2 + $0x60] sm:$0xff]  ;;  %v918_v33 = vld [vmem:[#allocation2 + $0x68] sm:$0xff]  ;;  %v279_v36 = vld [vmem:[#allocation2 + $0x78] sm:$0xff]  ;;  %367 = vst.msk [vmem:[#allocation3 + $0x10] sm:$0xff] %vm27_vm0, %v7553_v22  ;;  %v488_v58 = vpack.c.bf16 %v7558_v28, %v7556_v27 }
  0x5f   :  { %v7567_v38 = vpack.c.bf16 %v918_v33, %v917_v32  ;;  %v280_v39 = vld [vmem:[#allocation2 + $0x80] sm:$0xff]  ;;  %v282_v42 = vld [vmem:[#allocation2 + $0x98] sm:$0xff]  ;;  %365 = vst.msk [vmem:[#allocation3] sm:$0xff] %vm27_vm0, %v333_v31  ;;  %368 = vst.msk [vmem:[#allocation3 + $0x18] sm:$0xff] %vm27_vm0, %v7560_v29 }
  0x60   :  { %561 = vrot.lane.b32.xlu0 %v479_v60, %s7040_s22  ;;  %v7572_v43 = vpack.c.bf16 %v280_v39, %v279_v36  ;;  %v7574_v44 = vpack.c.bf16 %v282_v42, %v281_v41  ;;  %v283_v45 = vld [vmem:[#allocation2 + $0xa8] sm:$0xff]  ;;  %v284_v46 = vld [vmem:[#allocation2 + $0xb0] sm:$0xff]  ;;  %v285_v47 = vld [vmem:[#allocation2 + $0xc0] sm:$0xff] }
  0x61   :  { %563 = vrot.lane.b32.xlu1 %v480_v61, %s7040_s22  ;;  %369 = vst.msk [vmem:[#allocation3 + $0x20] sm:$0xff] %vm27_vm0, %v7567_v38  ;;  %v7578_v48 = vpack.c.bf16 %v284_v46, %v283_v45  ;;  %v286_v49 = vld [vmem:[#allocation2 + $0xc8] sm:$0xff]  ;;  %v287_v50 = vld [vmem:[#allocation2 + $0xd8] sm:$0xff]  ;;  %v288_v51 = vld [vmem:[#allocation2 + $0xe0] sm:$0xff] }
  0x62   :  { %v453_v53 = vld [vmem:[#allocation2 + $0x2d1] sm:$0xff]  ;;  %v454_v54 = vld [vmem:[#allocation2 + $0x2d9] sm:$0xff]  ;;  %370 = vst.msk [vmem:[#allocation3 + $0x28] sm:$0xff] %vm27_vm0, %v7572_v43  ;;  %371 = vst.msk [vmem:[#allocation3 + $0x30] sm:$0xff] %vm27_vm0, %v7574_v44  ;;  %v7585_v55 = vpack.c.bf16 %v286_v49, %v285_v47  ;;  %v7587_v56 = vpack.c.bf16 %v288_v51, %v287_v50 }
  0x63   :  { %v289_v57 = vld [vmem:[#allocation2 + $0xf0] sm:$0xff]  ;;  %372 = vst.msk [vmem:[#allocation3 + $0x38] sm:$0xff] %vm27_vm0, %v7578_v48  ;;  %v290_v59 = vld [vmem:[#allocation2 + $0xf8] sm:$0xff]  ;;  %v291_v60 = vld [vmem:[#allocation2 + $0x108] sm:$0xff] }
  0x64   :  { %565 = vrot.lane.b32.xlu0 %v481_v2, %s7040_s22  ;;  %v292_v61 = vld [vmem:[#allocation2 + $0x110] sm:$0xff]  ;;  %373 = vst.msk [vmem:[#allocation3 + $0x40] sm:$0xff] %vm27_vm0, %v7585_v55  ;;  %374 = vst.msk [vmem:[#allocation3 + $0x48] sm:$0xff] %vm27_vm0, %v7587_v56  ;;  %v7598_v0 = vpack.c.bf16 %v290_v59, %v289_v57  ;;  %v293_v2 = vld [vmem:[#allocation2 + $0x120] sm:$0xff] }
  0x65   :  { %567 = vrot.lane.b32.xlu1 %v482_v3, %s7040_s22  ;;  %v455_v62 = vld [vmem:[#allocation2 + $0x2e9] sm:$0xff]  ;;  %v456_v63 = vld [vmem:[#allocation2 + $0x2f1] sm:$0xff]  ;;  %v7600_v1 = vpack.c.bf16 %v292_v61, %v291_v60  ;;  %v457_v3 = vld [vmem:[#allocation2 + $0x301] sm:$0xff] }
  0x66   :  { %v458_v4 = vld [vmem:[#allocation2 + $0x309] sm:$0xff]  ;;  %v295_v6 = vld [vmem:[#allocation2 + $0x138] sm:$0xff]  ;;  %v296_v7 = vld [vmem:[#allocation2 + $0x140] sm:$0xff]  ;;  %375 = vst.msk [vmem:[#allocation3 + $0x50] sm:$0xff] %vm27_vm0, %v7598_v0  ;;  %v490_v15 = vpack.c.bf16 %v456_v63, %v455_v62 }
  0x67   :  { %v294_v5 = vld [vmem:[#allocation2 + $0x128] sm:$0xff]  ;;  %v7603_v9 = vld [vmem:[#allocation2 + $0x319] sm:$0xff]  ;;  %376 = vst.msk [vmem:[#allocation3 + $0x58] sm:$0xff] %vm27_vm0, %v7600_v1  ;;  %v7611_v11 = vpack.c.bf16 %v296_v7, %v295_v6  ;;  %v300_v18 = vld [vmem:[#allocation2 + $0x170] sm:$0xff]  ;;  %v491_v36 = vpack.c.bf16 %v458_v4, %v457_v3 }
  0x68   :  { %569 = vrot.lane.b32.xlu0 %v483_v8, %s7040_s22  ;;  %v489_v8 = vpack.c.bf16 %v454_v54, %v453_v53  ;;  %v7609_v10 = vpack.c.bf16 %v294_v5, %v293_v2  ;;  %v298_v13 = vld [vmem:[#allocation2 + $0x158] sm:$0xff]  ;;  %v299_v14 = vld [vmem:[#allocation2 + $0x168] sm:$0xff]  ;;  %v301_v19 = vld [vmem:[#allocation2 + $0x1b0] sm:$0xff] }
  0x69   :  { %571 = vrot.lane.b32.xlu1 %v484_v12, %s7040_s22  ;;  %v297_v12 = vld [vmem:[#allocation2 + $0x150] sm:$0xff]  ;;  %v302_v20 = vld [vmem:[#allocation2 + $0x1b8] sm:$0xff]  ;;  %v460_v21 = vld [vmem:[#allocation2 + $0x321] sm:$0xff]  ;;  %378 = vst.msk [vmem:[#allocation3 + $0x68] sm:$0xff] %vm27_vm0, %v7611_v11  ;;  %v7620_v23 = vpack.c.bf16 %v300_v18, %v299_v14 }
  0x6a   :  { %v7614_v17 = vpack.c.bf16 %v298_v13, %v297_v12  ;;  %377 = vst.msk [vmem:[#allocation3 + $0x60] sm:$0xff] %vm27_vm0, %v7609_v10  ;;  %v349_v24 = vpack.c.bf16 %v302_v20, %v301_v19  ;;  %v303_v25 = vld [vmem:[#allocation2 + $0x1c8] sm:$0xff]  ;;  %v305_v32 = vld [vmem:[#allocation2 + $0x1e0] sm:$0xff]  ;;  %v307_v42 = vld [vmem:[#allocation2 + $0x1f8] sm:$0xff]  ;;  %v492_v47 = vpack.c.bf16 %v460_v21, %v7603_v9 }
  0x6b   :  { %v7622_v27 = vld [vmem:[#allocation2 + $0x2] sm:$0xff]  ;;  %v655_v28 = vld [vmem:[#allocation2 + $0xa] sm:$0xff]  ;;  %380 = vst.msk [vmem:[#allocation3 + $0x78] sm:$0xff] %vm27_vm0, %v7620_v23  ;;  %v310_v50 = vld [vmem:[#allocation2 + $0x218] sm:$0xff] }
  0x6c   :  { %573 = vrot.lane.b32.xlu0 %v485_v26, %s7040_s22  ;;  %v304_v26 = vld [vmem:[#allocation2 + $0x1d0] sm:$0xff]  ;;  %379 = vst.msk [vmem:[#allocation3 + $0x70] sm:$0xff] %vm27_vm0, %v7614_v17  ;;  %v306_v33 = vld [vmem:[#allocation2 + $0x1e8] sm:$0xff]  ;;  %381 = vst.msk [vmem:[#allocation3 + $0x80] sm:$0xff] %vm27_vm0, %v349_v24  ;;  %v718_v2 = vpack.c.bf16 %v655_v28, %v7622_v27 }
  0x6d   :  { %575 = vrot.lane.b32.xlu1 %v486_v37, %s7040_s22  ;;  %v350_v31 = vpack.c.bf16 %v304_v26, %v303_v25  ;;  %v656_v37 = vld [vmem:[#allocation2 + $0x1a] sm:$0xff]  ;;  %v657_v39 = vld [vmem:[#allocation2 + $0x22] sm:$0xff]  ;;  %v351_v41 = vpack.c.bf16 %v306_v33, %v305_v32  ;;  %v309_v46 = vld [vmem:[#allocation2 + $0x210] sm:$0xff] }
  0x6e   :  { %v308_v45 = vld [vmem:[#allocation2 + $0x200] sm:$0xff]  ;;  %v311_v51 = vld [vmem:[#allocation2 + $0x228] sm:$0xff]  ;;  %v353_v53 = vpack.c.bf16 %v310_v50, %v309_v46  ;;  %v315_v59 = vld [vmem:[#allocation2 + $0x258] sm:$0xff]  ;;  %v7640_v9 = vpack.c.bf16 %v657_v39, %v656_v37 }
  0x6f   :  { %382 = vst.msk [vmem:[#allocation3 + $0x88] sm:$0xff] %vm27_vm0, %v350_v31  ;;  %v352_v49 = vpack.c.bf16 %v308_v45, %v307_v42  ;;  %383 = vst.msk [vmem:[#allocation3 + $0x90] sm:$0xff] %vm27_vm0, %v351_v41  ;;  %v313_v57 = vld [vmem:[#allocation2 + $0x240] sm:$0xff]  ;;  %v658_v60 = vld [vmem:[#allocation2 + $0x32] sm:$0xff] }
  0x70   :  { %577 = vrot.lane.b32.xlu0 %v487_v52, %s7040_s22  ;;  %v312_v52 = vld [vmem:[#allocation2 + $0x230] sm:$0xff]  ;;  %v659_v61 = vld [vmem:[#allocation2 + $0x3a] sm:$0xff]  ;;  %385 = vst.msk [vmem:[#allocation3 + $0xa0] sm:$0xff] %vm27_vm0, %v353_v53  ;;  %v327_v27 = vld [vmem:[#allocation2 + $0x2e8] sm:$0xff] }
  0x71   :  { %579 = vrot.lane.b32.xlu1 %v488_v58, %s7040_s22  ;;  %v354_v54 = vpack.c.bf16 %v312_v52, %v311_v51  ;;  %v314_v58 = vld [vmem:[#allocation2 + $0x248] sm:$0xff]  ;;  %384 = vst.msk [vmem:[#allocation3 + $0x98] sm:$0xff] %vm27_vm0, %v352_v49  ;;  %v316_v63 = vld [vmem:[#allocation2 + $0x260] sm:$0xff]  ;;  %v661_v4 = vld [vmem:[#allocation2 + $0x52] sm:$0xff]  ;;  %v7646_v31 = vpack.c.bf16 %v659_v61, %v658_v60 }
  0x72   :  { %v355_v62 = vpack.c.bf16 %v314_v58, %v313_v57  ;;  %v660_v3 = vld [vmem:[#allocation2 + $0x4a] sm:$0xff]  ;;  %v356_v5 = vpack.c.bf16 %v316_v63, %v315_v59  ;;  %v318_v7 = vld [vmem:[#allocation2 + $0x278] sm:$0xff]  ;;  %v321_v14 = vld [vmem:[#allocation2 + $0x2a0] sm:$0xff] }
  0x73   :  { %386 = vst.msk [vmem:[#allocation3 + $0xa8] sm:$0xff] %vm27_vm0, %v354_v54  ;;  %v317_v6 = vld [vmem:[#allocation2 + $0x270] sm:$0xff]  ;;  %v323_v20 = vld [vmem:[#allocation2 + $0x2b8] sm:$0xff]  ;;  %v324_v21 = vld [vmem:[#allocation2 + $0x2c0] sm:$0xff]  ;;  %v7652_v41 = vpack.c.bf16 %v661_v4, %v660_v3 }
  0x74   :  { %581 = vrot.lane.b32.xlu0 %v489_v8, %s7040_s22  ;;  %v319_v8 = vld [vmem:[#allocation2 + $0x288] sm:$0xff]  ;;  %387 = vst.msk [vmem:[#allocation3 + $0xb0] sm:$0xff] %vm27_vm0, %v355_v62  ;;  %v357_v12 = vpack.c.bf16 %v318_v7, %v317_v6  ;;  %v320_v13 = vld [vmem:[#allocation2 + $0x290] sm:$0xff]  ;;  %388 = vst.msk [vmem:[#allocation3 + $0xb8] sm:$0xff] %vm27_vm0, %v356_v5  ;;  %v360_v25 = vpack.c.bf16 %v324_v21, %v323_v20 }
  0x75   :  { %583 = vrot.lane.b32.xlu1 %v490_v15, %s7040_s22  ;;  %v322_v15 = vld [vmem:[#allocation2 + $0x2a8] sm:$0xff]  ;;  %v358_v18 = vpack.c.bf16 %v320_v13, %v319_v8  ;;  %v325_v24 = vld [vmem:[#allocation2 + $0x2d0] sm:$0xff]  ;;  %v326_v26 = vld [vmem:[#allocation2 + $0x2d8] sm:$0xff] }
  0x76   :  { %v359_v19 = vpack.c.bf16 %v322_v15, %v321_v14  ;;  %389 = vst.msk [vmem:[#allocation3 + $0xc0] sm:$0xff] %vm27_vm0, %v357_v12  ;;  %v328_v28 = vld [vmem:[#allocation2 + $0x2f0] sm:$0xff]  ;;  %v662_v32 = vld [vmem:[#allocation2 + $0x62] sm:$0xff]  ;;  %392 = vst.msk [vmem:[#allocation3 + $0xd8] sm:$0xff] %vm27_vm0, %v360_v25 }
  0x77   :  { %v663_v33 = vld [vmem:[#allocation2 + $0x6a] sm:$0xff]  ;;  %390 = vst.msk [vmem:[#allocation3 + $0xc8] sm:$0xff] %vm27_vm0, %v358_v18  ;;  %v362_v37 = vpack.c.bf16 %v328_v28, %v327_v27  ;;  %v329_v39 = vld [vmem:[#allocation2 + $0x300] sm:$0xff]  ;;  %v331_v45 = vld [vmem:[#allocation2 + $0x318] sm:$0xff] }
  0x78   :  { %585 = vrot.lane.b32.xlu0 %v491_v36, %s7040_s22  ;;  %391 = vst.msk [vmem:[#allocation3 + $0xd0] sm:$0xff] %vm27_vm0, %v359_v19  ;;  %v361_v36 = vpack.c.bf16 %v326_v26, %v325_v24  ;;  %v330_v42 = vld [vmem:[#allocation2 + $0x308] sm:$0xff]  ;;  %v332_v46 = vld [vmem:[#allocation2 + $0x320] sm:$0xff]  ;;  %v7659_v52 = vpack.c.bf16 %v663_v33, %v662_v32  ;;  %v666_v54 = vld [vmem:[#allocation2 + $0x92] sm:$0xff] }
  0x79   :  { %587 = vrot.lane.b32.xlu1 %v492_v47, %s7040_s22  ;;  %v664_v47 = vld [vmem:[#allocation2 + $0x7a] sm:$0xff]  ;;  %v665_v49 = vld [vmem:[#allocation2 + $0x82] sm:$0xff]  ;;  %394 = vst.msk [vmem:[#allocation3 + $0xe8] sm:$0xff] %vm27_vm0, %v362_v37  ;;  %v363_v50 = vpack.c.bf16 %v330_v42, %v329_v39  ;;  %v364_v51 = vpack.c.bf16 %v332_v46, %v331_v45  ;;  %v668_v58 = vld [vmem:[#allocation2 + $0xaa] sm:$0xff] }
  0x7a   :  { %393 = vst.msk [vmem:[#allocation3 + $0xe0] sm:$0xff] %vm27_vm0, %v361_v36  ;;  %v7665_v53 = vpack.c.bf16 %v665_v49, %v664_v47  ;;  %v667_v57 = vld [vmem:[#allocation2 + $0x9a] sm:$0xff]  ;;  %v669_v59 = vld [vmem:[#allocation2 + $0xb2] sm:$0xff]  ;;  %v670_v62 = vld [vmem:[#allocation2 + $0xc2] sm:$0xff] }
  0x7b   :  { %395 = vst.msk [vmem:[#allocation3 + $0xf0] sm:$0xff] %vm27_vm0, %v363_v50  ;;  %396 = vst.msk [vmem:[#allocation3 + $0xf8] sm:$0xff] %vm27_vm0, %v364_v51  ;;  %v7669_v60 = vpack.c.bf16 %v667_v57, %v666_v54  ;;  %v7673_v61 = vpack.c.bf16 %v669_v59, %v668_v58  ;;  %v671_v63 = vld [vmem:[#allocation2 + $0xca] sm:$0xff]  ;;  %v673_v3 = vld [vmem:[#allocation2 + $0xe2] sm:$0xff] }
  0x7c   :  { %782 = vrot.lane.b32.xlu0 %v718_v2, %s7041_s10  ;;  %v672_v2 = vld [vmem:[#allocation2 + $0xda] sm:$0xff]  ;;  %v7677_v4 = vpack.c.bf16 %v671_v63, %v670_v62  ;;  %v674_v5 = vld [vmem:[#allocation2 + $0xf2] sm:$0xff]  ;;  %v676_v12 = vld [vmem:[#allocation2 + $0x10a] sm:$0xff] }
  0x7d   :  { %784 = vrot.lane.b32.xlu1 %v7640_v9, %s7041_s10  ;;  %v675_v6 = vld [vmem:[#allocation2 + $0xfa] sm:$0xff]  ;;  %v7681_v7 = vpack.c.bf16 %v673_v3, %v672_v2  ;;  %v677_v13 = vld [vmem:[#allocation2 + $0x112] sm:$0xff]  ;;  %v678_v14 = vld [vmem:[#allocation2 + $0x122] sm:$0xff] }
  0x7e   :  { %v7018_v8 = vld [vmem:[%s11792_s1] sm:$0xff]   ;;  %v679_v15 = vld [vmem:[#allocation2 + $0x12a] sm:$0xff]  ;;  %v7688_v18 = vpack.c.bf16 %v675_v6, %v674_v5  ;;  %v729_v19 = vpack.c.bf16 %v677_v13, %v676_v12  ;;  %v682_v25 = vld [vmem:[#allocation2 + $0x152] sm:$0xff] }
  0x7f   :  { %6848 = vmatprep.subr.bf16.mxu0 %v7018_v8  ;;  %v680_v20 = vld [vmem:[#allocation2 + $0x13a] sm:$0xff]  ;;  %v681_v21 = vld [vmem:[#allocation2 + $0x142] sm:$0xff]  ;;  %v730_v26 = vpack.c.bf16 %v679_v15, %v678_v14  ;;  %v7020_v32 = vld [vmem:[%s11792_s1 + $0x10] sm:$0xff]  }
  0x80   :  { %786 = vrot.lane.b32.xlu0 %v7646_v31, %s7041_s10  ;;  %6849 = vmatpush3.bf16.msra.mxu0 %v7018_v8  ;;  %v7019_v24 = vld [vmem:[%s11792_s1 + $0x8] sm:$0xff]   ;;  %v731_v27 = vpack.c.bf16 %v681_v21, %v680_v20  ;;  %v683_v28 = vld [vmem:[#allocation2 + $0x15a] sm:$0xff]  ;;  %v171_v49 = vld [vmem:[%s11791_s0 + $0xf0] sm:$0xff] }
  0x81   :  { %788 = vrot.lane.b32.xlu1 %v7652_v41, %s7041_s10  ;;  %6850 = vmatprep.subr.bf16.mxu0 %v7019_v24  ;;  %v732_v33 = vpack.c.bf16 %v683_v28, %v682_v25  ;;  %v7021_v36 = vld [vmem:[%s11792_s1 + $0x18] sm:$0xff]   ;;  %v7022_v37 = vld [vmem:[%s11792_s1 + $0x20] sm:$0xff]   ;;  %v7023_v39 = vld [vmem:[%s11792_s1 + $0x28] sm:$0xff]   ;;  %235 = vst.msk [vmem:[#allocation2 + $0x181] sm:$0xff] %vm27_vm0, %v171_v49 }
  0x82   :  { %v1945_v47 = vld [vmem:[#allocation2 + $0x69] sm:$0xff]  ;;  %v1947_v51 = vld [vmem:[#allocation2 + $0x81] sm:$0xff]  ;;  %v1178_v2 = vld [vmem:[#allocation2 + $0x91] sm:$0xff] }
  0x83   :  { %v1179_v3 = vld [vmem:[#allocation2 + $0x99] sm:$0xff]  ;;  %v1950_v14 = vld [vmem:[#allocation2 + $0xa9] sm:$0xff]  ;;  %v1951_v15 = vld [vmem:[#allocation2 + $0xb1] sm:$0xff] }
  0x84   :  { %790 = vrot.lane.b32.xlu0 %v7659_v52, %s7041_s10  ;;  %6851 = vmatpush3.bf16.msra.mxu0 %v7019_v24 }
  0x85   :  { %792 = vrot.lane.b32.xlu1 %v7665_v53, %s7041_s10  ;;  %6852 = vmatprep.subr.bf16.mxu0 %v7020_v32 }
  0x88   :  { %794 = vrot.lane.b32.xlu0 %v7669_v60, %s7041_s10  ;;  %6853 = vmatpush3.bf16.msra.mxu0 %v7020_v32 }
  0x89   :  { %796 = vrot.lane.b32.xlu1 %v7673_v61, %s7041_s10  ;;  %6854 = vmatprep.subr.bf16.mxu0 %v7021_v36 }
  0x8c   :  { %798 = vrot.lane.b32.xlu0 %v7677_v4, %s7041_s10  ;;  %6855 = vmatpush3.bf16.msra.mxu0 %v7021_v36 }
  0x8d   :  { %800 = vrot.lane.b32.xlu1 %v7681_v7, %s7041_s10  ;;  %6856 = vmatprep.subr.bf16.mxu0 %v7022_v37 }
  0x90   :  { %802 = vrot.lane.b32.xlu0 %v7688_v18, %s7041_s10  ;;  %6857 = vmatpush3.bf16.msra.mxu0 %v7022_v37 }
  0x91   :  { %804 = vrot.lane.b32.xlu1 %v729_v19, %s7041_s10  ;;  %6858 = vmatprep.subr.bf16.mxu0 %v7023_v39 }
  0x94   :  { %806 = vrot.lane.b32.xlu0 %v730_v26, %s7041_s10  ;;  %6859 = vmatpush3.bf16.msra.mxu0 %v7023_v39  ;;  %v1182_v26 = vld [vmem:[#allocation2 + $0xc1] sm:$0xff]  ;;  %v1954_v39 = vld [vmem:[#allocation2 + $0xd9] sm:$0xff] }
  0x95   :  { %808 = vrot.lane.b32.xlu1 %v731_v27, %s7041_s10  ;;  %v1183_v27 = vld [vmem:[#allocation2 + $0xc9] sm:$0xff] }
  0x98   :  { %810 = vrot.lane.b32.xlu0 %v732_v33, %s7041_s10 }
  0x99   :  { %1039 = vrot.lane.b32.xlu1 %v7551_v16, %s7042_s19  ;;  %v7024_v16 = vld [vmem:[%s11792_s1 + $0x30] sm:$0xff]  }
  0x9a   :  { %6860 = vmatprep.subr.bf16.mxu0 %v7024_v16 }
  0x9b   :  { %6861 = vmatpush3.bf16.msra.mxu0 %v7024_v16  ;;  %v1955_v16 = vld [vmem:[#allocation2 + $0xe1] sm:$0xff] }
  0x9c   :  { %1041 = vrot.lane.b32.xlu0 %v7553_v22, %s7042_s19 }
  0x9d   :  { %1296 = vrot.lane.b32.xlu1 %v7368_v34, %s7043_s23  ;;  %v7025_v34 = vld [vmem:[%s11792_s1 + $0x38] sm:$0xff]  }
  0x9e   :  { %6862 = vmatprep.subr.bf16.mxu0 %v7025_v34 }
  0x9f   :  { %6863 = vmatpush3.bf16.msra.mxu0 %v7025_v34 }
  0xa0   :  { %1298 = vrot.lane.b32.xlu0 %v7365_v30, %s7043_s23 }
  0xa1   :  { %1553 = vrot.lane.b32.xlu1 %v7640_v9, %s7044_s26 }
  0xa3   :  { %v530_v9 = vpop.permute.xlu1 %529 }
  0xa4   :  { %1555 = vrot.lane.b32.xlu0 %v7646_v31, %s7044_s26  ;;  %624 = vst.msk [vmem:[#allocation3 + $0x10] sm:$0xff] %vm621_vm4, %v530_v9 }
  0xa5   :  { %1811 = vrot.lane.b32.xlu1 %v7553_v22, %s7045_s29  ;;  %v526_v22 = vpop.permute.xlu0 %525 }
  0xa6   :  { %622 = vst.msk [vmem:[#allocation3] sm:$0xff] %vm621_vm4, %v526_v22 }
  0xa7   :  { %v532_v42 = vpop.permute.xlu1 %531 }
  0xa8   :  { %1813 = vrot.lane.b32.xlu0 %v7560_v29, %s7045_s29  ;;  %625 = vst.msk [vmem:[#allocation3 + $0x18] sm:$0xff] %vm621_vm4, %v532_v42 }
  0xa9   :  { %2068 = vrot.lane.b32.xlu1 %v7365_v30, %s7046_s9  ;;  %v528_v30 = vpop.permute.xlu0 %527 }
  0xaa   :  { %623 = vst.msk [vmem:[#allocation3 + $0x8] sm:$0xff] %vm621_vm4, %v528_v30 }
  0xac   :  { %2070 = vrot.lane.b32.xlu0 %v7372_v35, %s7046_s9 }
  0xad   :  { %2325 = vrot.lane.b32.xlu1 %v7646_v31, %s7047_s11 }
  0xb0   :  { %2327 = vrot.lane.b32.xlu0 %v7652_v41, %s7047_s11 }
  0xb1   :  { %1043 = vrot.lane.b32.xlu1 %v7560_v29, %s7042_s19  ;;  %v1944_v29 = vld [vmem:[#allocation2 + $0x61] sm:$0xff] }
  0xb4   :  { %1045 = vrot.lane.b32.xlu0 %v7567_v38, %s7042_s19 }
  0xb5   :  { %1300 = vrot.lane.b32.xlu1 %v7372_v35, %s7043_s23  ;;  %v172_v35 = vld [vmem:[%s11791_s0 + $0xf8] sm:$0xff] }
  0xb6   :  { %v534_v31 = vpop.permute.xlu0 %533  ;;  %236 = vst.msk [vmem:[#allocation2 + $0x189] sm:$0xff] %vm27_vm0, %v172_v35 }
  0xb7   :  { %626 = vst.msk [vmem:[#allocation3 + $0x20] sm:$0xff] %vm621_vm4, %v534_v31  ;;  %v536_v45 = vpop.permute.xlu1 %535  ;;  %v1186_v31 = vld [vmem:[#allocation2 + $0xf1] sm:$0xff] }
  0xb8   :  { %627 = vst.msk [vmem:[#allocation3 + $0x28] sm:$0xff] %vm621_vm4, %v536_v45  ;;  %1302 = vrot.lane.b32.xlu0 %v7376_v40, %s7043_s23  ;;  %v2006_v40 = vpack.c.bf16 %v1945_v47, %v1944_v29  ;;  %v1187_v45 = vld [vmem:[#allocation2 + $0xf9] sm:$0xff] }
  0xb9   :  { %1557 = vrot.lane.b32.xlu1 %v7652_v41, %s7044_s26  ;;  %v1946_v41 = vld [vmem:[#allocation2 + $0x79] sm:$0xff] }
  0xba   :  { %v538_v46 = vpop.permute.xlu0 %537  ;;  %v2007_v58 = vpack.c.bf16 %v1947_v51, %v1946_v41  ;;  %v2213_v51 = vld [vmem:[#allocation2 + $0xf2] sm:$0xff] }
  0xbb   :  { %628 = vst.msk [vmem:[#allocation3 + $0x30] sm:$0xff] %vm621_vm4, %v538_v46  ;;  %v540_v50 = vpop.permute.xlu1 %539 }
  0xbc   :  { %629 = vst.msk [vmem:[#allocation3 + $0x38] sm:$0xff] %vm621_vm4, %v540_v50  ;;  %1559 = vrot.lane.b32.xlu0 %v7659_v52, %s7044_s26  ;;  %v1958_v50 = vld [vmem:[#allocation2 + $0x109] sm:$0xff] }
  0xbd   :  { %1815 = vrot.lane.b32.xlu1 %v7567_v38, %s7045_s29 }
  0xbe   :  { %v542_v54 = vpop.permute.xlu0 %541 }
  0xbf   :  { %630 = vst.msk [vmem:[#allocation3 + $0x40] sm:$0xff] %vm621_vm4, %v542_v54  ;;  %v544_v57 = vpop.permute.xlu1 %543  ;;  %v2214_v54 = vld [vmem:[#allocation2 + $0xfa] sm:$0xff] }
  0xc0   :  { %631 = vst.msk [vmem:[#allocation3 + $0x48] sm:$0xff] %vm621_vm4, %v544_v57  ;;  %1817 = vrot.lane.b32.xlu0 %v7572_v43, %s7045_s29 }
  0xc1   :  { %2072 = vrot.lane.b32.xlu1 %v2006_v40, %s7046_s9  ;;  %v1959_v40 = vld [vmem:[#allocation2 + $0x111] sm:$0xff] }
  0xc2   :  { %v546_v59 = vpop.permute.xlu0 %545  ;;  %v2013_v57 = vpack.c.bf16 %v1959_v40, %v1958_v50  ;;  %v941_v40 = vld [vmem:[#allocation2 + $0x180] sm:$0xff] }
  0xc3   :  { %632 = vst.msk [vmem:[#allocation3 + $0x50] sm:$0xff] %vm621_vm4, %v546_v59  ;;  %v548_v62 = vpop.permute.xlu1 %547 }
  0xc4   :  { %633 = vst.msk [vmem:[#allocation3 + $0x58] sm:$0xff] %vm621_vm4, %v548_v62  ;;  %2074 = vrot.lane.b32.xlu0 %v2007_v58, %s7046_s9 }
  0xc5   :  { %2329 = vrot.lane.b32.xlu1 %v7659_v52, %s7047_s11  ;;  %v1237_v52 = vpack.c.bf16 %v1179_v3, %v1178_v2  ;;  %v1190_v3 = vld [vmem:[#allocation2 + $0x121] sm:$0xff] }
  0xc6   :  { %v550_v38 = vpop.permute.xlu0 %549 }
  0xc7   :  { %634 = vst.msk [vmem:[#allocation3 + $0x60] sm:$0xff] %vm621_vm4, %v550_v38  ;;  %v552_v63 = vpop.permute.xlu1 %551 }
  0xc8   :  { %635 = vst.msk [vmem:[#allocation3 + $0x68] sm:$0xff] %vm621_vm4, %v552_v63  ;;  %2331 = vrot.lane.b32.xlu0 %v7665_v53, %s7047_s11 }
  0xc9   :  { %1047 = vrot.lane.b32.xlu1 %v7572_v43, %s7042_s19 }
  0xca   :  { %v554_v5 = vpop.permute.xlu0 %553 }
  0xcb   :  { %636 = vst.msk [vmem:[#allocation3 + $0x70] sm:$0xff] %vm621_vm4, %v554_v5  ;;  %v556_v6 = vpop.permute.xlu1 %555  ;;  %v1191_v5 = vld [vmem:[#allocation2 + $0x129] sm:$0xff] }
  0xcc   :  { %637 = vst.msk [vmem:[#allocation3 + $0x78] sm:$0xff] %vm621_vm4, %v556_v6  ;;  %1049 = vrot.lane.b32.xlu0 %v7574_v44, %s7042_s19 }
  0xcd   :  { %1304 = vrot.lane.b32.xlu1 %v2007_v58, %s7043_s23  ;;  %v2215_v58 = vld [vmem:[#allocation2 + $0x10a] sm:$0xff] }
  0xce   :  { %v558_v8 = vpop.permute.xlu0 %557 }
  0xcf   :  { %638 = vst.msk [vmem:[#allocation3 + $0x80] sm:$0xff] %vm621_vm4, %v558_v8  ;;  %v560_v12 = vpop.permute.xlu1 %559  ;;  %v1243_v8 = vpack.c.bf16 %v1191_v5, %v1190_v3 }
  0xd0   :  { %639 = vst.msk [vmem:[#allocation3 + $0x88] sm:$0xff] %vm621_vm4, %v560_v12  ;;  %1306 = vrot.lane.b32.xlu0 %v1237_v52, %s7043_s23  ;;  %v1447_v12 = vld [vmem:[#allocation2 + $0x122] sm:$0xff] }
  0xd1   :  { %1561 = vrot.lane.b32.xlu1 %v7665_v53, %s7044_s26  ;;  %v2009_v53 = vpack.c.bf16 %v1951_v15, %v1950_v14 }
  0xd2   :  { %v562_v43 = vpop.permute.xlu0 %561 }
  0xd3   :  { %640 = vst.msk [vmem:[#allocation3 + $0x90] sm:$0xff] %vm621_vm4, %v562_v43  ;;  %v564_v13 = vpop.permute.xlu1 %563  ;;  %v1448_v43 = vld [vmem:[#allocation2 + $0x12a] sm:$0xff] }
  0xd4   :  { %641 = vst.msk [vmem:[#allocation3 + $0x98] sm:$0xff] %vm621_vm4, %v564_v13  ;;  %1563 = vrot.lane.b32.xlu0 %v7669_v60, %s7044_s26  ;;  %v1500_v14 = vpack.c.bf16 %v1448_v43, %v1447_v12 }
  0xd5   :  { %1819 = vrot.lane.b32.xlu1 %v7574_v44, %s7045_s29 }
  0xd6   :  { %v566_v19 = vpop.permute.xlu0 %565 }
  0xd7   :  { %642 = vst.msk [vmem:[#allocation3 + $0xa0] sm:$0xff] %vm621_vm4, %v566_v19  ;;  %v568_v20 = vpop.permute.xlu1 %567 }
  0xd8   :  { %643 = vst.msk [vmem:[#allocation3 + $0xa8] sm:$0xff] %vm621_vm4, %v568_v20  ;;  %1821 = vrot.lane.b32.xlu0 %v7578_v48, %s7045_s29  ;;  %v1962_v20 = vld [vmem:[#allocation2 + $0x139] sm:$0xff] }
  0xd9   :  { %2076 = vrot.lane.b32.xlu1 %v1237_v52, %s7046_s9 }
  0xda   :  { %v570_v21 = vpop.permute.xlu0 %569 }
  0xdb   :  { %644 = vst.msk [vmem:[#allocation3 + $0xb0] sm:$0xff] %vm621_vm4, %v570_v21  ;;  %v572_v24 = vpop.permute.xlu1 %571 }
  0xdc   :  { %645 = vst.msk [vmem:[#allocation3 + $0xb8] sm:$0xff] %vm621_vm4, %v572_v24  ;;  %2078 = vrot.lane.b32.xlu0 %v2009_v53, %s7046_s9 }
  0xdd   :  { %2333 = vrot.lane.b32.xlu1 %v7669_v60, %s7047_s11  ;;  %v1239_v60 = vpack.c.bf16 %v1183_v27, %v1182_v26  ;;  %v2220_v26 = vld [vmem:[#allocation2 + $0x142] sm:$0xff] }
  0xde   :  { %v574_v44 = vpop.permute.xlu0 %573 }
  0xdf   :  { %646 = vst.msk [vmem:[#allocation3 + $0xc0] sm:$0xff] %vm621_vm4, %v574_v44  ;;  %v576_v25 = vpop.permute.xlu1 %575 }
  0xe0   :  { %647 = vst.msk [vmem:[#allocation3 + $0xc8] sm:$0xff] %vm621_vm4, %v576_v25  ;;  %2335 = vrot.lane.b32.xlu0 %v7673_v61, %s7047_s11  ;;  %v2219_v25 = vld [vmem:[#allocation2 + $0x13a] sm:$0xff] }
  0xe1   :  { %1051 = vrot.lane.b32.xlu1 %v7578_v48, %s7042_s19 }
  0xe2   :  { %v578_v28 = vpop.permute.xlu0 %577 }
  0xe3   :  { %648 = vst.msk [vmem:[#allocation3 + $0xd0] sm:$0xff] %vm621_vm4, %v578_v28  ;;  %v580_v32 = vpop.permute.xlu1 %579  ;;  %v2272_v28 = vpack.c.bf16 %v2220_v26, %v2219_v25  ;;  %v687_v25 = vld [vmem:[#allocation2 + $0x1ba] sm:$0xff] }
  0xe4   :  { %649 = vst.msk [vmem:[#allocation3 + $0xd8] sm:$0xff] %vm621_vm4, %v580_v32  ;;  %1053 = vrot.lane.b32.xlu0 %v7585_v55, %s7042_s19 }
  0xe5   :  { %1308 = vrot.lane.b32.xlu1 %v2009_v53, %s7043_s23  ;;  %v1963_v53 = vld [vmem:[#allocation2 + $0x141] sm:$0xff] }
  0xe6   :  { %v582_v33 = vpop.permute.xlu0 %581  ;;  %v2015_v44 = vpack.c.bf16 %v1963_v53, %v1962_v20  ;;  %v2227_v20 = vld [vmem:[#allocation2 + $0x19a] sm:$0xff]  ;;  %v2228_v53 = vld [vmem:[#allocation2 + $0x1a2] sm:$0xff] }
  0xe7   :  { %650 = vst.msk [vmem:[#allocation3 + $0xe0] sm:$0xff] %vm621_vm4, %v582_v33  ;;  %v584_v36 = vpop.permute.xlu1 %583 }
  0xe8   :  { %651 = vst.msk [vmem:[#allocation3 + $0xe8] sm:$0xff] %vm621_vm4, %v584_v36  ;;  %1310 = vrot.lane.b32.xlu0 %v1239_v60, %s7043_s23  ;;  %v1194_v36 = vld [vmem:[#allocation2 + $0x151] sm:$0xff] }
  0xe9   :  { %1565 = vrot.lane.b32.xlu1 %v7673_v61, %s7044_s26  ;;  %v2011_v61 = vpack.c.bf16 %v1955_v16, %v1954_v39 }
  0xea   :  { %v586_v48 = vpop.permute.xlu0 %585 }
  0xeb   :  { %652 = vst.msk [vmem:[#allocation3 + $0xf0] sm:$0xff] %vm621_vm4, %v586_v48  ;;  %v588_v37 = vpop.permute.xlu1 %587  ;;  %v1195_v48 = vld [vmem:[#allocation2 + $0x159] sm:$0xff] }
  0xec   :  { %653 = vst.msk [vmem:[#allocation3 + $0xf8] sm:$0xff] %vm621_vm4, %v588_v37  ;;  %1567 = vrot.lane.b32.xlu0 %v7677_v4, %s7044_s26 }
  0xed   :  { %1823 = vrot.lane.b32.xlu1 %v7585_v55, %s7045_s29 }
  0xee   :  { %v783_v34 = vpop.permute.xlu0 %782 }
  0xef   :  { %879 = vst.msk [vmem:[#allocation3] sm:$0xff] %vm878_vm5, %v783_v34  ;;  %v785_v22 = vpop.permute.xlu1 %784  ;;  %v1245_v34 = vpack.c.bf16 %v1195_v48, %v1194_v36  ;;  %v943_v36 = vld [vmem:[#allocation2 + $0x1c8] sm:$0xff]  ;;  %v944_v48 = vld [vmem:[#allocation2 + $0x1d0] sm:$0xff] }
  0xf0   :  { %880 = vst.msk [vmem:[#allocation3 + $0x8] sm:$0xff] %vm878_vm5, %v785_v22  ;;  %1825 = vrot.lane.b32.xlu0 %v7587_v56, %s7045_s29  ;;  %v1451_v22 = vld [vmem:[#allocation2 + $0x152] sm:$0xff] }
  0xf1   :  { %2080 = vrot.lane.b32.xlu1 %v1239_v60, %s7046_s9 }
  0xf2   :  { %v787_v9 = vpop.permute.xlu0 %786 }
  0xf3   :  { %881 = vst.msk [vmem:[#allocation3 + $0x10] sm:$0xff] %vm878_vm5, %v787_v9  ;;  %v789_v30 = vpop.permute.xlu1 %788 }
  0xf4   :  { %882 = vst.msk [vmem:[#allocation3 + $0x18] sm:$0xff] %vm878_vm5, %v789_v30  ;;  %2082 = vrot.lane.b32.xlu0 %v2011_v61, %s7046_s9 }
  0xf5   :  { %2337 = vrot.lane.b32.xlu1 %v7677_v4, %s7047_s11  ;;  %v1241_v4 = vpack.c.bf16 %v1187_v45, %v1186_v31  ;;  %v1966_v31 = vld [vmem:[#allocation2 + $0x169] sm:$0xff]  ;;  %v1967_v45 = vld [vmem:[#allocation2 + $0x171] sm:$0xff] }
  0xf6   :  { %v791_v55 = vpop.permute.xlu0 %790 }
  0xf7   :  { %883 = vst.msk [vmem:[#allocation3 + $0x20] sm:$0xff] %vm878_vm5, %v791_v55  ;;  %v793_v42 = vpop.permute.xlu1 %792 }
  0xf8   :  { %884 = vst.msk [vmem:[#allocation3 + $0x28] sm:$0xff] %vm878_vm5, %v793_v42  ;;  %2339 = vrot.lane.b32.xlu0 %v7681_v7, %s7047_s11 }
  0xf9   :  { %1055 = vrot.lane.b32.xlu1 %v7587_v56, %s7042_s19 }
  0xfa   :  { %v795_v29 = vpop.permute.xlu0 %794 }
  0xfb   :  { %885 = vst.msk [vmem:[#allocation3 + $0x30] sm:$0xff] %vm878_vm5, %v795_v29  ;;  %v797_v46 = vpop.permute.xlu1 %796 }
  0xfc   :  { %886 = vst.msk [vmem:[#allocation3 + $0x38] sm:$0xff] %vm878_vm5, %v797_v46  ;;  %1057 = vrot.lane.b32.xlu0 %v7598_v0, %s7042_s19 }
  0xfd   :  { %1312 = vrot.lane.b32.xlu1 %v2011_v61, %s7043_s23  ;;  %v1452_v61 = vld [vmem:[#allocation2 + $0x15a] sm:$0xff] }
  0xfe   :  { %v799_v47 = vpop.permute.xlu0 %798  ;;  %v1502_v30 = vpack.c.bf16 %v1452_v61, %v1451_v22  ;;  %v991_v61 = vpack.c.bf16 %v944_v48, %v943_v36 }
  0xff   :  { %887 = vst.msk [vmem:[#allocation3 + $0x40] sm:$0xff] %vm878_vm5, %v799_v47  ;;  %v801_v49 = vpop.permute.xlu1 %800  ;;  %v2223_v47 = vld [vmem:[#allocation2 + $0x16a] sm:$0xff] }
 0x100   :  { %888 = vst.msk [vmem:[#allocation3 + $0x48] sm:$0xff] %vm878_vm5, %v801_v49  ;;  %1314 = vrot.lane.b32.xlu0 %v1241_v4, %s7043_s23  ;;  %v2224_v49 = vld [vmem:[#allocation2 + $0x172] sm:$0xff] }
 0x101   :  { %1569 = vrot.lane.b32.xlu1 %v7681_v7, %s7044_s26 }
 0x102   :  { %v803_v56 = vpop.permute.xlu0 %802 }
 0x103   :  { %889 = vst.msk [vmem:[#allocation3 + $0x50] sm:$0xff] %vm878_vm5, %v803_v56  ;;  %v805_v35 = vpop.permute.xlu1 %804 }
 0x104   :  { %890 = vst.msk [vmem:[#allocation3 + $0x58] sm:$0xff] %vm878_vm5, %v805_v35  ;;  %1571 = vrot.lane.b32.xlu0 %v7688_v18, %s7044_s26  ;;  %v2269_v18 = vpack.c.bf16 %v2214_v54, %v2213_v51  ;;  %v2274_v35 = vpack.c.bf16 %v2224_v49, %v2223_v47  ;;  %v1459_v47 = vld [vmem:[#allocation2 + $0x1e2] sm:$0xff]  ;;  %v1460_v49 = vld [vmem:[#allocation2 + $0x1ea] sm:$0xff] }
 0x105   :  { %1827 = vrot.lane.b32.xlu1 %v7598_v0, %s7045_s29  ;;  %v2216_v0 = vld [vmem:[#allocation2 + $0x112] sm:$0xff] }
 0x106   :  { %v807_v41 = vpop.permute.xlu0 %806  ;;  %v2270_v38 = vpack.c.bf16 %v2216_v0, %v2215_v58  ;;  %v1198_v58 = vld [vmem:[#allocation2 + $0x181] sm:$0xff]  ;;  %v1199_v0 = vld [vmem:[#allocation2 + $0x189] sm:$0xff] }
 0x107   :  { %891 = vst.msk [vmem:[#allocation3 + $0x60] sm:$0xff] %vm878_vm5, %v807_v41  ;;  %v809_v7 = vpop.permute.xlu1 %808  ;;  %v942_v41 = vld [vmem:[#allocation2 + $0x188] sm:$0xff] }
 0x108   :  { %892 = vst.msk [vmem:[#allocation3 + $0x68] sm:$0xff] %vm878_vm5, %v809_v7  ;;  %1829 = vrot.lane.b32.xlu0 %v7600_v1, %s7045_s29  ;;  %v990_v7 = vpack.c.bf16 %v942_v41, %v941_v40  ;;  %v1718_v40 = vld [vmem:[#allocation2 + $0x200] sm:$0xff] }
 0x109   :  { %2084 = vrot.lane.b32.xlu1 %v1241_v4, %s7046_s9  ;;  %v2017_v4 = vpack.c.bf16 %v1967_v45, %v1966_v31  ;;  %v1203_v31 = vld [vmem:[#allocation2 + $0x1e9] sm:$0xff] }
 0x10a   :  { %v811_v59 = vpop.permute.xlu0 %810 }
 0x10b   :  { %893 = vst.msk [vmem:[#allocation3 + $0x70] sm:$0xff] %vm878_vm5, %v811_v59  ;;  %v1040_v62 = vpop.permute.xlu1 %1039 }
 0x10c   :  { %1136 = vst.msk [vmem:[#allocation3] sm:$0xff] %vm1135_vm6, %v1040_v62  ;;  %2086 = vrot.lane.b32.xlu0 %v2013_v57, %s7046_s9  ;;  %v1247_v62 = vpack.c.bf16 %v1199_v0, %v1198_v58 }
 0x10d   :  { %2341 = vrot.lane.b32.xlu1 %v2269_v18, %s7047_s11 }
 0x10e   :  { %v1042_v63 = vpop.permute.xlu0 %1041 }
 0x10f   :  { %1137 = vst.msk [vmem:[#allocation3 + $0x8] sm:$0xff] %vm1135_vm6, %v1042_v63  ;;  %v1297_v2 = vpop.permute.xlu1 %1296  ;;  %v1455_v63 = vld [vmem:[#allocation2 + $0x182] sm:$0xff] }
 0x110   :  { %1393 = vst.msk [vmem:[#allocation3] sm:$0xff] %vm1392_vm7, %v1297_v2  ;;  %2343 = vrot.lane.b32.xlu0 %v2270_v38, %s7047_s11  ;;  %v1456_v2 = vld [vmem:[#allocation2 + $0x18a] sm:$0xff] }
 0x111   :  { %1059 = vrot.lane.b32.xlu1 %v7600_v1, %s7042_s19  ;;  %v1504_v5 = vpack.c.bf16 %v1456_v2, %v1455_v63 }
 0x112   :  { %v1299_v6 = vpop.permute.xlu0 %1298 }
 0x113   :  { %1394 = vst.msk [vmem:[#allocation3 + $0x8] sm:$0xff] %vm1392_vm7, %v1299_v6  ;;  %v1554_v52 = vpop.permute.xlu1 %1553 }
 0x114   :  { %1650 = vst.msk [vmem:[#allocation3] sm:$0xff] %vm1649_vm8, %v1554_v52  ;;  %1061 = vrot.lane.b32.xlu0 %v7609_v10, %s7042_s19  ;;  %v1713_v52 = vld [vmem:[#allocation2 + $0x198] sm:$0xff] }
 0x115   :  { %1316 = vrot.lane.b32.xlu1 %v2013_v57, %s7043_s23 }
 0x116   :  { %v1556_v13 = vpop.permute.xlu0 %1555 }
 0x117   :  { %1651 = vst.msk [vmem:[#allocation3 + $0x8] sm:$0xff] %vm1649_vm8, %v1556_v13  ;;  %v1812_v1 = vpop.permute.xlu1 %1811  ;;  %v1970_v13 = vld [vmem:[#allocation2 + $0x199] sm:$0xff] }
 0x118   :  { %1908 = vst.msk [vmem:[#allocation3] sm:$0xff] %vm1907_vm9, %v1812_v1  ;;  %1318 = vrot.lane.b32.xlu0 %v1243_v8, %s7043_s23  ;;  %v1971_v1 = vld [vmem:[#allocation2 + $0x1a1] sm:$0xff] }
 0x119   :  { %1573 = vrot.lane.b32.xlu1 %v2270_v38, %s7044_s26 }
 0x11a   :  { %v1814_v15 = vpop.permute.xlu0 %1813 }
 0x11b   :  { %1909 = vst.msk [vmem:[#allocation3 + $0x8] sm:$0xff] %vm1907_vm9, %v1814_v15  ;;  %v2069_v19 = vpop.permute.xlu1 %2068  ;;  %v2019_v15 = vpack.c.bf16 %v1971_v1, %v1970_v13  ;;  %v1206_v1 = vld [vmem:[#allocation2 + $0x211] sm:$0xff] }
 0x11c   :  { %2165 = vst.msk [vmem:[#allocation3] sm:$0xff] %vm2164_vm10, %v2069_v19  ;;  %1575 = vrot.lane.b32.xlu0 %v1500_v14, %s7044_s26 }
 0x11d   :  { %1831 = vrot.lane.b32.xlu1 %v7609_v10, %s7045_s29 }
 0x11e   :  { %v2071_v21 = vpop.permute.xlu0 %2070 }
 0x11f   :  { %2166 = vst.msk [vmem:[#allocation3 + $0x8] sm:$0xff] %vm2164_vm10, %v2071_v21  ;;  %v2326_v24 = vpop.permute.xlu1 %2325 }
 0x120   :  { %2422 = vst.msk [vmem:[#allocation3] sm:$0xff] %vm2421_vm11, %v2326_v24  ;;  %1833 = vrot.lane.b32.xlu0 %v7611_v11, %s7045_s29  ;;  %v2276_v24 = vpack.c.bf16 %v2228_v53, %v2227_v20  ;;  %v1463_v53 = vld [vmem:[#allocation2 + $0x212] sm:$0xff] }
 0x121   :  { %2088 = vrot.lane.b32.xlu1 %v1243_v8, %s7046_s9  ;;  %v1714_v8 = vld [vmem:[#allocation2 + $0x1a0] sm:$0xff] }
 0x122   :  { %v2328_v27 = vpop.permute.xlu0 %2327  ;;  %v1762_v12 = vpack.c.bf16 %v1714_v8, %v1713_v52  ;;  %v949_v8 = vld [vmem:[#allocation2 + $0x210] sm:$0xff] }
 0x123   :  { %2423 = vst.msk [vmem:[#allocation3 + $0x8] sm:$0xff] %vm2421_vm11, %v2328_v27  ;;  %v1044_v10 = vpop.permute.xlu1 %1043  ;;  %v688_v27 = vld [vmem:[#allocation2 + $0x1ca] sm:$0xff] }
 0x124   :  { %1138 = vst.msk [vmem:[#allocation3 + $0x10] sm:$0xff] %vm1135_vm6, %v1044_v10  ;;  %2090 = vrot.lane.b32.xlu0 %v2015_v44, %s7046_s9  ;;  %v689_v10 = vld [vmem:[#allocation2 + $0x1d2] sm:$0xff] }
 0x125   :  { %2345 = vrot.lane.b32.xlu1 %v1500_v14, %s7047_s11 }
 0x126   :  { %v1046_v32 = vpop.permute.xlu0 %1045 }
 0x127   :  { %1139 = vst.msk [vmem:[#allocation3 + $0x18] sm:$0xff] %vm1135_vm6, %v1046_v32  ;;  %v1301_v60 = vpop.permute.xlu1 %1300  ;;  %v2454_v33 = vld [vmem:[#allocation3] sm:$0xff] }
 0x128   :  { %1395 = vst.msk [vmem:[#allocation3 + $0x10] sm:$0xff] %vm1392_vm7, %v1301_v60  ;;  %2347 = vrot.lane.b32.xlu0 %v2272_v28, %s7047_s11  ;;  %6864 = vmatprep.mubr.bf16.mxu0 %v2454_v33  ;;  %v735_v33 = vpack.c.bf16 %v689_v10, %v688_v27  ;;  %v1722_v27 = vld [vmem:[#allocation2 + $0x230] sm:$0xff] }
 0x129   :  { %1063 = vrot.lane.b32.xlu1 %v7611_v11, %s7042_s19 }
 0x12a   :  { %v1303_v37 = vpop.permute.xlu0 %1302  ;;  %v2455_v39 = vld [vmem:[#allocation3 + $0x8] sm:$0xff] }
 0x12b   :  { %1396 = vst.msk [vmem:[#allocation3 + $0x18] sm:$0xff] %vm1392_vm7, %v1303_v37  ;;  %v1558_v16 = vpop.permute.xlu1 %1557  ;;  %6865 = vmatmul.mubr.bf16.vlgmr.msra.gmra.mrb[0].mxu0 %v2455_v39 }
 0x12c   :  { %1652 = vst.msk [vmem:[#allocation3 + $0x10] sm:$0xff] %vm1649_vm8, %v1558_v16  ;;  %1065 = vrot.lane.b32.xlu0 %v7614_v17, %s7042_s19  ;;  %v945_v16 = vld [vmem:[#allocation2 + $0x1e0] sm:$0xff] }
 0x12d   :  { %1320 = vrot.lane.b32.xlu1 %v2015_v44, %s7043_s23  ;;  %v686_v44 = vld [vmem:[#allocation2 + $0x1b2] sm:$0xff] }
 0x12e   :  { %v1560_v9 = vpop.permute.xlu0 %1559  ;;  %v734_v60 = vpack.c.bf16 %v687_v25, %v686_v44 }
 0x12f   :  { %1653 = vst.msk [vmem:[#allocation3 + $0x18] sm:$0xff] %vm1649_vm8, %v1560_v9  ;;  %v1816_v11 = vpop.permute.xlu1 %1815 }
 0x130   :  { %1910 = vst.msk [vmem:[#allocation3 + $0x10] sm:$0xff] %vm1907_vm9, %v1816_v11  ;;  %1322 = vrot.lane.b32.xlu0 %v1245_v34, %s7043_s23  ;;  %v1200_v11 = vld [vmem:[#allocation2 + $0x1c9] sm:$0xff] }
 0x131   :  { %1577 = vrot.lane.b32.xlu1 %v2272_v28, %s7044_s26 }
 0x132   :  { %v1818_v55 = vpop.permute.xlu0 %1817 }
 0x133   :  { %1911 = vst.msk [vmem:[#allocation3 + $0x18] sm:$0xff] %vm1907_vm9, %v1818_v55  ;;  %v2073_v42 = vpop.permute.xlu1 %2072 }
 0x134   :  { %2167 = vst.msk [vmem:[#allocation3 + $0x10] sm:$0xff] %vm2164_vm10, %v2073_v42  ;;  %1579 = vrot.lane.b32.xlu0 %v1502_v30, %s7044_s26  ;;  %v1202_v42 = vld [vmem:[#allocation2 + $0x1e1] sm:$0xff] }
 0x135   :  { %1835 = vrot.lane.b32.xlu1 %v7614_v17, %s7045_s29 }
 0x136   :  { %v2075_v29 = vpop.permute.xlu0 %2074 }
 0x137   :  { %2168 = vst.msk [vmem:[#allocation3 + $0x18] sm:$0xff] %vm2164_vm10, %v2075_v29  ;;  %v2330_v46 = vpop.permute.xlu1 %2329 }
 0x138   :  { %2424 = vst.msk [vmem:[#allocation3 + $0x10] sm:$0xff] %vm2421_vm11, %v2330_v46  ;;  %1837 = vrot.lane.b32.xlu0 %v7620_v23, %s7045_s29  ;;  %v1249_v46 = vpack.c.bf16 %v1203_v31, %v1202_v42  ;;  %v953_v42 = vld [vmem:[#allocation2 + $0x240] sm:$0xff]  ;;  %v954_v31 = vld [vmem:[#allocation2 + $0x248] sm:$0xff] }
 0x139   :  { %2092 = vrot.lane.b32.xlu1 %v1245_v34, %s7046_s9  ;;  %v946_v34 = vld [vmem:[#allocation2 + $0x1e8] sm:$0xff] }
 0x13a   :  { %v2332_v56 = vpop.permute.xlu0 %2331  ;;  %v992_v9 = vpack.c.bf16 %v946_v34, %v945_v16  ;;  %v2235_v34 = vld [vmem:[#allocation2 + $0x22a] sm:$0xff] }
 0x13b   :  { %2425 = vst.msk [vmem:[#allocation3 + $0x18] sm:$0xff] %vm2421_vm11, %v2332_v56  ;;  %v1048_v17 = vpop.permute.xlu1 %1047 }
 0x13c   :  { %1140 = vst.msk [vmem:[#allocation3 + $0x20] sm:$0xff] %vm1135_vm6, %v1048_v17  ;;  %2094 = vrot.lane.b32.xlu0 %v2017_v4, %s7046_s9  ;;  %v1506_v17 = vpack.c.bf16 %v1460_v49, %v1459_v47  ;;  %v1211_v47 = vld [vmem:[#allocation2 + $0x249] sm:$0xff] }
 0x13d   :  { %2349 = vrot.lane.b32.xlu1 %v1502_v30, %s7047_s11  ;;  %v1201_v30 = vld [vmem:[#allocation2 + $0x1d1] sm:$0xff] }
 0x13e   :  { %v1050_v50 = vpop.permute.xlu0 %1049  ;;  %v1248_v29 = vpack.c.bf16 %v1201_v30, %v1200_v11 }
 0x13f   :  { %1141 = vst.msk [vmem:[#allocation3 + $0x28] sm:$0xff] %vm1135_vm6, %v1050_v50  ;;  %v1305_v51 = vpop.permute.xlu1 %1304  ;;  %v2456_v54 = vld [vmem:[#allocation3 + $0x10] sm:$0xff]  ;;  %v1717_v50 = vld [vmem:[#allocation2 + $0x1f8] sm:$0xff] }
 0x140   :  { %1397 = vst.msk [vmem:[#allocation3 + $0x20] sm:$0xff] %vm1392_vm7, %v1305_v51  ;;  %2351 = vrot.lane.b32.xlu0 %v2274_v35, %s7047_s11  ;;  %6868 = vmatprep.mubr.bf16.mxu0 %v2456_v54  ;;  %v1764_v51 = vpack.c.bf16 %v1718_v40, %v1717_v50  ;;  %v1468_v50 = vld [vmem:[#allocation2 + $0x24a] sm:$0xff] }
 0x141   :  { %812 = vrot.lane.b32.xlu1 %v2274_v35, %s7041_s10  ;;  %v203_v40 = vld [vmem:[%s11791_s0 + $0x1f0] sm:$0xff] }
 0x142   :  { %v1307_v57 = vpop.permute.xlu0 %1306  ;;  %v2457_v18 = vld [vmem:[#allocation3 + $0x18] sm:$0xff]  ;;  %267 = vst.msk [vmem:[#allocation2 + $0x331] sm:$0xff] %vm27_vm0, %v203_v40  ;;  %v1219_v40 = vld [vmem:[#allocation2 + $0x2a9] sm:$0xff] }
 0x143   :  { %1398 = vst.msk [vmem:[#allocation3 + $0x28] sm:$0xff] %vm1392_vm7, %v1307_v57  ;;  %v1562_v59 = vpop.permute.xlu1 %1561  ;;  %6869 = vmatmul.mubr.bf16.gmra.mrb[4].mxu0 %v2457_v18  ;;  %v1975_v57 = vld [vmem:[#allocation2 + $0x201] sm:$0xff] }
 0x144   :  { %1654 = vst.msk [vmem:[#allocation3 + $0x20] sm:$0xff] %vm1649_vm8, %v1562_v59  ;;  %1067 = vrot.lane.b32.xlu0 %v7620_v23, %s7042_s19  ;;  %v2231_v59 = vld [vmem:[#allocation2 + $0x1fa] sm:$0xff] }
 0x145   :  { %1069 = vrot.lane.b32.xlu1 %v990_v7, %s7042_s19 }
 0x146   :  { %v1564_v38 = vpop.permute.xlu0 %1563 }
 0x147   :  { %1655 = vst.msk [vmem:[#allocation3 + $0x28] sm:$0xff] %vm1649_vm8, %v1564_v38  ;;  %v1820_v3 = vpop.permute.xlu1 %1819 }
 0x148   :  { %1912 = vst.msk [vmem:[#allocation3 + $0x20] sm:$0xff] %vm1907_vm9, %v1820_v3  ;;  %1324 = vrot.lane.b32.xlu0 %v2017_v4, %s7043_s23 }
 0x149   :  { %1326 = vrot.lane.b32.xlu1 %v1247_v62, %s7043_s23 }
 0x14a   :  { %v1822_v6 = vpop.permute.xlu0 %1821 }
 0x14b   :  { %1913 = vst.msk [vmem:[#allocation3 + $0x28] sm:$0xff] %vm1907_vm9, %v1822_v6  ;;  %v2077_v23 = vpop.permute.xlu1 %2076 }
 0x14c   :  { %2169 = vst.msk [vmem:[#allocation3 + $0x20] sm:$0xff] %vm2164_vm10, %v2077_v23  ;;  %1581 = vrot.lane.b32.xlu0 %v2274_v35, %s7044_s26  ;;  %v950_v23 = vld [vmem:[#allocation2 + $0x218] sm:$0xff] }
 0x14d   :  { %1583 = vrot.lane.b32.xlu1 %v1504_v5, %s7044_s26 }
 0x14e   :  { %v2079_v43 = vpop.permute.xlu0 %2078 }
 0x14f   :  { %2170 = vst.msk [vmem:[#allocation3 + $0x28] sm:$0xff] %vm2164_vm10, %v2079_v43  ;;  %v2334_v14 = vpop.permute.xlu1 %2333  ;;  %v994_v43 = vpack.c.bf16 %v950_v23, %v949_v8  ;;  %v2240_v8 = vld [vmem:[#allocation2 + $0x262] sm:$0xff] }
 0x150   :  { %2426 = vst.msk [vmem:[#allocation3 + $0x20] sm:$0xff] %vm2421_vm11, %v2334_v14  ;;  %1839 = vrot.lane.b32.xlu0 %v990_v7, %s7045_s29  ;;  %v1974_v7 = vld [vmem:[#allocation2 + $0x1f9] sm:$0xff] }
 0x151   :  { %1841 = vrot.lane.b32.xlu1 %v1762_v12, %s7045_s29  ;;  %v2021_v58 = vpack.c.bf16 %v1975_v57, %v1974_v7  ;;  %v1207_v14 = vld [vmem:[#allocation2 + $0x219] sm:$0xff] }
 0x152   :  { %v2336_v19 = vpop.permute.xlu0 %2335  ;;  %v1725_v57 = vld [vmem:[#allocation2 + $0x258] sm:$0xff] }
 0x153   :  { %2427 = vst.msk [vmem:[#allocation3 + $0x28] sm:$0xff] %vm2421_vm11, %v2336_v19  ;;  %v1052_v21 = vpop.permute.xlu1 %1051  ;;  %v1251_v19 = vpack.c.bf16 %v1207_v14, %v1206_v1  ;;  %v957_v14 = vld [vmem:[#allocation2 + $0x270] sm:$0xff] }
 0x154   :  { %1142 = vst.msk [vmem:[#allocation3 + $0x30] sm:$0xff] %vm1135_vm6, %v1052_v21  ;;  %2096 = vrot.lane.b32.xlu0 %v1247_v62, %s7046_s9  ;;  %v2232_v62 = vld [vmem:[#allocation2 + $0x202] sm:$0xff]  ;;  %v1464_v21 = vld [vmem:[#allocation2 + $0x21a] sm:$0xff] }
 0x155   :  { %2098 = vrot.lane.b32.xlu1 %v2019_v15, %s7046_s9  ;;  %v2278_v2 = vpack.c.bf16 %v2232_v62, %v2231_v59  ;;  %v1508_v44 = vpack.c.bf16 %v1464_v21, %v1463_v53  ;;  %v1214_v21 = vld [vmem:[#allocation2 + $0x271] sm:$0xff] }
 0x156   :  { %v1054_v26 = vpop.permute.xlu0 %1053 }
 0x157   :  { %1143 = vst.msk [vmem:[#allocation3 + $0x38] sm:$0xff] %vm1135_vm6, %v1054_v26  ;;  %v1309_v28 = vpop.permute.xlu1 %1308  ;;  %v2458_v32 = vld [vmem:[#allocation3 + $0x20] sm:$0xff]  ;;  %v1721_v26 = vld [vmem:[#allocation2 + $0x228] sm:$0xff] }
 0x158   :  { %1399 = vst.msk [vmem:[#allocation3 + $0x30] sm:$0xff] %vm1392_vm7, %v1309_v28  ;;  %2353 = vrot.lane.b32.xlu0 %v1504_v5, %s7047_s11  ;;  %6872 = vmatprep.mubr.bf16.mxu0 %v2458_v32  ;;  %v1766_v28 = vpack.c.bf16 %v1722_v27, %v1721_v26  ;;  %v1471_v27 = vld [vmem:[#allocation2 + $0x272] sm:$0xff] }
 0x159   :  { %2355 = vrot.lane.b32.xlu1 %v2276_v24, %s7047_s11 }
 0x15a   :  { %v1311_v37 = vpop.permute.xlu0 %1310  ;;  %v2459_v39 = vld [vmem:[#allocation3 + $0x28] sm:$0xff] }
 0x15b   :  { %1400 = vst.msk [vmem:[#allocation3 + $0x38] sm:$0xff] %vm1392_vm7, %v1311_v37  ;;  %v1566_v22 = vpop.permute.xlu1 %1565  ;;  %6873 = vmatmul.mubr.bf16.gmra.mrb[8].mxu0 %v2459_v39 }
 0x15c   :  { %1656 = vst.msk [vmem:[#allocation3 + $0x30] sm:$0xff] %vm1649_vm8, %v1566_v22  ;;  %814 = vrot.lane.b32.xlu0 %v734_v60, %s7041_s10  ;;  %v1978_v60 = vld [vmem:[#allocation2 + $0x229] sm:$0xff]  ;;  %v2236_v22 = vld [vmem:[#allocation2 + $0x232] sm:$0xff] }
 0x15d   :  { %816 = vrot.lane.b32.xlu1 %v735_v33, %s7041_s10 }
 0x15e   :  { %v1568_v55 = vpop.permute.xlu0 %1567 }
 0x15f   :  { %1657 = vst.msk [vmem:[#allocation3 + $0x38] sm:$0xff] %vm1649_vm8, %v1568_v55  ;;  %v1824_v45 = vpop.permute.xlu1 %1823 }
 0x160   :  { %1914 = vst.msk [vmem:[#allocation3 + $0x30] sm:$0xff] %vm1907_vm9, %v1824_v45  ;;  %1071 = vrot.lane.b32.xlu0 %v991_v61, %s7042_s19 }
 0x161   :  { %1073 = vrot.lane.b32.xlu1 %v992_v9, %s7042_s19 }
 0x162   :  { %v1826_v4 = vpop.permute.xlu0 %1825 }
 0x163   :  { %1915 = vst.msk [vmem:[#allocation3 + $0x38] sm:$0xff] %vm1907_vm9, %v1826_v4  ;;  %v2081_v56 = vpop.permute.xlu1 %2080  ;;  %v1210_v4 = vld [vmem:[#allocation2 + $0x241] sm:$0xff] }
 0x164   :  { %2171 = vst.msk [vmem:[#allocation3 + $0x30] sm:$0xff] %vm2164_vm10, %v2081_v56  ;;  %1328 = vrot.lane.b32.xlu0 %v1248_v29, %s7043_s23  ;;  %v996_v29 = vpack.c.bf16 %v954_v31, %v953_v42  ;;  %v1253_v56 = vpack.c.bf16 %v1211_v47, %v1210_v4  ;;  %v2244_v42 = vld [vmem:[#allocation2 + $0x292] sm:$0xff]  ;;  %v961_v47 = vld [vmem:[#allocation2 + $0x2a0] sm:$0xff] }
 0x165   :  { %1330 = vrot.lane.b32.xlu1 %v1249_v46, %s7043_s23 }
 0x166   :  { %v2083_v35 = vpop.permute.xlu0 %2082 }
 0x167   :  { %2172 = vst.msk [vmem:[#allocation3 + $0x38] sm:$0xff] %vm2164_vm10, %v2083_v35  ;;  %v2338_v41 = vpop.permute.xlu1 %2337  ;;  %v1467_v35 = vld [vmem:[#allocation2 + $0x242] sm:$0xff] }
 0x168   :  { %2428 = vst.msk [vmem:[#allocation3 + $0x30] sm:$0xff] %vm2421_vm11, %v2338_v41  ;;  %1585 = vrot.lane.b32.xlu0 %v735_v33, %s7044_s26  ;;  %v1979_v33 = vld [vmem:[#allocation2 + $0x231] sm:$0xff] }
 0x169   :  { %1587 = vrot.lane.b32.xlu1 %v1506_v17, %s7044_s26  ;;  %v2023_v37 = vpack.c.bf16 %v1979_v33, %v1978_v60 }
 0x16a   :  { %v2340_v54 = vpop.permute.xlu0 %2339 }
 0x16b   :  { %2429 = vst.msk [vmem:[#allocation3 + $0x38] sm:$0xff] %vm2421_vm11, %v2340_v54  ;;  %v1056_v18 = vpop.permute.xlu1 %1055  ;;  %v1510_v54 = vpack.c.bf16 %v1468_v50, %v1467_v35  ;;  %v1218_v50 = vld [vmem:[#allocation2 + $0x2a1] sm:$0xff] }
 0x16c   :  { %1144 = vst.msk [vmem:[#allocation3 + $0x40] sm:$0xff] %vm1135_vm6, %v1056_v18  ;;  %1843 = vrot.lane.b32.xlu0 %v992_v9, %s7045_s29  ;;  %v2280_v9 = vpack.c.bf16 %v2236_v22, %v2235_v34  ;;  %v1726_v18 = vld [vmem:[#allocation2 + $0x260] sm:$0xff]  ;;  %v1986_v22 = vld [vmem:[#allocation2 + $0x289] sm:$0xff] }
 0x16d   :  { %1845 = vrot.lane.b32.xlu1 %v1764_v51, %s7045_s29  ;;  %v1768_v59 = vpack.c.bf16 %v1726_v18, %v1725_v57  ;;  %v1475_v57 = vld [vmem:[#allocation2 + $0x2a2] sm:$0xff]  ;;  %v1476_v18 = vld [vmem:[#allocation2 + $0x2aa] sm:$0xff] }
 0x16e   :  { %v1058_v0 = vpop.permute.xlu0 %1057 }
 0x16f   :  { %1145 = vst.msk [vmem:[#allocation3 + $0x48] sm:$0xff] %vm1135_vm6, %v1058_v0  ;;  %v1313_v38 = vpop.permute.xlu1 %1312  ;;  %v2460_v63 = vld [vmem:[#allocation3 + $0x30] sm:$0xff] }
 0x170   :  { %1401 = vst.msk [vmem:[#allocation3 + $0x40] sm:$0xff] %vm1392_vm7, %v1313_v38  ;;  %2100 = vrot.lane.b32.xlu0 %v1249_v46, %s7046_s9  ;;  %6876 = vmatprep.mubr.bf16.mxu0 %v2460_v63  ;;  %v1982_v63 = vld [vmem:[#allocation2 + $0x259] sm:$0xff] }
 0x171   :  { %2102 = vrot.lane.b32.xlu1 %v2021_v58, %s7046_s9 }
 0x172   :  { %v1315_v3 = vpop.permute.xlu0 %1314  ;;  %v2461_v5 = vld [vmem:[#allocation3 + $0x38] sm:$0xff] }
 0x173   :  { %1402 = vst.msk [vmem:[#allocation3 + $0x48] sm:$0xff] %vm1392_vm7, %v1315_v3  ;;  %v1570_v6 = vpop.permute.xlu1 %1569  ;;  %6877 = vmatmul.mubr.bf16.gmra.mrb[12].mxu0 %v2461_v5 }
 0x174   :  { %1658 = vst.msk [vmem:[#allocation3 + $0x40] sm:$0xff] %vm1649_vm8, %v1570_v6  ;;  %2357 = vrot.lane.b32.xlu0 %v1506_v17, %s7047_s11 }
 0x175   :  { %2359 = vrot.lane.b32.xlu1 %v2278_v2, %s7047_s11 }
 0x176   :  { %v1572_v52 = vpop.permute.xlu0 %1571 }
 0x177   :  { %1659 = vst.msk [vmem:[#allocation3 + $0x48] sm:$0xff] %vm1649_vm8, %v1572_v52  ;;  %v1828_v12 = vpop.permute.xlu1 %1827  ;;  %v2239_v52 = vld [vmem:[#allocation2 + $0x25a] sm:$0xff] }
 0x178   :  { %1916 = vst.msk [vmem:[#allocation3 + $0x40] sm:$0xff] %vm1907_vm9, %v1828_v12  ;;  %818 = vrot.lane.b32.xlu0 %v1506_v17, %s7041_s10  ;;  %v2282_v12 = vpack.c.bf16 %v2240_v8, %v2239_v52  ;;  %v1991_v52 = vld [vmem:[#allocation2 + $0x2c1] sm:$0xff] }
 0x179   :  { %820 = vrot.lane.b32.xlu1 %v2278_v2, %s7041_s10 }
 0x17a   :  { %v1830_v13 = vpop.permute.xlu0 %1829 }
 0x17b   :  { %1917 = vst.msk [vmem:[#allocation3 + $0x48] sm:$0xff] %vm1907_vm9, %v1830_v13  ;;  %v2085_v15 = vpop.permute.xlu1 %2084 }
 0x17c   :  { %2173 = vst.msk [vmem:[#allocation3 + $0x40] sm:$0xff] %vm2164_vm10, %v2085_v15  ;;  %1075 = vrot.lane.b32.xlu0 %v1764_v51, %s7042_s19  ;;  %v204_v51 = vld [vmem:[%s11791_s0 + $0x1f8] sm:$0xff] }
 0x17d   :  { %1077 = vrot.lane.b32.xlu1 %v994_v43, %s7042_s19  ;;  %268 = vst.msk [vmem:[#allocation2 + $0x339] sm:$0xff] %vm27_vm0, %v204_v51  ;;  %v958_v15 = vld [vmem:[#allocation2 + $0x278] sm:$0xff]  ;;  %v1257_v51 = vpack.c.bf16 %v1219_v40, %v1218_v50 }
 0x17e   :  { %v2087_v20 = vpop.permute.xlu0 %2086 }
 0x17f   :  { %2174 = vst.msk [vmem:[#allocation3 + $0x48] sm:$0xff] %vm2164_vm10, %v2087_v20  ;;  %v2342_v24 = vpop.permute.xlu1 %2341  ;;  %v998_v20 = vpack.c.bf16 %v958_v15, %v957_v14 }
 0x180   :  { %2430 = vst.msk [vmem:[#allocation3 + $0x40] sm:$0xff] %vm2421_vm11, %v2342_v24  ;;  %1332 = vrot.lane.b32.xlu0 %v2021_v58, %s7043_s23  ;;  %v1215_v24 = vld [vmem:[#allocation2 + $0x279] sm:$0xff] }
 0x181   :  { %1334 = vrot.lane.b32.xlu1 %v1251_v19, %s7043_s23 }
 0x182   :  { %v2344_v25 = vpop.permute.xlu0 %2343 }
 0x183   :  { %2431 = vst.msk [vmem:[#allocation3 + $0x48] sm:$0xff] %vm2421_vm11, %v2344_v25  ;;  %v1060_v10 = vpop.permute.xlu1 %1059  ;;  %v1255_v25 = vpack.c.bf16 %v1215_v24, %v1214_v21  ;;  %v966_v21 = vld [vmem:[#allocation2 + $0x2d8] sm:$0xff] }
 0x184   :  { %1146 = vst.msk [vmem:[#allocation3 + $0x50] sm:$0xff] %vm1135_vm6, %v1060_v10  ;;  %1589 = vrot.lane.b32.xlu0 %v2278_v2, %s7044_s26  ;;  %v1983_v2 = vld [vmem:[#allocation2 + $0x261] sm:$0xff] }
 0x185   :  { %1591 = vrot.lane.b32.xlu1 %v1508_v44, %s7044_s26  ;;  %v2025_v5 = vpack.c.bf16 %v1983_v2, %v1982_v63  ;;  %v1472_v10 = vld [vmem:[#allocation2 + $0x27a] sm:$0xff] }
 0x186   :  { %v1062_v32 = vpop.permute.xlu0 %1061  ;;  %v1512_v60 = vpack.c.bf16 %v1472_v10, %v1471_v27  ;;  %v1734_v63 = vld [vmem:[#allocation2 + $0x2c0] sm:$0xff] }
 0x187   :  { %1147 = vst.msk [vmem:[#allocation3 + $0x58] sm:$0xff] %vm1135_vm6, %v1062_v32  ;;  %v1317_v36 = vpop.permute.xlu1 %1316  ;;  %v2462_v48 = vld [vmem:[#allocation3 + $0x40] sm:$0xff] }
 0x188   :  { %1403 = vst.msk [vmem:[#allocation3 + $0x50] sm:$0xff] %vm1392_vm7, %v1317_v36  ;;  %1847 = vrot.lane.b32.xlu0 %v994_v43, %s7045_s29  ;;  %6880 = vmatprep.mubr.bf16.mxu0 %v2462_v48  ;;  %v1729_v48 = vld [vmem:[#allocation2 + $0x288] sm:$0xff]  ;;  %v1223_v27 = vld [vmem:[#allocation2 + $0x2d9] sm:$0xff] }
 0x189   :  { %1849 = vrot.lane.b32.xlu1 %v1766_v28, %s7045_s29 }
 0x18a   :  { %v1319_v39 = vpop.permute.xlu0 %1318  ;;  %v2463_v16 = vld [vmem:[#allocation3 + $0x48] sm:$0xff] }
 0x18b   :  { %1404 = vst.msk [vmem:[#allocation3 + $0x58] sm:$0xff] %vm1392_vm7, %v1319_v39  ;;  %v1574_v61 = vpop.permute.xlu1 %1573  ;;  %6881 = vmatmul.mubr.bf16.gmra.mrb[16].mxu0 %v2463_v16 }
 0x18c   :  { %1660 = vst.msk [vmem:[#allocation3 + $0x50] sm:$0xff] %vm1649_vm8, %v1574_v61  ;;  %2104 = vrot.lane.b32.xlu0 %v1251_v19, %s7046_s9  ;;  %v1987_v61 = vld [vmem:[#allocation2 + $0x291] sm:$0xff] }
 0x18d   :  { %2106 = vrot.lane.b32.xlu1 %v2023_v37, %s7046_s9 }
 0x18e   :  { %v1576_v11 = vpop.permute.xlu0 %1575 }
 0x18f   :  { %1661 = vst.msk [vmem:[#allocation3 + $0x58] sm:$0xff] %vm1649_vm8, %v1576_v11  ;;  %v1832_v30 = vpop.permute.xlu1 %1831  ;;  %v2027_v11 = vpack.c.bf16 %v1987_v61, %v1986_v22  ;;  %v1738_v22 = vld [vmem:[#allocation2 + $0x2f0] sm:$0xff] }
 0x190   :  { %1918 = vst.msk [vmem:[#allocation3 + $0x50] sm:$0xff] %vm1907_vm9, %v1832_v30  ;;  %2361 = vrot.lane.b32.xlu0 %v1508_v44, %s7047_s11 }
 0x191   :  { %2363 = vrot.lane.b32.xlu1 %v2280_v9, %s7047_s11 }
 0x192   :  { %v1834_v55 = vpop.permute.xlu0 %1833 }
 0x193   :  { %1919 = vst.msk [vmem:[#allocation3 + $0x58] sm:$0xff] %vm1907_vm9, %v1834_v55  ;;  %v2089_v45 = vpop.permute.xlu1 %2088  ;;  %v2243_v55 = vld [vmem:[#allocation2 + $0x28a] sm:$0xff] }
 0x194   :  { %2175 = vst.msk [vmem:[#allocation3 + $0x50] sm:$0xff] %vm2164_vm10, %v2089_v45  ;;  %822 = vrot.lane.b32.xlu0 %v1508_v44, %s7041_s10  ;;  %v2284_v45 = vpack.c.bf16 %v2244_v42, %v2243_v55  ;;  %v1995_v55 = vld [vmem:[#allocation2 + $0x2f1] sm:$0xff] }
 0x195   :  { %824 = vrot.lane.b32.xlu1 %v2280_v9, %s7041_s10 }
 0x196   :  { %v2091_v46 = vpop.permute.xlu0 %2090 }
 0x197   :  { %2176 = vst.msk [vmem:[#allocation3 + $0x58] sm:$0xff] %vm2164_vm10, %v2091_v46  ;;  %v2346_v49 = vpop.permute.xlu1 %2345 }
 0x198   :  { %2432 = vst.msk [vmem:[#allocation3 + $0x50] sm:$0xff] %vm2421_vm11, %v2346_v49  ;;  %1079 = vrot.lane.b32.xlu0 %v1766_v28, %s7042_s19  ;;  %v962_v49 = vld [vmem:[#allocation2 + $0x2a8] sm:$0xff] }
 0x199   :  { %1081 = vrot.lane.b32.xlu1 %v996_v29, %s7042_s19 }
 0x19a   :  { %v2348_v17 = vpop.permute.xlu0 %2347 }
 0x19b   :  { %2433 = vst.msk [vmem:[#allocation3 + $0x58] sm:$0xff] %vm2421_vm11, %v2348_v17  ;;  %v1064_v41 = vpop.permute.xlu1 %1063  ;;  %v1000_v17 = vpack.c.bf16 %v962_v49, %v961_v47 }
 0x19c   :  { %1148 = vst.msk [vmem:[#allocation3 + $0x60] sm:$0xff] %vm1135_vm6, %v1064_v41  ;;  %1336 = vrot.lane.b32.xlu0 %v2023_v37, %s7043_s23  ;;  %v1730_v37 = vld [vmem:[#allocation2 + $0x290] sm:$0xff] }
 0x19d   :  { %1338 = vrot.lane.b32.xlu1 %v1253_v56, %s7043_s23  ;;  %v1770_v16 = vpack.c.bf16 %v1730_v37, %v1729_v48 }
 0x19e   :  { %v1066_v7 = vpop.permute.xlu0 %1065 }
 0x19f   :  { %1149 = vst.msk [vmem:[#allocation3 + $0x68] sm:$0xff] %vm1135_vm6, %v1066_v7  ;;  %v1321_v58 = vpop.permute.xlu1 %1320  ;;  %v2464_v0 = vld [vmem:[#allocation3 + $0x50] sm:$0xff] }
 0x1a0   :  { %1405 = vst.msk [vmem:[#allocation3 + $0x60] sm:$0xff] %vm1392_vm7, %v1321_v58  ;;  %1593 = vrot.lane.b32.xlu0 %v2280_v9, %s7044_s26  ;;  %6884 = vmatprep.mubr.bf16.mxu0 %v2464_v0 }
 0x1a1   :  { %1595 = vrot.lane.b32.xlu1 %v1510_v54, %s7044_s26 }
 0x1a2   :  { %v1323_v62 = vpop.permute.xlu0 %1322  ;;  %v2465_v38 = vld [vmem:[#allocation3 + $0x58] sm:$0xff] }
 0x1a3   :  { %1406 = vst.msk [vmem:[#allocation3 + $0x68] sm:$0xff] %vm1392_vm7, %v1323_v62  ;;  %v1578_v3 = vpop.permute.xlu1 %1577  ;;  %6885 = vmatmul.mubr.bf16.gmra.mrb[20].mxu0 %v2465_v38  ;;  %v1733_v38 = vld [vmem:[#allocation2 + $0x2b8] sm:$0xff] }
 0x1a4   :  { %1662 = vst.msk [vmem:[#allocation3 + $0x60] sm:$0xff] %vm1649_vm8, %v1578_v3  ;;  %1851 = vrot.lane.b32.xlu0 %v996_v29, %s7045_s29  ;;  %v1772_v3 = vpack.c.bf16 %v1734_v63, %v1733_v38 }
 0x1a5   :  { %1853 = vrot.lane.b32.xlu1 %v1768_v59, %s7045_s29 }
 0x1a6   :  { %v1580_v6 = vpop.permute.xlu0 %1579 }
 0x1a7   :  { %1663 = vst.msk [vmem:[#allocation3 + $0x68] sm:$0xff] %vm1649_vm8, %v1580_v6  ;;  %v1836_v23 = vpop.permute.xlu1 %1835  ;;  %v1990_v6 = vld [vmem:[#allocation2 + $0x2b9] sm:$0xff] }
 0x1a8   :  { %1920 = vst.msk [vmem:[#allocation3 + $0x60] sm:$0xff] %vm1907_vm9, %v1836_v23  ;;  %2108 = vrot.lane.b32.xlu0 %v1253_v56, %s7046_s9  ;;  %v2029_v23 = vpack.c.bf16 %v1991_v52, %v1990_v6 }
 0x1a9   :  { %2110 = vrot.lane.b32.xlu1 %v2025_v5, %s7046_s9 }
 0x1aa   :  { %v1838_v43 = vpop.permute.xlu0 %1837 }
 0x1ab   :  { %1921 = vst.msk [vmem:[#allocation3 + $0x68] sm:$0xff] %vm1907_vm9, %v1838_v43  ;;  %v2093_v13 = vpop.permute.xlu1 %2092  ;;  %v2247_v43 = vld [vmem:[#allocation2 + $0x2ba] sm:$0xff] }
 0x1ac   :  { %2177 = vst.msk [vmem:[#allocation3 + $0x60] sm:$0xff] %vm2164_vm10, %v2093_v13  ;;  %2365 = vrot.lane.b32.xlu0 %v1510_v54, %s7047_s11  ;;  %v2248_v13 = vld [vmem:[#allocation2 + $0x2c2] sm:$0xff] }
 0x1ad   :  { %2367 = vrot.lane.b32.xlu1 %v2282_v12, %s7047_s11  ;;  %v2286_v14 = vpack.c.bf16 %v2248_v13, %v2247_v43  ;;  %v1226_v43 = vld [vmem:[#allocation2 + $0x301] sm:$0xff]  ;;  %v1227_v13 = vld [vmem:[#allocation2 + $0x309] sm:$0xff] }
 0x1ae   :  { %v2095_v1 = vpop.permute.xlu0 %2094 }
 0x1af   :  { %2178 = vst.msk [vmem:[#allocation3 + $0x68] sm:$0xff] %vm2164_vm10, %v2095_v1  ;;  %v2350_v19 = vpop.permute.xlu1 %2349 }
 0x1b0   :  { %2434 = vst.msk [vmem:[#allocation3 + $0x60] sm:$0xff] %vm2421_vm11, %v2350_v19  ;;  %826 = vrot.lane.b32.xlu0 %v1510_v54, %s7041_s10 }
 0x1b1   :  { %828 = vrot.lane.b32.xlu1 %v2282_v12, %s7041_s10 }
 0x1b2   :  { %v2352_v53 = vpop.permute.xlu0 %2351 }
 0x1b3   :  { %2435 = vst.msk [vmem:[#allocation3 + $0x68] sm:$0xff] %vm2421_vm11, %v2352_v53  ;;  %v813_v44 = vpop.permute.xlu1 %812  ;;  %v965_v53 = vld [vmem:[#allocation2 + $0x2d0] sm:$0xff] }
 0x1b4   :  { %894 = vst.msk [vmem:[#allocation3 + $0x78] sm:$0xff] %vm878_vm5, %v813_v44  ;;  %1083 = vrot.lane.b32.xlu0 %v1768_v59, %s7042_s19  ;;  %v1514_v59 = vpack.c.bf16 %v1476_v18, %v1475_v57  ;;  %v1002_v44 = vpack.c.bf16 %v966_v21, %v965_v53 }
 0x1b5   :  { %1085 = vrot.lane.b32.xlu1 %v998_v20, %s7042_s19 }
 0x1b6   :  { %v1068_v26 = vpop.permute.xlu0 %1067 }
 0x1b7   :  { %1150 = vst.msk [vmem:[#allocation3 + $0x70] sm:$0xff] %vm1135_vm6, %v1068_v26  ;;  %v1070_v28 = vpop.permute.xlu1 %1069  ;;  %v2466_v32 = vld [vmem:[#allocation3 + $0x60] sm:$0xff]  ;;  %v1222_v26 = vld [vmem:[#allocation2 + $0x2d1] sm:$0xff] }
 0x1b8   :  { %1151 = vst.msk [vmem:[#allocation3 + $0x78] sm:$0xff] %vm1135_vm6, %v1070_v28  ;;  %1340 = vrot.lane.b32.xlu0 %v2025_v5, %s7043_s23  ;;  %6888 = vmatprep.mubr.bf16.mxu0 %v2466_v32  ;;  %v1259_v28 = vpack.c.bf16 %v1223_v27, %v1222_v26 }
 0x1b9   :  { %1342 = vrot.lane.b32.xlu1 %v1255_v25, %s7043_s23 }
 0x1ba   :  { %v1325_v33 = vpop.permute.xlu0 %1324  ;;  %v2467_v36 = vld [vmem:[#allocation3 + $0x68] sm:$0xff] }
 0x1bb   :  { %1407 = vst.msk [vmem:[#allocation3 + $0x70] sm:$0xff] %vm1392_vm7, %v1325_v33  ;;  %v1327_v39 = vpop.permute.xlu1 %1326  ;;  %6889 = vmatmul.mubr.bf16.gmra.mrb[24].mxu0 %v2467_v36  ;;  %v1479_v33 = vld [vmem:[#allocation2 + $0x2d2] sm:$0xff]  ;;  %v1480_v36 = vld [vmem:[#allocation2 + $0x2da] sm:$0xff] }
 0x1bc   :  { %1408 = vst.msk [vmem:[#allocation3 + $0x78] sm:$0xff] %vm1392_vm7, %v1327_v39  ;;  %1597 = vrot.lane.b32.xlu0 %v2282_v12, %s7044_s26  ;;  %v1516_v39 = vpack.c.bf16 %v1480_v36, %v1479_v33 }
 0x1bd   :  { %1599 = vrot.lane.b32.xlu1 %v1512_v60, %s7044_s26 }
 0x1be   :  { %v1582_v34 = vpop.permute.xlu0 %1581 }
 0x1bf   :  { %1664 = vst.msk [vmem:[#allocation3 + $0x70] sm:$0xff] %vm1649_vm8, %v1582_v34  ;;  %v1584_v9 = vpop.permute.xlu1 %1583  ;;  %v1737_v34 = vld [vmem:[#allocation2 + $0x2e8] sm:$0xff] }
 0x1c0   :  { %1665 = vst.msk [vmem:[#allocation3 + $0x78] sm:$0xff] %vm1649_vm8, %v1584_v9  ;;  %1855 = vrot.lane.b32.xlu0 %v998_v20, %s7045_s29  ;;  %v1774_v9 = vpack.c.bf16 %v1738_v22, %v1737_v34 }
 0x1c1   :  { %1857 = vrot.lane.b32.xlu1 %v1770_v16, %s7045_s29 }
 0x1c2   :  { %v1840_v30 = vpop.permute.xlu0 %1839 }
 0x1c3   :  { %1922 = vst.msk [vmem:[#allocation3 + $0x70] sm:$0xff] %vm1907_vm9, %v1840_v30  ;;  %v1842_v31 = vpop.permute.xlu1 %1841  ;;  %v1994_v30 = vld [vmem:[#allocation2 + $0x2e9] sm:$0xff] }
 0x1c4   :  { %1923 = vst.msk [vmem:[#allocation3 + $0x78] sm:$0xff] %vm1907_vm9, %v1842_v31  ;;  %2112 = vrot.lane.b32.xlu0 %v1255_v25, %s7046_s9  ;;  %v8131_v31 = vpack.c.bf16 %v1995_v55, %v1994_v30 }
 0x1c5   :  { %2114 = vrot.lane.b32.xlu1 %v2027_v11, %s7046_s9 }
 0x1c6   :  { %v2097_v29 = vpop.permute.xlu0 %2096 }
 0x1c7   :  { %2179 = vst.msk [vmem:[#allocation3 + $0x70] sm:$0xff] %vm2164_vm10, %v2097_v29  ;;  %v2099_v46 = vpop.permute.xlu1 %2098  ;;  %v2251_v29 = vld [vmem:[#allocation2 + $0x2ea] sm:$0xff] }
 0x1c8   :  { %2180 = vst.msk [vmem:[#allocation3 + $0x78] sm:$0xff] %vm2164_vm10, %v2099_v46  ;;  %2369 = vrot.lane.b32.xlu0 %v1512_v60, %s7047_s11  ;;  %v2252_v46 = vld [vmem:[#allocation2 + $0x2f2] sm:$0xff] }
 0x1c9   :  { %2371 = vrot.lane.b32.xlu1 %v2284_v45, %s7047_s11  ;;  %v8138_v47 = vpack.c.bf16 %v2252_v46, %v2251_v29 }
 0x1ca   :  { %v2354_v4 = vpop.permute.xlu0 %2353 }
 0x1cb   :  { %2436 = vst.msk [vmem:[#allocation3 + $0x70] sm:$0xff] %vm2421_vm11, %v2354_v4  ;;  %v2356_v56 = vpop.permute.xlu1 %2355 }
 0x1cc   :  { %2437 = vst.msk [vmem:[#allocation3 + $0x78] sm:$0xff] %vm2421_vm11, %v2356_v56  ;;  %830 = vrot.lane.b32.xlu0 %v1512_v60, %s7041_s10 }
 0x1cd   :  { %832 = vrot.lane.b32.xlu1 %v2284_v45, %s7041_s10 }
 0x1ce   :  { %v815_v35 = vpop.permute.xlu0 %814 }
 0x1cf   :  { %895 = vst.msk [vmem:[#allocation3 + $0x80] sm:$0xff] %vm878_vm5, %v815_v35  ;;  %v817_v41 = vpop.permute.xlu1 %816 }
 0x1d0   :  { %896 = vst.msk [vmem:[#allocation3 + $0x88] sm:$0xff] %vm878_vm5, %v817_v41  ;;  %1087 = vrot.lane.b32.xlu0 %v1770_v16, %s7042_s19 }
 0x1d1   :  { %1089 = vrot.lane.b32.xlu1 %v1000_v17, %s7042_s19 }
 0x1d2   :  { %v1072_v54 = vpop.permute.xlu0 %1071  ;;  %v2468_v7 = vld [vmem:[#allocation3 + $0x70] sm:$0xff] }
 0x1d3   :  { %1152 = vst.msk [vmem:[#allocation3 + $0x80] sm:$0xff] %vm1135_vm6, %v1072_v54  ;;  %v1074_v58 = vpop.permute.xlu1 %1073  ;;  %6892 = vmatprep.mubr.bf16.mxu0 %v2468_v7  ;;  %v2469_v0 = vld [vmem:[#allocation3 + $0x78] sm:$0xff] }
 0x1d4   :  { %1153 = vst.msk [vmem:[#allocation3 + $0x88] sm:$0xff] %vm1135_vm6, %v1074_v58  ;;  %1344 = vrot.lane.b32.xlu0 %v2027_v11, %s7043_s23  ;;  %6893 = vmatmul.mubr.bf16.gmra.mrb[28].mxu0 %v2469_v0  ;;  %v969_v58 = vld [vmem:[#allocation2 + $0x300] sm:$0xff]  ;;  %v970_v0 = vld [vmem:[#allocation2 + $0x308] sm:$0xff] }
 0x1d5   :  { %1346 = vrot.lane.b32.xlu1 %v1257_v51, %s7043_s23  ;;  %v1004_v52 = vpack.c.bf16 %v970_v0, %v969_v58 }
 0x1d6   :  { %v1329_v62 = vpop.permute.xlu0 %1328 }
 0x1d7   :  { %1409 = vst.msk [vmem:[#allocation3 + $0x80] sm:$0xff] %vm1392_vm7, %v1329_v62  ;;  %v1331_v2 = vpop.permute.xlu1 %1330 }
 0x1d8   :  { %1410 = vst.msk [vmem:[#allocation3 + $0x88] sm:$0xff] %vm1392_vm7, %v1331_v2  ;;  %1601 = vrot.lane.b32.xlu0 %v2284_v45, %s7044_s26 }
 0x1d9   :  { %1603 = vrot.lane.b32.xlu1 %v1514_v59, %s7044_s26 }
 0x1da   :  { %v1586_v5 = vpop.permute.xlu0 %1585 }
 0x1db   :  { %1666 = vst.msk [vmem:[#allocation3 + $0x80] sm:$0xff] %vm1649_vm8, %v1586_v5  ;;  %v1588_v8 = vpop.permute.xlu1 %1587 }
 0x1dc   :  { %1667 = vst.msk [vmem:[#allocation3 + $0x88] sm:$0xff] %vm1649_vm8, %v1588_v8  ;;  %1859 = vrot.lane.b32.xlu0 %v1000_v17, %s7045_s29 }
 0x1dd   :  { %1861 = vrot.lane.b32.xlu1 %v1772_v3, %s7045_s29 }
 0x1de   :  { %v1844_v12 = vpop.permute.xlu0 %1843 }
 0x1df   :  { %1924 = vst.msk [vmem:[#allocation3 + $0x80] sm:$0xff] %vm1907_vm9, %v1844_v12  ;;  %v1846_v1 = vpop.permute.xlu1 %1845 }
 0x1e0   :  { %1925 = vst.msk [vmem:[#allocation3 + $0x88] sm:$0xff] %vm1907_vm9, %v1846_v1  ;;  %2116 = vrot.lane.b32.xlu0 %v1257_v51, %s7046_s9 }
 0x1e1   :  { %2118 = vrot.lane.b32.xlu1 %v2029_v23, %s7046_s9 }
 0x1e2   :  { %v2101_v15 = vpop.permute.xlu0 %2100 }
 0x1e3   :  { %2181 = vst.msk [vmem:[#allocation3 + $0x80] sm:$0xff] %vm2164_vm10, %v2101_v15  ;;  %v2103_v19 = vpop.permute.xlu1 %2102 }
 0x1e4   :  { %2182 = vst.msk [vmem:[#allocation3 + $0x88] sm:$0xff] %vm2164_vm10, %v2103_v19  ;;  %2373 = vrot.lane.b32.xlu0 %v1514_v59, %s7047_s11 }
 0x1e5   :  { %2375 = vrot.lane.b32.xlu1 %v2286_v14, %s7047_s11 }
 0x1e6   :  { %v2358_v20 = vpop.permute.xlu0 %2357 }
 0x1e7   :  { %2438 = vst.msk [vmem:[#allocation3 + $0x80] sm:$0xff] %vm2421_vm11, %v2358_v20  ;;  %v2360_v24 = vpop.permute.xlu1 %2359  ;;  %v1261_v20 = vpack.c.bf16 %v1227_v13, %v1226_v43 }
 0x1e8   :  { %2439 = vst.msk [vmem:[#allocation3 + $0x88] sm:$0xff] %vm2421_vm11, %v2360_v24  ;;  %834 = vrot.lane.b32.xlu0 %v1514_v59, %s7041_s10 }
 0x1e9   :  { %836 = vrot.lane.b32.xlu1 %v2286_v14, %s7041_s10 }
 0x1ea   :  { %v819_v25 = vpop.permute.xlu0 %818 }
 0x1eb   :  { %897 = vst.msk [vmem:[#allocation3 + $0x90] sm:$0xff] %vm878_vm5, %v819_v25  ;;  %v821_v10 = vpop.permute.xlu1 %820  ;;  %v1484_v25 = vld [vmem:[#allocation2 + $0x30a] sm:$0xff] }
 0x1ec   :  { %898 = vst.msk [vmem:[#allocation3 + $0x98] sm:$0xff] %vm878_vm5, %v821_v10  ;;  %1091 = vrot.lane.b32.xlu0 %v1772_v3, %s7042_s19 }
 0x1ed   :  { %1093 = vrot.lane.b32.xlu1 %v1002_v44, %s7042_s19 }
 0x1ee   :  { %v1076_v32 = vpop.permute.xlu0 %1075  ;;  %v2470_v60 = vld [vmem:[#allocation3 + $0x80] sm:$0xff] }
 0x1ef   :  { %1154 = vst.msk [vmem:[#allocation3 + $0x90] sm:$0xff] %vm1135_vm6, %v1076_v32  ;;  %v1078_v48 = vpop.permute.xlu1 %1077  ;;  %6896 = vmatprep.mubr.bf16.mxu0 %v2470_v60  ;;  %v2471_v37 = vld [vmem:[#allocation3 + $0x88] sm:$0xff]  ;;  %v1741_v32 = vld [vmem:[#allocation2 + $0x318] sm:$0xff]  ;;  %v1742_v60 = vld [vmem:[#allocation2 + $0x320] sm:$0xff] }
 0x1f0   :  { %1155 = vst.msk [vmem:[#allocation3 + $0x98] sm:$0xff] %vm1135_vm6, %v1078_v48  ;;  %1348 = vrot.lane.b32.xlu0 %v2029_v23, %s7043_s23  ;;  %6897 = vmatmul.mubr.bf16.gmra.mrb[32].mxu0 %v2471_v37  ;;  %v8195_v36 = vpack.c.bf16 %v1742_v60, %v1741_v32  ;;  %v1998_v37 = vld [vmem:[#allocation2 + $0x319] sm:$0xff] }
 0x1f1   :  { %1350 = vrot.lane.b32.xlu1 %v1259_v28, %s7043_s23 }
 0x1f2   :  { %v1333_v16 = vpop.permute.xlu0 %1332 }
 0x1f3   :  { %1411 = vst.msk [vmem:[#allocation3 + $0x90] sm:$0xff] %vm1392_vm7, %v1333_v16  ;;  %v1335_v61 = vpop.permute.xlu1 %1334 }
 0x1f4   :  { %1412 = vst.msk [vmem:[#allocation3 + $0x98] sm:$0xff] %vm1392_vm7, %v1335_v61  ;;  %1605 = vrot.lane.b32.xlu0 %v2286_v14, %s7044_s26 }
 0x1f5   :  { %1607 = vrot.lane.b32.xlu1 %v1516_v39, %s7044_s26 }
 0x1f6   :  { %v1590_v11 = vpop.permute.xlu0 %1589 }
 0x1f7   :  { %1668 = vst.msk [vmem:[#allocation3 + $0x90] sm:$0xff] %vm1649_vm8, %v1590_v11  ;;  %v1592_v42 = vpop.permute.xlu1 %1591  ;;  %v2256_v11 = vld [vmem:[#allocation2 + $0x322] sm:$0xff] }
 0x1f8   :  { %1669 = vst.msk [vmem:[#allocation3 + $0x98] sm:$0xff] %vm1649_vm8, %v1592_v42  ;;  %1863 = vrot.lane.b32.xlu0 %v1002_v44, %s7045_s29  ;;  %v1483_v44 = vld [vmem:[#allocation2 + $0x302] sm:$0xff] }
 0x1f9   :  { %1865 = vrot.lane.b32.xlu1 %v1774_v9, %s7045_s29  ;;  %v8187_v10 = vpack.c.bf16 %v1484_v25, %v1483_v44 }
 0x1fa   :  { %v1848_v45 = vpop.permute.xlu0 %1847 }
 0x1fb   :  { %1926 = vst.msk [vmem:[#allocation3 + $0x90] sm:$0xff] %vm1907_vm9, %v1848_v45  ;;  %v1850_v4 = vpop.permute.xlu1 %1849 }
 0x1fc   :  { %1927 = vst.msk [vmem:[#allocation3 + $0x98] sm:$0xff] %vm1907_vm9, %v1850_v4  ;;  %2120 = vrot.lane.b32.xlu0 %v1259_v28, %s7046_s9 }
 0x1fd   :  { %2122 = vrot.lane.b32.xlu1 %v8131_v31, %s7046_s9 }
 0x1fe   :  { %v2105_v49 = vpop.permute.xlu0 %2104  ;;  %v8140_v56 = vpop.f32.mrb[0].mxu0 }
 0x1ff   :  { %2183 = vst.msk [vmem:[#allocation3 + $0x90] sm:$0xff] %vm2164_vm10, %v2105_v49  ;;  %v2107_v17 = vpop.permute.xlu1 %2106  ;;  %v8143_v35 = vpop.f32.mrb[1].mxu0  ;;  %v2974_v51 = vmul.f32 %v8140_v56, %v8140_v56  ;;  %v2842_v38 = vsel %vm27_vm0, %v8140_v56, 0.0 }
 0x200   :  { %2184 = vst.msk [vmem:[#allocation3 + $0x98] sm:$0xff] %vm2164_vm10, %v2107_v17  ;;  %v2972_v50 = vmul.f32 %v8143_v35, %v8143_v35  ;;  %2377 = vrot.lane.b32.xlu0 %v1516_v39, %s7047_s11  ;;  %v8149_v40 = vpop.f32.mrb[2].mxu0  ;;  %v2839_v54 = vsel %vm27_vm0, %v8143_v35, 0.0 }
 0x201   :  { %2379 = vrot.lane.b32.xlu1 %v8138_v47, %s7047_s11  ;;  %v8153_v41 = vpop.f32.mrb[3].mxu0  ;;  %v2975_v2 = vmul.f32 %v8149_v40, %v8149_v40  ;;  %v3039_v8 = vsel %vm27_vm0, %v2974_v51, 0.0  ;;  %v2844_v23 = vsel %vm27_vm0, %v8149_v40, 0.0 }
 0x202   :  { %v2840_v7 = vsel %vm27_vm0, %v8153_v41, 0.0  ;;  %v2973_v57 = vmul.f32 %v8153_v41, %v8153_v41  ;;  %v2362_v18 = vpop.permute.xlu0 %2361  ;;  %v3036_v63 = vsel %vm27_vm0, %v2972_v50, 0.0 }
 0x203   :  { %v2841_v59 = vadd.f32 %v2840_v7, %v2839_v54  ;;  %2440 = vst.msk [vmem:[#allocation3 + $0x90] sm:$0xff] %vm2421_vm11, %v2362_v18  ;;  %v2364_v62 = vpop.permute.xlu1 %2363  ;;  %v3041_v19 = vsel %vm27_vm0, %v2975_v2, 0.0 }
 0x204   :  { %v3037_v3 = vsel %vm27_vm0, %v2973_v57, 0.0  ;;  %2441 = vst.msk [vmem:[#allocation3 + $0x98] sm:$0xff] %vm2421_vm11, %v2364_v62  ;;  %838 = vrot.lane.b32.xlu0 %v1516_v39, %s7041_s10  ;;  %v1999_v39 = vld [vmem:[#allocation2 + $0x321] sm:$0xff] }
 0x205   :  { %v2843_v5 = vadd.f32 %v2842_v38, %v2841_v59  ;;  %v3038_v6 = vadd.f32 %v3037_v3, %v3036_v63  ;;  %840 = vrot.lane.b32.xlu1 %v8138_v47, %s7041_s10  ;;  %v8202_v34 = vpack.c.bf16 %v1999_v39, %v1998_v37  ;;  %v973_v3 = vld [vmem:[#allocation2 + $0x330] sm:$0xff] }
 0x206   :  { %v823_v12 = vpop.permute.xlu0 %822  ;;  %v2003_v37 = vld [vmem:[#allocation2 + $0x351] sm:$0xff] }
 0x207   :  { %v3040_v1 = vadd.f32 %v3039_v8, %v3038_v6  ;;  %899 = vst.msk [vmem:[#allocation3 + $0xa0] sm:$0xff] %vm878_vm5, %v823_v12  ;;  %v825_v14 = vpop.permute.xlu1 %824  ;;  %v2845_v15 = vadd.f32 %v2844_v23, %v2843_v5  ;;  %v974_v5 = vld [vmem:[#allocation2 + $0x338] sm:$0xff] }
 0x208   :  { %900 = vst.msk [vmem:[#allocation3 + $0xa8] sm:$0xff] %vm878_vm5, %v825_v14  ;;  %1095 = vrot.lane.b32.xlu0 %v1774_v9, %s7042_s19  ;;  %v2255_v9 = vld [vmem:[#allocation2 + $0x31a] sm:$0xff]  ;;  %v1006_v12 = vpack.c.bf16 %v974_v5, %v973_v3 }
 0x209   :  { %1097 = vrot.lane.b32.xlu1 %v1004_v52, %s7042_s19  ;;  %v3042_v53 = vadd.f32 %v3041_v19, %v3040_v1  ;;  %v2290_v4 = vpack.c.bf16 %v2256_v11, %v2255_v9  ;;  %v1230_v1 = vld [vmem:[#allocation2 + $0x331] sm:$0xff]  ;;  %v1231_v14 = vld [vmem:[#allocation2 + $0x339] sm:$0xff] }
 0x20a   :  { %v1080_v21 = vpop.permute.xlu0 %1079  ;;  %v2472_v24 = vld [vmem:[#allocation3 + $0x90] sm:$0xff]  ;;  %v1263_v19 = vpack.c.bf16 %v1231_v14, %v1230_v1 }
 0x20b   :  { %1156 = vst.msk [vmem:[#allocation3 + $0xa0] sm:$0xff] %vm1135_vm6, %v1080_v21  ;;  %v1082_v26 = vpop.permute.xlu1 %1081  ;;  %6900 = vmatprep.mubr.bf16.mxu0 %v2472_v24  ;;  %v2473_v27 = vld [vmem:[#allocation3 + $0x98] sm:$0xff] }
 0x20c   :  { %1157 = vst.msk [vmem:[#allocation3 + $0xa8] sm:$0xff] %vm1135_vm6, %v1082_v26  ;;  %1352 = vrot.lane.b32.xlu0 %v8131_v31, %s7043_s23  ;;  %6901 = vmatmul.mubr.bf16.gmra.mrb[36].mxu0 %v2473_v27  ;;  %v1487_v21 = vld [vmem:[#allocation2 + $0x332] sm:$0xff]  ;;  %v1488_v24 = vld [vmem:[#allocation2 + $0x33a] sm:$0xff] }
 0x20d   :  { %1354 = vrot.lane.b32.xlu1 %v1261_v20, %s7043_s23  ;;  %v1520_v26 = vpack.c.bf16 %v1488_v24, %v1487_v21 }
 0x20e   :  { %v1337_v28 = vpop.permute.xlu0 %1336 }
 0x20f   :  { %1413 = vst.msk [vmem:[#allocation3 + $0xa0] sm:$0xff] %vm1392_vm7, %v1337_v28  ;;  %v1339_v33 = vpop.permute.xlu1 %1338  ;;  %v1746_v28 = vld [vmem:[#allocation2 + $0x350] sm:$0xff] }
 0x210   :  { %1414 = vst.msk [vmem:[#allocation3 + $0xa8] sm:$0xff] %vm1392_vm7, %v1339_v33  ;;  %1609 = vrot.lane.b32.xlu0 %v8138_v47, %s7044_s26 }
 0x211   :  { %1611 = vrot.lane.b32.xlu1 %v8187_v10, %s7044_s26 }
 0x212   :  { %v1594_v48 = vpop.permute.xlu0 %1593 }
 0x213   :  { %1670 = vst.msk [vmem:[#allocation3 + $0xa0] sm:$0xff] %vm1649_vm8, %v1594_v48  ;;  %v1596_v16 = vpop.permute.xlu1 %1595  ;;  %v2002_v48 = vld [vmem:[#allocation2 + $0x349] sm:$0xff] }
 0x214   :  { %1671 = vst.msk [vmem:[#allocation3 + $0xa8] sm:$0xff] %vm1649_vm8, %v1596_v16  ;;  %1867 = vrot.lane.b32.xlu0 %v1004_v52, %s7045_s29 }
 0x215   :  { %1869 = vrot.lane.b32.xlu1 %v8195_v36, %s7045_s29 }
 0x216   :  { %v1852_v22 = vpop.permute.xlu0 %1851  ;;  %v8204_v61 = vpop.f32.mrb[4].mxu0 }
 0x217   :  { %1928 = vst.msk [vmem:[#allocation3 + $0xa0] sm:$0xff] %vm1907_vm9, %v1852_v22  ;;  %v1854_v30 = vpop.permute.xlu1 %1853  ;;  %v8207_v55 = vpop.f32.mrb[5].mxu0  ;;  %v2978_v47 = vmul.f32 %v8204_v61, %v8204_v61  ;;  %v2850_v18 = vsel %vm27_vm0, %v8204_v61, 0.0 }
 0x218   :  { %1929 = vst.msk [vmem:[#allocation3 + $0xa8] sm:$0xff] %vm1907_vm9, %v1854_v30  ;;  %v2846_v42 = vsel %vm27_vm0, %v8207_v55, 0.0  ;;  %v2976_v31 = vmul.f32 %v8207_v55, %v8207_v55  ;;  %2124 = vrot.lane.b32.xlu0 %v1261_v20, %s7046_s9  ;;  %v8215_v45 = vpop.f32.mrb[6].mxu0 }
 0x219   :  { %v2847_v29 = vadd.f32 %v2846_v42, %v2845_v15  ;;  %2126 = vrot.lane.b32.xlu1 %v8202_v34, %s7046_s9  ;;  %v8219_v46 = vpop.f32.mrb[7].mxu0  ;;  %v2979_v58 = vmul.f32 %v8215_v45, %v8215_v45  ;;  %v3047_v38 = vsel %vm27_vm0, %v2978_v47, 0.0  ;;  %v2852_v63 = vsel %vm27_vm0, %v8215_v45, 0.0 }
 0x21a   :  { %v3043_v49 = vsel %vm27_vm0, %v2976_v31, 0.0  ;;  %v2848_v17 = vsel %vm27_vm0, %v8219_v46, 0.0  ;;  %v2977_v50 = vmul.f32 %v8219_v46, %v8219_v46  ;;  %v2109_v51 = vpop.permute.xlu0 %2108  ;;  %v2035_v42 = vpack.c.bf16 %v2003_v37, %v2002_v48 }
 0x21b   :  { %v3044_v54 = vadd.f32 %v3043_v49, %v3042_v53  ;;  %v2849_v7 = vadd.f32 %v2848_v17, %v2847_v29  ;;  %2185 = vst.msk [vmem:[#allocation3 + $0xa0] sm:$0xff] %vm2164_vm10, %v2109_v51  ;;  %v2111_v57 = vpop.permute.xlu1 %2110  ;;  %v3049_v23 = vsel %vm27_vm0, %v2979_v58, 0.0  ;;  %v2259_v17 = vld [vmem:[#allocation2 + $0x34a] sm:$0xff] }
 0x21c   :  { %v3045_v0 = vsel %vm27_vm0, %v2977_v50, 0.0  ;;  %2186 = vst.msk [vmem:[#allocation3 + $0xa8] sm:$0xff] %vm2164_vm10, %v2111_v57  ;;  %2381 = vrot.lane.b32.xlu0 %v8187_v10, %s7047_s11  ;;  %v2260_v50 = vld [vmem:[#allocation2 + $0x352] sm:$0xff] }
 0x21d   :  { %v2851_v59 = vadd.f32 %v2850_v18, %v2849_v7  ;;  %v3046_v62 = vadd.f32 %v3045_v0, %v3044_v54  ;;  %2383 = vrot.lane.b32.xlu1 %v2290_v4, %s7047_s11 }
 0x21e   :  { %v2366_v2 = vpop.permute.xlu0 %2365 }
 0x21f   :  { %v3048_v6 = vadd.f32 %v3047_v38, %v3046_v62  ;;  %2442 = vst.msk [vmem:[#allocation3 + $0xa0] sm:$0xff] %vm2421_vm11, %v2366_v2  ;;  %v2368_v52 = vpop.permute.xlu1 %2367  ;;  %v2853_v8 = vadd.f32 %v2852_v63, %v2851_v59  ;;  %v2292_v62 = vpack.c.bf16 %v2260_v50, %v2259_v17 }
 0x220   :  { %2443 = vst.msk [vmem:[#allocation3 + $0xa8] sm:$0xff] %vm2421_vm11, %v2368_v52  ;;  %842 = vrot.lane.b32.xlu0 %v8187_v10, %s7041_s10  ;;  %v1745_v10 = vld [vmem:[#allocation2 + $0x348] sm:$0xff] }
 0x221   :  { %844 = vrot.lane.b32.xlu1 %v2290_v4, %s7041_s10  ;;  %v3050_v43 = vadd.f32 %v3049_v23, %v3048_v6  ;;  %v1778_v60 = vpack.c.bf16 %v1746_v28, %v1745_v10 }
 0x222   :  { %v827_v13 = vpop.permute.xlu0 %826 }
 0x223   :  { %901 = vst.msk [vmem:[#allocation3 + $0xb0] sm:$0xff] %vm878_vm5, %v827_v13  ;;  %v829_v15 = vpop.permute.xlu1 %828 }
 0x224   :  { %902 = vst.msk [vmem:[#allocation3 + $0xb8] sm:$0xff] %vm878_vm5, %v829_v15  ;;  %1099 = vrot.lane.b32.xlu0 %v8195_v36, %s7042_s19 }
 0x225   :  { %1101 = vrot.lane.b32.xlu1 %v1006_v12, %s7042_s19 }
 0x226   :  { %v1084_v20 = vpop.permute.xlu0 %1083  ;;  %v2474_v53 = vld [vmem:[#allocation3 + $0xa0] sm:$0xff] }
 0x227   :  { %1158 = vst.msk [vmem:[#allocation3 + $0xb0] sm:$0xff] %vm1135_vm6, %v1084_v20  ;;  %v1086_v44 = vpop.permute.xlu1 %1085  ;;  %6904 = vmatprep.mubr.bf16.mxu0 %v2474_v53  ;;  %v2475_v25 = vld [vmem:[#allocation3 + $0xa8] sm:$0xff] }
 0x228   :  { %1159 = vst.msk [vmem:[#allocation3 + $0xb8] sm:$0xff] %vm1135_vm6, %v1086_v44  ;;  %1356 = vrot.lane.b32.xlu0 %v8202_v34, %s7043_s23  ;;  %6905 = vmatmul.mubr.bf16.gmra.mrb[40].mxu0 %v2475_v25 }
 0x229   :  { %1358 = vrot.lane.b32.xlu1 %v1263_v19, %s7043_s23 }
 0x22a   :  { %v1341_v27 = vpop.permute.xlu0 %1340 }
 0x22b   :  { %1415 = vst.msk [vmem:[#allocation3 + $0xb0] sm:$0xff] %vm1392_vm7, %v1341_v27  ;;  %v1343_v32 = vpop.permute.xlu1 %1342 }
 0x22c   :  { %1416 = vst.msk [vmem:[#allocation3 + $0xb8] sm:$0xff] %vm1392_vm7, %v1343_v32  ;;  %1613 = vrot.lane.b32.xlu0 %v2290_v4, %s7044_s26 }
 0x22d   :  { %1615 = vrot.lane.b32.xlu1 %v1520_v26, %s7044_s26 }
 0x22e   :  { %v1598_v33 = vpop.permute.xlu0 %1597  ;;  %v8261_v36 = vpop.f32.mrb[8].mxu0 }
 0x22f   :  { %1672 = vst.msk [vmem:[#allocation3 + $0xb0] sm:$0xff] %vm1649_vm8, %v1598_v33  ;;  %v1600_v39 = vpop.permute.xlu1 %1599  ;;  %v8264_v16 = vpop.f32.mrb[9].mxu0  ;;  %v2982_v31 = vmul.f32 %v8261_v36, %v8261_v36  ;;  %v2858_v57 = vsel %vm27_vm0, %v8261_v36, 0.0 }
 0x230   :  { %1673 = vst.msk [vmem:[#allocation3 + $0xb8] sm:$0xff] %vm1649_vm8, %v1600_v39  ;;  %v2854_v34 = vsel %vm27_vm0, %v8264_v16, 0.0  ;;  %v2980_v22 = vmul.f32 %v8264_v16, %v8264_v16  ;;  %1871 = vrot.lane.b32.xlu0 %v1006_v12, %s7045_s29  ;;  %v8272_v9 = vpop.f32.mrb[10].mxu0 }
 0x231   :  { %v2855_v11 = vadd.f32 %v2854_v34, %v2853_v8  ;;  %1873 = vrot.lane.b32.xlu1 %v1778_v60, %s7045_s29  ;;  %v8275_v30 = vpop.f32.mrb[11].mxu0  ;;  %v2983_v18 = vmul.f32 %v8272_v9, %v8272_v9  ;;  %v3055_v38 = vsel %vm27_vm0, %v2982_v31, 0.0  ;;  %v2860_v63 = vsel %vm27_vm0, %v8272_v9, 0.0 }
 0x232   :  { %v3051_v29 = vsel %vm27_vm0, %v2980_v22, 0.0  ;;  %v2856_v4 = vsel %vm27_vm0, %v8275_v30, 0.0  ;;  %v2981_v47 = vmul.f32 %v8275_v30, %v8275_v30  ;;  %v1856_v49 = vpop.permute.xlu0 %1855 }
 0x233   :  { %v3052_v51 = vadd.f32 %v3051_v29, %v3050_v43  ;;  %v2857_v54 = vadd.f32 %v2856_v4, %v2855_v11  ;;  %1930 = vst.msk [vmem:[#allocation3 + $0xb0] sm:$0xff] %vm1907_vm9, %v1856_v49  ;;  %v1858_v7 = vpop.permute.xlu1 %1857  ;;  %v3057_v52 = vsel %vm27_vm0, %v2983_v18, 0.0 }
 0x234   :  { %v3053_v58 = vsel %vm27_vm0, %v2981_v47, 0.0  ;;  %1931 = vst.msk [vmem:[#allocation3 + $0xb8] sm:$0xff] %vm1907_vm9, %v1858_v7  ;;  %2128 = vrot.lane.b32.xlu0 %v1263_v19, %s7046_s9 }
 0x235   :  { %v2859_v0 = vadd.f32 %v2858_v57, %v2857_v54  ;;  %v3054_v59 = vadd.f32 %v3053_v58, %v3052_v51  ;;  %2130 = vrot.lane.b32.xlu1 %v2035_v42, %s7046_s9 }
 0x236   :  { %v2113_v2 = vpop.permute.xlu0 %2112 }
 0x237   :  { %v3056_v3 = vadd.f32 %v3055_v38, %v3054_v59  ;;  %2187 = vst.msk [vmem:[#allocation3 + $0xb0] sm:$0xff] %vm2164_vm10, %v2113_v2  ;;  %v2115_v5 = vpop.permute.xlu1 %2114  ;;  %v2861_v6 = vadd.f32 %v2860_v63, %v2859_v0 }
 0x238   :  { %2188 = vst.msk [vmem:[#allocation3 + $0xb8] sm:$0xff] %vm2164_vm10, %v2115_v5  ;;  %2385 = vrot.lane.b32.xlu0 %v1520_v26, %s7047_s11 }
 0x239   :  { %2387 = vrot.lane.b32.xlu1 %v2292_v62, %s7047_s11  ;;  %v3058_v8 = vadd.f32 %v3057_v52, %v3056_v3 }
 0x23a   :  { %v2370_v23 = vpop.permute.xlu0 %2369 }
 0x23b   :  { %2444 = vst.msk [vmem:[#allocation3 + $0xb0] sm:$0xff] %vm2421_vm11, %v2370_v23  ;;  %v2372_v12 = vpop.permute.xlu1 %2371 }
 0x23c   :  { %2445 = vst.msk [vmem:[#allocation3 + $0xb8] sm:$0xff] %vm2421_vm11, %v2372_v12 }
 0x23e   :  { %v831_v43 = vpop.permute.xlu0 %830 }
 0x23f   :  { %903 = vst.msk [vmem:[#allocation3 + $0xc0] sm:$0xff] %vm878_vm5, %v831_v43  ;;  %v833_v13 = vpop.permute.xlu1 %832 }
 0x240   :  { %904 = vst.msk [vmem:[#allocation3 + $0xc8] sm:$0xff] %vm878_vm5, %v833_v13 }
 0x242   :  { %v1088_v1 = vpop.permute.xlu0 %1087  ;;  %v2476_v14 = vld [vmem:[#allocation3 + $0xb0] sm:$0xff] }
 0x243   :  { %1160 = vst.msk [vmem:[#allocation3 + $0xc0] sm:$0xff] %vm1135_vm6, %v1088_v1  ;;  %v1090_v15 = vpop.permute.xlu1 %1089  ;;  %6908 = vmatprep.mubr.bf16.mxu0 %v2476_v14  ;;  %v2477_v19 = vld [vmem:[#allocation3 + $0xb8] sm:$0xff] }
 0x244   :  { %1161 = vst.msk [vmem:[#allocation3 + $0xc8] sm:$0xff] %vm1135_vm6, %v1090_v15  ;;  %6909 = vmatmul.mubr.bf16.gmra.mrb[44].mxu0 %v2477_v19 }
 0x246   :  { %v1345_v20 = vpop.permute.xlu0 %1344  ;;  %v8307_v53 = vpop.f32.mrb[12].mxu0 }
 0x247   :  { %1417 = vst.msk [vmem:[#allocation3 + $0xc0] sm:$0xff] %vm1392_vm7, %v1345_v20  ;;  %v1347_v21 = vpop.permute.xlu1 %1346  ;;  %v8310_v24 = vpop.f32.mrb[13].mxu0  ;;  %v2986_v28 = vmul.f32 %v8307_v53, %v8307_v53  ;;  %v2866_v22 = vsel %vm27_vm0, %v8307_v53, 0.0 }
 0x248   :  { %1418 = vst.msk [vmem:[#allocation3 + $0xc8] sm:$0xff] %vm1392_vm7, %v1347_v21  ;;  %v2862_v44 = vsel %vm27_vm0, %v8310_v24, 0.0  ;;  %v2984_v25 = vmul.f32 %v8310_v24, %v8310_v24  ;;  %v8317_v26 = vpop.f32.mrb[14].mxu0 }
 0x249   :  { %v2863_v27 = vadd.f32 %v2862_v44, %v2861_v6  ;;  %v8319_v10 = vpop.f32.mrb[15].mxu0  ;;  %v2987_v11 = vmul.f32 %v8317_v26, %v8317_v26  ;;  %v3063_v4 = vsel %vm27_vm0, %v2986_v28, 0.0  ;;  %v2868_v47 = vsel %vm27_vm0, %v8317_v26, 0.0 }
 0x24a   :  { %v3059_v32 = vsel %vm27_vm0, %v2984_v25, 0.0  ;;  %v2864_v60 = vsel %vm27_vm0, %v8319_v10, 0.0  ;;  %v2985_v33 = vmul.f32 %v8319_v10, %v8319_v10  ;;  %v1602_v48 = vpop.permute.xlu0 %1601 }
 0x24b   :  { %v3060_v37 = vadd.f32 %v3059_v32, %v3058_v8  ;;  %v2865_v39 = vadd.f32 %v2864_v60, %v2863_v27  ;;  %1674 = vst.msk [vmem:[#allocation3 + $0xc0] sm:$0xff] %vm1649_vm8, %v1602_v48  ;;  %v1604_v34 = vpop.permute.xlu1 %1603  ;;  %v3065_v54 = vsel %vm27_vm0, %v2987_v11, 0.0 }
 0x24c   :  { %v3061_v42 = vsel %vm27_vm0, %v2985_v33, 0.0  ;;  %1675 = vst.msk [vmem:[#allocation3 + $0xc8] sm:$0xff] %vm1649_vm8, %v1604_v34 }
 0x24d   :  { %v2867_v31 = vadd.f32 %v2866_v22, %v2865_v39  ;;  %v3062_v29 = vadd.f32 %v3061_v42, %v3060_v37 }
 0x24e   :  { %v1860_v49 = vpop.permute.xlu0 %1859 }
 0x24f   :  { %v3064_v17 = vadd.f32 %v3063_v4, %v3062_v29  ;;  %1932 = vst.msk [vmem:[#allocation3 + $0xc0] sm:$0xff] %vm1907_vm9, %v1860_v49  ;;  %v1862_v50 = vpop.permute.xlu1 %1861  ;;  %v2869_v51 = vadd.f32 %v2868_v47, %v2867_v31 }
 0x250   :  { %1933 = vst.msk [vmem:[#allocation3 + $0xc8] sm:$0xff] %vm1907_vm9, %v1862_v50 }
 0x251   :  { %v3066_v7 = vadd.f32 %v3065_v54, %v3064_v17 }
 0x252   :  { %v2117_v57 = vpop.permute.xlu0 %2116 }
 0x253   :  { %2189 = vst.msk [vmem:[#allocation3 + $0xc0] sm:$0xff] %vm2164_vm10, %v2117_v57  ;;  %v2119_v18 = vpop.permute.xlu1 %2118 }
 0x254   :  { %2190 = vst.msk [vmem:[#allocation3 + $0xc8] sm:$0xff] %vm2164_vm10, %v2119_v18 }
 0x256   :  { %v2374_v58 = vpop.permute.xlu0 %2373 }
 0x257   :  { %2446 = vst.msk [vmem:[#allocation3 + $0xc0] sm:$0xff] %vm2421_vm11, %v2374_v58  ;;  %v2376_v0 = vpop.permute.xlu1 %2375 }
 0x258   :  { %2447 = vst.msk [vmem:[#allocation3 + $0xc8] sm:$0xff] %vm2421_vm11, %v2376_v0 }
 0x25a   :  { %v835_v59 = vpop.permute.xlu0 %834 }
 0x25b   :  { %905 = vst.msk [vmem:[#allocation3 + $0xd0] sm:$0xff] %vm878_vm5, %v835_v59  ;;  %v837_v62 = vpop.permute.xlu1 %836 }
 0x25c   :  { %906 = vst.msk [vmem:[#allocation3 + $0xd8] sm:$0xff] %vm878_vm5, %v837_v62 }
 0x25e   :  { %v1092_v38 = vpop.permute.xlu0 %1091  ;;  %v8347_v63 = vpop.f32.mrb[16].mxu0  ;;  %v2478_v2 = vld [vmem:[#allocation3 + $0xc0] sm:$0xff] }
 0x25f   :  { %1162 = vst.msk [vmem:[#allocation3 + $0xd0] sm:$0xff] %vm1135_vm6, %v1092_v38  ;;  %v1094_v3 = vpop.permute.xlu1 %1093  ;;  %v8350_v5 = vpop.f32.mrb[17].mxu0  ;;  %6912 = vmatprep.mubr.bf16.mxu0 %v2478_v2  ;;  %v2479_v6 = vld [vmem:[#allocation3 + $0xc8] sm:$0xff]  ;;  %v2990_v13 = vmul.f32 %v8347_v63, %v8347_v63  ;;  %v2874_v25 = vsel %vm27_vm0, %v8347_v63, 0.0 }
 0x260   :  { %1163 = vst.msk [vmem:[#allocation3 + $0xd8] sm:$0xff] %vm1135_vm6, %v1094_v3  ;;  %v2870_v52 = vsel %vm27_vm0, %v8350_v5, 0.0  ;;  %v2988_v8 = vmul.f32 %v8350_v5, %v8350_v5  ;;  %v8357_v23 = vpop.f32.mrb[18].mxu0  ;;  %6913 = vmatmul.mubr.bf16.gmra.mrb[48].mxu0 %v2479_v6 }
 0x261   :  { %v2871_v12 = vadd.f32 %v2870_v52, %v2869_v51  ;;  %v8359_v43 = vpop.f32.mrb[19].mxu0  ;;  %v2991_v27 = vmul.f32 %v8357_v23, %v8357_v23  ;;  %v3071_v33 = vsel %vm27_vm0, %v2990_v13, 0.0  ;;  %v2876_v48 = vsel %vm27_vm0, %v8357_v23, 0.0 }
 0x262   :  { %v3067_v1 = vsel %vm27_vm0, %v2988_v8, 0.0  ;;  %v2872_v14 = vsel %vm27_vm0, %v8359_v43, 0.0  ;;  %v2989_v15 = vmul.f32 %v8359_v43, %v8359_v43  ;;  %v1349_v19 = vpop.permute.xlu0 %1348 }
 0x263   :  { %v3068_v20 = vadd.f32 %v3067_v1, %v3066_v7  ;;  %v2873_v21 = vadd.f32 %v2872_v14, %v2871_v12  ;;  %1419 = vst.msk [vmem:[#allocation3 + $0xd0] sm:$0xff] %vm1392_vm7, %v1349_v19  ;;  %v1351_v44 = vpop.permute.xlu1 %1350  ;;  %v3073_v11 = vsel %vm27_vm0, %v2991_v27, 0.0 }
 0x264   :  { %v3069_v28 = vsel %vm27_vm0, %v2989_v15, 0.0  ;;  %1420 = vst.msk [vmem:[#allocation3 + $0xd8] sm:$0xff] %vm1392_vm7, %v1351_v44 }
 0x265   :  { %v2875_v32 = vadd.f32 %v2874_v25, %v2873_v21  ;;  %v3070_v60 = vadd.f32 %v3069_v28, %v3068_v20 }
 0x266   :  { %v1606_v37 = vpop.permute.xlu0 %1605 }
 0x267   :  { %v3072_v39 = vadd.f32 %v3071_v33, %v3070_v60  ;;  %1676 = vst.msk [vmem:[#allocation3 + $0xd0] sm:$0xff] %vm1649_vm8, %v1606_v37  ;;  %v1608_v34 = vpop.permute.xlu1 %1607  ;;  %v2877_v22 = vadd.f32 %v2876_v48, %v2875_v32 }
 0x268   :  { %1677 = vst.msk [vmem:[#allocation3 + $0xd8] sm:$0xff] %vm1649_vm8, %v1608_v34 }
 0x269   :  { %v3074_v42 = vadd.f32 %v3073_v11, %v3072_v39 }
 0x26a   :  { %v1864_v31 = vpop.permute.xlu0 %1863 }
 0x26b   :  { %1934 = vst.msk [vmem:[#allocation3 + $0xd0] sm:$0xff] %vm1907_vm9, %v1864_v31  ;;  %v1866_v29 = vpop.permute.xlu1 %1865 }
 0x26c   :  { %1935 = vst.msk [vmem:[#allocation3 + $0xd8] sm:$0xff] %vm1907_vm9, %v1866_v29 }
 0x26e   :  { %v2121_v4 = vpop.permute.xlu0 %2120 }
 0x26f   :  { %2191 = vst.msk [vmem:[#allocation3 + $0xd0] sm:$0xff] %vm2164_vm10, %v2121_v4  ;;  %v2123_v47 = vpop.permute.xlu1 %2122 }
 0x270   :  { %2192 = vst.msk [vmem:[#allocation3 + $0xd8] sm:$0xff] %vm2164_vm10, %v2123_v47 }
 0x272   :  { %v2378_v49 = vpop.permute.xlu0 %2377 }
 0x273   :  { %2448 = vst.msk [vmem:[#allocation3 + $0xd0] sm:$0xff] %vm2421_vm11, %v2378_v49  ;;  %v2380_v17 = vpop.permute.xlu1 %2379 }
 0x274   :  { %2449 = vst.msk [vmem:[#allocation3 + $0xd8] sm:$0xff] %vm2421_vm11, %v2380_v17 }
 0x276   :  { %v839_v50 = vpop.permute.xlu0 %838  ;;  %v8387_v51 = vpop.f32.mrb[20].mxu0 }
 0x277   :  { %907 = vst.msk [vmem:[#allocation3 + $0xe0] sm:$0xff] %vm878_vm5, %v839_v50  ;;  %v841_v54 = vpop.permute.xlu1 %840  ;;  %v8390_v7 = vpop.f32.mrb[21].mxu0  ;;  %v2994_v62 = vmul.f32 %v8387_v51, %v8387_v51  ;;  %v2882_v14 = vsel %vm27_vm0, %v8387_v51, 0.0 }
 0x278   :  { %908 = vst.msk [vmem:[#allocation3 + $0xe8] sm:$0xff] %vm878_vm5, %v841_v54  ;;  %v2878_v57 = vsel %vm27_vm0, %v8390_v7, 0.0  ;;  %v2992_v18 = vmul.f32 %v8390_v7, %v8390_v7  ;;  %v8397_v58 = vpop.f32.mrb[22].mxu0 }
 0x279   :  { %v2879_v0 = vadd.f32 %v2878_v57, %v2877_v22  ;;  %v8399_v59 = vpop.f32.mrb[23].mxu0  ;;  %v2995_v15 = vmul.f32 %v8397_v58, %v8397_v58  ;;  %v3079_v44 = vsel %vm27_vm0, %v2994_v62, 0.0  ;;  %v2884_v25 = vsel %vm27_vm0, %v8397_v58, 0.0 }
 0x27a   :  { %v3075_v38 = vsel %vm27_vm0, %v2992_v18, 0.0  ;;  %v2880_v2 = vsel %vm27_vm0, %v8399_v59, 0.0  ;;  %v2993_v3 = vmul.f32 %v8399_v59, %v8399_v59  ;;  %v1096_v6 = vpop.permute.xlu0 %1095  ;;  %v2480_v52 = vld [vmem:[#allocation3 + $0xd0] sm:$0xff] }
 0x27b   :  { %v3076_v8 = vadd.f32 %v3075_v38, %v3074_v42  ;;  %v2881_v12 = vadd.f32 %v2880_v2, %v2879_v0  ;;  %1164 = vst.msk [vmem:[#allocation3 + $0xe0] sm:$0xff] %vm1135_vm6, %v1096_v6  ;;  %v1098_v13 = vpop.permute.xlu1 %1097  ;;  %6916 = vmatprep.mubr.bf16.mxu0 %v2480_v52  ;;  %v2481_v1 = vld [vmem:[#allocation3 + $0xd8] sm:$0xff]  ;;  %v3081_v33 = vsel %vm27_vm0, %v2995_v15, 0.0 }
 0x27c   :  { %v3077_v19 = vsel %vm27_vm0, %v2993_v3, 0.0  ;;  %1165 = vst.msk [vmem:[#allocation3 + $0xe8] sm:$0xff] %vm1135_vm6, %v1098_v13  ;;  %6917 = vmatmul.mubr.bf16.gmra.mrb[52].mxu0 %v2481_v1 }
 0x27d   :  { %v2883_v20 = vadd.f32 %v2882_v14, %v2881_v12  ;;  %v3078_v21 = vadd.f32 %v3077_v19, %v3076_v8 }
 0x27e   :  { %v1353_v27 = vpop.permute.xlu0 %1352 }
 0x27f   :  { %v3080_v28 = vadd.f32 %v3079_v44, %v3078_v21  ;;  %1421 = vst.msk [vmem:[#allocation3 + $0xe0] sm:$0xff] %vm1392_vm7, %v1353_v27  ;;  %v1355_v32 = vpop.permute.xlu1 %1354  ;;  %v2885_v60 = vadd.f32 %v2884_v25, %v2883_v20 }
 0x280   :  { %1422 = vst.msk [vmem:[#allocation3 + $0xe8] sm:$0xff] %vm1392_vm7, %v1355_v32 }
 0x281   :  { %v3082_v48 = vadd.f32 %v3081_v33, %v3080_v28 }
 0x282   :  { %v1610_v37 = vpop.permute.xlu0 %1609 }
 0x283   :  { %1678 = vst.msk [vmem:[#allocation3 + $0xe0] sm:$0xff] %vm1649_vm8, %v1610_v37  ;;  %v1612_v39 = vpop.permute.xlu1 %1611 }
 0x284   :  { %1679 = vst.msk [vmem:[#allocation3 + $0xe8] sm:$0xff] %vm1649_vm8, %v1612_v39 }
 0x286   :  { %v1868_v34 = vpop.permute.xlu0 %1867 }
 0x287   :  { %1936 = vst.msk [vmem:[#allocation3 + $0xe0] sm:$0xff] %vm1907_vm9, %v1868_v34  ;;  %v1870_v22 = vpop.permute.xlu1 %1869 }
 0x288   :  { %1937 = vst.msk [vmem:[#allocation3 + $0xe8] sm:$0xff] %vm1907_vm9, %v1870_v22 }
 0x28a   :  { %v2125_v11 = vpop.permute.xlu0 %2124 }
 0x28b   :  { %2193 = vst.msk [vmem:[#allocation3 + $0xe0] sm:$0xff] %vm2164_vm10, %v2125_v11  ;;  %v2127_v42 = vpop.permute.xlu1 %2126 }
 0x28c   :  { %2194 = vst.msk [vmem:[#allocation3 + $0xe8] sm:$0xff] %vm2164_vm10, %v2127_v42 }
 0x28e   :  { %v2382_v31 = vpop.permute.xlu0 %2381  ;;  %v8427_v29 = vpop.f32.mrb[24].mxu0 }
 0x28f   :  { %2450 = vst.msk [vmem:[#allocation3 + $0xe0] sm:$0xff] %vm2421_vm11, %v2382_v31  ;;  %v2384_v4 = vpop.permute.xlu1 %2383  ;;  %v8430_v47 = vpop.f32.mrb[25].mxu0  ;;  %v2998_v18 = vmul.f32 %v8427_v29, %v8427_v29  ;;  %v2890_v8 = vsel %vm27_vm0, %v8427_v29, 0.0 }
 0x290   :  { %2451 = vst.msk [vmem:[#allocation3 + $0xe8] sm:$0xff] %vm2421_vm11, %v2384_v4  ;;  %v2886_v49 = vsel %vm27_vm0, %v8430_v47, 0.0  ;;  %v2996_v17 = vmul.f32 %v8430_v47, %v8430_v47  ;;  %v8437_v50 = vpop.f32.mrb[26].mxu0 }
 0x291   :  { %v2887_v54 = vadd.f32 %v2886_v49, %v2885_v60  ;;  %v8439_v57 = vpop.f32.mrb[27].mxu0  ;;  %v2999_v12 = vmul.f32 %v8437_v50, %v8437_v50  ;;  %v3087_v15 = vsel %vm27_vm0, %v2998_v18, 0.0  ;;  %v2892_v19 = vsel %vm27_vm0, %v8437_v50, 0.0 }
 0x292   :  { %v3083_v0 = vsel %vm27_vm0, %v2996_v17, 0.0  ;;  %v2888_v62 = vsel %vm27_vm0, %v8439_v57, 0.0  ;;  %v2997_v38 = vmul.f32 %v8439_v57, %v8439_v57  ;;  %v843_v2 = vpop.permute.xlu0 %842 }
 0x293   :  { %v3084_v3 = vadd.f32 %v3083_v0, %v3082_v48  ;;  %v2889_v6 = vadd.f32 %v2888_v62, %v2887_v54  ;;  %909 = vst.msk [vmem:[#allocation3 + $0xf0] sm:$0xff] %vm878_vm5, %v843_v2  ;;  %v845_v52 = vpop.permute.xlu1 %844  ;;  %v3089_v32 = vsel %vm27_vm0, %v2999_v12, 0.0 }
 0x294   :  { %v3085_v13 = vsel %vm27_vm0, %v2997_v38, 0.0  ;;  %910 = vst.msk [vmem:[#allocation3 + $0xf8] sm:$0xff] %vm878_vm5, %v845_v52 }
 0x295   :  { %v2891_v1 = vadd.f32 %v2890_v8, %v2889_v6  ;;  %v3086_v14 = vadd.f32 %v3085_v13, %v3084_v3 }
 0x296   :  { %v1100_v20 = vpop.permute.xlu0 %1099  ;;  %v2482_v21 = vld [vmem:[#allocation3 + $0xe0] sm:$0xff] }
 0x297   :  { %v3088_v44 = vadd.f32 %v3087_v15, %v3086_v14  ;;  %1166 = vst.msk [vmem:[#allocation3 + $0xf0] sm:$0xff] %vm1135_vm6, %v1100_v20  ;;  %v1102_v25 = vpop.permute.xlu1 %1101  ;;  %6920 = vmatprep.mubr.bf16.mxu0 %v2482_v21  ;;  %v2483_v27 = vld [vmem:[#allocation3 + $0xe8] sm:$0xff]  ;;  %v2893_v28 = vadd.f32 %v2892_v19, %v2891_v1 }
 0x298   :  { %1167 = vst.msk [vmem:[#allocation3 + $0xf8] sm:$0xff] %vm1135_vm6, %v1102_v25  ;;  %6921 = vmatmul.mubr.bf16.gmra.mrb[56].mxu0 %v2483_v27 }
 0x299   :  { %v3090_v60 = vadd.f32 %v3089_v32, %v3088_v44 }
 0x29a   :  { %v1357_v33 = vpop.permute.xlu0 %1356 }
 0x29b   :  { %1423 = vst.msk [vmem:[#allocation3 + $0xf0] sm:$0xff] %vm1392_vm7, %v1357_v33  ;;  %v1359_v48 = vpop.permute.xlu1 %1358 }
 0x29c   :  { %1424 = vst.msk [vmem:[#allocation3 + $0xf8] sm:$0xff] %vm1392_vm7, %v1359_v48 }
 0x29e   :  { %v1614_v37 = vpop.permute.xlu0 %1613 }
 0x29f   :  { %1680 = vst.msk [vmem:[#allocation3 + $0xf0] sm:$0xff] %vm1649_vm8, %v1614_v37  ;;  %v1616_v39 = vpop.permute.xlu1 %1615 }
 0x2a0   :  { %1681 = vst.msk [vmem:[#allocation3 + $0xf8] sm:$0xff] %vm1649_vm8, %v1616_v39 }
 0x2a2   :  { %v1872_v34 = vpop.permute.xlu0 %1871 }
 0x2a3   :  { %1938 = vst.msk [vmem:[#allocation3 + $0xf0] sm:$0xff] %vm1907_vm9, %v1872_v34  ;;  %v1874_v22 = vpop.permute.xlu1 %1873 }
 0x2a4   :  { %1939 = vst.msk [vmem:[#allocation3 + $0xf8] sm:$0xff] %vm1907_vm9, %v1874_v22 }
 0x2a6   :  { %v2129_v11 = vpop.permute.xlu0 %2128 }
 0x2a7   :  { %2195 = vst.msk [vmem:[#allocation3 + $0xf0] sm:$0xff] %vm2164_vm10, %v2129_v11  ;;  %v2131_v42 = vpop.permute.xlu1 %2130  ;;  %v8468_v31 = vpop.f32.mrb[28].mxu0 }
 0x2a8   :  { %2196 = vst.msk [vmem:[#allocation3 + $0xf8] sm:$0xff] %vm2164_vm10, %v2131_v42  ;;  %v8471_v4 = vpop.f32.mrb[29].mxu0  ;;  %v3002_v38 = vmul.f32 %v8468_v31, %v8468_v31  ;;  %v2898_v13 = vsel %vm27_vm0, %v8468_v31, 0.0 }
 0x2a9   :  { %v2894_v49 = vsel %vm27_vm0, %v8471_v4, 0.0  ;;  %v3000_v17 = vmul.f32 %v8471_v4, %v8471_v4  ;;  %v8477_v54 = vpop.f32.mrb[30].mxu0 }
 0x2aa   :  { %v2895_v18 = vadd.f32 %v2894_v49, %v2893_v28  ;;  %v2386_v0 = vpop.permute.xlu0 %2385  ;;  %v8479_v62 = vpop.f32.mrb[31].mxu0  ;;  %v3003_v1 = vmul.f32 %v8477_v54, %v8477_v54  ;;  %v3095_v20 = vsel %vm27_vm0, %v3002_v38, 0.0  ;;  %v2900_v21 = vsel %vm27_vm0, %v8477_v54, 0.0 }
 0x2ab   :  { %v3091_v2 = vsel %vm27_vm0, %v3000_v17, 0.0  ;;  %2452 = vst.msk [vmem:[#allocation3 + $0xf0] sm:$0xff] %vm2421_vm11, %v2386_v0  ;;  %v2896_v3 = vsel %vm27_vm0, %v8479_v62, 0.0  ;;  %v3001_v6 = vmul.f32 %v8479_v62, %v8479_v62  ;;  %v2388_v52 = vpop.permute.xlu1 %2387 }
 0x2ac   :  { %v3092_v8 = vadd.f32 %v3091_v2, %v3090_v60  ;;  %v2897_v12 = vadd.f32 %v2896_v3, %v2895_v18  ;;  %2453 = vst.msk [vmem:[#allocation3 + $0xf8] sm:$0xff] %vm2421_vm11, %v2388_v52  ;;  %v3097_v27 = vsel %vm27_vm0, %v3003_v1, 0.0 }
 0x2ad   :  { %v3093_v14 = vsel %vm27_vm0, %v3001_v6, 0.0 }
 0x2ae   :  { %v2899_v15 = vadd.f32 %v2898_v13, %v2897_v12  ;;  %v3094_v19 = vadd.f32 %v3093_v14, %v3092_v8 }
 0x2b0   :  { %v3096_v44 = vadd.f32 %v3095_v20, %v3094_v19  ;;  %v2901_v25 = vadd.f32 %v2900_v21, %v2899_v15 }
 0x2b2   :  { %v2484_v28 = vld [vmem:[#allocation3 + $0xf0] sm:$0xff]  ;;  %v3098_v32 = vadd.f32 %v3097_v27, %v3096_v44 }
 0x2b3   :  { %6924 = vmatprep.mubr.bf16.mxu0 %v2484_v28  ;;  %v2485_v60 = vld [vmem:[#allocation3 + $0xf8] sm:$0xff] }
 0x2b4   :  { %6925 = vmatmul.mubr.bf16.gmra.mrb[60].mxu0 %v2485_v60 }
 0x2c3   :  { %v8499_v33 = vpop.f32.mrb[32].mxu0 }
 0x2c4   :  { %v8501_v48 = vpop.f32.mrb[33].mxu0  ;;  %v3006_v42 = vmul.f32 %v8499_v33, %v8499_v33  ;;  %v2906_v2 = vsel %vm27_vm0, %v8499_v33, 0.0 }
 0x2c5   :  { %v2902_v37 = vsel %vm27_vm0, %v8501_v48, 0.0  ;;  %v3004_v39 = vmul.f32 %v8501_v48, %v8501_v48  ;;  %v8507_v34 = vpop.f32.mrb[34].mxu0 }
 0x2c6   :  { %v2903_v22 = vadd.f32 %v2902_v37, %v2901_v25  ;;  %v8509_v11 = vpop.f32.mrb[35].mxu0  ;;  %v3007_v3 = vmul.f32 %v8507_v34, %v8507_v34  ;;  %v3103_v12 = vsel %vm27_vm0, %v3006_v42, 0.0  ;;  %v2908_v13 = vsel %vm27_vm0, %v8507_v34, 0.0 }
 0x2c7   :  { %v3099_v49 = vsel %vm27_vm0, %v3004_v39, 0.0  ;;  %v2904_v17 = vsel %vm27_vm0, %v8509_v11, 0.0  ;;  %v3005_v18 = vmul.f32 %v8509_v11, %v8509_v11 }
 0x2c8   :  { %v3100_v0 = vadd.f32 %v3099_v49, %v3098_v32  ;;  %v2905_v38 = vadd.f32 %v2904_v17, %v2903_v22  ;;  %v3105_v15 = vsel %vm27_vm0, %v3007_v3, 0.0 }
 0x2c9   :  { %v3101_v6 = vsel %vm27_vm0, %v3005_v18, 0.0 }
 0x2ca   :  { %v2907_v52 = vadd.f32 %v2906_v2, %v2905_v38  ;;  %v3102_v8 = vadd.f32 %v3101_v6, %v3100_v0 }
 0x2cc   :  { %v3104_v1 = vadd.f32 %v3103_v12, %v3102_v8  ;;  %v2909_v14 = vadd.f32 %v2908_v13, %v2907_v52 }
 0x2ce   :  { %v3106_v19 = vadd.f32 %v3105_v15, %v3104_v1 }
 0x2df   :  { %v8527_v20 = vpop.f32.mrb[36].mxu0 }
 0x2e0   :  { %v8529_v21 = vpop.f32.mrb[37].mxu0  ;;  %v3010_v60 = vmul.f32 %v8527_v20, %v8527_v20  ;;  %v2914_v17 = vsel %vm27_vm0, %v8527_v20, 0.0 }
 0x2e1   :  { %v2910_v44 = vsel %vm27_vm0, %v8529_v21, 0.0  ;;  %v3008_v25 = vmul.f32 %v8529_v21, %v8529_v21  ;;  %v8535_v27 = vpop.f32.mrb[38].mxu0 }
 0x2e2   :  { %11849 = vst [vmem:[#allocation4_spill] sm:$0xff] %v8535_v27  ;;  %v2911_v28 = vadd.f32 %v2910_v44, %v2909_v14  ;;  %v8537_v32 = vpop.f32.mrb[39].mxu0  ;;  %v3011_v18 = vmul.f32 %v8535_v27, %v8535_v27  ;;  %v3111_v3 = vsel %vm27_vm0, %v3010_v60, 0.0  ;;  %v2916_v6 = vsel %vm27_vm0, %v8535_v27, 0.0 }
 0x2e3   :  { %v3107_v37 = vsel %vm27_vm0, %v3008_v25, 0.0  ;;  %v2912_v39 = vsel %vm27_vm0, %v8537_v32, 0.0  ;;  %v3009_v22 = vmul.f32 %v8537_v32, %v8537_v32 }
 0x2e4   :  { %v3108_v42 = vadd.f32 %v3107_v37, %v3106_v19  ;;  %v2913_v49 = vadd.f32 %v2912_v39, %v2911_v28  ;;  %v3113_v12 = vsel %vm27_vm0, %v3011_v18, 0.0 }
 0x2e5   :  { %v3109_v0 = vsel %vm27_vm0, %v3009_v22, 0.0 }
 0x2e6   :  { %v2915_v38 = vadd.f32 %v2914_v17, %v2913_v49  ;;  %v3110_v2 = vadd.f32 %v3109_v0, %v3108_v42 }
 0x2e8   :  { %v3112_v52 = vadd.f32 %v3111_v3, %v3110_v2  ;;  %v2917_v8 = vadd.f32 %v2916_v6, %v2915_v38 }
 0x2ea   :  { %v3114_v13 = vadd.f32 %v3113_v12, %v3112_v52 }
 0x2fb   :  { %v8555_v1 = vpop.f32.mrb[40].mxu0 }
 0x2fc   :  { %11850 = vst [vmem:[#allocation5_spill] sm:$0xff] %v8555_v1  ;;  %v8557_v14 = vpop.f32.mrb[41].mxu0  ;;  %v3014_v60 = vmul.f32 %v8555_v1, %v8555_v1  ;;  %v2922_v17 = vsel %vm27_vm0, %v8555_v1, 0.0 }
 0x2fd   :  { %11851 = vst [vmem:[#allocation6_spill] sm:$0xff] %v8557_v14  ;;  %v2918_v15 = vsel %vm27_vm0, %v8557_v14, 0.0  ;;  %v3012_v19 = vmul.f32 %v8557_v14, %v8557_v14  ;;  %v8563_v44 = vpop.f32.mrb[42].mxu0 }
 0x2fe   :  { %11852 = vst [vmem:[#allocation7_spill] sm:$0xff] %v8563_v44  ;;  %v2919_v25 = vadd.f32 %v2918_v15, %v2917_v8  ;;  %v8565_v28 = vpop.f32.mrb[43].mxu0  ;;  %v3015_v18 = vmul.f32 %v8563_v44, %v8563_v44  ;;  %v3119_v3 = vsel %vm27_vm0, %v3014_v60, 0.0  ;;  %v2924_v6 = vsel %vm27_vm0, %v8563_v44, 0.0 }
 0x2ff   :  { %11853 = vst [vmem:[#allocation8_spill] sm:$0xff] %v8565_v28  ;;  %v3115_v37 = vsel %vm27_vm0, %v3012_v19, 0.0  ;;  %v2920_v39 = vsel %vm27_vm0, %v8565_v28, 0.0  ;;  %v3013_v22 = vmul.f32 %v8565_v28, %v8565_v28 }
 0x300   :  { %v3116_v42 = vadd.f32 %v3115_v37, %v3114_v13  ;;  %v2921_v49 = vadd.f32 %v2920_v39, %v2919_v25  ;;  %v3121_v12 = vsel %vm27_vm0, %v3015_v18, 0.0 }
 0x301   :  { %v3117_v0 = vsel %vm27_vm0, %v3013_v22, 0.0 }
 0x302   :  { %v2923_v38 = vadd.f32 %v2922_v17, %v2921_v49  ;;  %v3118_v2 = vadd.f32 %v3117_v0, %v3116_v42 }
 0x304   :  { %v3120_v52 = vadd.f32 %v3119_v3, %v3118_v2  ;;  %v2925_v8 = vadd.f32 %v2924_v6, %v2923_v38 }
 0x306   :  { %v3122_v13 = vadd.f32 %v3121_v12, %v3120_v52 }
 0x317   :  { %v8583_v15 = vpop.f32.mrb[44].mxu0 }
 0x318   :  { %11854 = vst [vmem:[#allocation9_spill] sm:$0xff] %v8583_v15  ;;  %v8585_v19 = vpop.f32.mrb[45].mxu0  ;;  %v3018_v42 = vmul.f32 %v8583_v15, %v8583_v15  ;;  %v2930_v2 = vsel %vm27_vm0, %v8583_v15, 0.0 }
 0x319   :  { %11855 = vst [vmem:[#allocation10_spill] sm:$0xff] %v8585_v19  ;;  %v2926_v25 = vsel %vm27_vm0, %v8585_v19, 0.0  ;;  %v3016_v37 = vmul.f32 %v8585_v19, %v8585_v19  ;;  %v8591_v39 = vpop.f32.mrb[46].mxu0 }
 0x31a   :  { %11856 = vst [vmem:[#allocation11_spill] sm:$0xff] %v8591_v39  ;;  %v2927_v60 = vadd.f32 %v2926_v25, %v2925_v8  ;;  %v8593_v22 = vpop.f32.mrb[47].mxu0  ;;  %v3019_v3 = vmul.f32 %v8591_v39, %v8591_v39  ;;  %v3127_v12 = vsel %vm27_vm0, %v3018_v42, 0.0  ;;  %v2932_v25 = vsel %vm27_vm0, %v8591_v39, 0.0 }
 0x31b   :  { %11857 = vst [vmem:[#allocation12_spill] sm:$0xff] %v8593_v22  ;;  %v3123_v49 = vsel %vm27_vm0, %v3016_v37, 0.0  ;;  %v2928_v17 = vsel %vm27_vm0, %v8593_v22, 0.0  ;;  %v3017_v18 = vmul.f32 %v8593_v22, %v8593_v22 }
 0x31c   :  { %v3124_v0 = vadd.f32 %v3123_v49, %v3122_v13  ;;  %v2929_v38 = vadd.f32 %v2928_v17, %v2927_v60  ;;  %v3129_v13 = vsel %vm27_vm0, %v3019_v3, 0.0 }
 0x31d   :  { %v3125_v6 = vsel %vm27_vm0, %v3017_v18, 0.0 }
 0x31e   :  { %v2931_v52 = vadd.f32 %v2930_v2, %v2929_v38  ;;  %v3126_v8 = vadd.f32 %v3125_v6, %v3124_v0 }
 0x320   :  { %v3128_v37 = vadd.f32 %v3127_v12, %v3126_v8  ;;  %v2933_v19 = vadd.f32 %v2932_v25, %v2931_v52 }
 0x322   :  { %v3130_v60 = vadd.f32 %v3129_v13, %v3128_v37 }
 0x333   :  { %v8611_v49 = vpop.f32.mrb[48].mxu0 }
 0x334   :  { %11858 = vst [vmem:[#allocation13_spill] sm:$0xff] %v8611_v49  ;;  %v8613_v17 = vpop.f32.mrb[49].mxu0  ;;  %v3022_v2 = vmul.f32 %v8611_v49, %v8611_v49  ;;  %v2938_v25 = vsel %vm27_vm0, %v8611_v49, 0.0 }
 0x335   :  { %11859 = vst [vmem:[#allocation14_spill] sm:$0xff] %v8613_v17  ;;  %v2934_v15 = vsel %vm27_vm0, %v8613_v17, 0.0  ;;  %v3020_v18 = vmul.f32 %v8613_v17, %v8613_v17  ;;  %v8619_v0 = vpop.f32.mrb[50].mxu0 }
 0x336   :  { %11860 = vst [vmem:[#allocation15_spill] sm:$0xff] %v8619_v0  ;;  %v2935_v42 = vadd.f32 %v2934_v15, %v2933_v19  ;;  %v8621_v38 = vpop.f32.mrb[51].mxu0  ;;  %v3023_v15 = vmul.f32 %v8619_v0, %v8619_v0  ;;  %v2940_v17 = vsel %vm27_vm0, %v8619_v0, 0.0 }
 0x337   :  { %11861 = vst [vmem:[#allocation16_spill] sm:$0xff] %v8621_v38  ;;  %v3131_v3 = vsel %vm27_vm0, %v3020_v18, 0.0  ;;  %v2936_v6 = vsel %vm27_vm0, %v8621_v38, 0.0  ;;  %v3021_v52 = vmul.f32 %v8621_v38, %v8621_v38  ;;  %v3135_v18 = vsel %vm27_vm0, %v3022_v2, 0.0 }
 0x338   :  { %v3132_v8 = vadd.f32 %v3131_v3, %v3130_v60  ;;  %v2937_v12 = vadd.f32 %v2936_v6, %v2935_v42  ;;  %v3137_v60 = vsel %vm27_vm0, %v3023_v15, 0.0  ;;  %v3577_v3 = vld [vmem:[#allocation2 + $0x1] sm:$0xff]  ;;  %v3578_v6 = vld [vmem:[#allocation2 + $0x9] sm:$0xff] }
 0x339   :  { %v3133_v19 = vsel %vm27_vm0, %v3021_v52, 0.0  ;;  %v3641_v49 = vpack.c.bf16 %v3578_v6, %v3577_v3 }
 0x33a   :  { %v2939_v37 = vadd.f32 %v2938_v25, %v2937_v12  ;;  %v3134_v13 = vadd.f32 %v3133_v19, %v3132_v8 }
 0x33b   :  { %3705 = vrot.lane.b32.xlu0 %v3641_v49, %s7040_s22 }
 0x33c   :  { %v3136_v39 = vadd.f32 %v3135_v18, %v3134_v13  ;;  %v2941_v22 = vadd.f32 %v2940_v17, %v2939_v37 }
 0x33e   :  { %v3138_v42 = vadd.f32 %v3137_v60, %v3136_v39 }
 0x34f   :  { %v8640_v38 = vpop.f32.mrb[52].mxu0 }
 0x350   :  { %11862 = vst [vmem:[#allocation17_spill] sm:$0xff] %v8640_v38  ;;  %v8642_v52 = vpop.f32.mrb[53].mxu0  ;;  %v3026_v39 = vmul.f32 %v8640_v38, %v8640_v38  ;;  %v2946_v18 = vsel %vm27_vm0, %v8640_v38, 0.0 }
 0x351   :  { %11863 = vst [vmem:[#allocation18_spill] sm:$0xff] %v8642_v52  ;;  %v2942_v2 = vsel %vm27_vm0, %v8642_v52, 0.0  ;;  %v3024_v8 = vmul.f32 %v8642_v52, %v8642_v52  ;;  %v8648_v12 = vpop.f32.mrb[54].mxu0 }
 0x352   :  { %11864 = vst [vmem:[#allocation19_spill] sm:$0xff] %v8648_v12  ;;  %v2943_v17 = vadd.f32 %v2942_v2, %v2941_v22  ;;  %v8650_v25 = vpop.f32.mrb[55].mxu0  ;;  %v3027_v22 = vmul.f32 %v8648_v12, %v8648_v12  ;;  %v3143_v2 = vsel %vm27_vm0, %v3026_v39, 0.0 }
 0x353   :  { %11865 = vst [vmem:[#allocation20_spill] sm:$0xff] %v8650_v25  ;;  %v3139_v49 = vsel %vm27_vm0, %v3024_v8, 0.0  ;;  %v2944_v15 = vsel %vm27_vm0, %v8650_v25, 0.0  ;;  %v3025_v19 = vmul.f32 %v8650_v25, %v8650_v25  ;;  %v2948_v8 = vsel %vm27_vm0, %v8648_v12, 0.0 }
 0x354   :  { %v3140_v37 = vadd.f32 %v3139_v49, %v3138_v42  ;;  %v2945_v13 = vadd.f32 %v2944_v15, %v2943_v17  ;;  %v3145_v42 = vsel %vm27_vm0, %v3027_v22, 0.0 }
 0x355   :  { %v3141_v60 = vsel %vm27_vm0, %v3025_v19, 0.0 }
 0x356   :  { %v2947_v3 = vadd.f32 %v2946_v18, %v2945_v13  ;;  %v3142_v6 = vadd.f32 %v3141_v60, %v3140_v37 }
 0x358   :  { %v3144_v52 = vadd.f32 %v3143_v2, %v3142_v6  ;;  %v2949_v0 = vadd.f32 %v2948_v8, %v2947_v3 }
 0x35a   :  { %v3146_v17 = vadd.f32 %v3145_v42, %v3144_v52 }
 0x36b   :  { %v8668_v49 = vpop.f32.mrb[56].mxu0 }
 0x36c   :  { %11866 = vst [vmem:[#allocation21_spill] sm:$0xff] %v8668_v49  ;;  %v8670_v15 = vpop.f32.mrb[57].mxu0  ;;  %v3030_v18 = vmul.f32 %v8668_v49, %v8668_v49  ;;  %v2954_v2 = vsel %vm27_vm0, %v8668_v49, 0.0 }
 0x36d   :  { %11867 = vst [vmem:[#allocation22_spill] sm:$0xff] %v8670_v15  ;;  %v2950_v38 = vsel %vm27_vm0, %v8670_v15, 0.0  ;;  %v3028_v19 = vmul.f32 %v8670_v15, %v8670_v15  ;;  %v8676_v37 = vpop.f32.mrb[58].mxu0 }
 0x36e   :  { %11868 = vst [vmem:[#allocation23_spill] sm:$0xff] %v8676_v37  ;;  %v2951_v39 = vadd.f32 %v2950_v38, %v2949_v0  ;;  %v8678_v13 = vpop.f32.mrb[59].mxu0  ;;  %v3031_v0 = vmul.f32 %v8676_v37, %v8676_v37  ;;  %v2956_v15 = vsel %vm27_vm0, %v8676_v37, 0.0 }
 0x36f   :  { %11869 = vst [vmem:[#allocation24_spill] sm:$0xff] %v8678_v13  ;;  %v3147_v52 = vsel %vm27_vm0, %v3028_v19, 0.0  ;;  %v2952_v22 = vsel %vm27_vm0, %v8678_v13, 0.0  ;;  %v3029_v60 = vmul.f32 %v8678_v13, %v8678_v13  ;;  %v3151_v19 = vsel %vm27_vm0, %v3030_v18, 0.0 }
 0x370   :  { %v3148_v3 = vadd.f32 %v3147_v52, %v3146_v17  ;;  %v2953_v6 = vadd.f32 %v2952_v22, %v2951_v39  ;;  %v3153_v17 = vsel %vm27_vm0, %v3031_v0, 0.0 }
 0x371   :  { %v3149_v38 = vsel %vm27_vm0, %v3029_v60, 0.0 }
 0x372   :  { %v2955_v8 = vadd.f32 %v2954_v2, %v2953_v6  ;;  %v3150_v42 = vadd.f32 %v3149_v38, %v3148_v3 }
 0x374   :  { %v3152_v12 = vadd.f32 %v3151_v19, %v3150_v42  ;;  %v2957_v25 = vadd.f32 %v2956_v15, %v2955_v8 }
 0x376   :  { %v3154_v39 = vadd.f32 %v3153_v17, %v3152_v12 }
 0x387   :  { %v8696_v52 = vpop.f32.mrb[60].mxu0 }
 0x388   :  { %11870 = vst [vmem:[#allocation25_spill] sm:$0xff] %v8696_v52  ;;  %v8698_v22 = vpop.f32.mrb[61].mxu0  ;;  %v3034_v15 = vmul.f32 %v8696_v52, %v8696_v52  ;;  %v2962_v42 = vsel %vm27_vm0, %v8696_v52, 0.0 }
 0x389   :  { %11871 = vst [vmem:[#allocation26_spill] sm:$0xff] %v8698_v22  ;;  %v2958_v49 = vsel %vm27_vm0, %v8698_v22, 0.0  ;;  %v3032_v60 = vmul.f32 %v8698_v22, %v8698_v22  ;;  %v8704_v3 = vpop.f32.mrb[62].mxu0 }
 0x38a   :  { %11872 = vst [vmem:[#allocation27_spill] sm:$0xff] %v8704_v3  ;;  %v2959_v18 = vadd.f32 %v2958_v49, %v2957_v25  ;;  %v2827_v6 = vpop.f32.mrb[63].mxu0  ;;  %v3035_v19 = vmul.f32 %v8704_v3, %v8704_v3  ;;  %v3159_v22 = vsel %vm27_vm0, %v3034_v15, 0.0 }
 0x38b   :  { %v3155_v2 = vsel %vm27_vm0, %v3032_v60, 0.0  ;;  %v2960_v12 = vsel %vm27_vm0, %v2827_v6, 0.0  ;;  %v3033_v0 = vmul.f32 %v2827_v6, %v2827_v6  ;;  %v2964_v60 = vsel %vm27_vm0, %v8704_v3, 0.0 }
 0x38c   :  { %v3156_v38 = vadd.f32 %v3155_v2, %v3154_v39  ;;  %v2961_v8 = vadd.f32 %v2960_v12, %v2959_v18  ;;  %v3161_v39 = vsel %vm27_vm0, %v3035_v19, 0.0  ;;  %v3182_v19 = vlaneseq }
 0x38d   :  { %v3157_v17 = vsel %vm27_vm0, %v3033_v0, 0.0 }
 0x38e   :  { %v2963_v25 = vadd.f32 %v2962_v42, %v2961_v8  ;;  %v3158_v49 = vadd.f32 %v3157_v17, %v3156_v38 }
 0x390   :  { %v2965_v37 = vadd.f32 %v2964_v60, %v2963_v25  ;;  %v3160_v13 = vadd.f32 %v3159_v22, %v3158_v49 }
 0x392   :  { %v2966_v18 = vrot.slane %v2965_v37, 4  ;;  %v3162_v2 = vadd.f32 %v3161_v39, %v3160_v13  ;;  %v3183_v13 = vshrl.u32 %v3182_v19, 7 }
 0x394   :  { %v2967_v12 = vadd.f32 %v2966_v18, %v2965_v37  ;;  %v3163_v52 = vrot.slane %v3162_v2, 4  ;;  %v3174_v37 = vld [vmem:[%s11793_s2] sm:$0x1] }
 0x396   :  { %v2968_v44 = vrot.slane %v2967_v12, 2  ;;  %v3164_v1 = vadd.f32 %v3163_v52, %v3162_v2 }
 0x398   :  { %v2969_v28 = vadd.f32 %v2968_v44, %v2967_v12  ;;  %v3165_v14 = vrot.slane %v3164_v1, 2  ;;  %v8722_v44 = vsub.s32 0, %v3183_v13  ;;  %v11880_v13 = vld [vmem:[#allocation12_spill] sm:$0xff] }
 0x39a   :  { %v2970_v0 = vrot.slane %v2969_v28, 1  ;;  %v3166_v8 = vadd.f32 %v3165_v14, %v3164_v1  ;;  %11873 = vst [vmem:[#allocation28_spill] sm:$0xff] %v8722_v44  ;;  %v3178_v14 = vld [vmem:[%s11794_s3] sm:$0x1] }
 0x39c   :  { %v2971_v38 = vadd.f32 %v2970_v0, %v2969_v28  ;;  %v3167_v42 = vrot.slane %v3166_v8, 1 }
 0x39e   :  { %v3168_v15 = vadd.f32 %v3167_v42, %v3166_v8  ;;  %v3169_v17 = vmul.f32 0.001953125, %v2971_v38  ;;  %v11874_v42 = vld [vmem:[#allocation4_spill] sm:$0xff] }
 0x3a0   :  { %v3170_v27 = vmul.f32 0.001953125, %v3168_v15  ;;  %v3171_v3 = vmul.f32 %v3169_v17, %v3169_v17  ;;  %v11875_v15 = vld [vmem:[#allocation6_spill] sm:$0xff] }
 0x3a2   :  { %v3172_v25 = vsub.f32 %v3170_v27, %v3171_v3 }
 0x3a4   :  { %v3173_v22 = vmax.f32 %v3172_v25, 0.0  ;;  %v11877_v25 = vld [vmem:[#allocation5_spill] sm:$0xff] }
 0x3a6   :  { %v3175_v49 = vadd.f32 1e-05, %v3173_v22  ;;  %v11878_v22 = vld [vmem:[#allocation7_spill] sm:$0xff] }
 0x3a8   :  { %7034 = vrsqrt.f32 %v3175_v49  ;;  %v11879_v49 = vld [vmem:[#allocation10_spill] sm:$0xff] }
 0x3b2   :  { %v7035_v52 = vpop.eup %7034 }
 0x3b3   :  { %v3177_v1 = vmul.f32 %v7035_v52, %v3174_v37  ;;  %v11881_v52 = vld [vmem:[#allocation9_spill] sm:$0xff] }
 0x3b5   :  { %v3179_v28 = vmul.f32 %v3177_v1, %v3169_v17  ;;  %v8728_v27 = vrot.slane %v3177_v1, %v8722_v44  ;;  %v11876_v17 = vld [vmem:[#allocation8_spill] sm:$0xff] }
 0x3b7   :  { %v3180_v3 = vsub.f32 %v3178_v14, %v3179_v28  ;;  %v3248_v60 = vmul.f32 %v8728_v27, %v2827_v6  ;;  %v8733_v39 = vmul.f32 %v8728_v27, %v8143_v35  ;;  %v8737_v18 = vmul.f32 %v8728_v27, %v8153_v41  ;;  %v11882_v14 = vld [vmem:[#allocation11_spill] sm:$0xff] }
 0x3b8   :  { %v8741_v2 = vmul.f32 %v8140_v56, %v8728_v27  ;;  %v8745_v12 = vmul.f32 %v8149_v40, %v8728_v27  ;;  %v8749_v0 = vmul.f32 %v8728_v27, %v8207_v55  ;;  %v8753_v35 = vmul.f32 %v8728_v27, %v8219_v46 }
 0x3b9   :  { %v8756_v6 = vrot.slane %v3180_v3, %v8722_v44  ;;  %v8760_v41 = vmul.f32 %v8204_v61, %v8728_v27  ;;  %v8764_v56 = vmul.f32 %v8215_v45, %v8728_v27  ;;  %v8768_v40 = vmul.f32 %v8728_v27, %v8264_v16  ;;  %v11883_v3 = vld [vmem:[#allocation14_spill] sm:$0xff] }
 0x3ba   :  { %v8772_v55 = vmul.f32 %v8728_v27, %v8275_v30  ;;  %v8776_v46 = vmul.f32 %v8261_v36, %v8728_v27  ;;  %v8780_v61 = vmul.f32 %v8272_v9, %v8728_v27  ;;  %v8784_v45 = vmul.f32 %v8728_v27, %v8310_v24  ;;  %v11896_v44 = vld [vmem:[#allocation22_spill] sm:$0xff] }
 0x3bb   :  { %v3318_v8 = vadd.f32 %v8756_v6, %v3248_v60  ;;  %v8789_v16 = vmul.f32 %v8728_v27, %v8319_v10  ;;  %v8793_v30 = vmul.f32 %v8307_v53, %v8728_v27  ;;  %v8797_v36 = vmul.f32 %v8317_v26, %v8728_v27 }
 0x3bc   :  { %v8801_v9 = vmul.f32 %v8728_v27, %v8350_v5  ;;  %v8805_v24 = vmul.f32 %v8728_v27, %v8359_v43  ;;  %v8809_v10 = vmul.f32 %v8347_v63, %v8728_v27  ;;  %v8813_v53 = vmul.f32 %v8357_v23, %v8728_v27 }
 0x3bd   :  { %v3382_v38 = vmax.f32 %v3318_v8, 0.0  ;;  %v8817_v26 = vmul.f32 %v8728_v27, %v8390_v7  ;;  %v8821_v5 = vmul.f32 %v8728_v27, %v8399_v59  ;;  %v8825_v43 = vmul.f32 %v8387_v51, %v8728_v27  ;;  %v11884_v8 = vld [vmem:[#allocation16_spill] sm:$0xff] }
 0x3be   :  { %v8829_v63 = vmul.f32 %v8397_v58, %v8728_v27  ;;  %v8833_v23 = vmul.f32 %v8728_v27, %v8430_v47  ;;  %v8837_v7 = vmul.f32 %v8728_v27, %v8439_v57  ;;  %v8841_v59 = vmul.f32 %v8427_v29, %v8728_v27 }
 0x3bf   :  { %v8845_v51 = vmul.f32 %v8437_v50, %v8728_v27  ;;  %v8849_v58 = vmul.f32 %v8728_v27, %v8471_v4  ;;  %v8853_v47 = vmul.f32 %v8728_v27, %v8479_v62  ;;  %v8857_v57 = vmul.f32 %v8468_v31, %v8728_v27  ;;  %3446 = vst.msk [vmem:[#allocation2 + $0x321] sm:$0xff] %vm27_vm0, %v3382_v38 }
 0x3c0   :  { %v8862_v29 = vmul.f32 %v8477_v54, %v8728_v27  ;;  %v8866_v50 = vmul.f32 %v8728_v27, %v8501_v48  ;;  %v8870_v4 = vmul.f32 %v8728_v27, %v8509_v11  ;;  %v8874_v62 = vmul.f32 %v8499_v33, %v8728_v27 }
 0x3c1   :  { %v8878_v31 = vmul.f32 %v8507_v34, %v8728_v27  ;;  %v8882_v54 = vmul.f32 %v8728_v27, %v8529_v21  ;;  %v8886_v48 = vmul.f32 %v8728_v27, %v8537_v32  ;;  %v8890_v11 = vmul.f32 %v8527_v20, %v8728_v27 }
 0x3c2   :  { %v8894_v33 = vmul.f32 %v11874_v42, %v8728_v27  ;;  %v8898_v34 = vmul.f32 %v8728_v27, %v11875_v15  ;;  %v8902_v21 = vmul.f32 %v8728_v27, %v11876_v17  ;;  %v8906_v32 = vmul.f32 %v11877_v25, %v8728_v27  ;;  %v11885_v42 = vld [vmem:[#allocation13_spill] sm:$0xff]  ;;  %v11886_v17 = vld [vmem:[#allocation15_spill] sm:$0xff] }
 0x3c3   :  { %v8910_v20 = vmul.f32 %v11878_v22, %v8728_v27  ;;  %v8914_v19 = vmul.f32 %v8728_v27, %v11879_v49  ;;  %v8918_v37 = vmul.f32 %v8728_v27, %v11880_v13  ;;  %v8922_v1 = vmul.f32 %v11881_v52, %v8728_v27  ;;  %v11888_v22 = vld [vmem:[#allocation18_spill] sm:$0xff]  ;;  %v11890_v13 = vld [vmem:[#allocation20_spill] sm:$0xff] }
 0x3c4   :  { %v8926_v28 = vmul.f32 %v11882_v14, %v8728_v27  ;;  %v8930_v60 = vmul.f32 %v8728_v27, %v11883_v3  ;;  %v8934_v38 = vmul.f32 %v8728_v27, %v11884_v8  ;;  %v8938_v15 = vmul.f32 %v11885_v42, %v8728_v27  ;;  %v11892_v14 = vld [vmem:[#allocation17_spill] sm:$0xff]  ;;  %v11894_v8 = vld [vmem:[#allocation19_spill] sm:$0xff] }
 0x3c5   :  { %v8942_v25 = vmul.f32 %v11886_v17, %v8728_v27  ;;  %v8946_v49 = vmul.f32 %v8728_v27, %v11888_v22  ;;  %v8950_v52 = vmul.f32 %v8728_v27, %v11890_v13  ;;  %v8954_v3 = vmul.f32 %v11892_v14, %v8728_v27 }
 0x3c6   :  { %v8958_v42 = vmul.f32 %v11894_v8, %v8728_v27  ;;  %v8962_v17 = vmul.f32 %v8728_v27, %v11896_v44 }
 0x3c7   :  { %11887 = vst [vmem:[#allocation4_spill] sm:$0xff] %v8942_v25  ;;  %11889 = vst [vmem:[#allocation6_spill] sm:$0xff] %v8946_v49  ;;  %v11898_v25 = vld [vmem:[#allocation24_spill] sm:$0xff]  ;;  %v11899_v49 = vld [vmem:[#allocation21_spill] sm:$0xff] }
 0x3c8   :  { %11891 = vst [vmem:[#allocation8_spill] sm:$0xff] %v8950_v52  ;;  %11893 = vst [vmem:[#allocation5_spill] sm:$0xff] %v8954_v3  ;;  %v8966_v22 = vmul.f32 %v8728_v27, %v11898_v25  ;;  %v8970_v13 = vmul.f32 %v11899_v49, %v8728_v27  ;;  %v11900_v52 = vld [vmem:[#allocation23_spill] sm:$0xff]  ;;  %v11901_v3 = vld [vmem:[#allocation26_spill] sm:$0xff]  ;;  %v8990_v49 = vadd.f32 %v8756_v6, %v8733_v39 }
 0x3c9   :  { %11895 = vst [vmem:[#allocation7_spill] sm:$0xff] %v8958_v42  ;;  %11897 = vst [vmem:[#allocation10_spill] sm:$0xff] %v8962_v17  ;;  %v8974_v14 = vmul.f32 %v11900_v52, %v8728_v27  ;;  %v8978_v8 = vmul.f32 %v8728_v27, %v11901_v3  ;;  %v11902_v42 = vld [vmem:[#allocation25_spill] sm:$0xff]  ;;  %v11903_v17 = vld [vmem:[#allocation27_spill] sm:$0xff]  ;;  %v8994_v52 = vadd.f32 %v8756_v6, %v8737_v18 }
 0x3ca   :  { %v8982_v44 = vmul.f32 %v11902_v42, %v8728_v27  ;;  %v8986_v25 = vmul.f32 %v11903_v17, %v8728_v27  ;;  %v8998_v3 = vadd.f32 %v8756_v6, %v8741_v2  ;;  %v9002_v42 = vadd.f32 %v8756_v6, %v8745_v12 }
 0x3cb   :  { %v9006_v27 = vadd.f32 %v8756_v6, %v8749_v0  ;;  %v9010_v39 = vadd.f32 %v8756_v6, %v8753_v35  ;;  %v9014_v18 = vadd.f32 %v8756_v6, %v8760_v41  ;;  %v9018_v2 = vadd.f32 %v8756_v6, %v8764_v56 }
 0x3cc   :  { %v9022_v12 = vadd.f32 %v8756_v6, %v8768_v40  ;;  %v9026_v0 = vadd.f32 %v8756_v6, %v8772_v55  ;;  %v9030_v35 = vadd.f32 %v8756_v6, %v8776_v46  ;;  %v9034_v41 = vadd.f32 %v8756_v6, %v8780_v61 }
 0x3cd   :  { %v9038_v56 = vadd.f32 %v8756_v6, %v8784_v45  ;;  %v9042_v40 = vadd.f32 %v8756_v6, %v8789_v16  ;;  %v9046_v55 = vadd.f32 %v8756_v6, %v8793_v30  ;;  %v9050_v46 = vadd.f32 %v8756_v6, %v8797_v36 }
 0x3ce   :  { %v9054_v61 = vadd.f32 %v8756_v6, %v8801_v9  ;;  %v9058_v45 = vadd.f32 %v8756_v6, %v8805_v24  ;;  %v9062_v16 = vadd.f32 %v8756_v6, %v8809_v10  ;;  %v9066_v30 = vadd.f32 %v8756_v6, %v8813_v53  ;;  %v11909_v17 = vld [vmem:[#allocation4_spill] sm:$0xff] }
 0x3cf   :  { %v9070_v36 = vadd.f32 %v8756_v6, %v8817_v26  ;;  %v9074_v9 = vadd.f32 %v8756_v6, %v8821_v5  ;;  %v9078_v24 = vadd.f32 %v8756_v6, %v8825_v43  ;;  %v9082_v10 = vadd.f32 %v8756_v6, %v8829_v63 }
 0x3d0   :  { %v9086_v53 = vadd.f32 %v8756_v6, %v8833_v23  ;;  %v9090_v26 = vadd.f32 %v8756_v6, %v8837_v7  ;;  %v9094_v5 = vadd.f32 %v8756_v6, %v8841_v59  ;;  %v9098_v43 = vadd.f32 %v8756_v6, %v8845_v51 }
 0x3d1   :  { %v9102_v63 = vadd.f32 %v8756_v6, %v8849_v58  ;;  %v9106_v23 = vadd.f32 %v8756_v6, %v8853_v47  ;;  %v9110_v7 = vadd.f32 %v8756_v6, %v8857_v57  ;;  %v9114_v59 = vadd.f32 %v8756_v6, %v8862_v29 }
 0x3d2   :  { %v9118_v51 = vadd.f32 %v8756_v6, %v8866_v50  ;;  %v9122_v58 = vadd.f32 %v8756_v6, %v8870_v4  ;;  %v9126_v47 = vadd.f32 %v8756_v6, %v8874_v62  ;;  %v9130_v57 = vadd.f32 %v8756_v6, %v8878_v31 }
 0x3d3   :  { %v9134_v29 = vadd.f32 %v8756_v6, %v8882_v54  ;;  %v9138_v50 = vadd.f32 %v8756_v6, %v8886_v48  ;;  %v9142_v4 = vadd.f32 %v8756_v6, %v8890_v11  ;;  %v9146_v62 = vadd.f32 %v8756_v6, %v8894_v33 }
 0x3d4   :  { %v9150_v31 = vadd.f32 %v8756_v6, %v8898_v34  ;;  %v9154_v54 = vadd.f32 %v8756_v6, %v8902_v21  ;;  %v9158_v48 = vadd.f32 %v8756_v6, %v8906_v32  ;;  %v9162_v11 = vadd.f32 %v8756_v6, %v8910_v20 }
 0x3d5   :  { %v9166_v33 = vadd.f32 %v8756_v6, %v8914_v19  ;;  %v9170_v34 = vadd.f32 %v8756_v6, %v8918_v37  ;;  %v9174_v21 = vadd.f32 %v8756_v6, %v8922_v1  ;;  %v9178_v32 = vadd.f32 %v8756_v6, %v8926_v28 }
 0x3d6   :  { %v9182_v20 = vadd.f32 %v8756_v6, %v8930_v60  ;;  %v9186_v19 = vadd.f32 %v8756_v6, %v8934_v38  ;;  %v9190_v37 = vadd.f32 %v8756_v6, %v8938_v15  ;;  %v9194_v1 = vadd.f32 %v8756_v6, %v11909_v17 }
 0x3d7   :  { %11904 = vst [vmem:[#allocation12_spill] sm:$0xff] %v9174_v21  ;;  %11905 = vst [vmem:[#allocation9_spill] sm:$0xff] %v9178_v32  ;;  %v11910_v21 = vld [vmem:[#allocation6_spill] sm:$0xff]  ;;  %v11911_v32 = vld [vmem:[#allocation8_spill] sm:$0xff] }
 0x3d8   :  { %11906 = vst [vmem:[#allocation11_spill] sm:$0xff] %v9182_v20  ;;  %11907 = vst [vmem:[#allocation14_spill] sm:$0xff] %v9186_v19  ;;  %v9198_v28 = vadd.f32 %v8756_v6, %v11910_v21  ;;  %v9202_v60 = vadd.f32 %v8756_v6, %v11911_v32  ;;  %v11912_v20 = vld [vmem:[#allocation5_spill] sm:$0xff]  ;;  %v11913_v19 = vld [vmem:[#allocation7_spill] sm:$0xff]  ;;  %v9218_v21 = vadd.f32 %v8756_v6, %v8966_v22 }
 0x3d9   :  { %11908 = vst [vmem:[#allocation16_spill] sm:$0xff] %v9190_v37  ;;  %v9206_v38 = vadd.f32 %v8756_v6, %v11912_v20  ;;  %v9210_v15 = vadd.f32 %v8756_v6, %v11913_v19  ;;  %v11914_v37 = vld [vmem:[#allocation10_spill] sm:$0xff]  ;;  %v9222_v32 = vadd.f32 %v8756_v6, %v8970_v13  ;;  %v9226_v20 = vadd.f32 %v8756_v6, %v8974_v14 }
 0x3da   :  { %v9214_v17 = vadd.f32 %v8756_v6, %v11914_v37  ;;  %11915 = vst [vmem:[#allocation13_spill] sm:$0xff] %v9218_v21  ;;  %v9230_v19 = vadd.f32 %v8756_v6, %v8978_v8  ;;  %v9234_v37 = vadd.f32 %v8756_v6, %v8982_v44  ;;  %v9238_v22 = vadd.f32 %v8756_v6, %v8986_v25 }
 0x3db   :  { %11916 = vst [vmem:[#allocation15_spill] sm:$0xff] %v9222_v32  ;;  %11917 = vst [vmem:[#allocation18_spill] sm:$0xff] %v9226_v20  ;;  %v3323_v21 = vmax.f32 %v8998_v3, 0.0  ;;  %v3324_v13 = vmax.f32 %v9002_v42, 0.0  ;;  %v3321_v32 = vmax.f32 %v8990_v49, 0.0  ;;  %v3322_v14 = vmax.f32 %v8994_v52, 0.0 }
 0x3dc   :  { %11918 = vst [vmem:[#allocation20_spill] sm:$0xff] %v9234_v37  ;;  %v3325_v20 = vmax.f32 %v9006_v27, 0.0  ;;  %v3326_v8 = vmax.f32 %v9010_v39, 0.0  ;;  %v3327_v44 = vmax.f32 %v9014_v18, 0.0  ;;  %v3328_v37 = vmax.f32 %v9018_v2, 0.0 }
 0x3dd   :  { %3387 = vst.msk [vmem:[#allocation2 + $0x31] sm:$0xff] %vm27_vm0, %v3323_v21  ;;  %v3329_v6 = vmax.f32 %v9022_v12, 0.0  ;;  %3388 = vst.msk [vmem:[#allocation2 + $0x39] sm:$0xff] %vm27_vm0, %v3324_v13  ;;  %v3330_v25 = vmax.f32 %v9026_v0, 0.0  ;;  %v3331_v49 = vmax.f32 %v9030_v35, 0.0  ;;  %v3332_v52 = vmax.f32 %v9034_v41, 0.0 }
 0x3de   :  { %v3333_v3 = vmax.f32 %v9038_v56, 0.0  ;;  %3385 = vst.msk [vmem:[#allocation2 + $0x19] sm:$0xff] %vm27_vm0, %v3321_v32  ;;  %3386 = vst.msk [vmem:[#allocation2 + $0x21] sm:$0xff] %vm27_vm0, %v3322_v14  ;;  %v3334_v42 = vmax.f32 %v9042_v40, 0.0  ;;  %v3335_v27 = vmax.f32 %v9046_v55, 0.0  ;;  %v3336_v39 = vmax.f32 %v9050_v46, 0.0 }
 0x3df   :  { %3389 = vst.msk [vmem:[#allocation2 + $0x49] sm:$0xff] %vm27_vm0, %v3325_v20  ;;  %v3337_v18 = vmax.f32 %v9054_v61, 0.0  ;;  %3390 = vst.msk [vmem:[#allocation2 + $0x51] sm:$0xff] %vm27_vm0, %v3326_v8  ;;  %v3338_v2 = vmax.f32 %v9058_v45, 0.0  ;;  %v3339_v12 = vmax.f32 %v9062_v16, 0.0  ;;  %v3340_v0 = vmax.f32 %v9066_v30, 0.0 }
 0x3e0   :  { %3391 = vst.msk [vmem:[#allocation2 + $0x61] sm:$0xff] %vm27_vm0, %v3327_v44  ;;  %3392 = vst.msk [vmem:[#allocation2 + $0x69] sm:$0xff] %vm27_vm0, %v3328_v37  ;;  %v3341_v35 = vmax.f32 %v9070_v36, 0.0  ;;  %v3342_v41 = vmax.f32 %v9074_v9, 0.0  ;;  %v3343_v56 = vmax.f32 %v9078_v24, 0.0  ;;  %v3344_v40 = vmax.f32 %v9082_v10, 0.0 }
 0x3e1   :  { %3393 = vst.msk [vmem:[#allocation2 + $0x79] sm:$0xff] %vm27_vm0, %v3329_v6  ;;  %3394 = vst.msk [vmem:[#allocation2 + $0x81] sm:$0xff] %vm27_vm0, %v3330_v25  ;;  %v3345_v55 = vmax.f32 %v9086_v53, 0.0  ;;  %v3346_v46 = vmax.f32 %v9090_v26, 0.0  ;;  %v3347_v61 = vmax.f32 %v9094_v5, 0.0  ;;  %v3348_v45 = vmax.f32 %v9098_v43, 0.0 }
 0x3e2   :  { %3395 = vst.msk [vmem:[#allocation2 + $0x91] sm:$0xff] %vm27_vm0, %v3331_v49  ;;  %3396 = vst.msk [vmem:[#allocation2 + $0x99] sm:$0xff] %vm27_vm0, %v3332_v52  ;;  %v3349_v16 = vmax.f32 %v9102_v63, 0.0  ;;  %v3350_v30 = vmax.f32 %v9106_v23, 0.0  ;;  %v3351_v36 = vmax.f32 %v9110_v7, 0.0  ;;  %v3352_v9 = vmax.f32 %v9114_v59, 0.0 }
 0x3e3   :  { %3397 = vst.msk [vmem:[#allocation2 + $0xa9] sm:$0xff] %vm27_vm0, %v3333_v3  ;;  %3398 = vst.msk [vmem:[#allocation2 + $0xb1] sm:$0xff] %vm27_vm0, %v3334_v42  ;;  %v3353_v24 = vmax.f32 %v9118_v51, 0.0  ;;  %v3354_v53 = vmax.f32 %v9122_v58, 0.0  ;;  %v3355_v26 = vmax.f32 %v9126_v47, 0.0  ;;  %v3356_v5 = vmax.f32 %v9130_v57, 0.0 }
 0x3e4   :  { %3399 = vst.msk [vmem:[#allocation2 + $0xc1] sm:$0xff] %vm27_vm0, %v3335_v27  ;;  %3400 = vst.msk [vmem:[#allocation2 + $0xc9] sm:$0xff] %vm27_vm0, %v3336_v39  ;;  %v3581_v10 = vld [vmem:[#allocation2 + $0x31] sm:$0xff]  ;;  %v3357_v43 = vmax.f32 %v9134_v29, 0.0  ;;  %v3582_v63 = vld [vmem:[#allocation2 + $0x39] sm:$0xff]  ;;  %v3358_v23 = vmax.f32 %v9138_v50, 0.0 }
 0x3e5   :  { %3401 = vst.msk [vmem:[#allocation2 + $0xd9] sm:$0xff] %vm27_vm0, %v3337_v18  ;;  %3402 = vst.msk [vmem:[#allocation2 + $0xe1] sm:$0xff] %vm27_vm0, %v3338_v2  ;;  %v3359_v7 = vmax.f32 %v9142_v4, 0.0  ;;  %v3360_v59 = vmax.f32 %v9146_v62, 0.0  ;;  %v3361_v51 = vmax.f32 %v9150_v31, 0.0  ;;  %v9314_v58 = vpack.c.bf16 %v3582_v63, %v3581_v10  ;;  %v11919_v62 = vld [vmem:[#allocation12_spill] sm:$0xff] }
 0x3e6   :  { %3403 = vst.msk [vmem:[#allocation2 + $0xf1] sm:$0xff] %vm27_vm0, %v3339_v12  ;;  %3404 = vst.msk [vmem:[#allocation2 + $0xf9] sm:$0xff] %vm27_vm0, %v3340_v0  ;;  %v3362_v47 = vmax.f32 %v9154_v54, 0.0  ;;  %v3363_v57 = vmax.f32 %v9158_v48, 0.0  ;;  %v3364_v29 = vmax.f32 %v9162_v11, 0.0  ;;  %v3365_v50 = vmax.f32 %v9166_v33, 0.0 }
 0x3e7   :  { %3405 = vst.msk [vmem:[#allocation2 + $0x109] sm:$0xff] %vm27_vm0, %v3341_v35  ;;  %3406 = vst.msk [vmem:[#allocation2 + $0x111] sm:$0xff] %vm27_vm0, %v3342_v41  ;;  %v3366_v4 = vmax.f32 %v9170_v34, 0.0  ;;  %v3367_v31 = vmax.f32 %v11919_v62, 0.0  ;;  %v11920_v21 = vld [vmem:[#allocation9_spill] sm:$0xff]  ;;  %3709 = vrot.lane.b32.xlu0 %v9314_v58, %s7040_s22  ;;  %v11921_v48 = vld [vmem:[#allocation11_spill] sm:$0xff] }
 0x3e8   :  { %3407 = vst.msk [vmem:[#allocation2 + $0x121] sm:$0xff] %vm27_vm0, %v3343_v56  ;;  %3408 = vst.msk [vmem:[#allocation2 + $0x129] sm:$0xff] %vm27_vm0, %v3344_v40  ;;  %v3368_v54 = vmax.f32 %v11920_v21, 0.0  ;;  %v3369_v11 = vmax.f32 %v11921_v48, 0.0  ;;  %v11922_v33 = vld [vmem:[#allocation14_spill] sm:$0xff]  ;;  %v11923_v34 = vld [vmem:[#allocation16_spill] sm:$0xff] }
 0x3e9   :  { %3409 = vst.msk [vmem:[#allocation2 + $0x139] sm:$0xff] %vm27_vm0, %v3345_v55  ;;  %3410 = vst.msk [vmem:[#allocation2 + $0x141] sm:$0xff] %vm27_vm0, %v3346_v46  ;;  %v3370_v32 = vmax.f32 %v11922_v33, 0.0  ;;  %v3371_v20 = vmax.f32 %v11923_v34, 0.0  ;;  %v3372_v37 = vmax.f32 %v9194_v1, 0.0  ;;  %v3579_v13 = vld [vmem:[#allocation2 + $0x19] sm:$0xff] }
 0x3ea   :  { %3411 = vst.msk [vmem:[#allocation2 + $0x151] sm:$0xff] %vm27_vm0, %v3347_v61  ;;  %3412 = vst.msk [vmem:[#allocation2 + $0x159] sm:$0xff] %vm27_vm0, %v3348_v45  ;;  %v3580_v14 = vld [vmem:[#allocation2 + $0x21] sm:$0xff]  ;;  %v3373_v8 = vmax.f32 %v9198_v28, 0.0  ;;  %v3374_v44 = vmax.f32 %v9202_v60, 0.0  ;;  %v3375_v6 = vmax.f32 %v9206_v38, 0.0 }
 0x3eb   :  { %3413 = vst.msk [vmem:[#allocation2 + $0x169] sm:$0xff] %vm27_vm0, %v3349_v16  ;;  %3414 = vst.msk [vmem:[#allocation2 + $0x171] sm:$0xff] %vm27_vm0, %v3350_v30  ;;  %v3376_v25 = vmax.f32 %v9210_v15, 0.0  ;;  %v3585_v1 = vld [vmem:[#allocation2 + $0x61] sm:$0xff]  ;;  %v3586_v49 = vld [vmem:[#allocation2 + $0x69] sm:$0xff]  ;;  %v3377_v52 = vmax.f32 %v9214_v17, 0.0  ;;  %v9359_v2 = vpack.c.bf16 %v3580_v14, %v3579_v13  ;;  %v3706_v16 = vpop.permute.xlu0 %3705 }
 0x3ec   :  { %3415 = vst.msk [vmem:[#allocation2 + $0x181] sm:$0xff] %vm27_vm0, %v3351_v36  ;;  %3416 = vst.msk [vmem:[#allocation2 + $0x189] sm:$0xff] %vm27_vm0, %v3352_v9  ;;  %v11924_v3 = vld [vmem:[#allocation13_spill] sm:$0xff]  ;;  %v11925_v42 = vld [vmem:[#allocation15_spill] sm:$0xff]  ;;  %v3381_v15 = vmax.f32 %v9230_v19, 0.0  ;;  %v3384_v17 = vmax.f32 %v9238_v22, 0.0  ;;  %v9369_v19 = vpack.c.bf16 %v3586_v49, %v3585_v1 }
 0x3ed   :  { %3417 = vst.msk [vmem:[#allocation2 + $0x1c9] sm:$0xff] %vm27_vm0, %v3353_v24  ;;  %3418 = vst.msk [vmem:[#allocation2 + $0x1d1] sm:$0xff] %vm27_vm0, %v3354_v53  ;;  %v3378_v28 = vmax.f32 %v11924_v3, 0.0  ;;  %v3379_v60 = vmax.f32 %v11925_v42, 0.0  ;;  %v11926_v27 = vld [vmem:[#allocation18_spill] sm:$0xff]  ;;  %v11927_v39 = vld [vmem:[#allocation20_spill] sm:$0xff]  ;;  %3707 = vrot.lane.b32.xlu1 %v9359_v2, %s7040_s22 }
 0x3ee   :  { %3419 = vst.msk [vmem:[#allocation2 + $0x1e1] sm:$0xff] %vm27_vm0, %v3355_v26  ;;  %3420 = vst.msk [vmem:[#allocation2 + $0x1e9] sm:$0xff] %vm27_vm0, %v3356_v5  ;;  %v3380_v38 = vmax.f32 %v11926_v27, 0.0  ;;  %v3383_v18 = vmax.f32 %v11927_v39, 0.0  ;;  %v3449_v12 = vld [vmem:[#allocation2] sm:$0xff]  ;;  %v3450_v0 = vld [vmem:[#allocation2 + $0x8] sm:$0xff]  ;;  %3713 = vrot.lane.b32.xlu0 %v9369_v19, %s7040_s22 }
 0x3ef   :  { %3421 = vst.msk [vmem:[#allocation2 + $0x1f9] sm:$0xff] %vm27_vm0, %v3357_v43  ;;  %3422 = vst.msk [vmem:[#allocation2 + $0x201] sm:$0xff] %vm27_vm0, %v3358_v23  ;;  %v3583_v22 = vld [vmem:[#allocation2 + $0x49] sm:$0xff]  ;;  %v3584_v35 = vld [vmem:[#allocation2 + $0x51] sm:$0xff]  ;;  %v3513_v40 = vpack.c.bf16 %v3450_v0, %v3449_v12 }
 0x3f0   :  { %3423 = vst.msk [vmem:[#allocation2 + $0x211] sm:$0xff] %vm27_vm0, %v3359_v7  ;;  %3424 = vst.msk [vmem:[#allocation2 + $0x219] sm:$0xff] %vm27_vm0, %v3360_v59  ;;  %v3589_v41 = vld [vmem:[#allocation2 + $0x91] sm:$0xff]  ;;  %v3590_v56 = vld [vmem:[#allocation2 + $0x99] sm:$0xff]  ;;  %v9378_v55 = vpack.c.bf16 %v3584_v35, %v3583_v22 }
 0x3f1   :  { %3425 = vst.msk [vmem:[#allocation2 + $0x229] sm:$0xff] %vm27_vm0, %v3361_v51  ;;  %3426 = vst.msk [vmem:[#allocation2 + $0x231] sm:$0xff] %vm27_vm0, %v3362_v47  ;;  %v9380_v46 = vpack.c.bf16 %v3590_v56, %v3589_v41  ;;  %v3587_v61 = vld [vmem:[#allocation2 + $0x79] sm:$0xff]  ;;  %v3588_v45 = vld [vmem:[#allocation2 + $0x81] sm:$0xff] }
 0x3f2   :  { %3427 = vst.msk [vmem:[#allocation2 + $0x241] sm:$0xff] %vm27_vm0, %v3363_v57  ;;  %3428 = vst.msk [vmem:[#allocation2 + $0x249] sm:$0xff] %vm27_vm0, %v3364_v29  ;;  %3711 = vrot.lane.b32.xlu1 %v9378_v55, %s7040_s22  ;;  %v3593_v30 = vld [vmem:[#allocation2 + $0xc1] sm:$0xff]  ;;  %v3594_v36 = vld [vmem:[#allocation2 + $0xc9] sm:$0xff]  ;;  %v9388_v9 = vpack.c.bf16 %v3588_v45, %v3587_v61 }
 0x3f3   :  { %3429 = vst.msk [vmem:[#allocation2 + $0x259] sm:$0xff] %vm27_vm0, %v3365_v50  ;;  %3430 = vst.msk [vmem:[#allocation2 + $0x261] sm:$0xff] %vm27_vm0, %v3366_v4  ;;  %3717 = vrot.lane.b32.xlu0 %v9380_v46, %s7040_s22  ;;  %v9390_v24 = vpack.c.bf16 %v3594_v36, %v3593_v30  ;;  %v3591_v10 = vld [vmem:[#allocation2 + $0xa9] sm:$0xff]  ;;  %v3592_v53 = vld [vmem:[#allocation2 + $0xb1] sm:$0xff] }
 0x3f4   :  { %3431 = vst.msk [vmem:[#allocation2 + $0x271] sm:$0xff] %vm27_vm0, %v3367_v31  ;;  %3432 = vst.msk [vmem:[#allocation2 + $0x279] sm:$0xff] %vm27_vm0, %v3368_v54  ;;  %v4091_v26 = vld [vmem:[#allocation2 + $0x30] sm:$0xff]  ;;  %v3598_v43 = vld [vmem:[#allocation2 + $0xf9] sm:$0xff]  ;;  %v9396_v7 = vpack.c.bf16 %v3592_v53, %v3591_v10 }
 0x3f5   :  { %3433 = vst.msk [vmem:[#allocation2 + $0x289] sm:$0xff] %vm27_vm0, %v3369_v11  ;;  %3434 = vst.msk [vmem:[#allocation2 + $0x291] sm:$0xff] %vm27_vm0, %v3370_v32  ;;  %v3597_v5 = vld [vmem:[#allocation2 + $0xf1] sm:$0xff]  ;;  %v3595_v59 = vld [vmem:[#allocation2 + $0xd9] sm:$0xff] }
 0x3f6   :  { %3435 = vst.msk [vmem:[#allocation2 + $0x2a1] sm:$0xff] %vm27_vm0, %v3371_v20  ;;  %3436 = vst.msk [vmem:[#allocation2 + $0x2a9] sm:$0xff] %vm27_vm0, %v3372_v37  ;;  %3715 = vrot.lane.b32.xlu1 %v9388_v9, %s7040_s22  ;;  %v4092_v63 = vld [vmem:[#allocation2 + $0x38] sm:$0xff]  ;;  %v3596_v51 = vld [vmem:[#allocation2 + $0xe1] sm:$0xff]  ;;  %v9400_v29 = vpack.c.bf16 %v3598_v43, %v3597_v5 }
 0x3f7   :  { %3437 = vst.msk [vmem:[#allocation2 + $0x2b9] sm:$0xff] %vm27_vm0, %v3373_v8  ;;  %3438 = vst.msk [vmem:[#allocation2 + $0x2c1] sm:$0xff] %vm27_vm0, %v3374_v44  ;;  %3721 = vrot.lane.b32.xlu0 %v9390_v24, %s7040_s22  ;;  %v4089_v23 = vld [vmem:[#allocation2 + $0x18] sm:$0xff]  ;;  %v9398_v47 = vpack.c.bf16 %v4092_v63, %v4091_v26  ;;  %v4090_v57 = vld [vmem:[#allocation2 + $0x20] sm:$0xff]  ;;  %v9416_v34 = vpack.c.bf16 %v3596_v51, %v3595_v59 }
 0x3f8   :  { %3439 = vst.msk [vmem:[#allocation2 + $0x2d1] sm:$0xff] %vm27_vm0, %v3375_v6  ;;  %3440 = vst.msk [vmem:[#allocation2 + $0x2d9] sm:$0xff] %vm27_vm0, %v3376_v25  ;;  %v3601_v50 = vld [vmem:[#allocation2 + $0x121] sm:$0xff]  ;;  %v9402_v4 = vpack.c.bf16 %v4090_v57, %v4089_v23  ;;  %v4860_v31 = vld [vmem:[#allocation2 + $0x50] sm:$0xff] }
 0x3f9   :  { %3441 = vst.msk [vmem:[#allocation2 + $0x2e9] sm:$0xff] %vm27_vm0, %v3377_v52  ;;  %3442 = vst.msk [vmem:[#allocation2 + $0x2f1] sm:$0xff] %vm27_vm0, %v3378_v28  ;;  %v4859_v62 = vld [vmem:[#allocation2 + $0x48] sm:$0xff]  ;;  %v4095_v48 = vld [vmem:[#allocation2 + $0x60] sm:$0xff] }
 0x3fa   :  { %3443 = vst.msk [vmem:[#allocation2 + $0x301] sm:$0xff] %vm27_vm0, %v3379_v60  ;;  %3444 = vst.msk [vmem:[#allocation2 + $0x309] sm:$0xff] %vm27_vm0, %v3380_v38  ;;  %3719 = vrot.lane.b32.xlu1 %v9396_v7, %s7040_s22  ;;  %v3602_v21 = vld [vmem:[#allocation2 + $0x129] sm:$0xff]  ;;  %v9406_v54 = vpack.c.bf16 %v4860_v31, %v4859_v62  ;;  %v4863_v32 = vld [vmem:[#allocation2 + $0x78] sm:$0xff] }
 0x3fb   :  { %3445 = vst.msk [vmem:[#allocation2 + $0x319] sm:$0xff] %vm27_vm0, %v3381_v15  ;;  %3447 = vst.msk [vmem:[#allocation2 + $0x331] sm:$0xff] %vm27_vm0, %v3383_v18  ;;  %v4096_v11 = vld [vmem:[#allocation2 + $0x68] sm:$0xff]  ;;  %3725 = vrot.lane.b32.xlu0 %v9400_v29, %s7040_s22  ;;  %v3600_v37 = vld [vmem:[#allocation2 + $0x111] sm:$0xff]  ;;  %v3653_v14 = vpack.c.bf16 %v3602_v21, %v3601_v50 }
 0x3fc   :  { %3448 = vst.msk [vmem:[#allocation2 + $0x339] sm:$0xff] %vm27_vm0, %v3384_v17  ;;  %3545 = vst.msk [vmem:[#allocation3] sm:$0xff] %vm27_vm0, %v3513_v40  ;;  %v9412_v33 = vpack.c.bf16 %v4096_v11, %v4095_v48  ;;  %v3599_v20 = vld [vmem:[#allocation2 + $0x109] sm:$0xff]  ;;  %v4864_v13 = vld [vmem:[#allocation2 + $0x80] sm:$0xff] }
 0x3fd   :  { %3801 = vst.msk [vmem:[#allocation3] sm:$0xff] %vm621_vm4, %v3706_v16  ;;  %v3605_v8 = vld [vmem:[#allocation2 + $0x151] sm:$0xff]  ;;  %v9420_v44 = vpack.c.bf16 %v4864_v13, %v4863_v32  ;;  %v3606_v1 = vld [vmem:[#allocation2 + $0x159] sm:$0xff]  ;;  %v4867_v28 = vld [vmem:[#allocation2 + $0xa8] sm:$0xff]  ;;  %v9433_v39 = vpack.c.bf16 %v3600_v37, %v3599_v20 }
 0x3fe   :  { %3547 = vst.msk [vmem:[#allocation3 + $0x10] sm:$0xff] %vm27_vm0, %v9398_v47  ;;  %3546 = vst.msk [vmem:[#allocation3 + $0x8] sm:$0xff] %vm27_vm0, %v9402_v4  ;;  %v4099_v6 = vld [vmem:[#allocation2 + $0x90] sm:$0xff]  ;;  %v4100_v25 = vld [vmem:[#allocation2 + $0x98] sm:$0xff]  ;;  %3723 = vrot.lane.b32.xlu1 %v9416_v34, %s7040_s22  ;;  %v3655_v22 = vpack.c.bf16 %v3606_v1, %v3605_v8 }
 0x3ff   :  { %3548 = vst.msk [vmem:[#allocation3 + $0x18] sm:$0xff] %vm27_vm0, %v9406_v54  ;;  %3549 = vst.msk [vmem:[#allocation3 + $0x20] sm:$0xff] %vm27_vm0, %v9412_v33  ;;  %v3609_v49 = vld [vmem:[#allocation2 + $0x1b1] sm:$0xff]  ;;  %v3610_v52 = vld [vmem:[#allocation2 + $0x1b9] sm:$0xff]  ;;  %v9426_v3 = vpack.c.bf16 %v4100_v25, %v4099_v6  ;;  %3729 = vrot.lane.b32.xlu0 %v3653_v14, %s7040_s22 }
 0x400   :  { %v4868_v42 = vld [vmem:[#allocation2 + $0xb0] sm:$0xff]  ;;  %v3603_v60 = vld [vmem:[#allocation2 + $0x139] sm:$0xff]  ;;  %3550 = vst.msk [vmem:[#allocation3 + $0x28] sm:$0xff] %vm27_vm0, %v9420_v44  ;;  %v3466_v15 = vld [vmem:[#allocation2 + $0xc8] sm:$0xff]  ;;  %v3657_v36 = vpack.c.bf16 %v3610_v52, %v3609_v49 }
 0x401   :  { %v9429_v27 = vpack.c.bf16 %v4868_v42, %v4867_v28  ;;  %v3465_v38 = vld [vmem:[#allocation2 + $0xc0] sm:$0xff]  ;;  %3551 = vst.msk [vmem:[#allocation3 + $0x30] sm:$0xff] %vm27_vm0, %v9426_v3  ;;  %v3469_v12 = vld [vmem:[#allocation2 + $0xf0] sm:$0xff]  ;;  %v3470_v0 = vld [vmem:[#allocation2 + $0xf8] sm:$0xff] }
 0x402   :  { %v3604_v18 = vld [vmem:[#allocation2 + $0x141] sm:$0xff]  ;;  %v9437_v17 = vpack.c.bf16 %v3466_v15, %v3465_v38  ;;  %v9441_v35 = vpack.c.bf16 %v3470_v0, %v3469_v12  ;;  %v3467_v41 = vld [vmem:[#allocation2 + $0xd8] sm:$0xff]  ;;  %3727 = vrot.lane.b32.xlu1 %v9433_v39, %s7040_s22  ;;  %v3472_v30 = vld [vmem:[#allocation2 + $0x110] sm:$0xff] }
 0x403   :  { %3552 = vst.msk [vmem:[#allocation3 + $0x38] sm:$0xff] %vm27_vm0, %v9429_v27  ;;  %v3468_v56 = vld [vmem:[#allocation2 + $0xe0] sm:$0xff]  ;;  %v3474_v45 = vld [vmem:[#allocation2 + $0x128] sm:$0xff]  ;;  %3733 = vrot.lane.b32.xlu0 %v3655_v22, %s7040_s22  ;;  %v3608_v53 = vld [vmem:[#allocation2 + $0x171] sm:$0xff]  ;;  %v3654_v59 = vpack.c.bf16 %v3604_v18, %v3603_v60 }
 0x404   :  { %v3473_v40 = vld [vmem:[#allocation2 + $0x120] sm:$0xff]  ;;  %3553 = vst.msk [vmem:[#allocation3 + $0x40] sm:$0xff] %vm27_vm0, %v9437_v17  ;;  %v9447_v61 = vpack.c.bf16 %v3468_v56, %v3467_v41  ;;  %v3471_v16 = vld [vmem:[#allocation2 + $0x108] sm:$0xff]  ;;  %3555 = vst.msk [vmem:[#allocation3 + $0x50] sm:$0xff] %vm27_vm0, %v9441_v35 }
 0x405   :  { %v3607_v10 = vld [vmem:[#allocation2 + $0x169] sm:$0xff]  ;;  %v9452_v26 = vpack.c.bf16 %v3474_v45, %v3473_v40  ;;  %v9454_v5 = vpack.c.bf16 %v3472_v30, %v3471_v16  ;;  %v3478_v63 = vld [vmem:[#allocation2 + $0x158] sm:$0xff]  ;;  %v3476_v57 = vld [vmem:[#allocation2 + $0x140] sm:$0xff] }
 0x406   :  { %v3477_v43 = vld [vmem:[#allocation2 + $0x150] sm:$0xff]  ;;  %v3475_v23 = vld [vmem:[#allocation2 + $0x138] sm:$0xff]  ;;  %3554 = vst.msk [vmem:[#allocation3 + $0x48] sm:$0xff] %vm27_vm0, %v9447_v61  ;;  %v3613_v31 = vld [vmem:[#allocation2 + $0x1e1] sm:$0xff]  ;;  %3731 = vrot.lane.b32.xlu1 %v3654_v59, %s7040_s22  ;;  %v3656_v28 = vpack.c.bf16 %v3608_v53, %v3607_v10 }
 0x407   :  { %v9458_v51 = vpack.c.bf16 %v3478_v63, %v3477_v43  ;;  %v3481_v50 = vld [vmem:[#allocation2 + $0x1b0] sm:$0xff]  ;;  %v3482_v62 = vld [vmem:[#allocation2 + $0x1b8] sm:$0xff]  ;;  %3557 = vst.msk [vmem:[#allocation3 + $0x60] sm:$0xff] %vm27_vm0, %v9452_v26  ;;  %3556 = vst.msk [vmem:[#allocation3 + $0x58] sm:$0xff] %vm27_vm0, %v9454_v5  ;;  %v9464_v21 = vpack.c.bf16 %v3476_v57, %v3475_v23  ;;  %3737 = vrot.lane.b32.xlu0 %v3657_v36, %s7040_s22 }
 0x408   :  { %v3529_v48 = vpack.c.bf16 %v3482_v62, %v3481_v50  ;;  %v3479_v11 = vld [vmem:[#allocation2 + $0x168] sm:$0xff]  ;;  %v3480_v32 = vld [vmem:[#allocation2 + $0x170] sm:$0xff]  ;;  %v3485_v13 = vld [vmem:[#allocation2 + $0x1e0] sm:$0xff] }
 0x409   :  { %v3614_v20 = vld [vmem:[#allocation2 + $0x1e9] sm:$0xff]  ;;  %3559 = vst.msk [vmem:[#allocation3 + $0x70] sm:$0xff] %vm27_vm0, %v9458_v51  ;;  %v9469_v37 = vpack.c.bf16 %v3480_v32, %v3479_v11  ;;  %v3612_v6 = vld [vmem:[#allocation2 + $0x1d1] sm:$0xff]  ;;  %3558 = vst.msk [vmem:[#allocation3 + $0x68] sm:$0xff] %vm27_vm0, %v9464_v21 }
 0x40a   :  { %v3486_v14 = vld [vmem:[#allocation2 + $0x1e8] sm:$0xff]  ;;  %3561 = vst.msk [vmem:[#allocation3 + $0x80] sm:$0xff] %vm27_vm0, %v3529_v48  ;;  %v3484_v49 = vld [vmem:[#allocation2 + $0x1d0] sm:$0xff]  ;;  %v3490_v60 = vld [vmem:[#allocation2 + $0x218] sm:$0xff]  ;;  %v3659_v18 = vpack.c.bf16 %v3614_v20, %v3613_v31  ;;  %3735 = vrot.lane.b32.xlu1 %v3656_v28, %s7040_s22 }
 0x40b   :  { %v3611_v8 = vld [vmem:[#allocation2 + $0x1c9] sm:$0xff]  ;;  %v9475_v25 = vpack.c.bf16 %v3486_v14, %v3485_v13  ;;  %3560 = vst.msk [vmem:[#allocation3 + $0x78] sm:$0xff] %vm27_vm0, %v9469_v37  ;;  %v3487_v38 = vld [vmem:[#allocation2 + $0x1f8] sm:$0xff]  ;;  %v3488_v15 = vld [vmem:[#allocation2 + $0x200] sm:$0xff] }
 0x40c   :  { %v3483_v1 = vld [vmem:[#allocation2 + $0x1c8] sm:$0xff]  ;;  %v3489_v52 = vld [vmem:[#allocation2 + $0x210] sm:$0xff]  ;;  %v9483_v0 = vpack.c.bf16 %v3488_v15, %v3487_v38  ;;  %v3493_v22 = vld [vmem:[#allocation2 + $0x240] sm:$0xff]  ;;  %3741 = vrot.lane.b32.xlu0 %v3659_v18, %s7040_s22  ;;  %v3658_v63 = vpack.c.bf16 %v3612_v6, %v3611_v8 }
 0x40d   :  { %v9479_v42 = vpack.c.bf16 %v3484_v49, %v3483_v1  ;;  %3563 = vst.msk [vmem:[#allocation3 + $0x90] sm:$0xff] %vm27_vm0, %v9475_v25  ;;  %v3533_v12 = vpack.c.bf16 %v3490_v60, %v3489_v52  ;;  %v3494_v41 = vld [vmem:[#allocation2 + $0x248] sm:$0xff]  ;;  %v3617_v40 = vld [vmem:[#allocation2 + $0x211] sm:$0xff]  ;;  %v3618_v45 = vld [vmem:[#allocation2 + $0x219] sm:$0xff] }
 0x40e   :  { %v3491_v56 = vld [vmem:[#allocation2 + $0x228] sm:$0xff]  ;;  %v3535_v16 = vpack.c.bf16 %v3494_v41, %v3493_v22  ;;  %v3492_v30 = vld [vmem:[#allocation2 + $0x230] sm:$0xff]  ;;  %3564 = vst.msk [vmem:[#allocation3 + $0x98] sm:$0xff] %vm27_vm0, %v9483_v0  ;;  %v3498_v53 = vld [vmem:[#allocation2 + $0x278] sm:$0xff]  ;;  %v3661_v57 = vpack.c.bf16 %v3618_v45, %v3617_v40  ;;  %3739 = vrot.lane.b32.xlu1 %v3658_v63, %s7040_s22 }
 0x40f   :  { %3562 = vst.msk [vmem:[#allocation3 + $0x88] sm:$0xff] %vm27_vm0, %v9479_v42  ;;  %3565 = vst.msk [vmem:[#allocation3 + $0xa0] sm:$0xff] %vm27_vm0, %v3533_v12  ;;  %v3534_v36 = vpack.c.bf16 %v3492_v30, %v3491_v56  ;;  %v3497_v10 = vld [vmem:[#allocation2 + $0x270] sm:$0xff]  ;;  %v3495_v43 = vld [vmem:[#allocation2 + $0x258] sm:$0xff] }
 0x410   :  { %3567 = vst.msk [vmem:[#allocation3 + $0xb0] sm:$0xff] %vm27_vm0, %v3535_v16  ;;  %v3537_v23 = vpack.c.bf16 %v3498_v53, %v3497_v10  ;;  %v3496_v59 = vld [vmem:[#allocation2 + $0x260] sm:$0xff]  ;;  %v3622_v11 = vld [vmem:[#allocation2 + $0x249] sm:$0xff]  ;;  %3745 = vrot.lane.b32.xlu0 %v3661_v57, %s7040_s22  ;;  %v3620_v14 = vld [vmem:[#allocation2 + $0x231] sm:$0xff] }
 0x411   :  { %v3615_v50 = vld [vmem:[#allocation2 + $0x1f9] sm:$0xff]  ;;  %v3616_v62 = vld [vmem:[#allocation2 + $0x201] sm:$0xff]  ;;  %3566 = vst.msk [vmem:[#allocation3 + $0xa8] sm:$0xff] %vm27_vm0, %v3534_v36  ;;  %v3536_v31 = vpack.c.bf16 %v3496_v59, %v3495_v43  ;;  %v3619_v20 = vld [vmem:[#allocation2 + $0x229] sm:$0xff] }
 0x412   :  { %v3621_v48 = vld [vmem:[#allocation2 + $0x241] sm:$0xff]  ;;  %3569 = vst.msk [vmem:[#allocation3 + $0xc0] sm:$0xff] %vm27_vm0, %v3537_v23  ;;  %v3660_v32 = vpack.c.bf16 %v3616_v62, %v3615_v50  ;;  %v3625_v8 = vld [vmem:[#allocation2 + $0x271] sm:$0xff]  ;;  %v3626_v6 = vld [vmem:[#allocation2 + $0x279] sm:$0xff]  ;;  %v3662_v28 = vpack.c.bf16 %v3620_v14, %v3619_v20 }
 0x413   :  { %3568 = vst.msk [vmem:[#allocation3 + $0xb8] sm:$0xff] %vm27_vm0, %v3536_v31  ;;  %v3663_v13 = vpack.c.bf16 %v3622_v11, %v3621_v48  ;;  %v7026_v1 = vld [vmem:[%s11795_s4] sm:$0xff]   ;;  %v3665_v15 = vpack.c.bf16 %v3626_v6, %v3625_v8  ;;  %v3834_v12 = vld [vmem:[#allocation2 + $0xa] sm:$0xff]  ;;  %v7029_v16 = vld [vmem:[%s11795_s4 + $0x18] sm:$0xff]  }
 0x414   :  { %3743 = vrot.lane.b32.xlu1 %v3660_v32, %s7040_s22  ;;  %v3623_v49 = vld [vmem:[#allocation2 + $0x259] sm:$0xff]  ;;  %v3624_v52 = vld [vmem:[#allocation2 + $0x261] sm:$0xff]  ;;  %6928 = vmatprep.subr.bf16.mxu1 %v7026_v1  ;;  %v7028_v40 = vld [vmem:[%s11795_s4 + $0x10] sm:$0xff]  }
 0x415   :  { %3749 = vrot.lane.b32.xlu0 %v3663_v13, %s7040_s22  ;;  %v3835_v60 = vld [vmem:[#allocation2 + $0x1a] sm:$0xff]  ;;  %v3836_v38 = vld [vmem:[#allocation2 + $0x22] sm:$0xff]  ;;  %6929 = vmatpush3.bf16.msra.mxu1 %v7026_v1  ;;  %v3664_v41 = vpack.c.bf16 %v3624_v52, %v3623_v49  ;;  %v4603_v36 = vld [vmem:[#allocation2 + $0x32] sm:$0xff] }
 0x416   :  { %v3833_v18 = vld [vmem:[#allocation2 + $0x2] sm:$0xff]  ;;  %v3898_v56 = vpack.c.bf16 %v3836_v38, %v3835_v60  ;;  %v4604_v10 = vld [vmem:[#allocation2 + $0x3a] sm:$0xff]  ;;  %v5371_v23 = vld [vmem:[#allocation2 + $0x4a] sm:$0xff] }
 0x417   :  { %v7027_v22 = vld [vmem:[%s11795_s4 + $0x8] sm:$0xff]   ;;  %v3897_v45 = vpack.c.bf16 %v3834_v12, %v3833_v18  ;;  %v7030_v30 = vld [vmem:[%s11795_s4 + $0x20] sm:$0xff]   ;;  %v4666_v53 = vpack.c.bf16 %v4604_v10, %v4603_v36  ;;  %v7033_v63 = vld [vmem:[%s11795_s4 + $0x38] sm:$0xff]  }
 0x418   :  { %3747 = vrot.lane.b32.xlu1 %v3662_v28, %s7040_s22  ;;  %6930 = vmatprep.subr.bf16.mxu1 %v7027_v22  ;;  %v7031_v43 = vld [vmem:[%s11795_s4 + $0x28] sm:$0xff]   ;;  %v5372_v59 = vld [vmem:[#allocation2 + $0x52] sm:$0xff]  ;;  %v4139_v62 = vld [vmem:[#allocation2 + $0x2a0] sm:$0xff] }
 0x419   :  { %3753 = vrot.lane.b32.xlu0 %v3665_v15, %s7040_s22  ;;  %6931 = vmatpush3.bf16.msra.mxu1 %v7027_v22  ;;  %v4904_v57 = vld [vmem:[#allocation2 + $0x290] sm:$0xff]  ;;  %v4140_v31 = vld [vmem:[#allocation2 + $0x2a8] sm:$0xff]  ;;  %v5434_v48 = vpack.c.bf16 %v5372_v59, %v5371_v23  ;;  %v4907_v32 = vld [vmem:[#allocation2 + $0x2b8] sm:$0xff] }
 0x41a   :  { %6932 = vmatprep.subr.bf16.mxu1 %v7028_v40  ;;  %v9547_v11 = vpack.c.bf16 %v4140_v31, %v4139_v62  ;;  %v4143_v13 = vld [vmem:[#allocation2 + $0x2d0] sm:$0xff]  ;;  %v4144_v14 = vld [vmem:[#allocation2 + $0x2d8] sm:$0xff]  ;;  %v4911_v6 = vld [vmem:[#allocation2 + $0x2e8] sm:$0xff] }
 0x41b   :  { %v9558_v8 = vpack.c.bf16 %v4144_v14, %v4143_v13  ;;  %v4912_v1 = vld [vmem:[#allocation2 + $0x2f0] sm:$0xff]  ;;  %v4147_v49 = vld [vmem:[#allocation2 + $0x300] sm:$0xff]  ;;  %v4148_v52 = vld [vmem:[#allocation2 + $0x308] sm:$0xff] }
 0x41c   :  { %3751 = vrot.lane.b32.xlu1 %v3664_v41, %s7040_s22  ;;  %3571 = vst.msk [vmem:[#allocation3 + $0xd0] sm:$0xff] %vm27_vm0, %v9547_v11  ;;  %v9568_v28 = vpack.c.bf16 %v4148_v52, %v4147_v49  ;;  %v4915_v60 = vld [vmem:[#allocation2 + $0x318] sm:$0xff]  ;;  %v4916_v38 = vld [vmem:[#allocation2 + $0x320] sm:$0xff]  ;;  %v4608_v12 = vld [vmem:[#allocation2 + $0x6a] sm:$0xff] }
 0x41d   :  { %3963 = vrot.lane.b32.xlu0 %v3898_v56, %s7041_s10  ;;  %6933 = vmatpush3.bf16.msra.mxu1 %v7028_v40  ;;  %3573 = vst.msk [vmem:[#allocation3 + $0xe0] sm:$0xff] %vm27_vm0, %v9558_v8  ;;  %v9575_v15 = vpack.c.bf16 %v4916_v38, %v4915_v60  ;;  %v4607_v18 = vld [vmem:[#allocation2 + $0x62] sm:$0xff]  ;;  %v5380_v36 = vld [vmem:[#allocation2 + $0xb2] sm:$0xff] }
 0x41e   :  { %6934 = vmatprep.subr.bf16.mxu1 %v7029_v16  ;;  %3575 = vst.msk [vmem:[#allocation3 + $0xf0] sm:$0xff] %vm27_vm0, %v9568_v28  ;;  %v4668_v22 = vpack.c.bf16 %v4608_v12, %v4607_v18  ;;  %v5376_v41 = vld [vmem:[#allocation2 + $0x82] sm:$0xff]  ;;  %v4619_v12 = vld [vmem:[#allocation2 + $0xf2] sm:$0xff] }
 0x41f   :  { %3576 = vst.msk [vmem:[#allocation3 + $0xf8] sm:$0xff] %vm27_vm0, %v9575_v15  ;;  %v4615_v59 = vld [vmem:[#allocation2 + $0xc2] sm:$0xff] }
 0x420   :  { %3961 = vrot.lane.b32.xlu1 %v3897_v45, %s7041_s10  ;;  %v5384_v14 = vld [vmem:[#allocation2 + $0xe2] sm:$0xff] }
 0x421   :  { %4219 = vrot.lane.b32.xlu0 %v9398_v47, %s7042_s19  ;;  %6935 = vmatpush3.bf16.msra.mxu1 %v7029_v16 }
 0x422   :  { %6936 = vmatprep.subr.bf16.mxu1 %v7030_v30 }
 0x424   :  { %4217 = vrot.lane.b32.xlu1 %v9402_v4, %s7042_s19  ;;  %v7032_v4 = vld [vmem:[%s11795_s4 + $0x30] sm:$0xff]  }
 0x425   :  { %4475 = vrot.lane.b32.xlu0 %v9314_v58, %s7043_s23  ;;  %6937 = vmatpush3.bf16.msra.mxu1 %v7030_v30 }
 0x426   :  { %6938 = vmatprep.subr.bf16.mxu1 %v7031_v43 }
 0x428   :  { %4473 = vrot.lane.b32.xlu1 %v9359_v2, %s7043_s23  ;;  %v4903_v2 = vld [vmem:[#allocation2 + $0x288] sm:$0xff] }
 0x429   :  { %4731 = vrot.lane.b32.xlu0 %v4666_v53, %s7044_s26  ;;  %6939 = vmatpush3.bf16.msra.mxu1 %v7031_v43  ;;  %v9545_v50 = vpack.c.bf16 %v4904_v57, %v4903_v2  ;;  %v4616_v57 = vld [vmem:[#allocation2 + $0xca] sm:$0xff] }
 0x42a   :  { %6940 = vmatprep.subr.bf16.mxu1 %v7032_v4 }
 0x42b   :  { %3570 = vst.msk [vmem:[#allocation3 + $0xc8] sm:$0xff] %vm27_vm0, %v9545_v50 }
 0x42c   :  { %4729 = vrot.lane.b32.xlu1 %v3898_v56, %s7044_s26 }
 0x42d   :  { %4987 = vrot.lane.b32.xlu0 %v9406_v54, %s7045_s29  ;;  %6941 = vmatpush3.bf16.msra.mxu1 %v7032_v4 }
 0x42e   :  { %6942 = vmatprep.subr.bf16.mxu1 %v7033_v63 }
 0x430   :  { %4985 = vrot.lane.b32.xlu1 %v9398_v47, %s7045_s29  ;;  %v4908_v47 = vld [vmem:[#allocation2 + $0x2c0] sm:$0xff] }
 0x431   :  { %5243 = vrot.lane.b32.xlu0 %v9378_v55, %s7046_s9  ;;  %6943 = vmatpush3.bf16.msra.mxu1 %v7033_v63  ;;  %v9554_v20 = vpack.c.bf16 %v4908_v47, %v4907_v32 }
 0x433   :  { %3572 = vst.msk [vmem:[#allocation3 + $0xd8] sm:$0xff] %vm27_vm0, %v9554_v20 }
 0x434   :  { %5241 = vrot.lane.b32.xlu1 %v9314_v58, %s7046_s9  ;;  %v9564_v58 = vpack.c.bf16 %v4912_v1, %v4911_v6 }
 0x435   :  { %5499 = vrot.lane.b32.xlu0 %v5434_v48, %s7047_s11 }
 0x436   :  { %3574 = vst.msk [vmem:[#allocation3 + $0xe8] sm:$0xff] %vm27_vm0, %v9564_v58 }
 0x438   :  { %5497 = vrot.lane.b32.xlu1 %v4666_v53, %s7047_s11 }
 0x439   :  { %3967 = vrot.lane.b32.xlu0 %v5434_v48, %s7041_s10 }
 0x43c   :  { %3965 = vrot.lane.b32.xlu1 %v4666_v53, %s7041_s10 }
 0x43d   :  { %4223 = vrot.lane.b32.xlu0 %v9412_v33, %s7042_s19 }
 0x440   :  { %4221 = vrot.lane.b32.xlu1 %v9406_v54, %s7042_s19  ;;  %v5375_v54 = vld [vmem:[#allocation2 + $0x7a] sm:$0xff] }
 0x441   :  { %4479 = vrot.lane.b32.xlu0 %v9369_v19, %s7043_s23  ;;  %v5436_v56 = vpack.c.bf16 %v5376_v41, %v5375_v54 }
 0x444   :  { %4477 = vrot.lane.b32.xlu1 %v9378_v55, %s7043_s23  ;;  %v4611_v55 = vld [vmem:[#allocation2 + $0x92] sm:$0xff] }
 0x445   :  { %4735 = vrot.lane.b32.xlu0 %v4668_v22, %s7044_s26 }
 0x448   :  { %4733 = vrot.lane.b32.xlu1 %v5434_v48, %s7044_s26  ;;  %v4672_v48 = vpack.c.bf16 %v4616_v57, %v4615_v59  ;;  %v4624_v59 = vld [vmem:[#allocation2 + $0x12a] sm:$0xff] }
 0x449   :  { %4991 = vrot.lane.b32.xlu0 %v9420_v44, %s7045_s29 }
 0x44c   :  { %4989 = vrot.lane.b32.xlu1 %v9412_v33, %s7045_s29  ;;  %v4612_v33 = vld [vmem:[#allocation2 + $0x9a] sm:$0xff] }
 0x44d   :  { %5247 = vrot.lane.b32.xlu0 %v9388_v9, %s7046_s9  ;;  %v4670_v40 = vpack.c.bf16 %v4612_v33, %v4611_v55 }
 0x450   :  { %5245 = vrot.lane.b32.xlu1 %v9369_v19, %s7046_s9 }
 0x451   :  { %5503 = vrot.lane.b32.xlu0 %v5436_v56, %s7047_s11 }
 0x454   :  { %5501 = vrot.lane.b32.xlu1 %v4668_v22, %s7047_s11 }
 0x455   :  { %3971 = vrot.lane.b32.xlu0 %v5436_v56, %s7041_s10 }
 0x458   :  { %3969 = vrot.lane.b32.xlu1 %v4668_v22, %s7041_s10  ;;  %v4620_v22 = vld [vmem:[#allocation2 + $0xfa] sm:$0xff] }
 0x459   :  { %4227 = vrot.lane.b32.xlu0 %v9426_v3, %s7042_s19  ;;  %v3710_v19 = vpop.permute.xlu0 %3709 }
 0x45a   :  { %3803 = vst.msk [vmem:[#allocation3 + $0x10] sm:$0xff] %vm621_vm4, %v3710_v19  ;;  %v5130_v19 = vld [vmem:[#allocation2 + $0xf9] sm:$0xff] }
 0x45c   :  { %4225 = vrot.lane.b32.xlu1 %v9420_v44, %s7042_s19 }
 0x45d   :  { %4483 = vrot.lane.b32.xlu0 %v9380_v46, %s7043_s23 }
 0x45f   :  { %v3708_v45 = vpop.permute.xlu1 %3707 }
 0x460   :  { %4481 = vrot.lane.b32.xlu1 %v9388_v9, %s7043_s23  ;;  %3802 = vst.msk [vmem:[#allocation3 + $0x8] sm:$0xff] %vm621_vm4, %v3708_v45  ;;  %v3714_v16 = vpop.permute.xlu0 %3713  ;;  %v5379_v9 = vld [vmem:[#allocation2 + $0xaa] sm:$0xff]  ;;  %v5388_v45 = vld [vmem:[#allocation2 + $0x112] sm:$0xff] }
 0x461   :  { %4739 = vrot.lane.b32.xlu0 %v4670_v40, %s7044_s26  ;;  %3805 = vst.msk [vmem:[#allocation3 + $0x20] sm:$0xff] %vm621_vm4, %v3714_v16  ;;  %v5438_v43 = vpack.c.bf16 %v5380_v36, %v5379_v9 }
 0x464   :  { %4737 = vrot.lane.b32.xlu1 %v5436_v56, %s7044_s26  ;;  %v3712_v44 = vpop.permute.xlu1 %3711  ;;  %v4674_v56 = vpack.c.bf16 %v4620_v22, %v4619_v12  ;;  %v4371_v22 = vld [vmem:[#allocation2 + $0x151] sm:$0xff] }
 0x465   :  { %4995 = vrot.lane.b32.xlu0 %v9429_v27, %s7045_s29  ;;  %3804 = vst.msk [vmem:[#allocation3 + $0x18] sm:$0xff] %vm621_vm4, %v3712_v44  ;;  %v3718_v30 = vpop.permute.xlu0 %3717 }
 0x466   :  { %3807 = vst.msk [vmem:[#allocation3 + $0x30] sm:$0xff] %vm621_vm4, %v3718_v30 }
 0x468   :  { %4993 = vrot.lane.b32.xlu1 %v9426_v3, %s7045_s29  ;;  %v3716_v10 = vpop.permute.xlu1 %3715 }
 0x469   :  { %5251 = vrot.lane.b32.xlu0 %v9396_v7, %s7046_s9  ;;  %3806 = vst.msk [vmem:[#allocation3 + $0x28] sm:$0xff] %vm621_vm4, %v3716_v10  ;;  %v3722_v53 = vpop.permute.xlu0 %3721 }
 0x46a   :  { %3809 = vst.msk [vmem:[#allocation3 + $0x40] sm:$0xff] %vm621_vm4, %v3722_v53  ;;  %v4367_v53 = vld [vmem:[#allocation2 + $0x121] sm:$0xff] }
 0x46c   :  { %5249 = vrot.lane.b32.xlu1 %v9380_v46, %s7046_s9  ;;  %v3720_v3 = vpop.permute.xlu1 %3719 }
 0x46d   :  { %5507 = vrot.lane.b32.xlu0 %v5438_v43, %s7047_s11  ;;  %3808 = vst.msk [vmem:[#allocation3 + $0x38] sm:$0xff] %vm621_vm4, %v3720_v3  ;;  %v3726_v4 = vpop.permute.xlu0 %3725 }
 0x46e   :  { %3811 = vst.msk [vmem:[#allocation3 + $0x50] sm:$0xff] %vm621_vm4, %v3726_v4 }
 0x470   :  { %5505 = vrot.lane.b32.xlu1 %v4670_v40, %s7047_s11  ;;  %v3724_v63 = vpop.permute.xlu1 %3723 }
 0x471   :  { %3975 = vrot.lane.b32.xlu0 %v5438_v43, %s7041_s10  ;;  %3810 = vst.msk [vmem:[#allocation3 + $0x48] sm:$0xff] %vm621_vm4, %v3724_v63  ;;  %v3730_v2 = vpop.permute.xlu0 %3729 }
 0x472   :  { %3813 = vst.msk [vmem:[#allocation3 + $0x60] sm:$0xff] %vm621_vm4, %v3730_v2  ;;  %v4365_v2 = vld [vmem:[#allocation2 + $0x109] sm:$0xff] }
 0x474   :  { %3973 = vrot.lane.b32.xlu1 %v4670_v40, %s7041_s10  ;;  %v3728_v46 = vpop.permute.xlu1 %3727  ;;  %v5387_v40 = vld [vmem:[#allocation2 + $0x10a] sm:$0xff] }
 0x475   :  { %4231 = vrot.lane.b32.xlu0 %v9437_v17, %s7042_s19  ;;  %3812 = vst.msk [vmem:[#allocation3 + $0x58] sm:$0xff] %vm621_vm4, %v3728_v46  ;;  %v3734_v23 = vpop.permute.xlu0 %3733  ;;  %v5442_v9 = vpack.c.bf16 %v5388_v45, %v5387_v40  ;;  %v4366_v46 = vld [vmem:[#allocation2 + $0x111] sm:$0xff] }
 0x476   :  { %3815 = vst.msk [vmem:[#allocation3 + $0x70] sm:$0xff] %vm621_vm4, %v3734_v23  ;;  %v4623_v23 = vld [vmem:[#allocation2 + $0x122] sm:$0xff] }
 0x478   :  { %4229 = vrot.lane.b32.xlu1 %v9429_v27, %s7042_s19  ;;  %v3732_v62 = vpop.permute.xlu1 %3731 }
 0x479   :  { %4487 = vrot.lane.b32.xlu0 %v9390_v24, %s7043_s23  ;;  %3814 = vst.msk [vmem:[#allocation3 + $0x68] sm:$0xff] %vm621_vm4, %v3732_v62  ;;  %v3738_v31 = vpop.permute.xlu0 %3737 }
 0x47a   :  { %3817 = vst.msk [vmem:[#allocation3 + $0x80] sm:$0xff] %vm621_vm4, %v3738_v31 }
 0x47c   :  { %4485 = vrot.lane.b32.xlu1 %v9396_v7, %s7043_s23  ;;  %v3736_v27 = vpop.permute.xlu1 %3735  ;;  %v5383_v7 = vld [vmem:[#allocation2 + $0xda] sm:$0xff] }
 0x47d   :  { %4743 = vrot.lane.b32.xlu0 %v4672_v48, %s7044_s26  ;;  %3816 = vst.msk [vmem:[#allocation3 + $0x78] sm:$0xff] %vm621_vm4, %v3736_v27  ;;  %v5440_v49 = vpack.c.bf16 %v5384_v14, %v5383_v7  ;;  %v5136_v7 = vld [vmem:[#allocation2 + $0x141] sm:$0xff] }
 0x47e   :  { %v3742_v32 = vpop.permute.xlu0 %3741 }
 0x47f   :  { %3819 = vst.msk [vmem:[#allocation3 + $0x90] sm:$0xff] %vm621_vm4, %v3742_v32  ;;  %v4676_v32 = vpack.c.bf16 %v4624_v59, %v4623_v23 }
 0x480   :  { %4741 = vrot.lane.b32.xlu1 %v5438_v43, %s7044_s26  ;;  %v3740_v47 = vpop.permute.xlu1 %3739  ;;  %v4368_v43 = vld [vmem:[#allocation2 + $0x129] sm:$0xff] }
 0x481   :  { %4999 = vrot.lane.b32.xlu0 %v9447_v61, %s7045_s29  ;;  %3818 = vst.msk [vmem:[#allocation3 + $0x88] sm:$0xff] %vm621_vm4, %v3740_v47  ;;  %v4420_v63 = vpack.c.bf16 %v4368_v43, %v4367_v53 }
 0x482   :  { %v3746_v13 = vpop.permute.xlu0 %3745 }
 0x483   :  { %3821 = vst.msk [vmem:[#allocation3 + $0xa0] sm:$0xff] %vm621_vm4, %v3746_v13  ;;  %v5135_v13 = vld [vmem:[#allocation2 + $0x139] sm:$0xff] }
 0x484   :  { %4997 = vrot.lane.b32.xlu1 %v9437_v17, %s7045_s29 }
 0x485   :  { %5255 = vrot.lane.b32.xlu0 %v9416_v34, %s7046_s9 }
 0x486   :  { %v3744_v6 = vpop.permute.xlu1 %3743 }
 0x487   :  { %3820 = vst.msk [vmem:[#allocation3 + $0x98] sm:$0xff] %vm621_vm4, %v3744_v6  ;;  %v3750_v1 = vpop.permute.xlu0 %3749 }
 0x488   :  { %5253 = vrot.lane.b32.xlu1 %v9390_v24, %s7046_s9  ;;  %3823 = vst.msk [vmem:[#allocation3 + $0xb0] sm:$0xff] %vm621_vm4, %v3750_v1  ;;  %v5188_v1 = vpack.c.bf16 %v5136_v7, %v5135_v13 }
 0x489   :  { %5511 = vrot.lane.b32.xlu0 %v5440_v49, %s7047_s11 }
 0x48a   :  { %v3748_v17 = vpop.permute.xlu1 %3747 }
 0x48b   :  { %3822 = vst.msk [vmem:[#allocation3 + $0xa8] sm:$0xff] %vm621_vm4, %v3748_v17  ;;  %v3754_v52 = vpop.permute.xlu0 %3753  ;;  %v5392_v17 = vld [vmem:[#allocation2 + $0x142] sm:$0xff] }
 0x48c   :  { %5509 = vrot.lane.b32.xlu1 %v4672_v48, %s7047_s11  ;;  %3825 = vst.msk [vmem:[#allocation3 + $0xc0] sm:$0xff] %vm621_vm4, %v3754_v52 }
 0x48d   :  { %3979 = vrot.lane.b32.xlu0 %v5440_v49, %s7041_s10 }
 0x48e   :  { %v3752_v60 = vpop.permute.xlu1 %3751 }
 0x48f   :  { %3824 = vst.msk [vmem:[#allocation3 + $0xb8] sm:$0xff] %vm621_vm4, %v3752_v60  ;;  %v3964_v38 = vpop.permute.xlu0 %3963 }
 0x490   :  { %3977 = vrot.lane.b32.xlu1 %v4672_v48, %s7041_s10  ;;  %4058 = vst.msk [vmem:[#allocation3 + $0x8] sm:$0xff] %vm878_vm5, %v3964_v38  ;;  %v4419_v48 = vpack.c.bf16 %v4366_v46, %v4365_v2  ;;  %v4120_v2 = vld [vmem:[#allocation2 + $0x188] sm:$0xff] }
 0x491   :  { %4235 = vrot.lane.b32.xlu0 %v9441_v35, %s7042_s19 }
 0x492   :  { %v3962_v24 = vpop.permute.xlu1 %3961 }
 0x493   :  { %4057 = vst.msk [vmem:[#allocation3] sm:$0xff] %vm878_vm5, %v3962_v24  ;;  %v4220_v18 = vpop.permute.xlu0 %4219 }
 0x494   :  { %4233 = vrot.lane.b32.xlu1 %v9447_v61, %s7042_s19  ;;  %4314 = vst.msk [vmem:[#allocation3 + $0x8] sm:$0xff] %vm1135_vm6, %v4220_v18 }
 0x495   :  { %4491 = vrot.lane.b32.xlu0 %v9400_v29, %s7043_s23 }
 0x496   :  { %v4218_v54 = vpop.permute.xlu1 %4217 }
 0x497   :  { %4313 = vst.msk [vmem:[#allocation3] sm:$0xff] %vm1135_vm6, %v4218_v54  ;;  %v4476_v41 = vpop.permute.xlu0 %4475  ;;  %v4372_v54 = vld [vmem:[#allocation2 + $0x159] sm:$0xff] }
 0x498   :  { %4489 = vrot.lane.b32.xlu1 %v9416_v34, %s7043_s23  ;;  %4570 = vst.msk [vmem:[#allocation3 + $0x8] sm:$0xff] %vm1392_vm7, %v4476_v41  ;;  %v5129_v34 = vld [vmem:[#allocation2 + $0xf1] sm:$0xff] }
 0x499   :  { %4747 = vrot.lane.b32.xlu0 %v4674_v56, %s7044_s26  ;;  %v5185_v44 = vpack.c.bf16 %v5130_v19, %v5129_v34 }
 0x49a   :  { %v4474_v61 = vpop.permute.xlu1 %4473 }
 0x49b   :  { %4569 = vst.msk [vmem:[#allocation3] sm:$0xff] %vm1392_vm7, %v4474_v61  ;;  %v4732_v55 = vpop.permute.xlu0 %4731  ;;  %v4422_v61 = vpack.c.bf16 %v4372_v54, %v4371_v22 }
 0x49c   :  { %4745 = vrot.lane.b32.xlu1 %v5440_v49, %s7044_s26  ;;  %4826 = vst.msk [vmem:[#allocation3 + $0x8] sm:$0xff] %vm1649_vm8, %v4732_v55  ;;  %v5391_v49 = vld [vmem:[#allocation2 + $0x13a] sm:$0xff]  ;;  %v4627_v55 = vld [vmem:[#allocation2 + $0x152] sm:$0xff] }
 0x49d   :  { %5003 = vrot.lane.b32.xlu0 %v9454_v5, %s7045_s29  ;;  %v5444_v38 = vpack.c.bf16 %v5392_v17, %v5391_v49 }
 0x49e   :  { %v4730_v29 = vpop.permute.xlu1 %4729 }
 0x49f   :  { %4825 = vst.msk [vmem:[#allocation3] sm:$0xff] %vm1649_vm8, %v4730_v29  ;;  %v4988_v33 = vpop.permute.xlu0 %4987  ;;  %v4628_v29 = vld [vmem:[#allocation2 + $0x15a] sm:$0xff] }
 0x4a0   :  { %5001 = vrot.lane.b32.xlu1 %v9441_v35, %s7045_s29  ;;  %5082 = vst.msk [vmem:[#allocation3 + $0x8] sm:$0xff] %vm1907_vm9, %v4988_v33  ;;  %v4678_v45 = vpack.c.bf16 %v4628_v29, %v4627_v55  ;;  %v3868_v55 = vld [vmem:[#allocation2 + $0x1d2] sm:$0xff] }
 0x4a1   :  { %5259 = vrot.lane.b32.xlu0 %v9433_v39, %s7046_s9  ;;  %v3865_v29 = vld [vmem:[#allocation2 + $0x1b2] sm:$0xff] }
 0x4a2   :  { %v4986_v16 = vpop.permute.xlu1 %4985 }
 0x4a3   :  { %5081 = vst.msk [vmem:[#allocation3] sm:$0xff] %vm1907_vm9, %v4986_v16  ;;  %v5244_v30 = vpop.permute.xlu0 %5243 }
 0x4a4   :  { %5257 = vrot.lane.b32.xlu1 %v5185_v44, %s7046_s9  ;;  %5338 = vst.msk [vmem:[#allocation3 + $0x8] sm:$0xff] %vm2164_vm10, %v5244_v30  ;;  %v5139_v44 = vld [vmem:[#allocation2 + $0x169] sm:$0xff]  ;;  %v5140_v30 = vld [vmem:[#allocation2 + $0x171] sm:$0xff] }
 0x4a5   :  { %5515 = vrot.lane.b32.xlu0 %v5442_v9, %s7047_s11 }
 0x4a6   :  { %v5242_v35 = vpop.permute.xlu1 %5241 }
 0x4a7   :  { %5337 = vst.msk [vmem:[#allocation3] sm:$0xff] %vm2164_vm10, %v5242_v35  ;;  %v5500_v36 = vpop.permute.xlu0 %5499 }
 0x4a8   :  { %5513 = vrot.lane.b32.xlu1 %v4674_v56, %s7047_s11  ;;  %5594 = vst.msk [vmem:[#allocation3 + $0x8] sm:$0xff] %vm2421_vm11, %v5500_v36  ;;  %v5190_v36 = vpack.c.bf16 %v5140_v30, %v5139_v44  ;;  %v4379_v44 = vld [vmem:[#allocation2 + $0x1e1] sm:$0xff]  ;;  %v4380_v30 = vld [vmem:[#allocation2 + $0x1e9] sm:$0xff] }
 0x4a9   :  { %3983 = vrot.lane.b32.xlu0 %v5442_v9, %s7041_s10 }
 0x4aa   :  { %v5498_v39 = vpop.permute.xlu1 %5497 }
 0x4ab   :  { %5593 = vst.msk [vmem:[#allocation3] sm:$0xff] %vm2421_vm11, %v5498_v39  ;;  %v3968_v10 = vpop.permute.xlu0 %3967  ;;  %v5395_v39 = vld [vmem:[#allocation2 + $0x16a] sm:$0xff] }
 0x4ac   :  { %3981 = vrot.lane.b32.xlu1 %v4674_v56, %s7041_s10  ;;  %4060 = vst.msk [vmem:[#allocation3 + $0x18] sm:$0xff] %vm878_vm5, %v3968_v10  ;;  %v5396_v10 = vld [vmem:[#allocation2 + $0x172] sm:$0xff] }
 0x4ad   :  { %4239 = vrot.lane.b32.xlu0 %v9452_v26, %s7042_s19 }
 0x4ae   :  { %v3966_v3 = vpop.permute.xlu1 %3965 }
 0x4af   :  { %4059 = vst.msk [vmem:[#allocation3 + $0x10] sm:$0xff] %vm878_vm5, %v3966_v3  ;;  %v4224_v4 = vpop.permute.xlu0 %4223  ;;  %v5626_v57 = vld [vmem:[#allocation3 + $0x8] sm:$0xff]  ;;  %v5446_v3 = vpack.c.bf16 %v5396_v10, %v5395_v39  ;;  %v4378_v10 = vld [vmem:[#allocation2 + $0x1d1] sm:$0xff] }
 0x4b0   :  { %4237 = vrot.lane.b32.xlu1 %v9454_v5, %s7042_s19  ;;  %4316 = vst.msk [vmem:[#allocation3 + $0x18] sm:$0xff] %vm1135_vm6, %v4224_v4  ;;  %v4377_v39 = vld [vmem:[#allocation2 + $0x1c9] sm:$0xff] }
 0x4b1   :  { %4495 = vrot.lane.b32.xlu0 %v4420_v63, %s7043_s23 }
 0x4b2   :  { %v4222_v62 = vpop.permute.xlu1 %4221  ;;  %v5625_v31 = vld [vmem:[#allocation3] sm:$0xff] }
 0x4b3   :  { %4315 = vst.msk [vmem:[#allocation3 + $0x10] sm:$0xff] %vm1135_vm6, %v4222_v62  ;;  %6944 = vmatprep.mubr.bf16.mxu1 %v5625_v31  ;;  %v4480_v27 = vpop.permute.xlu0 %4479  ;;  %v4376_v62 = vld [vmem:[#allocation2 + $0x189] sm:$0xff] }
 0x4b4   :  { %4493 = vrot.lane.b32.xlu1 %v4419_v48, %s7043_s23  ;;  %6945 = vmatmul.mubr.bf16.vlgmr.msra.gmra.mrb[0].mxu1 %v5626_v57  ;;  %4572 = vst.msk [vmem:[#allocation3 + $0x18] sm:$0xff] %vm1392_vm7, %v4480_v27  ;;  %v4375_v57 = vld [vmem:[#allocation2 + $0x181] sm:$0xff] }
 0x4b5   :  { %4751 = vrot.lane.b32.xlu0 %v4676_v32, %s7044_s26  ;;  %v4424_v27 = vpack.c.bf16 %v4376_v62, %v4375_v57  ;;  %v5147_v57 = vld [vmem:[#allocation2 + $0x1f9] sm:$0xff]  ;;  %v5148_v62 = vld [vmem:[#allocation2 + $0x201] sm:$0xff] }
 0x4b6   :  { %v4478_v5 = vpop.permute.xlu1 %4477 }
 0x4b7   :  { %4571 = vst.msk [vmem:[#allocation3 + $0x10] sm:$0xff] %vm1392_vm7, %v4478_v5  ;;  %v4736_v47 = vpop.permute.xlu0 %4735  ;;  %v4632_v5 = vld [vmem:[#allocation2 + $0x18a] sm:$0xff] }
 0x4b8   :  { %4749 = vrot.lane.b32.xlu1 %v5442_v9, %s7044_s26  ;;  %4828 = vst.msk [vmem:[#allocation3 + $0x18] sm:$0xff] %vm1649_vm8, %v4736_v47 }
 0x4b9   :  { %5007 = vrot.lane.b32.xlu0 %v9464_v21, %s7045_s29 }
 0x4ba   :  { %v4734_v14 = vpop.permute.xlu1 %4733 }
 0x4bb   :  { %4827 = vst.msk [vmem:[#allocation3 + $0x10] sm:$0xff] %vm1649_vm8, %v4734_v14  ;;  %v4992_v6 = vpop.permute.xlu0 %4991  ;;  %v4887_v14 = vld [vmem:[#allocation2 + $0x198] sm:$0xff] }
 0x4bc   :  { %5005 = vrot.lane.b32.xlu1 %v9452_v26, %s7045_s29  ;;  %5084 = vst.msk [vmem:[#allocation3 + $0x18] sm:$0xff] %vm1907_vm9, %v4992_v6  ;;  %v4888_v6 = vld [vmem:[#allocation2 + $0x1a0] sm:$0xff] }
 0x4bd   :  { %5263 = vrot.lane.b32.xlu0 %v5188_v1, %s7046_s9 }
 0x4be   :  { %v4990_v52 = vpop.permute.xlu1 %4989 }
 0x4bf   :  { %5083 = vst.msk [vmem:[#allocation3 + $0x10] sm:$0xff] %vm1907_vm9, %v4990_v52  ;;  %v5248_v60 = vpop.permute.xlu0 %5247  ;;  %v5143_v52 = vld [vmem:[#allocation2 + $0x199] sm:$0xff] }
 0x4c0   :  { %5261 = vrot.lane.b32.xlu1 %v4420_v63, %s7046_s9  ;;  %5340 = vst.msk [vmem:[#allocation3 + $0x18] sm:$0xff] %vm2164_vm10, %v5248_v60  ;;  %v4119_v63 = vld [vmem:[#allocation2 + $0x180] sm:$0xff] }
 0x4c1   :  { %5519 = vrot.lane.b32.xlu0 %v5444_v38, %s7047_s11  ;;  %v4168_v59 = vpack.c.bf16 %v4120_v2, %v4119_v63  ;;  %v5144_v60 = vld [vmem:[#allocation2 + $0x1a1] sm:$0xff] }
 0x4c2   :  { %v5246_v24 = vpop.permute.xlu1 %5245 }
 0x4c3   :  { %5339 = vst.msk [vmem:[#allocation3 + $0x10] sm:$0xff] %vm2164_vm10, %v5246_v24  ;;  %v5504_v26 = vpop.permute.xlu0 %5503  ;;  %v5192_v24 = vpack.c.bf16 %v5144_v60, %v5143_v52  ;;  %v4125_v60 = vld [vmem:[#allocation2 + $0x1f8] sm:$0xff] }
 0x4c4   :  { %5517 = vrot.lane.b32.xlu1 %v4676_v32, %s7047_s11  ;;  %5596 = vst.msk [vmem:[#allocation3 + $0x18] sm:$0xff] %vm2421_vm11, %v5504_v26 }
 0x4c5   :  { %3987 = vrot.lane.b32.xlu0 %v5444_v38, %s7041_s10 }
 0x4c6   :  { %v5502_v18 = vpop.permute.xlu1 %5501 }
 0x4c7   :  { %5595 = vst.msk [vmem:[#allocation3 + $0x10] sm:$0xff] %vm2421_vm11, %v5502_v18  ;;  %v3972_v12 = vpop.permute.xlu0 %3971  ;;  %v5399_v18 = vld [vmem:[#allocation2 + $0x19a] sm:$0xff] }
 0x4c8   :  { %3985 = vrot.lane.b32.xlu1 %v4676_v32, %s7041_s10  ;;  %4062 = vst.msk [vmem:[#allocation3 + $0x28] sm:$0xff] %vm878_vm5, %v3972_v12  ;;  %v4631_v32 = vld [vmem:[#allocation2 + $0x182] sm:$0xff] }
 0x4c9   :  { %4243 = vrot.lane.b32.xlu0 %v9458_v51, %s7042_s19  ;;  %v4680_v49 = vpack.c.bf16 %v4632_v5, %v4631_v32  ;;  %v5400_v12 = vld [vmem:[#allocation2 + $0x1a2] sm:$0xff]  ;;  %v5194_v32 = vpack.c.bf16 %v5148_v62, %v5147_v57  ;;  %v5403_v5 = vld [vmem:[#allocation2 + $0x1fa] sm:$0xff] }
 0x4ca   :  { %v3970_v41 = vpop.permute.xlu1 %3969  ;;  %v5448_v54 = vpack.c.bf16 %v5400_v12, %v5399_v18 }
 0x4cb   :  { %4061 = vst.msk [vmem:[#allocation3 + $0x20] sm:$0xff] %vm878_vm5, %v3970_v41  ;;  %v4228_v56 = vpop.permute.xlu0 %4227  ;;  %v5628_v33 = vld [vmem:[#allocation3 + $0x18] sm:$0xff] }
 0x4cc   :  { %4241 = vrot.lane.b32.xlu1 %v9464_v21, %s7042_s19  ;;  %4318 = vst.msk [vmem:[#allocation3 + $0x28] sm:$0xff] %vm1135_vm6, %v4228_v56 }
 0x4cd   :  { %4499 = vrot.lane.b32.xlu0 %v4422_v61, %s7043_s23 }
 0x4ce   :  { %v4226_v34 = vpop.permute.xlu1 %4225  ;;  %v5627_v19 = vld [vmem:[#allocation3 + $0x10] sm:$0xff] }
 0x4cf   :  { %4317 = vst.msk [vmem:[#allocation3 + $0x20] sm:$0xff] %vm1135_vm6, %v4226_v34  ;;  %6948 = vmatprep.mubr.bf16.mxu1 %v5627_v19  ;;  %v4484_v40 = vpop.permute.xlu0 %4483 }
 0x4d0   :  { %4497 = vrot.lane.b32.xlu1 %v5188_v1, %s7043_s23  ;;  %6949 = vmatmul.mubr.bf16.gmra.mrb[4].mxu1 %v5628_v33  ;;  %4574 = vst.msk [vmem:[#allocation3 + $0x28] sm:$0xff] %vm1392_vm7, %v4484_v40  ;;  %v3866_v33 = vld [vmem:[#allocation2 + $0x1ba] sm:$0xff] }
 0x4d1   :  { %4755 = vrot.lane.b32.xlu0 %v4678_v45, %s7044_s26 }
 0x4d2   :  { %v4482_v21 = vpop.permute.xlu1 %4481 }
 0x4d3   :  { %4573 = vst.msk [vmem:[#allocation3 + $0x20] sm:$0xff] %vm1392_vm7, %v4482_v21  ;;  %v4740_v16 = vpop.permute.xlu0 %4739 }
 0x4d4   :  { %4753 = vrot.lane.b32.xlu1 %v5444_v38, %s7044_s26  ;;  %4830 = vst.msk [vmem:[#allocation3 + $0x28] sm:$0xff] %vm1649_vm8, %v4740_v16 }
 0x4d5   :  { %5011 = vrot.lane.b32.xlu0 %v9469_v37, %s7045_s29 }
 0x4d6   :  { %v4738_v9 = vpop.permute.xlu1 %4737 }
 0x4d7   :  { %4829 = vst.msk [vmem:[#allocation3 + $0x20] sm:$0xff] %vm1649_vm8, %v4738_v9  ;;  %v4996_v35 = vpop.permute.xlu0 %4995 }
 0x4d8   :  { %5009 = vrot.lane.b32.xlu1 %v9458_v51, %s7045_s29  ;;  %5086 = vst.msk [vmem:[#allocation3 + $0x28] sm:$0xff] %vm1907_vm9, %v4996_v35 }
 0x4d9   :  { %5267 = vrot.lane.b32.xlu0 %v5190_v36, %s7046_s9 }
 0x4da   :  { %v4994_v53 = vpop.permute.xlu1 %4993 }
 0x4db   :  { %5085 = vst.msk [vmem:[#allocation3 + $0x20] sm:$0xff] %vm1907_vm9, %v4994_v53  ;;  %v5252_v43 = vpop.permute.xlu0 %5251  ;;  %v4635_v53 = vld [vmem:[#allocation2 + $0x1e2] sm:$0xff] }
 0x4dc   :  { %5265 = vrot.lane.b32.xlu1 %v4422_v61, %s7046_s9  ;;  %5342 = vst.msk [vmem:[#allocation3 + $0x28] sm:$0xff] %vm2164_vm10, %v5252_v43  ;;  %v3867_v61 = vld [vmem:[#allocation2 + $0x1ca] sm:$0xff] }
 0x4dd   :  { %5523 = vrot.lane.b32.xlu0 %v5446_v3, %s7047_s11  ;;  %v3914_v40 = vpack.c.bf16 %v3868_v55, %v3867_v61  ;;  %v4636_v43 = vld [vmem:[#allocation2 + $0x1ea] sm:$0xff] }
 0x4de   :  { %v5250_v4 = vpop.permute.xlu1 %5249  ;;  %v4682_v2 = vpack.c.bf16 %v4636_v43, %v4635_v53 }
 0x4df   :  { %5341 = vst.msk [vmem:[#allocation3 + $0x20] sm:$0xff] %vm2164_vm10, %v5250_v4  ;;  %v5508_v51 = vpop.permute.xlu0 %5507 }
 0x4e0   :  { %5521 = vrot.lane.b32.xlu1 %v4678_v45, %s7047_s11  ;;  %5598 = vst.msk [vmem:[#allocation3 + $0x28] sm:$0xff] %vm2421_vm11, %v5508_v51 }
 0x4e1   :  { %3991 = vrot.lane.b32.xlu0 %v5446_v3, %s7041_s10 }
 0x4e2   :  { %v5506_v46 = vpop.permute.xlu1 %5505 }
 0x4e3   :  { %5597 = vst.msk [vmem:[#allocation3 + $0x20] sm:$0xff] %vm2421_vm11, %v5506_v46  ;;  %v3976_v23 = vpop.permute.xlu0 %3975 }
 0x4e4   :  { %3989 = vrot.lane.b32.xlu1 %v4678_v45, %s7041_s10  ;;  %4064 = vst.msk [vmem:[#allocation3 + $0x38] sm:$0xff] %vm878_vm5, %v3976_v23  ;;  %v3913_v45 = vpack.c.bf16 %v3866_v33, %v3865_v29  ;;  %v4889_v23 = vld [vmem:[#allocation2 + $0x1e0] sm:$0xff] }
 0x4e5   :  { %4247 = vrot.lane.b32.xlu0 %v4168_v59, %s7042_s19 }
 0x4e6   :  { %v3974_v31 = vpop.permute.xlu1 %3973 }
 0x4e7   :  { %4063 = vst.msk [vmem:[#allocation3 + $0x30] sm:$0xff] %vm878_vm5, %v3974_v31  ;;  %v4232_v48 = vpop.permute.xlu0 %4231  ;;  %v5630_v47 = vld [vmem:[#allocation3 + $0x28] sm:$0xff] }
 0x4e8   :  { %4245 = vrot.lane.b32.xlu1 %v9469_v37, %s7042_s19  ;;  %4320 = vst.msk [vmem:[#allocation3 + $0x38] sm:$0xff] %vm1135_vm6, %v4232_v48  ;;  %v4936_v37 = vpack.c.bf16 %v4888_v6, %v4887_v14 }
 0x4e9   :  { %4503 = vrot.lane.b32.xlu0 %v4424_v27, %s7043_s23 }
 0x4ea   :  { %v4230_v13 = vpop.permute.xlu1 %4229  ;;  %v5629_v7 = vld [vmem:[#allocation3 + $0x20] sm:$0xff] }
 0x4eb   :  { %4319 = vst.msk [vmem:[#allocation3 + $0x30] sm:$0xff] %vm1135_vm6, %v4230_v13  ;;  %6952 = vmatprep.mubr.bf16.mxu1 %v5629_v7  ;;  %v4488_v1 = vpop.permute.xlu0 %4487 }
 0x4ec   :  { %4501 = vrot.lane.b32.xlu1 %v5190_v36, %s7043_s23  ;;  %6953 = vmatmul.mubr.bf16.gmra.mrb[8].mxu1 %v5630_v47  ;;  %4576 = vst.msk [vmem:[#allocation3 + $0x38] sm:$0xff] %vm1392_vm7, %v4488_v1  ;;  %v4426_v36 = vpack.c.bf16 %v4380_v30, %v4379_v44  ;;  %v5404_v47 = vld [vmem:[#allocation2 + $0x202] sm:$0xff]  ;;  %v4127_v1 = vld [vmem:[#allocation2 + $0x210] sm:$0xff] }
 0x4ed   :  { %4759 = vrot.lane.b32.xlu0 %v4680_v49, %s7044_s26  ;;  %v5450_v14 = vpack.c.bf16 %v5404_v47, %v5403_v5  ;;  %v5151_v44 = vld [vmem:[#allocation2 + $0x229] sm:$0xff]  ;;  %v5152_v30 = vld [vmem:[#allocation2 + $0x231] sm:$0xff] }
 0x4ee   :  { %v4486_v17 = vpop.permute.xlu1 %4485 }
 0x4ef   :  { %4575 = vst.msk [vmem:[#allocation3 + $0x30] sm:$0xff] %vm1392_vm7, %v4486_v17  ;;  %v4744_v38 = vpop.permute.xlu0 %4743 }
 0x4f0   :  { %4757 = vrot.lane.b32.xlu1 %v5446_v3, %s7044_s26  ;;  %4832 = vst.msk [vmem:[#allocation3 + $0x38] sm:$0xff] %vm1649_vm8, %v4744_v38  ;;  %v4126_v38 = vld [vmem:[#allocation2 + $0x200] sm:$0xff] }
 0x4f1   :  { %5015 = vrot.lane.b32.xlu0 %v4936_v37, %s7045_s29  ;;  %v4171_v12 = vpack.c.bf16 %v4126_v38, %v4125_v60 }
 0x4f2   :  { %v4742_v26 = vpop.permute.xlu1 %4741 }
 0x4f3   :  { %4831 = vst.msk [vmem:[#allocation3 + $0x30] sm:$0xff] %vm1649_vm8, %v4742_v26  ;;  %v5000_v22 = vpop.permute.xlu0 %4999  ;;  %v4384_v26 = vld [vmem:[#allocation2 + $0x219] sm:$0xff] }
 0x4f4   :  { %5013 = vrot.lane.b32.xlu1 %v4168_v59, %s7045_s29  ;;  %5088 = vst.msk [vmem:[#allocation3 + $0x38] sm:$0xff] %vm1907_vm9, %v5000_v22  ;;  %v4890_v59 = vld [vmem:[#allocation2 + $0x1e8] sm:$0xff] }
 0x4f5   :  { %5271 = vrot.lane.b32.xlu0 %v5192_v24, %s7046_s9  ;;  %v4937_v48 = vpack.c.bf16 %v4890_v59, %v4889_v23  ;;  %v4383_v24 = vld [vmem:[#allocation2 + $0x211] sm:$0xff]  ;;  %v4387_v23 = vld [vmem:[#allocation2 + $0x241] sm:$0xff]  ;;  %v4388_v59 = vld [vmem:[#allocation2 + $0x249] sm:$0xff] }
 0x4f6   :  { %v4998_v41 = vpop.permute.xlu1 %4997 }
 0x4f7   :  { %5087 = vst.msk [vmem:[#allocation3 + $0x30] sm:$0xff] %vm1907_vm9, %v4998_v41  ;;  %v5256_v56 = vpop.permute.xlu0 %5255  ;;  %v4639_v41 = vld [vmem:[#allocation2 + $0x212] sm:$0xff] }
 0x4f8   :  { %5269 = vrot.lane.b32.xlu1 %v4424_v27, %s7046_s9  ;;  %5344 = vst.msk [vmem:[#allocation3 + $0x38] sm:$0xff] %vm2164_vm10, %v5256_v56  ;;  %v4640_v56 = vld [vmem:[#allocation2 + $0x21a] sm:$0xff] }
 0x4f9   :  { %5527 = vrot.lane.b32.xlu0 %v5448_v54, %s7047_s11  ;;  %v4428_v54 = vpack.c.bf16 %v4384_v26, %v4383_v24  ;;  %v5411_v24 = vld [vmem:[#allocation2 + $0x25a] sm:$0xff]  ;;  %v5412_v26 = vld [vmem:[#allocation2 + $0x262] sm:$0xff] }
 0x4fa   :  { %v5254_v34 = vpop.permute.xlu1 %5253 }
 0x4fb   :  { %5343 = vst.msk [vmem:[#allocation3 + $0x30] sm:$0xff] %vm2164_vm10, %v5254_v34  ;;  %v5512_v19 = vpop.permute.xlu0 %5511  ;;  %v4684_v34 = vpack.c.bf16 %v4640_v56, %v4639_v41  ;;  %v4135_v56 = vld [vmem:[#allocation2 + $0x270] sm:$0xff] }
 0x4fc   :  { %5525 = vrot.lane.b32.xlu1 %v4680_v49, %s7047_s11  ;;  %5600 = vst.msk [vmem:[#allocation3 + $0x38] sm:$0xff] %vm2421_vm11, %v5512_v19  ;;  %v4128_v49 = vld [vmem:[#allocation2 + $0x218] sm:$0xff]  ;;  %v4895_v19 = vld [vmem:[#allocation2 + $0x228] sm:$0xff] }
 0x4fd   :  { %3995 = vrot.lane.b32.xlu0 %v3914_v40, %s7041_s10  ;;  %v4172_v52 = vpack.c.bf16 %v4128_v49, %v4127_v1 }
 0x4fe   :  { %v5510_v21 = vpop.permute.xlu1 %5509 }
 0x4ff   :  { %5599 = vst.msk [vmem:[#allocation3 + $0x30] sm:$0xff] %vm2421_vm11, %v5510_v21  ;;  %v3980_v16 = vpop.permute.xlu0 %3979 }
 0x500   :  { %3993 = vrot.lane.b32.xlu1 %v3913_v45, %s7041_s10  ;;  %4066 = vst.msk [vmem:[#allocation3 + $0x48] sm:$0xff] %vm878_vm5, %v3980_v16 }
 0x501   :  { %4251 = vrot.lane.b32.xlu0 %v9475_v25, %s7042_s19  ;;  %v4425_v25 = vpack.c.bf16 %v4378_v10, %v4377_v39  ;;  %v5407_v39 = vld [vmem:[#allocation2 + $0x22a] sm:$0xff]  ;;  %v5408_v10 = vld [vmem:[#allocation2 + $0x232] sm:$0xff] }
 0x502   :  { %v3978_v9 = vpop.permute.xlu1 %3977 }
 0x503   :  { %4065 = vst.msk [vmem:[#allocation3 + $0x40] sm:$0xff] %vm878_vm5, %v3978_v9  ;;  %v4236_v35 = vpop.permute.xlu0 %4235  ;;  %v5632_v3 = vld [vmem:[#allocation3 + $0x38] sm:$0xff] }
 0x504   :  { %4249 = vrot.lane.b32.xlu1 %v9479_v42, %s7042_s19  ;;  %4322 = vst.msk [vmem:[#allocation3 + $0x48] sm:$0xff] %vm1135_vm6, %v4236_v35 }
 0x505   :  { %4507 = vrot.lane.b32.xlu0 %v4426_v36, %s7043_s23 }
 0x506   :  { %v4234_v4 = vpop.permute.xlu1 %4233  ;;  %v5631_v51 = vld [vmem:[#allocation3 + $0x30] sm:$0xff] }
 0x507   :  { %4321 = vst.msk [vmem:[#allocation3 + $0x40] sm:$0xff] %vm1135_vm6, %v4234_v4  ;;  %6956 = vmatprep.mubr.bf16.mxu1 %v5631_v51  ;;  %v4492_v63 = vpop.permute.xlu0 %4491 }
 0x508   :  { %4505 = vrot.lane.b32.xlu1 %v4425_v25, %s7043_s23  ;;  %6957 = vmatmul.mubr.bf16.gmra.mrb[12].mxu1 %v5632_v3  ;;  %4578 = vst.msk [vmem:[#allocation3 + $0x48] sm:$0xff] %vm1392_vm7, %v4492_v63  ;;  %v5452_v3 = vpack.c.bf16 %v5408_v10, %v5407_v39  ;;  %v4131_v25 = vld [vmem:[#allocation2 + $0x240] sm:$0xff]  ;;  %v4132_v63 = vld [vmem:[#allocation2 + $0x248] sm:$0xff] }
 0x509   :  { %4763 = vrot.lane.b32.xlu0 %v4682_v2, %s7044_s26 }
 0x50a   :  { %v4490_v42 = vpop.permute.xlu1 %4489 }
 0x50b   :  { %4577 = vst.msk [vmem:[#allocation3 + $0x40] sm:$0xff] %vm1392_vm7, %v4490_v42  ;;  %v4748_v46 = vpop.permute.xlu0 %4747 }
 0x50c   :  { %4761 = vrot.lane.b32.xlu1 %v3914_v40, %s7044_s26  ;;  %4834 = vst.msk [vmem:[#allocation3 + $0x48] sm:$0xff] %vm1649_vm8, %v4748_v46  ;;  %v4896_v40 = vld [vmem:[#allocation2 + $0x230] sm:$0xff]  ;;  %v4174_v46 = vpack.c.bf16 %v4132_v63, %v4131_v25 }
 0x50d   :  { %5019 = vrot.lane.b32.xlu0 %v9483_v0, %s7045_s29  ;;  %v4940_v16 = vpack.c.bf16 %v4896_v40, %v4895_v19  ;;  %v4392_v19 = vld [vmem:[#allocation2 + $0x279] sm:$0xff]  ;;  %v5415_v63 = vld [vmem:[#allocation2 + $0x28a] sm:$0xff] }
 0x50e   :  { %v4746_v31 = vpop.permute.xlu1 %4745 }
 0x50f   :  { %4833 = vst.msk [vmem:[#allocation3 + $0x40] sm:$0xff] %vm1649_vm8, %v4746_v31  ;;  %v5004_v27 = vpop.permute.xlu0 %5003  ;;  %v4430_v31 = vpack.c.bf16 %v4388_v59, %v4387_v23 }
 0x510   :  { %5017 = vrot.lane.b32.xlu1 %v4937_v48, %s7045_s29  ;;  %5090 = vst.msk [vmem:[#allocation3 + $0x48] sm:$0xff] %vm1907_vm9, %v5004_v27  ;;  %v4643_v48 = vld [vmem:[#allocation2 + $0x242] sm:$0xff]  ;;  %v4644_v27 = vld [vmem:[#allocation2 + $0x24a] sm:$0xff] }
 0x511   :  { %5275 = vrot.lane.b32.xlu0 %v5194_v32, %s7046_s9 }
 0x512   :  { %v5002_v13 = vpop.permute.xlu1 %5001 }
 0x513   :  { %5089 = vst.msk [vmem:[#allocation3 + $0x40] sm:$0xff] %vm1907_vm9, %v5002_v13  ;;  %v5260_v7 = vpop.permute.xlu0 %5259 }
 0x514   :  { %5273 = vrot.lane.b32.xlu1 %v4426_v36, %s7046_s9  ;;  %5346 = vst.msk [vmem:[#allocation3 + $0x48] sm:$0xff] %vm2164_vm10, %v5260_v7  ;;  %v5196_v36 = vpack.c.bf16 %v5152_v30, %v5151_v44  ;;  %v4686_v7 = vpack.c.bf16 %v4644_v27, %v4643_v48  ;;  %v4648_v44 = vld [vmem:[#allocation2 + $0x27a] sm:$0xff] }
 0x515   :  { %5531 = vrot.lane.b32.xlu0 %v5450_v14, %s7047_s11 }
 0x516   :  { %v5258_v0 = vpop.permute.xlu1 %5257 }
 0x517   :  { %5345 = vst.msk [vmem:[#allocation3 + $0x40] sm:$0xff] %vm2164_vm10, %v5258_v0  ;;  %v5516_v6 = vpop.permute.xlu0 %5515  ;;  %v4900_v0 = vld [vmem:[#allocation2 + $0x260] sm:$0xff] }
 0x518   :  { %5529 = vrot.lane.b32.xlu1 %v4682_v2, %s7047_s11  ;;  %5602 = vst.msk [vmem:[#allocation3 + $0x48] sm:$0xff] %vm2421_vm11, %v5516_v6 }
 0x519   :  { %3999 = vrot.lane.b32.xlu0 %v5450_v14, %s7041_s10 }
 0x51a   :  { %v5514_v37 = vpop.permute.xlu1 %5513 }
 0x51b   :  { %5601 = vst.msk [vmem:[#allocation3 + $0x40] sm:$0xff] %vm2421_vm11, %v5514_v37  ;;  %v3984_v17 = vpop.permute.xlu0 %3983  ;;  %v5155_v37 = vld [vmem:[#allocation2 + $0x259] sm:$0xff] }
 0x51c   :  { %3997 = vrot.lane.b32.xlu1 %v4682_v2, %s7041_s10  ;;  %4068 = vst.msk [vmem:[#allocation3 + $0x58] sm:$0xff] %vm878_vm5, %v3984_v17  ;;  %v5156_v17 = vld [vmem:[#allocation2 + $0x261] sm:$0xff] }
 0x51d   :  { %4255 = vrot.lane.b32.xlu0 %v4172_v52, %s7042_s19  ;;  %v5198_v38 = vpack.c.bf16 %v5156_v17, %v5155_v37 }
 0x51e   :  { %v3982_v18 = vpop.permute.xlu1 %3981 }
 0x51f   :  { %4067 = vst.msk [vmem:[#allocation3 + $0x50] sm:$0xff] %vm878_vm5, %v3982_v18  ;;  %v4240_v22 = vpop.permute.xlu0 %4239  ;;  %v5634_v61 = vld [vmem:[#allocation3 + $0x48] sm:$0xff] }
 0x520   :  { %4253 = vrot.lane.b32.xlu1 %v4171_v12, %s7042_s19  ;;  %4324 = vst.msk [vmem:[#allocation3 + $0x58] sm:$0xff] %vm1135_vm6, %v4240_v22  ;;  %v5454_v22 = vpack.c.bf16 %v5412_v26, %v5411_v24  ;;  %v5163_v24 = vld [vmem:[#allocation2 + $0x2b9] sm:$0xff]  ;;  %v5164_v26 = vld [vmem:[#allocation2 + $0x2c1] sm:$0xff] }
 0x521   :  { %4511 = vrot.lane.b32.xlu0 %v4428_v54, %s7043_s23 }
 0x522   :  { %v4238_v55 = vpop.permute.xlu1 %4237  ;;  %v5633_v29 = vld [vmem:[#allocation3 + $0x40] sm:$0xff] }
 0x523   :  { %4323 = vst.msk [vmem:[#allocation3 + $0x50] sm:$0xff] %vm1135_vm6, %v4238_v55  ;;  %6960 = vmatprep.mubr.bf16.mxu1 %v5633_v29  ;;  %v4496_v33 = vpop.permute.xlu0 %4495 }
 0x524   :  { %4509 = vrot.lane.b32.xlu1 %v5194_v32, %s7043_s23  ;;  %6961 = vmatmul.mubr.bf16.gmra.mrb[16].mxu1 %v5634_v61  ;;  %4580 = vst.msk [vmem:[#allocation3 + $0x58] sm:$0xff] %vm1392_vm7, %v4496_v33  ;;  %v4136_v61 = vld [vmem:[#allocation2 + $0x278] sm:$0xff] }
 0x525   :  { %4767 = vrot.lane.b32.xlu0 %v4684_v34, %s7044_s26  ;;  %v4176_v33 = vpack.c.bf16 %v4136_v61, %v4135_v56 }
 0x526   :  { %v4494_v45 = vpop.permute.xlu1 %4493 }
 0x527   :  { %4579 = vst.msk [vmem:[#allocation3 + $0x50] sm:$0xff] %vm1392_vm7, %v4494_v45  ;;  %v4752_v21 = vpop.permute.xlu0 %4751 }
 0x528   :  { %4765 = vrot.lane.b32.xlu1 %v5450_v14, %s7044_s26  ;;  %4836 = vst.msk [vmem:[#allocation3 + $0x58] sm:$0xff] %vm1649_vm8, %v4752_v21  ;;  %v4899_v14 = vld [vmem:[#allocation2 + $0x258] sm:$0xff] }
 0x529   :  { %5023 = vrot.lane.b32.xlu0 %v4940_v16, %s7045_s29  ;;  %v4942_v49 = vpack.c.bf16 %v4900_v0, %v4899_v14  ;;  %v4396_v14 = vld [vmem:[#allocation2 + $0x2a9] sm:$0xff] }
 0x52a   :  { %v4750_v9 = vpop.permute.xlu1 %4749 }
 0x52b   :  { %4835 = vst.msk [vmem:[#allocation3 + $0x50] sm:$0xff] %vm1649_vm8, %v4750_v9  ;;  %v5008_v35 = vpop.permute.xlu0 %5007 }
 0x52c   :  { %5021 = vrot.lane.b32.xlu1 %v4172_v52, %s7045_s29  ;;  %5092 = vst.msk [vmem:[#allocation3 + $0x58] sm:$0xff] %vm1907_vm9, %v5008_v35 }
 0x52d   :  { %5279 = vrot.lane.b32.xlu0 %v5196_v36, %s7046_s9 }
 0x52e   :  { %v5006_v53 = vpop.permute.xlu1 %5005 }
 0x52f   :  { %5091 = vst.msk [vmem:[#allocation3 + $0x50] sm:$0xff] %vm1907_vm9, %v5006_v53  ;;  %v5264_v43 = vpop.permute.xlu0 %5263 }
 0x530   :  { %5277 = vrot.lane.b32.xlu1 %v4428_v54, %s7046_s9  ;;  %5348 = vst.msk [vmem:[#allocation3 + $0x58] sm:$0xff] %vm2164_vm10, %v5264_v43  ;;  %v5159_v43 = vld [vmem:[#allocation2 + $0x289] sm:$0xff] }
 0x531   :  { %5535 = vrot.lane.b32.xlu0 %v5452_v3, %s7047_s11 }
 0x532   :  { %v5262_v4 = vpop.permute.xlu1 %5261 }
 0x533   :  { %5347 = vst.msk [vmem:[#allocation3 + $0x50] sm:$0xff] %vm2164_vm10, %v5262_v4  ;;  %v5520_v51 = vpop.permute.xlu0 %5519 }
 0x534   :  { %5533 = vrot.lane.b32.xlu1 %v4684_v34, %s7047_s11  ;;  %5604 = vst.msk [vmem:[#allocation3 + $0x58] sm:$0xff] %vm2421_vm11, %v5520_v51 }
 0x535   :  { %4003 = vrot.lane.b32.xlu0 %v5452_v3, %s7041_s10 }
 0x536   :  { %v5518_v2 = vpop.permute.xlu1 %5517 }
 0x537   :  { %5603 = vst.msk [vmem:[#allocation3 + $0x50] sm:$0xff] %vm2421_vm11, %v5518_v2  ;;  %v3988_v42 = vpop.permute.xlu0 %3987  ;;  %v5416_v2 = vld [vmem:[#allocation2 + $0x292] sm:$0xff] }
 0x538   :  { %4001 = vrot.lane.b32.xlu1 %v4684_v34, %s7041_s10  ;;  %4070 = vst.msk [vmem:[#allocation3 + $0x68] sm:$0xff] %vm878_vm5, %v3988_v42  ;;  %v4391_v34 = vld [vmem:[#allocation2 + $0x271] sm:$0xff]  ;;  %v5456_v23 = vpack.c.bf16 %v5416_v2, %v5415_v63 }
 0x539   :  { %4259 = vrot.lane.b32.xlu0 %v4174_v46, %s7042_s19  ;;  %v4432_v21 = vpack.c.bf16 %v4392_v19, %v4391_v34 }
 0x53a   :  { %v3986_v57 = vpop.permute.xlu1 %3985 }
 0x53b   :  { %4069 = vst.msk [vmem:[#allocation3 + $0x60] sm:$0xff] %vm878_vm5, %v3986_v57  ;;  %v4244_v62 = vpop.permute.xlu0 %4243  ;;  %v5636_v32 = vld [vmem:[#allocation3 + $0x58] sm:$0xff] }
 0x53c   :  { %4257 = vrot.lane.b32.xlu1 %v4940_v16, %s7042_s19  ;;  %4326 = vst.msk [vmem:[#allocation3 + $0x68] sm:$0xff] %vm1135_vm6, %v4244_v62  ;;  %v4647_v16 = vld [vmem:[#allocation2 + $0x272] sm:$0xff] }
 0x53d   :  { %4515 = vrot.lane.b32.xlu0 %v4430_v31, %s7043_s23  ;;  %v4688_v39 = vpack.c.bf16 %v4648_v44, %v4647_v16 }
 0x53e   :  { %v4242_v5 = vpop.permute.xlu1 %4241  ;;  %v5635_v47 = vld [vmem:[#allocation3 + $0x50] sm:$0xff] }
 0x53f   :  { %4325 = vst.msk [vmem:[#allocation3 + $0x60] sm:$0xff] %vm1135_vm6, %v4242_v5  ;;  %6964 = vmatprep.mubr.bf16.mxu1 %v5635_v47  ;;  %v4500_v13 = vpop.permute.xlu0 %4499 }
 0x540   :  { %4513 = vrot.lane.b32.xlu1 %v5196_v36, %s7043_s23  ;;  %6965 = vmatmul.mubr.bf16.gmra.mrb[20].mxu1 %v5636_v32  ;;  %4582 = vst.msk [vmem:[#allocation3 + $0x68] sm:$0xff] %vm1392_vm7, %v4500_v13 }
 0x541   :  { %4771 = vrot.lane.b32.xlu0 %v4686_v7, %s7044_s26 }
 0x542   :  { %v4498_v6 = vpop.permute.xlu1 %4497 }
 0x543   :  { %4581 = vst.msk [vmem:[#allocation3 + $0x60] sm:$0xff] %vm1392_vm7, %v4498_v6  ;;  %v4756_v1 = vpop.permute.xlu0 %4755 }
 0x544   :  { %4769 = vrot.lane.b32.xlu1 %v5452_v3, %s7044_s26  ;;  %4838 = vst.msk [vmem:[#allocation3 + $0x68] sm:$0xff] %vm1649_vm8, %v4756_v1  ;;  %v5160_v3 = vld [vmem:[#allocation2 + $0x291] sm:$0xff]  ;;  %v4651_v1 = vld [vmem:[#allocation2 + $0x2a2] sm:$0xff] }
 0x545   :  { %5027 = vrot.lane.b32.xlu0 %v4942_v49, %s7045_s29  ;;  %v5200_v25 = vpack.c.bf16 %v5160_v3, %v5159_v43 }
 0x546   :  { %v4754_v52 = vpop.permute.xlu1 %4753 }
 0x547   :  { %4837 = vst.msk [vmem:[#allocation3 + $0x60] sm:$0xff] %vm1649_vm8, %v4754_v52  ;;  %v5012_v60 = vpop.permute.xlu0 %5011 }
 0x548   :  { %5025 = vrot.lane.b32.xlu1 %v4174_v46, %s7045_s29  ;;  %5094 = vst.msk [vmem:[#allocation3 + $0x68] sm:$0xff] %vm1907_vm9, %v5012_v60 }
 0x549   :  { %5283 = vrot.lane.b32.xlu0 %v5198_v38, %s7046_s9 }
 0x54a   :  { %v5010_v18 = vpop.permute.xlu1 %5009 }
 0x54b   :  { %5093 = vst.msk [vmem:[#allocation3 + $0x60] sm:$0xff] %vm1907_vm9, %v5010_v18  ;;  %v5268_v12 = vpop.permute.xlu0 %5267  ;;  %v5420_v18 = vld [vmem:[#allocation2 + $0x2c2] sm:$0xff] }
 0x54c   :  { %5281 = vrot.lane.b32.xlu1 %v4430_v31, %s7046_s9  ;;  %5350 = vst.msk [vmem:[#allocation3 + $0x68] sm:$0xff] %vm2164_vm10, %v5268_v12 }
 0x54d   :  { %5539 = vrot.lane.b32.xlu0 %v5454_v22, %s7047_s11 }
 0x54e   :  { %v5266_v54 = vpop.permute.xlu1 %5265 }
 0x54f   :  { %5349 = vst.msk [vmem:[#allocation3 + $0x60] sm:$0xff] %vm2164_vm10, %v5266_v54  ;;  %v5524_v41 = vpop.permute.xlu0 %5523 }
 0x550   :  { %5537 = vrot.lane.b32.xlu1 %v4686_v7, %s7047_s11  ;;  %5606 = vst.msk [vmem:[#allocation3 + $0x68] sm:$0xff] %vm2421_vm11, %v5524_v41 }
 0x551   :  { %4007 = vrot.lane.b32.xlu0 %v5454_v22, %s7041_s10 }
 0x552   :  { %v5522_v55 = vpop.permute.xlu1 %5521 }
 0x553   :  { %5605 = vst.msk [vmem:[#allocation3 + $0x60] sm:$0xff] %vm2421_vm11, %v5522_v55  ;;  %v3992_v29 = vpop.permute.xlu0 %3991 }
 0x554   :  { %4005 = vrot.lane.b32.xlu1 %v4686_v7, %s7041_s10  ;;  %4072 = vst.msk [vmem:[#allocation3 + $0x78] sm:$0xff] %vm878_vm5, %v3992_v29  ;;  %v4395_v7 = vld [vmem:[#allocation2 + $0x2a1] sm:$0xff] }
 0x555   :  { %4263 = vrot.lane.b32.xlu0 %v4176_v33, %s7042_s19  ;;  %v4434_v0 = vpack.c.bf16 %v4396_v14, %v4395_v7 }
 0x556   :  { %v3990_v40 = vpop.permute.xlu1 %3989 }
 0x557   :  { %4071 = vst.msk [vmem:[#allocation3 + $0x70] sm:$0xff] %vm878_vm5, %v3990_v40  ;;  %v4248_v45 = vpop.permute.xlu0 %4247  ;;  %v5638_v30 = vld [vmem:[#allocation3 + $0x68] sm:$0xff] }
 0x558   :  { %4261 = vrot.lane.b32.xlu1 %v4942_v49, %s7042_s19  ;;  %4328 = vst.msk [vmem:[#allocation3 + $0x78] sm:$0xff] %vm1135_vm6, %v4248_v45  ;;  %v4652_v49 = vld [vmem:[#allocation2 + $0x2aa] sm:$0xff] }
 0x559   :  { %4519 = vrot.lane.b32.xlu0 %v4432_v21, %s7043_s23  ;;  %v4690_v17 = vpack.c.bf16 %v4652_v49, %v4651_v1  ;;  %v5168_v49 = vld [vmem:[#allocation2 + $0x2f1] sm:$0xff] }
 0x55a   :  { %v4246_v9 = vpop.permute.xlu1 %4245  ;;  %v5637_v35 = vld [vmem:[#allocation3 + $0x60] sm:$0xff] }
 0x55b   :  { %4327 = vst.msk [vmem:[#allocation3 + $0x70] sm:$0xff] %vm1135_vm6, %v4246_v9  ;;  %6968 = vmatprep.mubr.bf16.mxu1 %v5637_v35  ;;  %v4504_v36 = vpop.permute.xlu0 %4503 }
 0x55c   :  { %4517 = vrot.lane.b32.xlu1 %v5198_v38, %s7043_s23  ;;  %6969 = vmatmul.mubr.bf16.gmra.mrb[24].mxu1 %v5638_v30  ;;  %4584 = vst.msk [vmem:[#allocation3 + $0x78] sm:$0xff] %vm1392_vm7, %v4504_v36 }
 0x55d   :  { %4775 = vrot.lane.b32.xlu0 %v4688_v39, %s7044_s26 }
 0x55e   :  { %v4502_v10 = vpop.permute.xlu1 %4501 }
 0x55f   :  { %4583 = vst.msk [vmem:[#allocation3 + $0x70] sm:$0xff] %vm1392_vm7, %v4502_v10  ;;  %v4760_v53 = vpop.permute.xlu0 %4759 }
 0x560   :  { %4773 = vrot.lane.b32.xlu1 %v5454_v22, %s7044_s26  ;;  %4840 = vst.msk [vmem:[#allocation3 + $0x78] sm:$0xff] %vm1649_vm8, %v4760_v53  ;;  %v5202_v22 = vpack.c.bf16 %v5164_v26, %v5163_v24 }
 0x561   :  { %5031 = vrot.lane.b32.xlu0 %v9545_v50, %s7045_s29 }
 0x562   :  { %v4758_v4 = vpop.permute.xlu1 %4757 }
 0x563   :  { %4839 = vst.msk [vmem:[#allocation3 + $0x70] sm:$0xff] %vm1649_vm8, %v4758_v4  ;;  %v5016_v51 = vpop.permute.xlu0 %5015 }
 0x564   :  { %5029 = vrot.lane.b32.xlu1 %v4176_v33, %s7045_s29  ;;  %5096 = vst.msk [vmem:[#allocation3 + $0x78] sm:$0xff] %vm1907_vm9, %v5016_v51 }
 0x565   :  { %5287 = vrot.lane.b32.xlu0 %v5200_v25, %s7046_s9 }
 0x566   :  { %v5014_v42 = vpop.permute.xlu1 %5013 }
 0x567   :  { %5095 = vst.msk [vmem:[#allocation3 + $0x70] sm:$0xff] %vm1907_vm9, %v5014_v42  ;;  %v5272_v46 = vpop.permute.xlu0 %5271 }
 0x568   :  { %5285 = vrot.lane.b32.xlu1 %v4432_v21, %s7046_s9  ;;  %5352 = vst.msk [vmem:[#allocation3 + $0x78] sm:$0xff] %vm2164_vm10, %v5272_v46 }
 0x569   :  { %5543 = vrot.lane.b32.xlu0 %v5456_v23, %s7047_s11 }
 0x56a   :  { %v5270_v59 = vpop.permute.xlu1 %5269 }
 0x56b   :  { %5351 = vst.msk [vmem:[#allocation3 + $0x70] sm:$0xff] %vm2164_vm10, %v5270_v59  ;;  %v5528_v57 = vpop.permute.xlu0 %5527 }
 0x56c   :  { %5541 = vrot.lane.b32.xlu1 %v4688_v39, %s7047_s11  ;;  %5608 = vst.msk [vmem:[#allocation3 + $0x78] sm:$0xff] %vm2421_vm11, %v5528_v57 }
 0x56d   :  { %4009 = vrot.lane.b32.xlu0 %v4688_v39, %s7041_s10 }
 0x56e   :  { %v5526_v62 = vpop.permute.xlu1 %5525 }
 0x56f   :  { %5607 = vst.msk [vmem:[#allocation3 + $0x70] sm:$0xff] %vm2421_vm11, %v5526_v62  ;;  %v3996_v31 = vpop.permute.xlu0 %3995 }
 0x570   :  { %3755 = vrot.lane.b32.xlu1 %v5200_v25, %s7040_s22  ;;  %4074 = vst.msk [vmem:[#allocation3 + $0x88] sm:$0xff] %vm878_vm5, %v3996_v31  ;;  %v4400_v31 = vld [vmem:[#allocation2 + $0x2d9] sm:$0xff] }
 0x571   :  { %4265 = vrot.lane.b32.xlu0 %v9545_v50, %s7042_s19 }
 0x572   :  { %v3994_v48 = vpop.permute.xlu1 %3993 }
 0x573   :  { %4073 = vst.msk [vmem:[#allocation3 + $0x80] sm:$0xff] %vm878_vm5, %v3994_v48  ;;  %v4252_v27 = vpop.permute.xlu0 %4251  ;;  %v5640_v32 = vld [vmem:[#allocation3 + $0x78] sm:$0xff] }
 0x574   :  { %4011 = vrot.lane.b32.xlu1 %v5456_v23, %s7041_s10  ;;  %4330 = vst.msk [vmem:[#allocation3 + $0x88] sm:$0xff] %vm1135_vm6, %v4252_v27 }
 0x575   :  { %4521 = vrot.lane.b32.xlu0 %v5200_v25, %s7043_s23 }
 0x576   :  { %v4250_v5 = vpop.permute.xlu1 %4249  ;;  %v5639_v47 = vld [vmem:[#allocation3 + $0x70] sm:$0xff] }
 0x577   :  { %4329 = vst.msk [vmem:[#allocation3 + $0x80] sm:$0xff] %vm1135_vm6, %v4250_v5  ;;  %6972 = vmatprep.mubr.bf16.mxu1 %v5639_v47  ;;  %v4508_v13 = vpop.permute.xlu0 %4507  ;;  %v4655_v5 = vld [vmem:[#allocation2 + $0x2d2] sm:$0xff]  ;;  %v4656_v47 = vld [vmem:[#allocation2 + $0x2da] sm:$0xff] }
 0x578   :  { %4267 = vrot.lane.b32.xlu1 %v9547_v11, %s7042_s19  ;;  %6973 = vmatmul.mubr.bf16.gmra.mrb[28].mxu1 %v5640_v32  ;;  %4586 = vst.msk [vmem:[#allocation3 + $0x88] sm:$0xff] %vm1392_vm7, %v4508_v13  ;;  %v4692_v7 = vpack.c.bf16 %v4656_v47, %v4655_v5 }
 0x579   :  { %4777 = vrot.lane.b32.xlu0 %v5456_v23, %s7044_s26 }
 0x57a   :  { %v4506_v50 = vpop.permute.xlu1 %4505 }
 0x57b   :  { %4585 = vst.msk [vmem:[#allocation3 + $0x80] sm:$0xff] %vm1392_vm7, %v4506_v50  ;;  %v4764_v6 = vpop.permute.xlu0 %4763 }
 0x57c   :  { %4523 = vrot.lane.b32.xlu1 %v4434_v0, %s7043_s23  ;;  %4842 = vst.msk [vmem:[#allocation3 + $0x88] sm:$0xff] %vm1649_vm8, %v4764_v6 }
 0x57d   :  { %5033 = vrot.lane.b32.xlu0 %v9547_v11, %s7045_s29  ;;  %v5419_v11 = vld [vmem:[#allocation2 + $0x2ba] sm:$0xff] }
 0x57e   :  { %v4762_v37 = vpop.permute.xlu1 %4761  ;;  %v5458_v56 = vpack.c.bf16 %v5420_v18, %v5419_v11 }
 0x57f   :  { %4841 = vst.msk [vmem:[#allocation3 + $0x80] sm:$0xff] %vm1649_vm8, %v4762_v37  ;;  %v5020_v52 = vpop.permute.xlu0 %5019  ;;  %v5424_v37 = vld [vmem:[#allocation2 + $0x2f2] sm:$0xff] }
 0x580   :  { %4779 = vrot.lane.b32.xlu1 %v4690_v17, %s7044_s26  ;;  %5098 = vst.msk [vmem:[#allocation3 + $0x88] sm:$0xff] %vm1907_vm9, %v5020_v52 }
 0x581   :  { %5289 = vrot.lane.b32.xlu0 %v4434_v0, %s7046_s9 }
 0x582   :  { %v5018_v60 = vpop.permute.xlu1 %5017 }
 0x583   :  { %5097 = vst.msk [vmem:[#allocation3 + $0x80] sm:$0xff] %vm1907_vm9, %v5018_v60  ;;  %v5276_v38 = vpop.permute.xlu0 %5275 }
 0x584   :  { %5035 = vrot.lane.b32.xlu1 %v9554_v20, %s7045_s29  ;;  %5354 = vst.msk [vmem:[#allocation3 + $0x88] sm:$0xff] %vm2164_vm10, %v5276_v38 }
 0x585   :  { %5545 = vrot.lane.b32.xlu0 %v4690_v17, %s7047_s11 }
 0x586   :  { %v5274_v12 = vpop.permute.xlu1 %5273 }
 0x587   :  { %5353 = vst.msk [vmem:[#allocation3 + $0x80] sm:$0xff] %vm2164_vm10, %v5274_v12  ;;  %v9940_v54 = vpop.f32.mrb[0].mxu1  ;;  %v5532_v41 = vpop.permute.xlu0 %5531 }
 0x588   :  { %5291 = vrot.lane.b32.xlu1 %v5202_v22, %s7046_s9  ;;  %v9943_v61 = vpop.f32.mrb[1].mxu1  ;;  %5610 = vst.msk [vmem:[#allocation3 + $0x88] sm:$0xff] %vm2421_vm11, %v5532_v41  ;;  %v6145_v19 = vmul.f32 %v9940_v54, %v9940_v54  ;;  %v6013_v30 = vsel %vm27_vm0, %v9940_v54, 0.0 }
 0x589   :  { %v6143_v55 = vmul.f32 %v9943_v61, %v9943_v61  ;;  %v9948_v29 = vpop.f32.mrb[2].mxu1  ;;  %5547 = vrot.lane.b32.xlu0 %v5458_v56, %s7047_s11  ;;  %v6010_v40 = vsel %vm27_vm0, %v9943_v61, 0.0 }
 0x58a   :  { %v5530_v33 = vpop.permute.xlu1 %5529  ;;  %v9951_v34 = vpop.f32.mrb[3].mxu1  ;;  %v6146_v35 = vmul.f32 %v9948_v29, %v9948_v29  ;;  %v6210_v43 = vsel %vm27_vm0, %v6145_v19, 0.0  ;;  %v6015_v3 = vsel %vm27_vm0, %v9948_v29, 0.0 }
 0x58b   :  { %5609 = vst.msk [vmem:[#allocation3 + $0x80] sm:$0xff] %vm2421_vm11, %v5530_v33  ;;  %v6011_v45 = vsel %vm27_vm0, %v9951_v34, 0.0  ;;  %v6144_v21 = vmul.f32 %v9951_v34, %v9951_v34  ;;  %v4000_v16 = vpop.permute.xlu0 %3999  ;;  %v6207_v9 = vsel %vm27_vm0, %v6143_v55, 0.0 }
 0x58c   :  { %v6012_v44 = vadd.f32 %v6011_v45, %v6010_v40  ;;  %3757 = vrot.lane.b32.xlu1 %v4434_v0, %s7040_s22  ;;  %4076 = vst.msk [vmem:[#allocation3 + $0x98] sm:$0xff] %vm878_vm5, %v4000_v16  ;;  %v6212_v63 = vsel %vm27_vm0, %v6146_v35, 0.0  ;;  %v5167_v0 = vld [vmem:[#allocation2 + $0x2e9] sm:$0xff] }
 0x58d   :  { %v6208_v36 = vsel %vm27_vm0, %v6144_v21, 0.0  ;;  %4013 = vrot.lane.b32.xlu0 %v4690_v17, %s7041_s10  ;;  %v5204_v18 = vpack.c.bf16 %v5168_v49, %v5167_v0 }
 0x58e   :  { %v6014_v39 = vadd.f32 %v6013_v30, %v6012_v44  ;;  %v6209_v10 = vadd.f32 %v6208_v36, %v6207_v9  ;;  %v3998_v53 = vpop.permute.xlu1 %3997 }
 0x58f   :  { %4075 = vst.msk [vmem:[#allocation3 + $0x90] sm:$0xff] %vm878_vm5, %v3998_v53  ;;  %v4256_v4 = vpop.permute.xlu0 %4255  ;;  %v5642_v2 = vld [vmem:[#allocation3 + $0x88] sm:$0xff] }
 0x590   :  { %v6211_v51 = vadd.f32 %v6210_v43, %v6209_v10  ;;  %3759 = vrot.lane.b32.xlu1 %v5202_v22, %s7040_s22  ;;  %4332 = vst.msk [vmem:[#allocation3 + $0x98] sm:$0xff] %vm1135_vm6, %v4256_v4  ;;  %v6016_v25 = vadd.f32 %v6015_v3, %v6014_v39 }
 0x591   :  { %4269 = vrot.lane.b32.xlu0 %v9554_v20, %s7042_s19  ;;  %v4399_v20 = vld [vmem:[#allocation2 + $0x2d1] sm:$0xff] }
 0x592   :  { %v4254_v42 = vpop.permute.xlu1 %4253  ;;  %v5641_v46 = vld [vmem:[#allocation3 + $0x80] sm:$0xff]  ;;  %v6213_v23 = vadd.f32 %v6212_v63, %v6211_v51  ;;  %v4436_v27 = vpack.c.bf16 %v4400_v31, %v4399_v20 }
 0x593   :  { %4331 = vst.msk [vmem:[#allocation3 + $0x90] sm:$0xff] %vm1135_vm6, %v4254_v42  ;;  %6976 = vmatprep.mubr.bf16.mxu1 %v5641_v46  ;;  %v4512_v59 = vpop.permute.xlu0 %4511  ;;  %v4659_v31 = vld [vmem:[#allocation2 + $0x302] sm:$0xff] }
 0x594   :  { %4015 = vrot.lane.b32.xlu1 %v5458_v56, %s7041_s10  ;;  %6977 = vmatmul.mubr.bf16.gmra.mrb[32].mxu1 %v5642_v2  ;;  %4588 = vst.msk [vmem:[#allocation3 + $0x98] sm:$0xff] %vm1392_vm7, %v4512_v59  ;;  %v4403_v59 = vld [vmem:[#allocation2 + $0x301] sm:$0xff] }
 0x595   :  { %4525 = vrot.lane.b32.xlu0 %v5202_v22, %s7043_s23 }
 0x596   :  { %v4510_v57 = vpop.permute.xlu1 %4509 }
 0x597   :  { %4587 = vst.msk [vmem:[#allocation3 + $0x90] sm:$0xff] %vm1392_vm7, %v4510_v57  ;;  %v4768_v62 = vpop.permute.xlu0 %4767  ;;  %v4404_v57 = vld [vmem:[#allocation2 + $0x309] sm:$0xff] }
 0x598   :  { %4271 = vrot.lane.b32.xlu1 %v9558_v8, %s7042_s19  ;;  %4844 = vst.msk [vmem:[#allocation3 + $0x98] sm:$0xff] %vm1649_vm8, %v4768_v62  ;;  %v4438_v62 = vpack.c.bf16 %v4404_v57, %v4403_v59 }
 0x599   :  { %4781 = vrot.lane.b32.xlu0 %v5458_v56, %s7044_s26 }
 0x59a   :  { %v4766_v48 = vpop.permute.xlu1 %4765 }
 0x59b   :  { %4843 = vst.msk [vmem:[#allocation3 + $0x90] sm:$0xff] %vm1649_vm8, %v4766_v48  ;;  %v5024_v32 = vpop.permute.xlu0 %5023  ;;  %v4660_v48 = vld [vmem:[#allocation2 + $0x30a] sm:$0xff] }
 0x59c   :  { %4527 = vrot.lane.b32.xlu1 %v4436_v27, %s7043_s23  ;;  %5100 = vst.msk [vmem:[#allocation3 + $0x98] sm:$0xff] %vm1907_vm9, %v5024_v32  ;;  %v4694_v32 = vpack.c.bf16 %v4660_v48, %v4659_v31 }
 0x59d   :  { %5037 = vrot.lane.b32.xlu0 %v9558_v8, %s7045_s29  ;;  %v5423_v8 = vld [vmem:[#allocation2 + $0x2ea] sm:$0xff] }
 0x59e   :  { %v5022_v13 = vpop.permute.xlu1 %5021  ;;  %v5460_v12 = vpack.c.bf16 %v5424_v37, %v5423_v8 }
 0x59f   :  { %5099 = vst.msk [vmem:[#allocation3 + $0x90] sm:$0xff] %vm1907_vm9, %v5022_v13  ;;  %v5280_v14 = vpop.permute.xlu0 %5279 }
 0x5a0   :  { %4783 = vrot.lane.b32.xlu1 %v4692_v7, %s7044_s26  ;;  %5356 = vst.msk [vmem:[#allocation3 + $0x98] sm:$0xff] %vm2164_vm10, %v5280_v14 }
 0x5a1   :  { %5293 = vrot.lane.b32.xlu0 %v4436_v27, %s7046_s9 }
 0x5a2   :  { %v5278_v50 = vpop.permute.xlu1 %5277 }
 0x5a3   :  { %5355 = vst.msk [vmem:[#allocation3 + $0x90] sm:$0xff] %vm2164_vm10, %v5278_v50  ;;  %v9999_v6 = vpop.f32.mrb[4].mxu1  ;;  %v5536_v1 = vpop.permute.xlu0 %5535 }
 0x5a4   :  { %5039 = vrot.lane.b32.xlu1 %v9564_v58, %s7045_s29  ;;  %v10003_v17 = vpop.f32.mrb[5].mxu1  ;;  %5612 = vst.msk [vmem:[#allocation3 + $0x98] sm:$0xff] %vm2421_vm11, %v5536_v1  ;;  %v6149_v22 = vmul.f32 %v9999_v6, %v9999_v6  ;;  %v6021_v45 = vsel %vm27_vm0, %v9999_v6, 0.0 }
 0x5a5   :  { %v6017_v52 = vsel %vm27_vm0, %v10003_v17, 0.0  ;;  %v6147_v60 = vmul.f32 %v10003_v17, %v10003_v17  ;;  %v10010_v38 = vpop.f32.mrb[6].mxu1  ;;  %5549 = vrot.lane.b32.xlu0 %v4692_v7, %s7047_s11 }
 0x5a6   :  { %v6018_v24 = vadd.f32 %v6017_v52, %v6016_v25  ;;  %v5534_v26 = vpop.permute.xlu1 %5533  ;;  %v10013_v11 = vpop.f32.mrb[7].mxu1  ;;  %v6150_v21 = vmul.f32 %v10010_v38, %v10010_v38  ;;  %v6218_v35 = vsel %vm27_vm0, %v6149_v22, 0.0  ;;  %v6023_v36 = vsel %vm27_vm0, %v10010_v38, 0.0  ;;  %v5427_v22 = vld [vmem:[#allocation2 + $0x31a] sm:$0xff] }
 0x5a7   :  { %v6214_v41 = vsel %vm27_vm0, %v6147_v60, 0.0  ;;  %5611 = vst.msk [vmem:[#allocation3 + $0x90] sm:$0xff] %vm2421_vm11, %v5534_v26  ;;  %v6019_v56 = vsel %vm27_vm0, %v10013_v11, 0.0  ;;  %v6148_v55 = vmul.f32 %v10013_v11, %v10013_v11  ;;  %v4004_v33 = vpop.permute.xlu0 %4003  ;;  %v5172_v26 = vld [vmem:[#allocation2 + $0x321] sm:$0xff] }
 0x5a8   :  { %v6215_v19 = vadd.f32 %v6214_v41, %v6213_v23  ;;  %v6020_v40 = vadd.f32 %v6019_v56, %v6018_v24  ;;  %5295 = vrot.lane.b32.xlu1 %v5204_v18, %s7046_s9  ;;  %4078 = vst.msk [vmem:[#allocation3 + $0xa8] sm:$0xff] %vm878_vm5, %v4004_v33  ;;  %v6220_v43 = vsel %vm27_vm0, %v6150_v21, 0.0  ;;  %v5171_v24 = vld [vmem:[#allocation2 + $0x319] sm:$0xff]  ;;  %v5428_v41 = vld [vmem:[#allocation2 + $0x322] sm:$0xff] }
 0x5a9   :  { %v6216_v16 = vsel %vm27_vm0, %v6148_v55, 0.0  ;;  %5551 = vrot.lane.b32.xlu0 %v5460_v12, %s7047_s11  ;;  %v5206_v21 = vpack.c.bf16 %v5172_v26, %v5171_v24 }
 0x5aa   :  { %v6022_v44 = vadd.f32 %v6021_v45, %v6020_v40  ;;  %v6217_v30 = vadd.f32 %v6216_v16, %v6215_v19  ;;  %v4002_v9 = vpop.permute.xlu1 %4001 }
 0x5ab   :  { %4077 = vst.msk [vmem:[#allocation3 + $0xa0] sm:$0xff] %vm878_vm5, %v4002_v9  ;;  %v4260_v39 = vpop.permute.xlu0 %4259  ;;  %v5644_v3 = vld [vmem:[#allocation3 + $0x98] sm:$0xff]  ;;  %v5462_v9 = vpack.c.bf16 %v5428_v41, %v5427_v22 }
 0x5ac   :  { %v6219_v10 = vadd.f32 %v6218_v35, %v6217_v30  ;;  %3761 = vrot.lane.b32.xlu1 %v4436_v27, %s7040_s22  ;;  %4334 = vst.msk [vmem:[#allocation3 + $0xa8] sm:$0xff] %vm1135_vm6, %v4260_v39  ;;  %v6024_v53 = vadd.f32 %v6023_v36, %v6022_v44 }
 0x5ad   :  { %4017 = vrot.lane.b32.xlu0 %v4692_v7, %s7041_s10 }
 0x5ae   :  { %v4258_v4 = vpop.permute.xlu1 %4257  ;;  %v5643_v51 = vld [vmem:[#allocation3 + $0x90] sm:$0xff]  ;;  %v6221_v25 = vadd.f32 %v6220_v43, %v6219_v10 }
 0x5af   :  { %4333 = vst.msk [vmem:[#allocation3 + $0xa0] sm:$0xff] %vm1135_vm6, %v4258_v4  ;;  %6980 = vmatprep.mubr.bf16.mxu1 %v5643_v51  ;;  %v4516_v63 = vpop.permute.xlu0 %4515 }
 0x5b0   :  { %3763 = vrot.lane.b32.xlu1 %v5204_v18, %s7040_s22  ;;  %6981 = vmatmul.mubr.bf16.gmra.mrb[36].mxu1 %v5644_v3  ;;  %4590 = vst.msk [vmem:[#allocation3 + $0xa8] sm:$0xff] %vm1392_vm7, %v4516_v63 }
 0x5b1   :  { %4273 = vrot.lane.b32.xlu0 %v9564_v58, %s7042_s19 }
 0x5b2   :  { %v4514_v2 = vpop.permute.xlu1 %4513 }
 0x5b3   :  { %4589 = vst.msk [vmem:[#allocation3 + $0xa0] sm:$0xff] %vm1392_vm7, %v4514_v2  ;;  %v4772_v42 = vpop.permute.xlu0 %4771 }
 0x5b4   :  { %4019 = vrot.lane.b32.xlu1 %v5460_v12, %s7041_s10  ;;  %4846 = vst.msk [vmem:[#allocation3 + $0xa8] sm:$0xff] %vm1649_vm8, %v4772_v42  ;;  %v4151_v42 = vld [vmem:[#allocation2 + $0x330] sm:$0xff] }
 0x5b5   :  { %4529 = vrot.lane.b32.xlu0 %v5204_v18, %s7043_s23 }
 0x5b6   :  { %v4770_v46 = vpop.permute.xlu1 %4769 }
 0x5b7   :  { %4845 = vst.msk [vmem:[#allocation3 + $0xa0] sm:$0xff] %vm1649_vm8, %v4770_v46  ;;  %v5028_v23 = vpop.permute.xlu0 %5027  ;;  %v4152_v46 = vld [vmem:[#allocation2 + $0x338] sm:$0xff] }
 0x5b8   :  { %4275 = vrot.lane.b32.xlu1 %v9568_v28, %s7042_s19  ;;  %5102 = vst.msk [vmem:[#allocation3 + $0xa8] sm:$0xff] %vm1907_vm9, %v5028_v23  ;;  %v4184_v59 = vpack.c.bf16 %v4152_v46, %v4151_v42 }
 0x5b9   :  { %4785 = vrot.lane.b32.xlu0 %v5460_v12, %s7044_s26 }
 0x5ba   :  { %v5026_v58 = vpop.permute.xlu1 %5025 }
 0x5bb   :  { %5101 = vst.msk [vmem:[#allocation3 + $0xa0] sm:$0xff] %vm1907_vm9, %v5026_v58  ;;  %v5284_v20 = vpop.permute.xlu0 %5283  ;;  %v4407_v58 = vld [vmem:[#allocation2 + $0x331] sm:$0xff] }
 0x5bc   :  { %4531 = vrot.lane.b32.xlu1 %v4438_v62, %s7043_s23  ;;  %5358 = vst.msk [vmem:[#allocation3 + $0xa8] sm:$0xff] %vm2164_vm10, %v5284_v20 }
 0x5bd   :  { %5041 = vrot.lane.b32.xlu0 %v9568_v28, %s7045_s29 }
 0x5be   :  { %v5282_v27 = vpop.permute.xlu1 %5281 }
 0x5bf   :  { %5357 = vst.msk [vmem:[#allocation3 + $0xa0] sm:$0xff] %vm2164_vm10, %v5282_v27  ;;  %v10059_v5 = vpop.f32.mrb[8].mxu1  ;;  %v5540_v47 = vpop.permute.xlu0 %5539  ;;  %v4663_v27 = vld [vmem:[#allocation2 + $0x332] sm:$0xff] }
 0x5c0   :  { %4787 = vrot.lane.b32.xlu1 %v4694_v32, %s7044_s26  ;;  %v10062_v13 = vpop.f32.mrb[9].mxu1  ;;  %5614 = vst.msk [vmem:[#allocation3 + $0xa8] sm:$0xff] %vm2421_vm11, %v5540_v47  ;;  %v6153_v49 = vmul.f32 %v10059_v5, %v10059_v5  ;;  %v6029_v56 = vsel %vm27_vm0, %v10059_v5, 0.0 }
 0x5c1   :  { %v6025_v7 = vsel %vm27_vm0, %v10062_v13, 0.0  ;;  %v6151_v14 = vmul.f32 %v10062_v13, %v10062_v13  ;;  %v10069_v28 = vpop.f32.mrb[10].mxu1  ;;  %5297 = vrot.lane.b32.xlu0 %v4438_v62, %s7046_s9 }
 0x5c2   :  { %v6026_v50 = vadd.f32 %v6025_v7, %v6024_v53  ;;  %v5538_v0 = vpop.permute.xlu1 %5537  ;;  %v10072_v1 = vpop.f32.mrb[11].mxu1  ;;  %v6154_v55 = vmul.f32 %v10069_v28, %v10069_v28  ;;  %v6226_v16 = vsel %vm27_vm0, %v6153_v49, 0.0  ;;  %v6031_v44 = vsel %vm27_vm0, %v10069_v28, 0.0  ;;  %v4920_v49 = vld [vmem:[#allocation2 + $0x350] sm:$0xff] }
 0x5c3   :  { %v6222_v8 = vsel %vm27_vm0, %v6151_v14, 0.0  ;;  %5613 = vst.msk [vmem:[#allocation3 + $0xa0] sm:$0xff] %vm2421_vm11, %v5538_v0  ;;  %v6027_v37 = vsel %vm27_vm0, %v10072_v1, 0.0  ;;  %v6152_v52 = vmul.f32 %v10072_v1, %v10072_v1  ;;  %v4008_v60 = vpop.permute.xlu0 %4007  ;;  %v4919_v0 = vld [vmem:[#allocation2 + $0x348] sm:$0xff] }
 0x5c4   :  { %v6223_v18 = vadd.f32 %v6222_v8, %v6221_v25  ;;  %v6028_v12 = vadd.f32 %v6027_v37, %v6026_v50  ;;  %5043 = vrot.lane.b32.xlu1 %v9575_v15, %s7045_s29  ;;  %4080 = vst.msk [vmem:[#allocation3 + $0xb8] sm:$0xff] %vm878_vm5, %v4008_v60  ;;  %v6228_v39 = vsel %vm27_vm0, %v6154_v55, 0.0  ;;  %v4952_v55 = vpack.c.bf16 %v4920_v49, %v4919_v0 }
 0x5c5   :  { %v6224_v33 = vsel %vm27_vm0, %v6152_v52, 0.0  ;;  %5553 = vrot.lane.b32.xlu0 %v4694_v32, %s7047_s11 }
 0x5c6   :  { %v6030_v19 = vadd.f32 %v6029_v56, %v6028_v12  ;;  %v6225_v40 = vadd.f32 %v6224_v33, %v6223_v18  ;;  %v4006_v45 = vpop.permute.xlu1 %4005 }
 0x5c7   :  { %4079 = vst.msk [vmem:[#allocation3 + $0xb0] sm:$0xff] %vm878_vm5, %v4006_v45  ;;  %v4264_v30 = vpop.permute.xlu0 %4263  ;;  %v5646_v10 = vld [vmem:[#allocation3 + $0xa8] sm:$0xff] }
 0x5c8   :  { %v6227_v35 = vadd.f32 %v6226_v16, %v6225_v40  ;;  %5299 = vrot.lane.b32.xlu1 %v5206_v21, %s7046_s9  ;;  %4336 = vst.msk [vmem:[#allocation3 + $0xb8] sm:$0xff] %vm1135_vm6, %v4264_v30  ;;  %v6032_v36 = vadd.f32 %v6031_v44, %v6030_v19  ;;  %v5175_v45 = vld [vmem:[#allocation2 + $0x349] sm:$0xff] }
 0x5c9   :  { %5555 = vrot.lane.b32.xlu0 %v5462_v9, %s7047_s11 }
 0x5ca   :  { %v4262_v53 = vpop.permute.xlu1 %4261  ;;  %v5645_v43 = vld [vmem:[#allocation3 + $0xa0] sm:$0xff]  ;;  %v6229_v3 = vadd.f32 %v6228_v39, %v6227_v35 }
 0x5cb   :  { %4335 = vst.msk [vmem:[#allocation3 + $0xb0] sm:$0xff] %vm1135_vm6, %v4262_v53  ;;  %6984 = vmatprep.mubr.bf16.mxu1 %v5645_v43  ;;  %v4520_v4 = vpop.permute.xlu0 %4519 }
 0x5cc   :  { %3765 = vrot.lane.b32.xlu1 %v4438_v62, %s7040_s22  ;;  %6985 = vmatmul.mubr.bf16.gmra.mrb[40].mxu1 %v5646_v10  ;;  %4592 = vst.msk [vmem:[#allocation3 + $0xb8] sm:$0xff] %vm1392_vm7, %v4520_v4  ;;  %v4408_v62 = vld [vmem:[#allocation2 + $0x339] sm:$0xff]  ;;  %v5431_v4 = vld [vmem:[#allocation2 + $0x34a] sm:$0xff] }
 0x5cd   :  { %4021 = vrot.lane.b32.xlu0 %v4694_v32, %s7041_s10  ;;  %v4440_v20 = vpack.c.bf16 %v4408_v62, %v4407_v58  ;;  %v4664_v32 = vld [vmem:[#allocation2 + $0x33a] sm:$0xff] }
 0x5ce   :  { %v4518_v51 = vpop.permute.xlu1 %4517  ;;  %v4696_v60 = vpack.c.bf16 %v4664_v32, %v4663_v27 }
 0x5cf   :  { %4591 = vst.msk [vmem:[#allocation3 + $0xb0] sm:$0xff] %vm1392_vm7, %v4518_v51  ;;  %v4776_v25 = vpop.permute.xlu0 %4775  ;;  %v5432_v51 = vld [vmem:[#allocation2 + $0x352] sm:$0xff] }
 0x5d0   :  { %3767 = vrot.lane.b32.xlu1 %v5206_v21, %s7040_s22  ;;  %4848 = vst.msk [vmem:[#allocation3 + $0xb8] sm:$0xff] %vm1649_vm8, %v4776_v25  ;;  %v5464_v46 = vpack.c.bf16 %v5432_v51, %v5431_v4 }
 0x5d1   :  { %4277 = vrot.lane.b32.xlu0 %v9575_v15, %s7042_s19 }
 0x5d2   :  { %v4774_v63 = vpop.permute.xlu1 %4773 }
 0x5d3   :  { %4847 = vst.msk [vmem:[#allocation3 + $0xb0] sm:$0xff] %vm1649_vm8, %v4774_v63  ;;  %v5032_v2 = vpop.permute.xlu0 %5031 }
 0x5d4   :  { %4023 = vrot.lane.b32.xlu1 %v5462_v9, %s7041_s10  ;;  %5104 = vst.msk [vmem:[#allocation3 + $0xb8] sm:$0xff] %vm1907_vm9, %v5032_v2 }
 0x5d5   :  { %4533 = vrot.lane.b32.xlu0 %v5206_v21, %s7043_s23  ;;  %v5176_v21 = vld [vmem:[#allocation2 + $0x351] sm:$0xff] }
 0x5d6   :  { %v5030_v23 = vpop.permute.xlu1 %5029  ;;  %v5208_v10 = vpack.c.bf16 %v5176_v21, %v5175_v45 }
 0x5d7   :  { %5103 = vst.msk [vmem:[#allocation3 + $0xb0] sm:$0xff] %vm1907_vm9, %v5030_v23  ;;  %v5288_v57 = vpop.permute.xlu0 %5287 }
 0x5d8   :  { %4279 = vrot.lane.b32.xlu1 %v4184_v59, %s7042_s19  ;;  %5360 = vst.msk [vmem:[#allocation3 + $0xb8] sm:$0xff] %vm2164_vm10, %v5288_v57 }
 0x5d9   :  { %4789 = vrot.lane.b32.xlu0 %v5462_v9, %s7044_s26 }
 0x5da   :  { %v5286_v15 = vpop.permute.xlu1 %5285 }
 0x5db   :  { %5359 = vst.msk [vmem:[#allocation3 + $0xb0] sm:$0xff] %vm2164_vm10, %v5286_v15  ;;  %v10117_v31 = vpop.f32.mrb[12].mxu1  ;;  %v5544_v48 = vpop.permute.xlu0 %5543 }
 0x5dc   :  { %4535 = vrot.lane.b32.xlu1 %v4440_v20, %s7043_s23  ;;  %v10120_v47 = vpop.f32.mrb[13].mxu1  ;;  %5616 = vst.msk [vmem:[#allocation3 + $0xb8] sm:$0xff] %vm2421_vm11, %v5544_v48  ;;  %v6157_v24 = vmul.f32 %v10117_v31, %v10117_v31  ;;  %v6037_v33 = vsel %vm27_vm0, %v10117_v31, 0.0 }
 0x5dd   :  { %v6033_v7 = vsel %vm27_vm0, %v10120_v47, 0.0  ;;  %v6155_v14 = vmul.f32 %v10120_v47, %v10120_v47  ;;  %v10127_v50 = vpop.f32.mrb[14].mxu1  ;;  %5045 = vrot.lane.b32.xlu0 %v4184_v59, %s7045_s29 }
 0x5de   :  { %v6034_v8 = vadd.f32 %v6033_v7, %v6032_v36  ;;  %v5542_v37 = vpop.permute.xlu1 %5541  ;;  %v10130_v52 = vpop.f32.mrb[15].mxu1  ;;  %v6158_v19 = vmul.f32 %v10127_v50, %v10127_v50  ;;  %v6234_v9 = vsel %vm27_vm0, %v6157_v24, 0.0  ;;  %v6039_v35 = vsel %vm27_vm0, %v10127_v50, 0.0 }
 0x5df   :  { %v6230_v26 = vsel %vm27_vm0, %v6155_v14, 0.0  ;;  %5615 = vst.msk [vmem:[#allocation3 + $0xb0] sm:$0xff] %vm2421_vm11, %v5542_v37  ;;  %v6035_v18 = vsel %vm27_vm0, %v10130_v52, 0.0  ;;  %v6156_v12 = vmul.f32 %v10130_v52, %v10130_v52  ;;  %v4010_v22 = vpop.permute.xlu0 %4009 }
 0x5e0   :  { %v6231_v41 = vadd.f32 %v6230_v26, %v6229_v3  ;;  %v6036_v56 = vadd.f32 %v6035_v18, %v6034_v8  ;;  %4791 = vrot.lane.b32.xlu1 %v4696_v60, %s7044_s26  ;;  %4081 = vst.msk [vmem:[#allocation3 + $0xc0] sm:$0xff] %vm878_vm5, %v4010_v22  ;;  %v6236_v43 = vsel %vm27_vm0, %v6158_v19, 0.0 }
 0x5e1   :  { %v6232_v40 = vsel %vm27_vm0, %v6156_v12, 0.0  ;;  %5301 = vrot.lane.b32.xlu0 %v4440_v20, %s7046_s9 }
 0x5e2   :  { %v6038_v16 = vadd.f32 %v6037_v33, %v6036_v56  ;;  %v6233_v44 = vadd.f32 %v6232_v40, %v6231_v41  ;;  %v3756_v30 = vpop.permute.xlu1 %3755 }
 0x5e3   :  { %3826 = vst.msk [vmem:[#allocation3 + $0xc8] sm:$0xff] %vm621_vm4, %v3756_v30  ;;  %v4266_v36 = vpop.permute.xlu0 %4265  ;;  %v5648_v3 = vld [vmem:[#allocation3 + $0xb8] sm:$0xff] }
 0x5e4   :  { %v6235_v39 = vadd.f32 %v6234_v9, %v6233_v44  ;;  %5047 = vrot.lane.b32.xlu1 %v4952_v55, %s7045_s29  ;;  %4337 = vst.msk [vmem:[#allocation3 + $0xc0] sm:$0xff] %vm1135_vm6, %v4266_v36  ;;  %v6040_v53 = vadd.f32 %v6039_v35, %v6038_v16 }
 0x5e5   :  { %5557 = vrot.lane.b32.xlu0 %v4696_v60, %s7047_s11 }
 0x5e6   :  { %v4012_v25 = vpop.permute.xlu1 %4011  ;;  %v5647_v63 = vld [vmem:[#allocation3 + $0xb0] sm:$0xff]  ;;  %v6237_v2 = vadd.f32 %v6236_v43, %v6235_v39 }
 0x5e7   :  { %4082 = vst.msk [vmem:[#allocation3 + $0xc8] sm:$0xff] %vm878_vm5, %v4012_v25  ;;  %6988 = vmatprep.mubr.bf16.mxu1 %v5647_v63  ;;  %v4522_v42 = vpop.permute.xlu0 %4521 }
 0x5e8   :  { %5303 = vrot.lane.b32.xlu1 %v5208_v10, %s7046_s9  ;;  %6989 = vmatmul.mubr.bf16.gmra.mrb[44].mxu1 %v5648_v3  ;;  %4593 = vst.msk [vmem:[#allocation3 + $0xc0] sm:$0xff] %vm1392_vm7, %v4522_v42 }
 0x5ea   :  { %v4268_v23 = vpop.permute.xlu1 %4267 }
 0x5eb   :  { %4338 = vst.msk [vmem:[#allocation3 + $0xc8] sm:$0xff] %vm1135_vm6, %v4268_v23  ;;  %v4778_v59 = vpop.permute.xlu0 %4777 }
 0x5ec   :  { %5559 = vrot.lane.b32.xlu1 %v5464_v46, %s7047_s11  ;;  %4849 = vst.msk [vmem:[#allocation3 + $0xc0] sm:$0xff] %vm1649_vm8, %v4778_v59 }
 0x5ee   :  { %v4524_v57 = vpop.permute.xlu1 %4523 }
 0x5ef   :  { %4594 = vst.msk [vmem:[#allocation3 + $0xc8] sm:$0xff] %vm1392_vm7, %v4524_v57  ;;  %v5034_v58 = vpop.permute.xlu0 %5033 }
 0x5f0   :  { %5105 = vst.msk [vmem:[#allocation3 + $0xc0] sm:$0xff] %vm1907_vm9, %v5034_v58 }
 0x5f2   :  { %v4780_v62 = vpop.permute.xlu1 %4779 }
 0x5f3   :  { %4850 = vst.msk [vmem:[#allocation3 + $0xc8] sm:$0xff] %vm1649_vm8, %v4780_v62  ;;  %v5290_v15 = vpop.permute.xlu0 %5289 }
 0x5f4   :  { %5361 = vst.msk [vmem:[#allocation3 + $0xc0] sm:$0xff] %vm2164_vm10, %v5290_v15 }
 0x5f6   :  { %v5036_v20 = vpop.permute.xlu1 %5035 }
 0x5f7   :  { %5106 = vst.msk [vmem:[#allocation3 + $0xc8] sm:$0xff] %vm1907_vm9, %v5036_v20  ;;  %v10167_v48 = vpop.f32.mrb[16].mxu1  ;;  %v5546_v27 = vpop.permute.xlu0 %5545 }
 0x5f8   :  { %v10169_v32 = vpop.f32.mrb[17].mxu1  ;;  %5617 = vst.msk [vmem:[#allocation3 + $0xc0] sm:$0xff] %vm2421_vm11, %v5546_v27  ;;  %v6161_v60 = vmul.f32 %v10167_v48, %v10167_v48  ;;  %v6045_v56 = vsel %vm27_vm0, %v10167_v48, 0.0 }
 0x5f9   :  { %v6041_v7 = vsel %vm27_vm0, %v10169_v32, 0.0  ;;  %v6159_v14 = vmul.f32 %v10169_v32, %v10169_v32  ;;  %v10176_v0 = vpop.f32.mrb[18].mxu1 }
 0x5fa   :  { %v6042_v49 = vadd.f32 %v6041_v7, %v6040_v53  ;;  %v5292_v8 = vpop.permute.xlu1 %5291  ;;  %v10178_v37 = vpop.f32.mrb[19].mxu1  ;;  %v6162_v55 = vmul.f32 %v10176_v0, %v10176_v0  ;;  %v6242_v21 = vsel %vm27_vm0, %v6161_v60, 0.0  ;;  %v6047_v16 = vsel %vm27_vm0, %v10176_v0, 0.0 }
 0x5fb   :  { %v6238_v24 = vsel %vm27_vm0, %v6159_v14, 0.0  ;;  %5362 = vst.msk [vmem:[#allocation3 + $0xc8] sm:$0xff] %vm2164_vm10, %v5292_v8  ;;  %v6043_v26 = vsel %vm27_vm0, %v10178_v37, 0.0  ;;  %v6160_v18 = vmul.f32 %v10178_v37, %v10178_v37  ;;  %v5548_v12 = vpop.permute.xlu0 %5547 }
 0x5fc   :  { %v6239_v22 = vadd.f32 %v6238_v24, %v6237_v2  ;;  %v6044_v41 = vadd.f32 %v6043_v26, %v6042_v49  ;;  %5618 = vst.msk [vmem:[#allocation3 + $0xc8] sm:$0xff] %vm2421_vm11, %v5548_v12  ;;  %v6244_v36 = vsel %vm27_vm0, %v6162_v55, 0.0 }
 0x5fd   :  { %v6240_v33 = vsel %vm27_vm0, %v6160_v18, 0.0 }
 0x5fe   :  { %v6046_v19 = vadd.f32 %v6045_v56, %v6044_v41  ;;  %v6241_v40 = vadd.f32 %v6240_v33, %v6239_v22  ;;  %v3758_v45 = vpop.permute.xlu1 %3757 }
 0x5ff   :  { %3827 = vst.msk [vmem:[#allocation3 + $0xd0] sm:$0xff] %vm621_vm4, %v3758_v45  ;;  %v4014_v44 = vpop.permute.xlu0 %4013  ;;  %v5649_v30 = vld [vmem:[#allocation3 + $0xc0] sm:$0xff] }
 0x600   :  { %v6243_v9 = vadd.f32 %v6242_v21, %v6241_v40  ;;  %4083 = vst.msk [vmem:[#allocation3 + $0xd0] sm:$0xff] %vm878_vm5, %v4014_v44  ;;  %6992 = vmatprep.mubr.bf16.mxu1 %v5649_v30  ;;  %v6048_v35 = vadd.f32 %v6047_v16, %v6046_v19 }
 0x602   :  { %v3760_v39 = vpop.permute.xlu1 %3759  ;;  %v6245_v10 = vadd.f32 %v6244_v36, %v6243_v9 }
 0x603   :  { %3828 = vst.msk [vmem:[#allocation3 + $0xd8] sm:$0xff] %vm621_vm4, %v3760_v39  ;;  %v4270_v53 = vpop.permute.xlu0 %4269  ;;  %v5650_v43 = vld [vmem:[#allocation3 + $0xc8] sm:$0xff] }
 0x604   :  { %4339 = vst.msk [vmem:[#allocation3 + $0xd0] sm:$0xff] %vm1135_vm6, %v4270_v53  ;;  %6993 = vmatmul.mubr.bf16.gmra.mrb[48].mxu1 %v5650_v43 }
 0x606   :  { %v4016_v3 = vpop.permute.xlu1 %4015 }
 0x607   :  { %4084 = vst.msk [vmem:[#allocation3 + $0xd8] sm:$0xff] %vm878_vm5, %v4016_v3  ;;  %v4526_v4 = vpop.permute.xlu0 %4525 }
 0x608   :  { %4595 = vst.msk [vmem:[#allocation3 + $0xd0] sm:$0xff] %vm1392_vm7, %v4526_v4 }
 0x60a   :  { %v4272_v51 = vpop.permute.xlu1 %4271 }
 0x60b   :  { %4340 = vst.msk [vmem:[#allocation3 + $0xd8] sm:$0xff] %vm1135_vm6, %v4272_v51  ;;  %v4782_v25 = vpop.permute.xlu0 %4781 }
 0x60c   :  { %4851 = vst.msk [vmem:[#allocation3 + $0xd0] sm:$0xff] %vm1649_vm8, %v4782_v25 }
 0x60e   :  { %v4528_v63 = vpop.permute.xlu1 %4527 }
 0x60f   :  { %4596 = vst.msk [vmem:[#allocation3 + $0xd8] sm:$0xff] %vm1392_vm7, %v4528_v63  ;;  %v5038_v2 = vpop.permute.xlu0 %5037 }
 0x610   :  { %5107 = vst.msk [vmem:[#allocation3 + $0xd0] sm:$0xff] %vm1907_vm9, %v5038_v2 }
 0x612   :  { %v4784_v42 = vpop.permute.xlu1 %4783 }
 0x613   :  { %4852 = vst.msk [vmem:[#allocation3 + $0xd8] sm:$0xff] %vm1649_vm8, %v4784_v42  ;;  %v10209_v46 = vpop.f32.mrb[20].mxu1  ;;  %v5294_v23 = vpop.permute.xlu0 %5293 }
 0x614   :  { %v10211_v59 = vpop.f32.mrb[21].mxu1  ;;  %5363 = vst.msk [vmem:[#allocation3 + $0xd0] sm:$0xff] %vm2164_vm10, %v5294_v23  ;;  %v6165_v7 = vmul.f32 %v10209_v46, %v10209_v46  ;;  %v6053_v18 = vsel %vm27_vm0, %v10209_v46, 0.0 }
 0x615   :  { %v6049_v57 = vsel %vm27_vm0, %v10211_v59, 0.0  ;;  %v6163_v58 = vmul.f32 %v10211_v59, %v10211_v59  ;;  %v10218_v62 = vpop.f32.mrb[22].mxu1 }
 0x616   :  { %v6050_v15 = vadd.f32 %v6049_v57, %v6048_v35  ;;  %v5040_v20 = vpop.permute.xlu1 %5039  ;;  %v10220_v27 = vpop.f32.mrb[23].mxu1  ;;  %v6166_v12 = vmul.f32 %v10218_v62, %v10218_v62  ;;  %v6250_v33 = vsel %vm27_vm0, %v6165_v7, 0.0  ;;  %v6055_v19 = vsel %vm27_vm0, %v10218_v62, 0.0 }
 0x617   :  { %v6246_v14 = vsel %vm27_vm0, %v6163_v58, 0.0  ;;  %5108 = vst.msk [vmem:[#allocation3 + $0xd8] sm:$0xff] %vm1907_vm9, %v5040_v20  ;;  %v6051_v49 = vsel %vm27_vm0, %v10220_v27, 0.0  ;;  %v6164_v8 = vmul.f32 %v10220_v27, %v10220_v27  ;;  %v5550_v60 = vpop.permute.xlu0 %5549 }
 0x618   :  { %v6247_v24 = vadd.f32 %v6246_v14, %v6245_v10  ;;  %v6052_v26 = vadd.f32 %v6051_v49, %v6050_v15  ;;  %5619 = vst.msk [vmem:[#allocation3 + $0xd0] sm:$0xff] %vm2421_vm11, %v5550_v60  ;;  %v6252_v16 = vsel %vm27_vm0, %v6166_v12, 0.0 }
 0x619   :  { %v6248_v22 = vsel %vm27_vm0, %v6164_v8, 0.0 }
 0x61a   :  { %v6054_v41 = vadd.f32 %v6053_v18, %v6052_v26  ;;  %v6249_v56 = vadd.f32 %v6248_v22, %v6247_v24  ;;  %v5296_v55 = vpop.permute.xlu1 %5295 }
 0x61b   :  { %5364 = vst.msk [vmem:[#allocation3 + $0xd8] sm:$0xff] %vm2164_vm10, %v5296_v55  ;;  %v5552_v40 = vpop.permute.xlu0 %5551 }
 0x61c   :  { %v6251_v45 = vadd.f32 %v6250_v33, %v6249_v56  ;;  %5620 = vst.msk [vmem:[#allocation3 + $0xd8] sm:$0xff] %vm2421_vm11, %v5552_v40  ;;  %v6056_v21 = vadd.f32 %v6055_v19, %v6054_v41 }
 0x61e   :  { %v3762_v44 = vpop.permute.xlu1 %3761  ;;  %v6253_v30 = vadd.f32 %v6252_v16, %v6251_v45 }
 0x61f   :  { %3829 = vst.msk [vmem:[#allocation3 + $0xe0] sm:$0xff] %vm621_vm4, %v3762_v44  ;;  %v4018_v9 = vpop.permute.xlu0 %4017  ;;  %v5651_v35 = vld [vmem:[#allocation3 + $0xd0] sm:$0xff] }
 0x620   :  { %4085 = vst.msk [vmem:[#allocation3 + $0xe0] sm:$0xff] %vm878_vm5, %v4018_v9  ;;  %6996 = vmatprep.mubr.bf16.mxu1 %v5651_v35 }
 0x622   :  { %v3764_v36 = vpop.permute.xlu1 %3763 }
 0x623   :  { %3830 = vst.msk [vmem:[#allocation3 + $0xe8] sm:$0xff] %vm621_vm4, %v3764_v36  ;;  %v4274_v39 = vpop.permute.xlu0 %4273  ;;  %v5652_v10 = vld [vmem:[#allocation3 + $0xd8] sm:$0xff] }
 0x624   :  { %4341 = vst.msk [vmem:[#allocation3 + $0xe0] sm:$0xff] %vm1135_vm6, %v4274_v39  ;;  %6997 = vmatmul.mubr.bf16.gmra.mrb[52].mxu1 %v5652_v10 }
 0x626   :  { %v4020_v53 = vpop.permute.xlu1 %4019 }
 0x627   :  { %4086 = vst.msk [vmem:[#allocation3 + $0xe8] sm:$0xff] %vm878_vm5, %v4020_v53  ;;  %v4530_v43 = vpop.permute.xlu0 %4529 }
 0x628   :  { %4597 = vst.msk [vmem:[#allocation3 + $0xe0] sm:$0xff] %vm1392_vm7, %v4530_v43 }
 0x62a   :  { %v4276_v3 = vpop.permute.xlu1 %4275 }
 0x62b   :  { %4342 = vst.msk [vmem:[#allocation3 + $0xe8] sm:$0xff] %vm1135_vm6, %v4276_v3  ;;  %v4786_v4 = vpop.permute.xlu0 %4785 }
 0x62c   :  { %4853 = vst.msk [vmem:[#allocation3 + $0xe0] sm:$0xff] %vm1649_vm8, %v4786_v4 }
 0x62e   :  { %v4532_v51 = vpop.permute.xlu1 %4531 }
 0x62f   :  { %4598 = vst.msk [vmem:[#allocation3 + $0xe8] sm:$0xff] %vm1392_vm7, %v4532_v51  ;;  %v10251_v25 = vpop.f32.mrb[24].mxu1  ;;  %v5042_v63 = vpop.permute.xlu0 %5041 }
 0x630   :  { %v10253_v2 = vpop.f32.mrb[25].mxu1  ;;  %5109 = vst.msk [vmem:[#allocation3 + $0xe0] sm:$0xff] %vm1907_vm9, %v5042_v63  ;;  %v6169_v7 = vmul.f32 %v10251_v25, %v10251_v25  ;;  %v6061_v18 = vsel %vm27_vm0, %v10251_v25, 0.0 }
 0x631   :  { %v6057_v42 = vsel %vm27_vm0, %v10253_v2, 0.0  ;;  %v6167_v23 = vmul.f32 %v10253_v2, %v10253_v2  ;;  %v10260_v57 = vpop.f32.mrb[26].mxu1 }
 0x632   :  { %v6058_v58 = vadd.f32 %v6057_v42, %v6056_v21  ;;  %v4788_v15 = vpop.permute.xlu1 %4787  ;;  %v10262_v20 = vpop.f32.mrb[27].mxu1  ;;  %v6170_v12 = vmul.f32 %v10260_v57, %v10260_v57  ;;  %v6258_v33 = vsel %vm27_vm0, %v6169_v7, 0.0  ;;  %v6063_v19 = vsel %vm27_vm0, %v10260_v57, 0.0 }
 0x633   :  { %v6254_v14 = vsel %vm27_vm0, %v6167_v23, 0.0  ;;  %4854 = vst.msk [vmem:[#allocation3 + $0xe8] sm:$0xff] %vm1649_vm8, %v4788_v15  ;;  %v6059_v49 = vsel %vm27_vm0, %v10262_v20, 0.0  ;;  %v6168_v8 = vmul.f32 %v10262_v20, %v10262_v20  ;;  %v5298_v60 = vpop.permute.xlu0 %5297 }
 0x634   :  { %v6255_v24 = vadd.f32 %v6254_v14, %v6253_v30  ;;  %v6060_v26 = vadd.f32 %v6059_v49, %v6058_v58  ;;  %5365 = vst.msk [vmem:[#allocation3 + $0xe0] sm:$0xff] %vm2164_vm10, %v5298_v60  ;;  %v6260_v16 = vsel %vm27_vm0, %v6170_v12, 0.0 }
 0x635   :  { %v6256_v22 = vsel %vm27_vm0, %v6168_v8, 0.0 }
 0x636   :  { %v6062_v41 = vadd.f32 %v6061_v18, %v6060_v26  ;;  %v6257_v56 = vadd.f32 %v6256_v22, %v6255_v24  ;;  %v5044_v55 = vpop.permute.xlu1 %5043 }
 0x637   :  { %5110 = vst.msk [vmem:[#allocation3 + $0xe8] sm:$0xff] %vm1907_vm9, %v5044_v55  ;;  %v5554_v40 = vpop.permute.xlu0 %5553 }
 0x638   :  { %v6259_v45 = vadd.f32 %v6258_v33, %v6257_v56  ;;  %5621 = vst.msk [vmem:[#allocation3 + $0xe0] sm:$0xff] %vm2421_vm11, %v5554_v40  ;;  %v6064_v21 = vadd.f32 %v6063_v19, %v6062_v41 }
 0x63a   :  { %v5300_v44 = vpop.permute.xlu1 %5299  ;;  %v6261_v30 = vadd.f32 %v6260_v16, %v6259_v45 }
 0x63b   :  { %5366 = vst.msk [vmem:[#allocation3 + $0xe8] sm:$0xff] %vm2164_vm10, %v5300_v44  ;;  %v5556_v9 = vpop.permute.xlu0 %5555 }
 0x63c   :  { %5622 = vst.msk [vmem:[#allocation3 + $0xe8] sm:$0xff] %vm2421_vm11, %v5556_v9 }
 0x63e   :  { %v3766_v35 = vpop.permute.xlu1 %3765 }
 0x63f   :  { %3831 = vst.msk [vmem:[#allocation3 + $0xf0] sm:$0xff] %vm621_vm4, %v3766_v35  ;;  %v4022_v36 = vpop.permute.xlu0 %4021  ;;  %v5653_v39 = vld [vmem:[#allocation3 + $0xe0] sm:$0xff] }
 0x640   :  { %4087 = vst.msk [vmem:[#allocation3 + $0xf0] sm:$0xff] %vm878_vm5, %v4022_v36  ;;  %7000 = vmatprep.mubr.bf16.mxu1 %v5653_v39 }
 0x642   :  { %v3768_v10 = vpop.permute.xlu1 %3767 }
 0x643   :  { %3832 = vst.msk [vmem:[#allocation3 + $0xf8] sm:$0xff] %vm621_vm4, %v3768_v10  ;;  %v4278_v53 = vpop.permute.xlu0 %4277  ;;  %v5654_v43 = vld [vmem:[#allocation3 + $0xe8] sm:$0xff] }
 0x644   :  { %4343 = vst.msk [vmem:[#allocation3 + $0xf0] sm:$0xff] %vm1135_vm6, %v4278_v53  ;;  %7001 = vmatmul.mubr.bf16.gmra.mrb[56].mxu1 %v5654_v43 }
 0x646   :  { %v4024_v3 = vpop.permute.xlu1 %4023 }
 0x647   :  { %4088 = vst.msk [vmem:[#allocation3 + $0xf8] sm:$0xff] %vm878_vm5, %v4024_v3  ;;  %v4534_v4 = vpop.permute.xlu0 %4533 }
 0x648   :  { %4599 = vst.msk [vmem:[#allocation3 + $0xf0] sm:$0xff] %vm1392_vm7, %v4534_v4 }
 0x64a   :  { %v4280_v51 = vpop.permute.xlu1 %4279 }
 0x64b   :  { %4344 = vst.msk [vmem:[#allocation3 + $0xf8] sm:$0xff] %vm1135_vm6, %v4280_v51  ;;  %v10293_v63 = vpop.f32.mrb[28].mxu1  ;;  %v4790_v42 = vpop.permute.xlu0 %4789 }
 0x64c   :  { %v10295_v23 = vpop.f32.mrb[29].mxu1  ;;  %4855 = vst.msk [vmem:[#allocation3 + $0xf0] sm:$0xff] %vm1649_vm8, %v4790_v42  ;;  %v6173_v60 = vmul.f32 %v10293_v63, %v10293_v63  ;;  %v6069_v56 = vsel %vm27_vm0, %v10293_v63, 0.0 }
 0x64d   :  { %v6065_v58 = vsel %vm27_vm0, %v10295_v23, 0.0  ;;  %v6171_v15 = vmul.f32 %v10295_v23, %v10295_v23  ;;  %v10302_v7 = vpop.f32.mrb[30].mxu1 }
 0x64e   :  { %v6066_v14 = vadd.f32 %v6065_v58, %v6064_v21  ;;  %v4536_v49 = vpop.permute.xlu1 %4535  ;;  %v10304_v8 = vpop.f32.mrb[31].mxu1  ;;  %v6174_v55 = vmul.f32 %v10302_v7, %v10302_v7  ;;  %v6266_v21 = vsel %vm27_vm0, %v6173_v60, 0.0  ;;  %v6071_v16 = vsel %vm27_vm0, %v10302_v7, 0.0 }
 0x64f   :  { %v6262_v24 = vsel %vm27_vm0, %v6171_v15, 0.0  ;;  %4600 = vst.msk [vmem:[#allocation3 + $0xf8] sm:$0xff] %vm1392_vm7, %v4536_v49  ;;  %v6067_v26 = vsel %vm27_vm0, %v10304_v8, 0.0  ;;  %v6172_v18 = vmul.f32 %v10304_v8, %v10304_v8  ;;  %v5046_v12 = vpop.permute.xlu0 %5045 }
 0x650   :  { %v6263_v22 = vadd.f32 %v6262_v24, %v6261_v30  ;;  %v6068_v41 = vadd.f32 %v6067_v26, %v6066_v14  ;;  %5111 = vst.msk [vmem:[#allocation3 + $0xf0] sm:$0xff] %vm1907_vm9, %v5046_v12  ;;  %v6268_v35 = vsel %vm27_vm0, %v6174_v55, 0.0 }
 0x651   :  { %v6264_v33 = vsel %vm27_vm0, %v6172_v18, 0.0 }
 0x652   :  { %v6070_v19 = vadd.f32 %v6069_v56, %v6068_v41  ;;  %v6265_v40 = vadd.f32 %v6264_v33, %v6263_v22  ;;  %v4792_v45 = vpop.permute.xlu1 %4791 }
 0x653   :  { %4856 = vst.msk [vmem:[#allocation3 + $0xf8] sm:$0xff] %vm1649_vm8, %v4792_v45  ;;  %v5302_v44 = vpop.permute.xlu0 %5301 }
 0x654   :  { %v6267_v30 = vadd.f32 %v6266_v21, %v6265_v40  ;;  %5367 = vst.msk [vmem:[#allocation3 + $0xf0] sm:$0xff] %vm2164_vm10, %v5302_v44  ;;  %v6072_v9 = vadd.f32 %v6071_v16, %v6070_v19 }
 0x656   :  { %v5048_v36 = vpop.permute.xlu1 %5047  ;;  %v6269_v39 = vadd.f32 %v6268_v35, %v6267_v30 }
 0x657   :  { %5112 = vst.msk [vmem:[#allocation3 + $0xf8] sm:$0xff] %vm1907_vm9, %v5048_v36  ;;  %v5558_v10 = vpop.permute.xlu0 %5557 }
 0x658   :  { %5623 = vst.msk [vmem:[#allocation3 + $0xf0] sm:$0xff] %vm2421_vm11, %v5558_v10 }
 0x65a   :  { %v5304_v53 = vpop.permute.xlu1 %5303 }
 0x65b   :  { %5368 = vst.msk [vmem:[#allocation3 + $0xf8] sm:$0xff] %vm2164_vm10, %v5304_v53 }
 0x65e   :  { %v5560_v43 = vpop.permute.xlu1 %5559 }
 0x65f   :  { %5624 = vst.msk [vmem:[#allocation3 + $0xf8] sm:$0xff] %vm2421_vm11, %v5560_v43  ;;  %v5655_v3 = vld [vmem:[#allocation3 + $0xf0] sm:$0xff] }
 0x660   :  { %7004 = vmatprep.mubr.bf16.mxu1 %v5655_v3 }
 0x666   :  { %v5656_v4 = vld [vmem:[#allocation3 + $0xf8] sm:$0xff] }
 0x667   :  { %v10330_v51 = vpop.f32.mrb[32].mxu1  ;;  %7005 = vmatmul.mubr.bf16.gmra.mrb[60].mxu1 %v5656_v4 }
 0x668   :  { %v10332_v42 = vpop.f32.mrb[33].mxu1  ;;  %v6177_v24 = vmul.f32 %v10330_v51, %v10330_v51  ;;  %v6077_v56 = vsel %vm27_vm0, %v10330_v51, 0.0 }
 0x669   :  { %v6073_v58 = vsel %vm27_vm0, %v10332_v42, 0.0  ;;  %v6175_v15 = vmul.f32 %v10332_v42, %v10332_v42  ;;  %v10338_v14 = vpop.f32.mrb[34].mxu1 }
 0x66a   :  { %v6074_v49 = vadd.f32 %v6073_v58, %v6072_v9  ;;  %v10340_v60 = vpop.f32.mrb[35].mxu1  ;;  %v6178_v55 = vmul.f32 %v10338_v14, %v10338_v14  ;;  %v6274_v45 = vsel %vm27_vm0, %v6177_v24, 0.0  ;;  %v6079_v21 = vsel %vm27_vm0, %v10338_v14, 0.0 }
 0x66b   :  { %v6270_v26 = vsel %vm27_vm0, %v6175_v15, 0.0  ;;  %v6075_v18 = vsel %vm27_vm0, %v10340_v60, 0.0  ;;  %v6176_v12 = vmul.f32 %v10340_v60, %v10340_v60 }
 0x66c   :  { %v6271_v22 = vadd.f32 %v6270_v26, %v6269_v39  ;;  %v6076_v41 = vadd.f32 %v6075_v18, %v6074_v49  ;;  %v6276_v30 = vsel %vm27_vm0, %v6178_v55, 0.0 }
 0x66d   :  { %v6272_v33 = vsel %vm27_vm0, %v6176_v12, 0.0 }
 0x66e   :  { %v6078_v19 = vadd.f32 %v6077_v56, %v6076_v41  ;;  %v6273_v40 = vadd.f32 %v6272_v33, %v6271_v22 }
 0x670   :  { %v6275_v16 = vadd.f32 %v6274_v45, %v6273_v40  ;;  %v6080_v44 = vadd.f32 %v6079_v21, %v6078_v19 }
 0x672   :  { %v6277_v9 = vadd.f32 %v6276_v30, %v6275_v16 }
 0x683   :  { %v10358_v35 = vpop.f32.mrb[36].mxu1 }
 0x684   :  { %v10360_v36 = vpop.f32.mrb[37].mxu1  ;;  %v6181_v4 = vmul.f32 %v10358_v35, %v10358_v35  ;;  %v6085_v18 = vsel %vm27_vm0, %v10358_v35, 0.0 }
 0x685   :  { %v6081_v39 = vsel %vm27_vm0, %v10360_v36, 0.0  ;;  %v6179_v10 = vmul.f32 %v10360_v36, %v10360_v36  ;;  %v10366_v53 = vpop.f32.mrb[38].mxu1 }
 0x686   :  { %v6082_v43 = vadd.f32 %v6081_v39, %v6080_v44  ;;  %v10368_v3 = vpop.f32.mrb[39].mxu1  ;;  %v6182_v12 = vmul.f32 %v10366_v53, %v10366_v53  ;;  %v6282_v55 = vsel %vm27_vm0, %v6181_v4, 0.0  ;;  %v6087_v33 = vsel %vm27_vm0, %v10366_v53, 0.0 }
 0x687   :  { %v6278_v58 = vsel %vm27_vm0, %v6179_v10, 0.0  ;;  %v6083_v15 = vsel %vm27_vm0, %v10368_v3, 0.0  ;;  %v6180_v49 = vmul.f32 %v10368_v3, %v10368_v3 }
 0x688   :  { %v6279_v24 = vadd.f32 %v6278_v58, %v6277_v9  ;;  %v6084_v26 = vadd.f32 %v6083_v15, %v6082_v43  ;;  %v6284_v45 = vsel %vm27_vm0, %v6182_v12, 0.0 }
 0x689   :  { %v6280_v22 = vsel %vm27_vm0, %v6180_v49, 0.0 }
 0x68a   :  { %v6086_v41 = vadd.f32 %v6085_v18, %v6084_v26  ;;  %v6281_v56 = vadd.f32 %v6280_v22, %v6279_v24 }
 0x68c   :  { %v6283_v19 = vadd.f32 %v6282_v55, %v6281_v56  ;;  %v6088_v40 = vadd.f32 %v6087_v33, %v6086_v41 }
 0x68e   :  { %v6285_v21 = vadd.f32 %v6284_v45, %v6283_v19 }
 0x69f   :  { %v10386_v16 = vpop.f32.mrb[40].mxu1 }
 0x6a0   :  { %11928 = vst [vmem:[#allocation17_spill] sm:$0xff] %v10386_v16  ;;  %v10388_v44 = vpop.f32.mrb[41].mxu1  ;;  %v6185_v4 = vmul.f32 %v10386_v16, %v10386_v16  ;;  %v6093_v18 = vsel %vm27_vm0, %v10386_v16, 0.0 }
 0x6a1   :  { %11929 = vst [vmem:[#allocation19_spill] sm:$0xff] %v10388_v44  ;;  %v6089_v30 = vsel %vm27_vm0, %v10388_v44, 0.0  ;;  %v6183_v9 = vmul.f32 %v10388_v44, %v10388_v44  ;;  %v10394_v39 = vpop.f32.mrb[42].mxu1 }
 0x6a2   :  { %11930 = vst [vmem:[#allocation22_spill] sm:$0xff] %v10394_v39  ;;  %v6090_v10 = vadd.f32 %v6089_v30, %v6088_v40  ;;  %v10396_v43 = vpop.f32.mrb[43].mxu1  ;;  %v6186_v12 = vmul.f32 %v10394_v39, %v10394_v39  ;;  %v6290_v55 = vsel %vm27_vm0, %v6185_v4, 0.0  ;;  %v6095_v33 = vsel %vm27_vm0, %v10394_v39, 0.0 }
 0x6a3   :  { %11931 = vst [vmem:[#allocation24_spill] sm:$0xff] %v10396_v43  ;;  %v6286_v58 = vsel %vm27_vm0, %v6183_v9, 0.0  ;;  %v6091_v15 = vsel %vm27_vm0, %v10396_v43, 0.0  ;;  %v6184_v49 = vmul.f32 %v10396_v43, %v10396_v43 }
 0x6a4   :  { %v6287_v24 = vadd.f32 %v6286_v58, %v6285_v21  ;;  %v6092_v26 = vadd.f32 %v6091_v15, %v6090_v10  ;;  %v6292_v45 = vsel %vm27_vm0, %v6186_v12, 0.0 }
 0x6a5   :  { %v6288_v22 = vsel %vm27_vm0, %v6184_v49, 0.0 }
 0x6a6   :  { %v6094_v41 = vadd.f32 %v6093_v18, %v6092_v26  ;;  %v6289_v56 = vadd.f32 %v6288_v22, %v6287_v24 }
 0x6a8   :  { %v6291_v19 = vadd.f32 %v6290_v55, %v6289_v56  ;;  %v6096_v40 = vadd.f32 %v6095_v33, %v6094_v41 }
 0x6aa   :  { %v6293_v21 = vadd.f32 %v6292_v45, %v6291_v19 }
 0x6bb   :  { %v10414_v30 = vpop.f32.mrb[44].mxu1 }
 0x6bc   :  { %11932 = vst [vmem:[#allocation21_spill] sm:$0xff] %v10414_v30  ;;  %v10416_v9 = vpop.f32.mrb[45].mxu1  ;;  %v6189_v24 = vmul.f32 %v10414_v30, %v10414_v30  ;;  %v6101_v56 = vsel %vm27_vm0, %v10414_v30, 0.0 }
 0x6bd   :  { %11933 = vst [vmem:[#allocation23_spill] sm:$0xff] %v10416_v9  ;;  %v6097_v10 = vsel %vm27_vm0, %v10416_v9, 0.0  ;;  %v6187_v58 = vmul.f32 %v10416_v9, %v10416_v9  ;;  %v10422_v15 = vpop.f32.mrb[46].mxu1 }
 0x6be   :  { %11934 = vst [vmem:[#allocation26_spill] sm:$0xff] %v10422_v15  ;;  %v6098_v4 = vadd.f32 %v6097_v10, %v6096_v40  ;;  %v10424_v49 = vpop.f32.mrb[47].mxu1  ;;  %v6190_v55 = vmul.f32 %v10422_v15, %v10422_v15  ;;  %v6298_v45 = vsel %vm27_vm0, %v6189_v24, 0.0  ;;  %v6103_v10 = vsel %vm27_vm0, %v10422_v15, 0.0 }
 0x6bf   :  { %11935 = vst [vmem:[#allocation25_spill] sm:$0xff] %v10424_v49  ;;  %v6294_v26 = vsel %vm27_vm0, %v6187_v58, 0.0  ;;  %v6099_v18 = vsel %vm27_vm0, %v10424_v49, 0.0  ;;  %v6188_v12 = vmul.f32 %v10424_v49, %v10424_v49 }
 0x6c0   :  { %v6295_v22 = vadd.f32 %v6294_v26, %v6293_v21  ;;  %v6100_v41 = vadd.f32 %v6099_v18, %v6098_v4  ;;  %v6300_v21 = vsel %vm27_vm0, %v6190_v55, 0.0 }
 0x6c1   :  { %v6296_v33 = vsel %vm27_vm0, %v6188_v12, 0.0 }
 0x6c2   :  { %v6102_v19 = vadd.f32 %v6101_v56, %v6100_v41  ;;  %v6297_v40 = vadd.f32 %v6296_v33, %v6295_v22 }
 0x6c4   :  { %v6299_v58 = vadd.f32 %v6298_v45, %v6297_v40  ;;  %v6104_v9 = vadd.f32 %v6103_v10, %v6102_v19 }
 0x6c6   :  { %v6301_v4 = vadd.f32 %v6300_v21, %v6299_v58 }
 0x6d7   :  { %v10442_v26 = vpop.f32.mrb[48].mxu1 }
 0x6d8   :  { %11936 = vst [vmem:[#allocation27_spill] sm:$0xff] %v10442_v26  ;;  %v10444_v18 = vpop.f32.mrb[49].mxu1  ;;  %v6193_v56 = vmul.f32 %v10442_v26, %v10442_v26  ;;  %v6109_v10 = vsel %vm27_vm0, %v10442_v26, 0.0 }
 0x6d9   :  { %11937 = vst [vmem:[#allocation4_spill] sm:$0xff] %v10444_v18  ;;  %v6105_v30 = vsel %vm27_vm0, %v10444_v18, 0.0  ;;  %v6191_v12 = vmul.f32 %v10444_v18, %v10444_v18  ;;  %v10450_v22 = vpop.f32.mrb[50].mxu1 }
 0x6da   :  { %11938 = vst [vmem:[#allocation6_spill] sm:$0xff] %v10450_v22  ;;  %v6106_v24 = vadd.f32 %v6105_v30, %v6104_v9  ;;  %v10452_v41 = vpop.f32.mrb[51].mxu1  ;;  %v6194_v30 = vmul.f32 %v10450_v22, %v10450_v22  ;;  %v6111_v18 = vsel %vm27_vm0, %v10450_v22, 0.0 }
 0x6db   :  { %11939 = vst [vmem:[#allocation8_spill] sm:$0xff] %v10452_v41  ;;  %v6302_v55 = vsel %vm27_vm0, %v6191_v12, 0.0  ;;  %v6107_v33 = vsel %vm27_vm0, %v10452_v41, 0.0  ;;  %v6192_v19 = vmul.f32 %v10452_v41, %v10452_v41  ;;  %v6306_v12 = vsel %vm27_vm0, %v6193_v56, 0.0 }
 0x6dc   :  { %v6303_v40 = vadd.f32 %v6302_v55, %v6301_v4  ;;  %v6108_v45 = vadd.f32 %v6107_v33, %v6106_v24  ;;  %v6308_v4 = vsel %vm27_vm0, %v6194_v30, 0.0 }
 0x6dd   :  { %v6304_v9 = vsel %vm27_vm0, %v6192_v19, 0.0 }
 0x6de   :  { %v6110_v58 = vadd.f32 %v6109_v10, %v6108_v45  ;;  %v6305_v21 = vadd.f32 %v6304_v9, %v6303_v40 }
 0x6e0   :  { %v6307_v15 = vadd.f32 %v6306_v12, %v6305_v21  ;;  %v6112_v49 = vadd.f32 %v6111_v18, %v6110_v58 }
 0x6e2   :  { %v6309_v24 = vadd.f32 %v6308_v4, %v6307_v15 }
 0x6f7   :  { %v10470_v55 = vpop.f32.mrb[52].mxu1 }
 0x6f8   :  { %11940 = vst [vmem:[#allocation5_spill] sm:$0xff] %v10470_v55  ;;  %v10472_v33 = vpop.f32.mrb[53].mxu1  ;;  %v6197_v18 = vmul.f32 %v10470_v55, %v10470_v55  ;;  %v6117_v21 = vsel %vm27_vm0, %v10470_v55, 0.0 }
 0x6f9   :  { %11941 = vst [vmem:[#allocation7_spill] sm:$0xff] %v10472_v33  ;;  %v6113_v26 = vsel %vm27_vm0, %v10472_v33, 0.0  ;;  %v6195_v19 = vmul.f32 %v10472_v33, %v10472_v33  ;;  %v10478_v40 = vpop.f32.mrb[54].mxu1 }
 0x6fa   :  { %11942 = vst [vmem:[#allocation10_spill] sm:$0xff] %v10478_v40  ;;  %v6114_v56 = vadd.f32 %v6113_v26, %v6112_v49  ;;  %v10480_v45 = vpop.f32.mrb[55].mxu1  ;;  %v6198_v49 = vmul.f32 %v10478_v40, %v10478_v40  ;;  %v6119_v33 = vsel %vm27_vm0, %v10478_v40, 0.0 }
 0x6fb   :  { %11943 = vst [vmem:[#allocation12_spill] sm:$0xff] %v10480_v45  ;;  %v6310_v15 = vsel %vm27_vm0, %v6195_v19, 0.0  ;;  %v6115_v10 = vsel %vm27_vm0, %v10480_v45, 0.0  ;;  %v6196_v30 = vmul.f32 %v10480_v45, %v10480_v45  ;;  %v6314_v19 = vsel %vm27_vm0, %v6197_v18, 0.0 }
 0x6fc   :  { %v6311_v9 = vadd.f32 %v6310_v15, %v6309_v24  ;;  %v6116_v58 = vadd.f32 %v6115_v10, %v6114_v56  ;;  %v6316_v24 = vsel %vm27_vm0, %v6198_v49, 0.0 }
 0x6fd   :  { %v6312_v26 = vsel %vm27_vm0, %v6196_v30, 0.0 }
 0x6fe   :  { %v6118_v12 = vadd.f32 %v6117_v21, %v6116_v58  ;;  %v6313_v4 = vadd.f32 %v6312_v26, %v6311_v9 }
 0x700   :  { %v6315_v22 = vadd.f32 %v6314_v19, %v6313_v4  ;;  %v6120_v41 = vadd.f32 %v6119_v33, %v6118_v12 }
 0x702   :  { %v6317_v56 = vadd.f32 %v6316_v24, %v6315_v22 }
 0x717   :  { %v10498_v15 = vpop.f32.mrb[56].mxu1 }
 0x718   :  { %11944 = vst [vmem:[#allocation9_spill] sm:$0xff] %v10498_v15  ;;  %v10500_v10 = vpop.f32.mrb[57].mxu1  ;;  %v6201_v33 = vmul.f32 %v10498_v15, %v10498_v15  ;;  %v6125_v4 = vsel %vm27_vm0, %v10498_v15, 0.0 }
 0x719   :  { %11945 = vst [vmem:[#allocation11_spill] sm:$0xff] %v10500_v10  ;;  %v6121_v55 = vsel %vm27_vm0, %v10500_v10, 0.0  ;;  %v6199_v30 = vmul.f32 %v10500_v10, %v10500_v10  ;;  %v10506_v9 = vpop.f32.mrb[58].mxu1 }
 0x71a   :  { %11946 = vst [vmem:[#allocation14_spill] sm:$0xff] %v10506_v9  ;;  %v6122_v18 = vadd.f32 %v6121_v55, %v6120_v41  ;;  %v10508_v58 = vpop.f32.mrb[59].mxu1  ;;  %v6202_v41 = vmul.f32 %v10506_v9, %v10506_v9  ;;  %v6127_v10 = vsel %vm27_vm0, %v10506_v9, 0.0 }
 0x71b   :  { %11947 = vst [vmem:[#allocation16_spill] sm:$0xff] %v10508_v58  ;;  %v6318_v22 = vsel %vm27_vm0, %v6199_v30, 0.0  ;;  %v6123_v21 = vsel %vm27_vm0, %v10508_v58, 0.0  ;;  %v6200_v49 = vmul.f32 %v10508_v58, %v10508_v58  ;;  %v6322_v30 = vsel %vm27_vm0, %v6201_v33, 0.0 }
 0x71c   :  { %v6319_v26 = vadd.f32 %v6318_v22, %v6317_v56  ;;  %v6124_v12 = vadd.f32 %v6123_v21, %v6122_v18  ;;  %v6324_v56 = vsel %vm27_vm0, %v6202_v41, 0.0 }
 0x71d   :  { %v6320_v55 = vsel %vm27_vm0, %v6200_v49, 0.0 }
 0x71e   :  { %v6126_v19 = vadd.f32 %v6125_v4, %v6124_v12  ;;  %v6321_v24 = vadd.f32 %v6320_v55, %v6319_v26 }
 0x720   :  { %v6323_v40 = vadd.f32 %v6322_v30, %v6321_v24  ;;  %v6128_v45 = vadd.f32 %v6127_v10, %v6126_v19 }
 0x722   :  { %v6325_v18 = vadd.f32 %v6324_v56, %v6323_v40 }
 0x73a   :  { %v10526_v22 = vpop.f32.mrb[60].mxu1 }
 0x73b   :  { %11948 = vst [vmem:[#allocation13_spill] sm:$0xff] %v10526_v22  ;;  %v10528_v21 = vpop.f32.mrb[61].mxu1  ;;  %v6205_v10 = vmul.f32 %v10526_v22, %v10526_v22  ;;  %v6133_v24 = vsel %vm27_vm0, %v10526_v22, 0.0 }
 0x73c   :  { %11949 = vst [vmem:[#allocation15_spill] sm:$0xff] %v10528_v21  ;;  %v6129_v15 = vsel %vm27_vm0, %v10528_v21, 0.0  ;;  %v6203_v49 = vmul.f32 %v10528_v21, %v10528_v21  ;;  %v10534_v26 = vpop.f32.mrb[62].mxu1 }
 0x73d   :  { %11950 = vst [vmem:[#allocation18_spill] sm:$0xff] %v10534_v26  ;;  %v6130_v33 = vadd.f32 %v6129_v15, %v6128_v45  ;;  %v10536_v12 = vpop.f32.mrb[63].mxu1  ;;  %v6206_v45 = vmul.f32 %v10534_v26, %v10534_v26  ;;  %v6135_v21 = vsel %vm27_vm0, %v10534_v26, 0.0 }
 0x73e   :  { %11951 = vst [vmem:[#allocation20_spill] sm:$0xff] %v10536_v12  ;;  %v6326_v40 = vsel %vm27_vm0, %v6203_v49, 0.0  ;;  %v6131_v4 = vsel %vm27_vm0, %v10536_v12, 0.0  ;;  %v6204_v41 = vmul.f32 %v10536_v12, %v10536_v12  ;;  %v6330_v49 = vsel %vm27_vm0, %v6205_v10, 0.0 }
 0x73f   :  { %v6327_v55 = vadd.f32 %v6326_v40, %v6325_v18  ;;  %v6132_v19 = vadd.f32 %v6131_v4, %v6130_v33  ;;  %v6332_v18 = vsel %vm27_vm0, %v6206_v45, 0.0 }
 0x740   :  { %v6328_v15 = vsel %vm27_vm0, %v6204_v41, 0.0 }
 0x741   :  { %v6134_v30 = vadd.f32 %v6133_v24, %v6132_v19  ;;  %v6329_v56 = vadd.f32 %v6328_v15, %v6327_v55 }
 0x743   :  { %v6136_v9 = vadd.f32 %v6135_v21, %v6134_v30  ;;  %v6331_v58 = vadd.f32 %v6330_v49, %v6329_v56 }
 0x745   :  { %v6137_v33 = vrot.slane %v6136_v9, 4  ;;  %v6333_v40 = vadd.f32 %v6332_v18, %v6331_v58 }
 0x747   :  { %v6138_v4 = vadd.f32 %v6137_v33, %v6136_v9  ;;  %v6334_v22 = vrot.slane %v6333_v40, 4  ;;  %v6345_v9 = vld [vmem:[%s11796_s5] sm:$0x1] }
 0x749   :  { %v6139_v12 = vrot.slane %v6138_v4, 2  ;;  %v6335_v39 = vadd.f32 %v6334_v22, %v6333_v40  ;;  %v11953_v40 = vld [vmem:[#allocation19_spill] sm:$0xff] }
 0x74b   :  { %v6140_v16 = vadd.f32 %v6139_v12, %v6138_v4  ;;  %v6336_v43 = vrot.slane %v6335_v39, 2  ;;  %v11954_v4 = vld [vmem:[#allocation24_spill] sm:$0xff] }
 0x74d   :  { %v6141_v41 = vrot.slane %v6140_v16, 1  ;;  %v6337_v19 = vadd.f32 %v6336_v43, %v6335_v39  ;;  %v10560_v39 = vld [vmem:[%s11797_s6] sm:$0x1] }
 0x74e   :  { %v11952_v43 = vld [vmem:[#allocation28_spill] sm:$0xff] }
 0x74f   :  { %v6142_v55 = vadd.f32 %v6141_v41, %v6140_v16  ;;  %v6338_v24 = vrot.slane %v6337_v19, 1  ;;  %v11955_v41 = vld [vmem:[#allocation17_spill] sm:$0xff] }
 0x751   :  { %v6339_v10 = vadd.f32 %v6338_v24, %v6337_v19  ;;  %v6340_v15 = vmul.f32 0.001953125, %v6142_v55  ;;  %v11956_v19 = vld [vmem:[#allocation22_spill] sm:$0xff]  ;;  %v11957_v55 = vld [vmem:[#allocation23_spill] sm:$0xff]  ;;  %v11958_v24 = vld [vmem:[#allocation25_spill] sm:$0xff] }
 0x753   :  { %v6341_v44 = vmul.f32 0.001953125, %v6339_v10  ;;  %v6342_v26 = vmul.f32 %v6340_v15, %v6340_v15 }
 0x755   :  { %v6343_v21 = vsub.f32 %v6341_v44, %v6342_v26  ;;  %v11972_v44 = vld [vmem:[#allocation5_spill] sm:$0xff] }
 0x757   :  { %v6344_v30 = vmax.f32 %v6343_v21, 0.0 }
 0x759   :  { %v6346_v56 = vadd.f32 1e-05, %v6344_v30  ;;  %v11960_v30 = vld [vmem:[#allocation26_spill] sm:$0xff] }
 0x75b   :  { %7036 = vrsqrt.f32 %v6346_v56 }
 0x765   :  { %v7037_v58 = vpop.eup %7036 }
 0x766   :  { %v6348_v22 = vmul.f32 %v7037_v58, %v6345_v9  ;;  %v11961_v9 = vld [vmem:[#allocation4_spill] sm:$0xff] }
 0x768   :  { %v10562_v16 = vmul.f32 %v6348_v22, %v6340_v15  ;;  %v10565_v12 = vrot.slane %v6348_v22, %v11952_v43  ;;  %v11959_v15 = vld [vmem:[#allocation21_spill] sm:$0xff]  ;;  %v11962_v22 = vld [vmem:[#allocation8_spill] sm:$0xff] }
 0x76a   :  { %v10571_v26 = vmul.f32 %v10565_v12, %v9943_v61  ;;  %v10575_v45 = vmul.f32 %v10565_v12, %v9951_v34  ;;  %v10579_v49 = vmul.f32 %v9940_v54, %v10565_v12  ;;  %v10583_v18 = vmul.f32 %v9948_v29, %v10565_v12 }
 0x76b   :  { %v10587_v33 = vmul.f32 %v10565_v12, %v10003_v17  ;;  %v10591_v61 = vmul.f32 %v10565_v12, %v10013_v11  ;;  %v10595_v34 = vmul.f32 %v9999_v6, %v10565_v12  ;;  %v10599_v54 = vmul.f32 %v10010_v38, %v10565_v12 }
 0x76c   :  { %v10603_v29 = vmul.f32 %v10565_v12, %v10062_v13  ;;  %v10607_v17 = vmul.f32 %v10565_v12, %v10072_v1  ;;  %v10611_v11 = vmul.f32 %v10059_v5, %v10565_v12  ;;  %v10615_v6 = vmul.f32 %v10069_v28, %v10565_v12 }
 0x76d   :  { %v10619_v38 = vmul.f32 %v10565_v12, %v10120_v47  ;;  %v10623_v13 = vmul.f32 %v10565_v12, %v10130_v52  ;;  %v10627_v1 = vmul.f32 %v10117_v31, %v10565_v12  ;;  %v10631_v5 = vmul.f32 %v10127_v50, %v10565_v12 }
 0x76e   :  { %v10635_v28 = vmul.f32 %v10565_v12, %v10169_v32  ;;  %v10639_v47 = vmul.f32 %v10565_v12, %v10178_v37  ;;  %v10643_v52 = vmul.f32 %v10167_v48, %v10565_v12  ;;  %v10647_v31 = vmul.f32 %v10176_v0, %v10565_v12 }
 0x76f   :  { %v10651_v50 = vmul.f32 %v10565_v12, %v10211_v59  ;;  %v10655_v32 = vmul.f32 %v10565_v12, %v10220_v27  ;;  %v10659_v37 = vmul.f32 %v10209_v46, %v10565_v12  ;;  %v10663_v48 = vmul.f32 %v10218_v62, %v10565_v12 }
 0x770   :  { %v10667_v0 = vmul.f32 %v10565_v12, %v10253_v2  ;;  %v10671_v59 = vmul.f32 %v10565_v12, %v10262_v20  ;;  %v10675_v27 = vmul.f32 %v10251_v25, %v10565_v12  ;;  %v10679_v46 = vmul.f32 %v10260_v57, %v10565_v12 }
 0x771   :  { %v10683_v62 = vmul.f32 %v10565_v12, %v10295_v23  ;;  %v10687_v2 = vmul.f32 %v10565_v12, %v10304_v8  ;;  %v10691_v20 = vmul.f32 %v10293_v63, %v10565_v12  ;;  %v10695_v25 = vmul.f32 %v10302_v7, %v10565_v12 }
 0x772   :  { %v10699_v57 = vmul.f32 %v10565_v12, %v10332_v42  ;;  %v10703_v23 = vmul.f32 %v10565_v12, %v10340_v60  ;;  %v10707_v8 = vmul.f32 %v10330_v51, %v10565_v12  ;;  %v10711_v63 = vmul.f32 %v10338_v14, %v10565_v12 }
 0x773   :  { %v10715_v7 = vmul.f32 %v10565_v12, %v10360_v36  ;;  %v10719_v42 = vmul.f32 %v10565_v12, %v10368_v3  ;;  %v10723_v60 = vmul.f32 %v10358_v35, %v10565_v12  ;;  %v10727_v51 = vmul.f32 %v10366_v53, %v10565_v12 }
 0x774   :  { %v10731_v14 = vmul.f32 %v10565_v12, %v11953_v40  ;;  %v10735_v36 = vmul.f32 %v10565_v12, %v11954_v4  ;;  %v10739_v3 = vmul.f32 %v11955_v41, %v10565_v12  ;;  %v10743_v35 = vmul.f32 %v11956_v19, %v10565_v12  ;;  %v11964_v4 = vld [vmem:[#allocation27_spill] sm:$0xff]  ;;  %v11966_v19 = vld [vmem:[#allocation6_spill] sm:$0xff] }
 0x775   :  { %v10747_v53 = vmul.f32 %v10565_v12, %v11957_v55  ;;  %v10751_v10 = vmul.f32 %v10565_v12, %v11958_v24  ;;  %v10755_v21 = vmul.f32 %v11959_v15, %v10565_v12  ;;  %v10759_v56 = vmul.f32 %v11960_v30, %v10565_v12  ;;  %v11968_v24 = vld [vmem:[#allocation7_spill] sm:$0xff]  ;;  %v11970_v30 = vld [vmem:[#allocation12_spill] sm:$0xff] }
 0x776   :  { %v10763_v58 = vmul.f32 %v10565_v12, %v11961_v9  ;;  %v10767_v40 = vmul.f32 %v10565_v12, %v11962_v22  ;;  %v10771_v41 = vmul.f32 %v11964_v4, %v10565_v12  ;;  %v10775_v55 = vmul.f32 %v11966_v19, %v10565_v12 }
 0x777   :  { %v10779_v15 = vmul.f32 %v10565_v12, %v11968_v24  ;;  %v10783_v9 = vmul.f32 %v10565_v12, %v11970_v30  ;;  %v10787_v22 = vmul.f32 %v11972_v44, %v10565_v12 }
 0x778   :  { %11963 = vst [vmem:[#allocation28_spill] sm:$0xff] %v10767_v40  ;;  %11965 = vst [vmem:[#allocation19_spill] sm:$0xff] %v10771_v41  ;;  %v11974_v40 = vld [vmem:[#allocation10_spill] sm:$0xff]  ;;  %v11976_v41 = vld [vmem:[#allocation11_spill] sm:$0xff] }
 0x779   :  { %11967 = vst [vmem:[#allocation24_spill] sm:$0xff] %v10775_v55  ;;  %11969 = vst [vmem:[#allocation17_spill] sm:$0xff] %v10779_v15  ;;  %v10791_v4 = vmul.f32 %v11974_v40, %v10565_v12  ;;  %v10795_v19 = vmul.f32 %v10565_v12, %v11976_v41  ;;  %v11978_v55 = vld [vmem:[#allocation16_spill] sm:$0xff]  ;;  %v11980_v15 = vld [vmem:[#allocation9_spill] sm:$0xff] }
 0x77a   :  { %11971 = vst [vmem:[#allocation22_spill] sm:$0xff] %v10783_v9  ;;  %11973 = vst [vmem:[#allocation23_spill] sm:$0xff] %v10787_v22  ;;  %v10799_v24 = vmul.f32 %v10565_v12, %v11978_v55  ;;  %v10803_v30 = vmul.f32 %v11980_v15, %v10565_v12  ;;  %v11981_v9 = vld [vmem:[#allocation14_spill] sm:$0xff]  ;;  %v11983_v22 = vld [vmem:[#allocation15_spill] sm:$0xff] }
 0x77b   :  { %11975 = vst [vmem:[#allocation25_spill] sm:$0xff] %v10791_v4  ;;  %11977 = vst [vmem:[#allocation21_spill] sm:$0xff] %v10795_v19  ;;  %v10807_v44 = vmul.f32 %v11981_v9, %v10565_v12  ;;  %v10811_v40 = vmul.f32 %v10565_v12, %v11983_v22  ;;  %v11984_v4 = vld [vmem:[#allocation20_spill] sm:$0xff]  ;;  %v11985_v19 = vld [vmem:[#allocation13_spill] sm:$0xff]  ;;  %v11987_v9 = vsub.f32 %v10560_v39, %v10562_v16 }
 0x77c   :  { %11979 = vst [vmem:[#allocation26_spill] sm:$0xff] %v10799_v24  ;;  %v10815_v41 = vmul.f32 %v10565_v12, %v11984_v4  ;;  %v10819_v55 = vmul.f32 %v11985_v19, %v10565_v12  ;;  %v11986_v24 = vld [vmem:[#allocation18_spill] sm:$0xff] }
 0x77d   :  { %11982 = vst [vmem:[#allocation4_spill] sm:$0xff] %v10807_v44  ;;  %v10823_v15 = vmul.f32 %v11986_v24, %v10565_v12  ;;  %v10829_v44 = vrot.slane %v11987_v9, %v11952_v43  ;;  %v6356_v9 = vld [vmem:[%s11791_s0 + $0x20] sm:$0xff] }
 0x77f   :  { %v10833_v22 = vadd.f32 %v10829_v44, %v10571_v26  ;;  %v10837_v4 = vadd.f32 %v10829_v44, %v10575_v45  ;;  %v10841_v19 = vadd.f32 %v10829_v44, %v10579_v49  ;;  %v10845_v12 = vadd.f32 %v10829_v44, %v10583_v18 }
 0x780   :  { %v10849_v39 = vadd.f32 %v10829_v44, %v10587_v33  ;;  %v10853_v16 = vadd.f32 %v10829_v44, %v10591_v61  ;;  %v10857_v43 = vadd.f32 %v10829_v44, %v10595_v34  ;;  %v10861_v26 = vadd.f32 %v10829_v44, %v10599_v54 }
 0x781   :  { %v10865_v45 = vadd.f32 %v10829_v44, %v10603_v29  ;;  %v10869_v49 = vadd.f32 %v10829_v44, %v10607_v17  ;;  %v10873_v18 = vadd.f32 %v10829_v44, %v10611_v11  ;;  %v10877_v33 = vadd.f32 %v10829_v44, %v10615_v6 }
 0x782   :  { %v10881_v61 = vadd.f32 %v10829_v44, %v10619_v38  ;;  %v10885_v34 = vadd.f32 %v10829_v44, %v10623_v13  ;;  %v10889_v54 = vadd.f32 %v10829_v44, %v10627_v1  ;;  %v10893_v29 = vadd.f32 %v10829_v44, %v10631_v5 }
 0x783   :  { %v10897_v17 = vadd.f32 %v10829_v44, %v10635_v28  ;;  %v10901_v11 = vadd.f32 %v10829_v44, %v10639_v47  ;;  %v10905_v6 = vadd.f32 %v10829_v44, %v10643_v52  ;;  %v10909_v38 = vadd.f32 %v10829_v44, %v10647_v31 }
 0x784   :  { %v10913_v13 = vadd.f32 %v10829_v44, %v10651_v50  ;;  %v10917_v1 = vadd.f32 %v10829_v44, %v10655_v32  ;;  %v10921_v5 = vadd.f32 %v10829_v44, %v10659_v37  ;;  %v10925_v28 = vadd.f32 %v10829_v44, %v10663_v48 }
 0x785   :  { %v10929_v47 = vadd.f32 %v10829_v44, %v10667_v0  ;;  %v10933_v52 = vadd.f32 %v10829_v44, %v10671_v59  ;;  %v10937_v31 = vadd.f32 %v10829_v44, %v10675_v27  ;;  %v10941_v50 = vadd.f32 %v10829_v44, %v10679_v46 }
 0x786   :  { %v10945_v32 = vadd.f32 %v10829_v44, %v10683_v62  ;;  %v10949_v37 = vadd.f32 %v10829_v44, %v10687_v2  ;;  %v10953_v48 = vadd.f32 %v10829_v44, %v10691_v20  ;;  %v10957_v0 = vadd.f32 %v10829_v44, %v10695_v25 }
 0x787   :  { %v10961_v59 = vadd.f32 %v10829_v44, %v10699_v57  ;;  %v10965_v27 = vadd.f32 %v10829_v44, %v10703_v23  ;;  %v10969_v46 = vadd.f32 %v10829_v44, %v10707_v8  ;;  %v10973_v62 = vadd.f32 %v10829_v44, %v10711_v63 }
 0x788   :  { %v10977_v2 = vadd.f32 %v10829_v44, %v10715_v7  ;;  %v10981_v20 = vadd.f32 %v10829_v44, %v10719_v42  ;;  %v10985_v25 = vadd.f32 %v10829_v44, %v10723_v60  ;;  %v10989_v57 = vadd.f32 %v10829_v44, %v10727_v51  ;;  %v6352_v42 = vld [vmem:[%s11791_s0] sm:$0xff]  ;;  %v6353_v60 = vld [vmem:[%s11791_s0 + $0x8] sm:$0xff]  ;;  %v6354_v51 = vld [vmem:[%s11791_s0 + $0x10] sm:$0xff] }
 0x789   :  { %11988 = vst [vmem:[#allocation8_spill] sm:$0xff] %v10969_v46  ;;  %11989 = vst [vmem:[#allocation27_spill] sm:$0xff] %v10973_v62  ;;  %v10993_v23 = vadd.f32 %v10829_v44, %v10731_v14  ;;  %v10997_v8 = vadd.f32 %v10829_v44, %v10735_v36  ;;  %v11001_v63 = vadd.f32 %v10829_v44, %v10739_v3  ;;  %v6355_v14 = vld [vmem:[%s11791_s0 + $0x18] sm:$0xff]  ;;  %v6368_v46 = vld [vmem:[%s11791_s0 + $0x80] sm:$0xff] }
 0x78a   :  { %11990 = vst [vmem:[#allocation6_spill] sm:$0xff] %v10977_v2  ;;  %11991 = vst [vmem:[#allocation7_spill] sm:$0xff] %v10981_v20  ;;  %v11005_v7 = vadd.f32 %v10829_v44, %v10743_v35  ;;  %v11021_v36 = vadd.f32 %v10829_v44, %v10747_v53  ;;  %v11025_v3 = vadd.f32 %v10829_v44, %v10751_v10  ;;  %v6357_v53 = vld [vmem:[%s11791_s0 + $0x28] sm:$0xff]  ;;  %v6358_v10 = vld [vmem:[%s11791_s0 + $0x30] sm:$0xff] }
 0x78b   :  { %11992 = vst [vmem:[#allocation12_spill] sm:$0xff] %v10985_v25  ;;  %11993 = vst [vmem:[#allocation5_spill] sm:$0xff] %v10989_v57  ;;  %v11029_v35 = vadd.f32 %v10829_v44, %v10755_v21  ;;  %v11033_v24 = vadd.f32 %v10829_v44, %v10759_v56  ;;  %v6359_v21 = vld [vmem:[%s11791_s0 + $0x38] sm:$0xff]  ;;  %v11049_v56 = vadd.f32 %v10829_v44, %v10763_v58  ;;  %v6361_v58 = vld [vmem:[%s11791_s0 + $0x48] sm:$0xff] }
 0x78c   :  { %11994 = vst [vmem:[#allocation10_spill] sm:$0xff] %v10993_v23  ;;  %11995 = vst [vmem:[#allocation11_spill] sm:$0xff] %v10997_v8  ;;  %v6360_v8 = vld [vmem:[%s11791_s0 + $0x40] sm:$0xff]  ;;  %v12015_v57 = vld [vmem:[#allocation25_spill] sm:$0xff] }
 0x78d   :  { %11996 = vst [vmem:[#allocation16_spill] sm:$0xff] %v11001_v63  ;;  %11997 = vst [vmem:[#allocation9_spill] sm:$0xff] %v11005_v7  ;;  %v12007_v7 = vld [vmem:[#allocation24_spill] sm:$0xff]  ;;  %v11089_v25 = vadd.f32 %v10829_v44, %v12015_v57 }
 0x78e   :  { %11998 = vst [vmem:[#allocation14_spill] sm:$0xff] %v11021_v36  ;;  %11999 = vst [vmem:[#allocation15_spill] sm:$0xff] %v11025_v3  ;;  %v12005_v3 = vld [vmem:[#allocation19_spill] sm:$0xff]  ;;  %v11061_v63 = vadd.f32 %v10829_v44, %v12007_v7  ;;  %v6364_v20 = vld [vmem:[%s11791_s0 + $0x60] sm:$0xff] }
 0x78f   :  { %12000 = vst [vmem:[#allocation20_spill] sm:$0xff] %v11029_v35  ;;  %12001 = vst [vmem:[#allocation13_spill] sm:$0xff] %v11033_v24  ;;  %v12003_v24 = vld [vmem:[#allocation28_spill] sm:$0xff]  ;;  %v11057_v36 = vadd.f32 %v10829_v44, %v12005_v3  ;;  %v6363_v3 = vld [vmem:[%s11791_s0 + $0x58] sm:$0xff] }
 0x790   :  { %12002 = vst [vmem:[#allocation18_spill] sm:$0xff] %v11049_v56  ;;  %v11053_v35 = vadd.f32 %v10829_v44, %v12003_v24  ;;  %12008 = vst [vmem:[#allocation24_spill] sm:$0xff] %v11061_v63  ;;  %v6362_v24 = vld [vmem:[%s11791_s0 + $0x50] sm:$0xff]  ;;  %v12013_v56 = vld [vmem:[#allocation23_spill] sm:$0xff] }
 0x791   :  { %12006 = vst [vmem:[#allocation19_spill] sm:$0xff] %v11057_v36  ;;  %v12009_v36 = vld [vmem:[#allocation17_spill] sm:$0xff]  ;;  %v12011_v63 = vld [vmem:[#allocation22_spill] sm:$0xff]  ;;  %v11085_v23 = vadd.f32 %v10829_v44, %v12013_v56  ;;  %12016 = vst [vmem:[#allocation25_spill] sm:$0xff] %v11089_v25 }
 0x792   :  { %12004 = vst [vmem:[#allocation28_spill] sm:$0xff] %v11053_v35  ;;  %v11077_v7 = vadd.f32 %v10829_v44, %v12009_v36  ;;  %v11081_v35 = vadd.f32 %v10829_v44, %v12011_v63  ;;  %v6365_v36 = vld [vmem:[%s11791_s0 + $0x68] sm:$0xff]  ;;  %v6366_v63 = vld [vmem:[%s11791_s0 + $0x70] sm:$0xff]  ;;  %v6367_v56 = vld [vmem:[%s11791_s0 + $0x78] sm:$0xff] }
 0x793   :  { %12014 = vst [vmem:[#allocation23_spill] sm:$0xff] %v11085_v23  ;;  %v12017_v23 = vld [vmem:[#allocation21_spill] sm:$0xff]  ;;  %v12019_v25 = vld [vmem:[#allocation26_spill] sm:$0xff]  ;;  %v12022_v2 = vld [vmem:[#allocation4_spill] sm:$0xff] }
 0x794   :  { %12010 = vst [vmem:[#allocation17_spill] sm:$0xff] %v11077_v7  ;;  %12012 = vst [vmem:[#allocation22_spill] sm:$0xff] %v11081_v35  ;;  %v11105_v57 = vadd.f32 %v10829_v44, %v12017_v23  ;;  %v11109_v35 = vadd.f32 %v10829_v44, %v12019_v25  ;;  %v11113_v7 = vadd.f32 %v10829_v44, %v10803_v30  ;;  %v6369_v23 = vld [vmem:[%s11791_s0 + $0x88] sm:$0xff]  ;;  %v6370_v25 = vld [vmem:[%s11791_s0 + $0x90] sm:$0xff] }
 0x795   :  { %v11117_v62 = vadd.f32 %v10829_v44, %v12022_v2  ;;  %v6371_v30 = vld [vmem:[%s11791_s0 + $0x98] sm:$0xff]  ;;  %v11133_v2 = vadd.f32 %v10829_v44, %v10811_v40  ;;  %v6373_v40 = vld [vmem:[%s11791_s0 + $0xa8] sm:$0xff] }
 0x796   :  { %12018 = vst [vmem:[#allocation21_spill] sm:$0xff] %v11105_v57  ;;  %12020 = vst [vmem:[#allocation26_spill] sm:$0xff] %v11109_v35  ;;  %v11145_v35 = vadd.f32 %v10829_v44, %v10823_v15  ;;  %v6372_v57 = vld [vmem:[%s11791_s0 + $0xa0] sm:$0xff]  ;;  %v11166_v15 = vadd.f32 %v10841_v19, %v6354_v51  ;;  %v11184_v19 = vadd.f32 %v10849_v39, %v6356_v9  ;;  %v6382_v39 = vld [vmem:[%s11791_s0 + $0xf0] sm:$0xff] }
 0x797   :  { %12021 = vst [vmem:[#allocation29_spill] sm:$0xff] %v11113_v7  ;;  %12023 = vst [vmem:[#allocation4_spill] sm:$0xff] %v11117_v62  ;;  %v11137_v62 = vadd.f32 %v10829_v44, %v10815_v41  ;;  %v11141_v7 = vadd.f32 %v10829_v44, %v10819_v55  ;;  %v6374_v41 = vld [vmem:[%s11791_s0 + $0xb0] sm:$0xff]  ;;  %v6375_v55 = vld [vmem:[%s11791_s0 + $0xb8] sm:$0xff]  ;;  %v11163_v44 = vadd.f32 %v10837_v4, %v6353_v60 }
 0x798   :  { %12024 = vst [vmem:[#allocation30_spill] sm:$0xff] %v11133_v2  ;;  %12027 = vst [vmem:[#allocation33_spill] sm:$0xff] %v11145_v35  ;;  %v11169_v35 = vadd.f32 %v10845_v12, %v6355_v14  ;;  %v6377_v2 = vld [vmem:[%s11791_s0 + $0xc8] sm:$0xff]  ;;  %v6379_v4 = vld [vmem:[%s11791_s0 + $0xd8] sm:$0xff]  ;;  %v11187_v12 = vadd.f32 %v10853_v16, %v6357_v53  ;;  %v11193_v60 = vadd.f32 %v10861_v26, %v6359_v21 }
 0x799   :  { %12025 = vst [vmem:[#allocation31_spill] sm:$0xff] %v11137_v62  ;;  %12026 = vst [vmem:[#allocation32_spill] sm:$0xff] %v11141_v7  ;;  %v11160_v7 = vadd.f32 %v10833_v22, %v6352_v42  ;;  %v6376_v62 = vld [vmem:[%s11791_s0 + $0xc0] sm:$0xff]  ;;  %v6378_v22 = vld [vmem:[%s11791_s0 + $0xd0] sm:$0xff]  ;;  %v11190_v42 = vadd.f32 %v10857_v43, %v6358_v10  ;;  %v11208_v43 = vadd.f32 %v10865_v45, %v6360_v8 }
 0x79a   :  { %v6380_v51 = vld [vmem:[%s11791_s0 + $0xe0] sm:$0xff]  ;;  %v6381_v14 = vld [vmem:[%s11791_s0 + $0xe8] sm:$0xff]  ;;  %v6383_v16 = vld [vmem:[%s11791_s0 + $0xf8] sm:$0xff]  ;;  %v11211_v26 = vadd.f32 %v10869_v49, %v6361_v58  ;;  %v11214_v9 = vadd.f32 %v10873_v18, %v6362_v24  ;;  %v11217_v53 = vadd.f32 %v10877_v33, %v6363_v3  ;;  %v11232_v18 = vadd.f32 %v10881_v61, %v6364_v20 }
 0x79b   :  { %v6384_v10 = vld [vmem:[%s11791_s0 + $0x100] sm:$0xff]  ;;  %v6385_v21 = vld [vmem:[%s11791_s0 + $0x108] sm:$0xff]  ;;  %v6386_v45 = vld [vmem:[%s11791_s0 + $0x110] sm:$0xff]  ;;  %v11235_v33 = vadd.f32 %v10885_v34, %v6365_v36  ;;  %v11238_v8 = vadd.f32 %v10889_v54, %v6366_v63  ;;  %v11241_v58 = vadd.f32 %v10893_v29, %v6367_v56  ;;  %v11256_v54 = vadd.f32 %v10897_v17, %v6368_v46 }
 0x79c   :  { %v6387_v49 = vld [vmem:[%s11791_s0 + $0x118] sm:$0xff]  ;;  %v6388_v24 = vld [vmem:[%s11791_s0 + $0x120] sm:$0xff]  ;;  %v6389_v3 = vld [vmem:[%s11791_s0 + $0x128] sm:$0xff]  ;;  %v11259_v29 = vadd.f32 %v10901_v11, %v6369_v23  ;;  %v11262_v20 = vadd.f32 %v10905_v6, %v6370_v25  ;;  %v11265_v36 = vadd.f32 %v10909_v38, %v6371_v30  ;;  %v11277_v11 = vadd.f32 %v10913_v13, %v6372_v57 }
 0x79d   :  { %v6390_v61 = vld [vmem:[%s11791_s0 + $0x130] sm:$0xff]  ;;  %v6391_v34 = vld [vmem:[%s11791_s0 + $0x138] sm:$0xff]  ;;  %v6392_v63 = vld [vmem:[%s11791_s0 + $0x140] sm:$0xff]  ;;  %v11280_v6 = vadd.f32 %v10917_v1, %v6373_v40  ;;  %v11283_v38 = vadd.f32 %v10921_v5, %v6374_v41  ;;  %v11286_v46 = vadd.f32 %v10925_v28, %v6375_v55  ;;  %v11298_v1 = vadd.f32 %v10929_v47, %v6376_v62 }
 0x79e   :  { %v6393_v56 = vld [vmem:[%s11791_s0 + $0x148] sm:$0xff]  ;;  %v6394_v17 = vld [vmem:[%s11791_s0 + $0x150] sm:$0xff]  ;;  %v6395_v23 = vld [vmem:[%s11791_s0 + $0x158] sm:$0xff]  ;;  %v11301_v5 = vadd.f32 %v10933_v52, %v6377_v2  ;;  %v11304_v28 = vadd.f32 %v10937_v31, %v6378_v22  ;;  %v11307_v57 = vadd.f32 %v10941_v50, %v6379_v4  ;;  %v11319_v52 = vadd.f32 %v10945_v32, %v6380_v51 }
 0x79f   :  { %v6396_v25 = vld [vmem:[%s11791_s0 + $0x160] sm:$0xff]  ;;  %v6397_v13 = vld [vmem:[%s11791_s0 + $0x168] sm:$0xff]  ;;  %v6398_v30 = vld [vmem:[%s11791_s0 + $0x170] sm:$0xff]  ;;  %v11322_v31 = vadd.f32 %v10949_v37, %v6381_v14  ;;  %v11325_v50 = vadd.f32 %v10953_v48, %v6382_v39  ;;  %v11328_v62 = vadd.f32 %v10957_v0, %v6383_v16  ;;  %v11340_v37 = vadd.f32 %v10961_v59, %v6384_v10 }
 0x7a0   :  { %v6399_v40 = vld [vmem:[%s11791_s0 + $0x178] sm:$0xff]  ;;  %v6400_v47 = vld [vmem:[%s11791_s0 + $0x180] sm:$0xff]  ;;  %v6401_v2 = vld [vmem:[%s11791_s0 + $0x188] sm:$0xff]  ;;  %v11343_v48 = vadd.f32 %v10965_v27, %v6385_v21 }
 0x7a1   :  { %v6402_v41 = vld [vmem:[%s11791_s0 + $0x190] sm:$0xff]  ;;  %v6403_v32 = vld [vmem:[%s11791_s0 + $0x198] sm:$0xff]  ;;  %v12028_v0 = vld [vmem:[#allocation8_spill] sm:$0xff] }
 0x7a2   :  { %v11346_v55 = vadd.f32 %v12028_v0, %v6386_v45  ;;  %v12030_v22 = vld [vmem:[#allocation27_spill] sm:$0xff]  ;;  %v6404_v51 = vld [vmem:[%s11791_s0 + $0x1a0] sm:$0xff]  ;;  %v6405_v14 = vld [vmem:[%s11791_s0 + $0x1a8] sm:$0xff] }
 0x7a3   :  { %v11349_v4 = vadd.f32 %v12030_v22, %v6387_v49  ;;  %v6406_v59 = vld [vmem:[%s11791_s0 + $0x1b0] sm:$0xff]  ;;  %v12034_v16 = vld [vmem:[#allocation7_spill] sm:$0xff]  ;;  %v12036_v21 = vld [vmem:[#allocation12_spill] sm:$0xff] }
 0x7a4   :  { %12029 = vst [vmem:[#allocation8_spill] sm:$0xff] %v11346_v55  ;;  %v12032_v27 = vld [vmem:[#allocation6_spill] sm:$0xff]  ;;  %v11364_v10 = vadd.f32 %v12034_v16, %v6389_v3  ;;  %v11367_v45 = vadd.f32 %v12036_v21, %v6390_v61  ;;  %v12038_v49 = vld [vmem:[#allocation5_spill] sm:$0xff]  ;;  %v6407_v22 = vld [vmem:[%s11791_s0 + $0x1b8] sm:$0xff] }
 0x7a5   :  { %12031 = vst [vmem:[#allocation27_spill] sm:$0xff] %v11349_v4  ;;  %v11361_v39 = vadd.f32 %v12032_v27, %v6388_v24  ;;  %v11370_v0 = vadd.f32 %v12038_v49, %v6391_v34  ;;  %v6408_v4 = vld [vmem:[%s11791_s0 + $0x1c0] sm:$0xff]  ;;  %v6409_v24 = vld [vmem:[%s11791_s0 + $0x1c8] sm:$0xff]  ;;  %v12040_v3 = vld [vmem:[#allocation10_spill] sm:$0xff] }
 0x7a6   :  { %12035 = vst [vmem:[#allocation7_spill] sm:$0xff] %v11364_v10  ;;  %12037 = vst [vmem:[#allocation12_spill] sm:$0xff] %v11367_v45  ;;  %v11382_v27 = vadd.f32 %v12040_v3, %v6392_v63  ;;  %v12042_v61 = vld [vmem:[#allocation11_spill] sm:$0xff]  ;;  %v12044_v34 = vld [vmem:[#allocation16_spill] sm:$0xff] }
 0x7a7   :  { %12033 = vst [vmem:[#allocation6_spill] sm:$0xff] %v11361_v39  ;;  %12039 = vst [vmem:[#allocation5_spill] sm:$0xff] %v11370_v0  ;;  %v11385_v16 = vadd.f32 %v12042_v61, %v6393_v56  ;;  %v11388_v21 = vadd.f32 %v12044_v34, %v6394_v17  ;;  %v12046_v49 = vld [vmem:[#allocation9_spill] sm:$0xff]  ;;  %v6410_v45 = vld [vmem:[%s11791_s0 + $0x1d0] sm:$0xff] }
 0x7a8   :  { %12041 = vst [vmem:[#allocation10_spill] sm:$0xff] %v11382_v27  ;;  %v11391_v0 = vadd.f32 %v12046_v49, %v6395_v23  ;;  %v6411_v10 = vld [vmem:[%s11791_s0 + $0x1d8] sm:$0xff]  ;;  %v6412_v63 = vld [vmem:[%s11791_s0 + $0x1e0] sm:$0xff]  ;;  %v12048_v56 = vld [vmem:[#allocation14_spill] sm:$0xff] }
 0x7a9   :  { %12043 = vst [vmem:[#allocation11_spill] sm:$0xff] %v11385_v16  ;;  %12045 = vst [vmem:[#allocation16_spill] sm:$0xff] %v11388_v21  ;;  %v11403_v3 = vadd.f32 %v12048_v56, %v6396_v25  ;;  %v12050_v17 = vld [vmem:[#allocation15_spill] sm:$0xff]  ;;  %v12052_v23 = vld [vmem:[#allocation20_spill] sm:$0xff] }
 0x7aa   :  { %12047 = vst [vmem:[#allocation9_spill] sm:$0xff] %v11391_v0  ;;  %v11406_v61 = vadd.f32 %v12050_v17, %v6397_v13  ;;  %v11409_v34 = vadd.f32 %v12052_v23, %v6398_v30  ;;  %v12054_v49 = vld [vmem:[#allocation13_spill] sm:$0xff]  ;;  %v6414_v16 = vld [vmem:[%s11791_s0 + $0x1f0] sm:$0xff]  ;;  %v6415_v25 = vld [vmem:[%s11791_s0 + $0x1f8] sm:$0xff] }
 0x7ab   :  { %12049 = vst [vmem:[#allocation14_spill] sm:$0xff] %v11403_v3  ;;  %v11412_v0 = vadd.f32 %v12054_v49, %v6399_v40  ;;  %v6413_v21 = vld [vmem:[%s11791_s0 + $0x1e8] sm:$0xff]  ;;  %v12056_v13 = vld [vmem:[#allocation18_spill] sm:$0xff]  ;;  %v12057_v30 = vld [vmem:[#allocation28_spill] sm:$0xff] }
 0x7ac   :  { %12051 = vst [vmem:[#allocation15_spill] sm:$0xff] %v11406_v61  ;;  %12053 = vst [vmem:[#allocation20_spill] sm:$0xff] %v11409_v34  ;;  %v11424_v56 = vadd.f32 %v12056_v13, %v6400_v47  ;;  %v11427_v17 = vadd.f32 %v12057_v30, %v6401_v2  ;;  %v12058_v40 = vld [vmem:[#allocation19_spill] sm:$0xff]  ;;  %v12059_v49 = vld [vmem:[#allocation24_spill] sm:$0xff] }
 0x7ad   :  { %12055 = vst [vmem:[#allocation13_spill] sm:$0xff] %v11412_v0  ;;  %v11430_v23 = vadd.f32 %v12058_v40, %v6402_v41  ;;  %v11433_v0 = vadd.f32 %v12059_v49, %v6403_v32  ;;  %v12060_v34 = vld [vmem:[#allocation17_spill] sm:$0xff]  ;;  %v12061_v3 = vld [vmem:[#allocation22_spill] sm:$0xff]  ;;  %v12062_v39 = vld [vmem:[#allocation23_spill] sm:$0xff] }
 0x7ae   :  { %v11436_v61 = vadd.f32 %v12060_v34, %v6404_v51  ;;  %v11439_v27 = vadd.f32 %v12061_v3, %v6405_v14  ;;  %v11442_v55 = vadd.f32 %v12062_v39, %v6406_v59  ;;  %v12063_v47 = vld [vmem:[#allocation25_spill] sm:$0xff]  ;;  %v12065_v41 = vld [vmem:[#allocation26_spill] sm:$0xff]  ;;  %v12067_v51 = vld [vmem:[#allocation4_spill] sm:$0xff] }
 0x7af   :  { %v11445_v13 = vadd.f32 %v12063_v47, %v6407_v22  ;;  %v12064_v2 = vld [vmem:[#allocation21_spill] sm:$0xff]  ;;  %v11451_v40 = vadd.f32 %v12065_v41, %v6409_v24  ;;  %v11457_v34 = vadd.f32 %v12067_v51, %v6411_v10  ;;  %v12068_v14 = vld [vmem:[#allocation30_spill] sm:$0xff]  ;;  %v12069_v59 = vld [vmem:[#allocation31_spill] sm:$0xff]  ;;  %v6620_v24 = vmax.f32 %v11160_v7, 0.0 }
 0x7b0   :  { %v11448_v30 = vadd.f32 %v12064_v2, %v6408_v4  ;;  %v12066_v32 = vld [vmem:[#allocation29_spill] sm:$0xff]  ;;  %v11460_v3 = vadd.f32 %v12068_v14, %v6412_v63  ;;  %v11463_v39 = vadd.f32 %v12069_v59, %v6413_v21  ;;  %v12070_v22 = vld [vmem:[#allocation32_spill] sm:$0xff]  ;;  %v6622_v41 = vmax.f32 %v11166_v15, 0.0 }
 0x7b1   :  { %v11454_v49 = vadd.f32 %v12066_v32, %v6410_v45  ;;  %v11466_v47 = vadd.f32 %v12070_v22, %v6414_v16  ;;  %v12071_v4 = vld [vmem:[#allocation33_spill] sm:$0xff]  ;;  %v6621_v45 = vmax.f32 %v11163_v44, 0.0  ;;  %v6623_v10 = vmax.f32 %v11169_v35, 0.0  ;;  %6684 = vst.msk [vmem:[%s11798_s7] sm:$0xff] %vm27_vm0, %v6620_v24  ;;  %v12078_v22 = vld [vmem:[#allocation10_spill] sm:$0xff]  ;;  %v12079_v24 = vld [vmem:[#allocation11_spill] sm:$0xff] }
 0x7b2   :  { %v11469_v2 = vadd.f32 %v12071_v4, %v6415_v25  ;;  %v6624_v63 = vmax.f32 %v11184_v19, 0.0  ;;  %v6625_v32 = vmax.f32 %v11187_v12, 0.0  ;;  %v6626_v21 = vmax.f32 %v11190_v42, 0.0  ;;  %6686 = vst.msk [vmem:[%s11798_s7 + $0x10] sm:$0xff] %vm27_vm0, %v6622_v41  ;;  %v12077_v14 = vld [vmem:[#allocation5_spill] sm:$0xff]  ;;  %v12080_v41 = vld [vmem:[#allocation16_spill] sm:$0xff] }
 0x7b3   :  { %v6627_v16 = vmax.f32 %v11193_v60, 0.0  ;;  %v6628_v51 = vmax.f32 %v11208_v43, 0.0  ;;  %v6629_v25 = vmax.f32 %v11211_v26, 0.0  ;;  %v6630_v7 = vmax.f32 %v11214_v9, 0.0  ;;  %6685 = vst.msk [vmem:[%s11798_s7 + $0x8] sm:$0xff] %vm27_vm0, %v6621_v45  ;;  %6687 = vst.msk [vmem:[%s11798_s7 + $0x18] sm:$0xff] %vm27_vm0, %v6623_v10 }
 0x7b4   :  { %v6631_v44 = vmax.f32 %v11217_v53, 0.0  ;;  %v6632_v35 = vmax.f32 %v11232_v18, 0.0  ;;  %v6633_v15 = vmax.f32 %v11235_v33, 0.0  ;;  %v6634_v19 = vmax.f32 %v11238_v8, 0.0  ;;  %6688 = vst.msk [vmem:[%s11798_s7 + $0x20] sm:$0xff] %vm27_vm0, %v6624_v63  ;;  %6689 = vst.msk [vmem:[%s11798_s7 + $0x28] sm:$0xff] %vm27_vm0, %v6625_v32 }
 0x7b5   :  { %v6635_v12 = vmax.f32 %v11241_v58, 0.0  ;;  %6690 = vst.msk [vmem:[%s11798_s7 + $0x30] sm:$0xff] %vm27_vm0, %v6626_v21  ;;  %6691 = vst.msk [vmem:[%s11798_s7 + $0x38] sm:$0xff] %vm27_vm0, %v6627_v16  ;;  %v6636_v42 = vmax.f32 %v11256_v54, 0.0  ;;  %v6637_v60 = vmax.f32 %v11259_v29, 0.0  ;;  %v6638_v43 = vmax.f32 %v11262_v20, 0.0 }
 0x7b6   :  { %v6639_v26 = vmax.f32 %v11265_v36, 0.0  ;;  %6692 = vst.msk [vmem:[%s11798_s7 + $0x40] sm:$0xff] %vm27_vm0, %v6628_v51  ;;  %6693 = vst.msk [vmem:[%s11798_s7 + $0x48] sm:$0xff] %vm27_vm0, %v6629_v25  ;;  %v6640_v9 = vmax.f32 %v11277_v11, 0.0  ;;  %v6641_v53 = vmax.f32 %v11280_v6, 0.0  ;;  %v6642_v18 = vmax.f32 %v11283_v38, 0.0 }
 0x7b7   :  { %6694 = vst.msk [vmem:[%s11798_s7 + $0x50] sm:$0xff] %vm27_vm0, %v6630_v7  ;;  %6695 = vst.msk [vmem:[%s11798_s7 + $0x58] sm:$0xff] %vm27_vm0, %v6631_v44  ;;  %v6643_v33 = vmax.f32 %v11286_v46, 0.0  ;;  %v6644_v8 = vmax.f32 %v11298_v1, 0.0  ;;  %v6645_v58 = vmax.f32 %v11301_v5, 0.0  ;;  %v6646_v54 = vmax.f32 %v11304_v28, 0.0 }
 0x7b8   :  { %6696 = vst.msk [vmem:[%s11798_s7 + $0x60] sm:$0xff] %vm27_vm0, %v6632_v35  ;;  %6697 = vst.msk [vmem:[%s11798_s7 + $0x68] sm:$0xff] %vm27_vm0, %v6633_v15  ;;  %v6647_v29 = vmax.f32 %v11307_v57, 0.0  ;;  %v6648_v20 = vmax.f32 %v11319_v52, 0.0  ;;  %v6649_v36 = vmax.f32 %v11322_v31, 0.0  ;;  %v6650_v11 = vmax.f32 %v11325_v50, 0.0 }
 0x7b9   :  { %6698 = vst.msk [vmem:[%s11798_s7 + $0x70] sm:$0xff] %vm27_vm0, %v6634_v19  ;;  %6699 = vst.msk [vmem:[%s11798_s7 + $0x78] sm:$0xff] %vm27_vm0, %v6635_v12  ;;  %v6651_v6 = vmax.f32 %v11328_v62, 0.0  ;;  %v6652_v38 = vmax.f32 %v11340_v37, 0.0  ;;  %v6653_v46 = vmax.f32 %v11343_v48, 0.0  ;;  %v12072_v1 = vld [vmem:[#allocation8_spill] sm:$0xff] }
 0x7ba   :  { %6700 = vst.msk [vmem:[%s11798_s7 + $0x80] sm:$0xff] %vm27_vm0, %v6636_v42  ;;  %6701 = vst.msk [vmem:[%s11798_s7 + $0x88] sm:$0xff] %vm27_vm0, %v6637_v60  ;;  %v6654_v5 = vmax.f32 %v12072_v1, 0.0  ;;  %v12073_v28 = vld [vmem:[#allocation27_spill] sm:$0xff]  ;;  %v12074_v52 = vld [vmem:[#allocation6_spill] sm:$0xff]  ;;  %v6659_v59 = vmax.f32 %v12077_v14, 0.0 }
 0x7bb   :  { %6702 = vst.msk [vmem:[%s11798_s7 + $0x90] sm:$0xff] %vm27_vm0, %v6638_v43  ;;  %6703 = vst.msk [vmem:[%s11798_s7 + $0x98] sm:$0xff] %vm27_vm0, %v6639_v26  ;;  %v6655_v57 = vmax.f32 %v12073_v28, 0.0  ;;  %v6656_v31 = vmax.f32 %v12074_v52, 0.0  ;;  %v12075_v50 = vld [vmem:[#allocation7_spill] sm:$0xff]  ;;  %v12076_v37 = vld [vmem:[#allocation12_spill] sm:$0xff] }
 0x7bc   :  { %6704 = vst.msk [vmem:[%s11798_s7 + $0xa0] sm:$0xff] %vm27_vm0, %v6640_v9  ;;  %6705 = vst.msk [vmem:[%s11798_s7 + $0xa8] sm:$0xff] %vm27_vm0, %v6641_v53  ;;  %v6657_v62 = vmax.f32 %v12075_v50, 0.0  ;;  %v6658_v48 = vmax.f32 %v12076_v37, 0.0  ;;  %v6660_v4 = vmax.f32 %v12078_v22, 0.0  ;;  %v6661_v45 = vmax.f32 %v12079_v24, 0.0 }
 0x7bd   :  { %6706 = vst.msk [vmem:[%s11798_s7 + $0xb0] sm:$0xff] %vm27_vm0, %v6642_v18  ;;  %6707 = vst.msk [vmem:[%s11798_s7 + $0xb8] sm:$0xff] %vm27_vm0, %v6643_v33  ;;  %v6662_v10 = vmax.f32 %v12080_v41, 0.0  ;;  %v12081_v63 = vld [vmem:[#allocation9_spill] sm:$0xff]  ;;  %v12082_v21 = vld [vmem:[#allocation14_spill] sm:$0xff]  ;;  %v6668_v19 = vmax.f32 %v11424_v56, 0.0 }
 0x7be   :  { %6708 = vst.msk [vmem:[%s11798_s7 + $0xc0] sm:$0xff] %vm27_vm0, %v6644_v8  ;;  %6709 = vst.msk [vmem:[%s11798_s7 + $0xc8] sm:$0xff] %vm27_vm0, %v6645_v58  ;;  %v6663_v32 = vmax.f32 %v12081_v63, 0.0  ;;  %v6664_v16 = vmax.f32 %v12082_v21, 0.0  ;;  %v12083_v51 = vld [vmem:[#allocation15_spill] sm:$0xff]  ;;  %v12084_v7 = vld [vmem:[#allocation20_spill] sm:$0xff] }
 0x7bf   :  { %6710 = vst.msk [vmem:[%s11798_s7 + $0xd0] sm:$0xff] %vm27_vm0, %v6646_v54  ;;  %6711 = vst.msk [vmem:[%s11798_s7 + $0xd8] sm:$0xff] %vm27_vm0, %v6647_v29  ;;  %v6665_v25 = vmax.f32 %v12083_v51, 0.0  ;;  %v6666_v44 = vmax.f32 %v12084_v7, 0.0  ;;  %v12085_v35 = vld [vmem:[#allocation13_spill] sm:$0xff]  ;;  %v6669_v12 = vmax.f32 %v11427_v17, 0.0 }
 0x7c0   :  { %6712 = vst.msk [vmem:[%s11798_s7 + $0xe0] sm:$0xff] %vm27_vm0, %v6648_v20  ;;  %6713 = vst.msk [vmem:[%s11798_s7 + $0xe8] sm:$0xff] %vm27_vm0, %v6649_v36  ;;  %v6667_v15 = vmax.f32 %v12085_v35, 0.0  ;;  %v6670_v42 = vmax.f32 %v11430_v23, 0.0  ;;  %v6671_v60 = vmax.f32 %v11433_v0, 0.0  ;;  %v6672_v0 = vmax.f32 %v11436_v61, 0.0 }
 0x7c1   :  { %6714 = vst.msk [vmem:[%s11798_s7 + $0xf0] sm:$0xff] %vm27_vm0, %v6650_v11  ;;  %6715 = vst.msk [vmem:[%s11798_s7 + $0xf8] sm:$0xff] %vm27_vm0, %v6651_v6  ;;  %v6673_v56 = vmax.f32 %v11439_v27, 0.0  ;;  %v6674_v17 = vmax.f32 %v11442_v55, 0.0  ;;  %v6675_v23 = vmax.f32 %v11445_v13, 0.0  ;;  %v6676_v55 = vmax.f32 %v11448_v30, 0.0 }
 0x7c2   :  { %6716 = vst.msk [vmem:[%s11798_s7 + $0x100] sm:$0xff] %vm27_vm0, %v6652_v38  ;;  %6717 = vst.msk [vmem:[%s11798_s7 + $0x108] sm:$0xff] %vm27_vm0, %v6653_v46  ;;  %v6677_v27 = vmax.f32 %v11451_v40, 0.0  ;;  %v6678_v61 = vmax.f32 %v11454_v49, 0.0  ;;  %v6679_v13 = vmax.f32 %v11457_v34, 0.0  ;;  %v6680_v30 = vmax.f32 %v11460_v3, 0.0 }
 0x7c3   :  { %6718 = vst.msk [vmem:[%s11798_s7 + $0x110] sm:$0xff] %vm27_vm0, %v6654_v5  ;;  %6719 = vst.msk [vmem:[%s11798_s7 + $0x118] sm:$0xff] %vm27_vm0, %v6655_v57  ;;  %v6681_v40 = vmax.f32 %v11463_v39, 0.0  ;;  %v6682_v49 = vmax.f32 %v11466_v47, 0.0  ;;  %v6683_v34 = vmax.f32 %v11469_v2, 0.0 }
 0x7c4   :  { %6720 = vst.msk [vmem:[%s11798_s7 + $0x120] sm:$0xff] %vm27_vm0, %v6656_v31  ;;  %6721 = vst.msk [vmem:[%s11798_s7 + $0x128] sm:$0xff] %vm27_vm0, %v6657_v62 }
 0x7c5   :  { %6722 = vst.msk [vmem:[%s11798_s7 + $0x130] sm:$0xff] %vm27_vm0, %v6658_v48  ;;  %6723 = vst.msk [vmem:[%s11798_s7 + $0x138] sm:$0xff] %vm27_vm0, %v6659_v59 }
 0x7c6   :  { %6724 = vst.msk [vmem:[%s11798_s7 + $0x140] sm:$0xff] %vm27_vm0, %v6660_v4  ;;  %6725 = vst.msk [vmem:[%s11798_s7 + $0x148] sm:$0xff] %vm27_vm0, %v6661_v45 }
 0x7c7   :  { %6726 = vst.msk [vmem:[%s11798_s7 + $0x150] sm:$0xff] %vm27_vm0, %v6662_v10  ;;  %6727 = vst.msk [vmem:[%s11798_s7 + $0x158] sm:$0xff] %vm27_vm0, %v6663_v32 }
 0x7c8   :  { %6728 = vst.msk [vmem:[%s11798_s7 + $0x160] sm:$0xff] %vm27_vm0, %v6664_v16  ;;  %6729 = vst.msk [vmem:[%s11798_s7 + $0x168] sm:$0xff] %vm27_vm0, %v6665_v25 }
 0x7c9   :  { %6730 = vst.msk [vmem:[%s11798_s7 + $0x170] sm:$0xff] %vm27_vm0, %v6666_v44  ;;  %6731 = vst.msk [vmem:[%s11798_s7 + $0x178] sm:$0xff] %vm27_vm0, %v6667_v15 }
 0x7ca   :  { %6732 = vst.msk [vmem:[%s11798_s7 + $0x180] sm:$0xff] %vm27_vm0, %v6668_v19  ;;  %6733 = vst.msk [vmem:[%s11798_s7 + $0x188] sm:$0xff] %vm27_vm0, %v6669_v12 }
 0x7cb   :  { %6734 = vst.msk [vmem:[%s11798_s7 + $0x190] sm:$0xff] %vm27_vm0, %v6670_v42  ;;  %6735 = vst.msk [vmem:[%s11798_s7 + $0x198] sm:$0xff] %vm27_vm0, %v6671_v60 }
 0x7cc   :  { %6736 = vst.msk [vmem:[%s11798_s7 + $0x1a0] sm:$0xff] %vm27_vm0, %v6672_v0  ;;  %6737 = vst.msk [vmem:[%s11798_s7 + $0x1a8] sm:$0xff] %vm27_vm0, %v6673_v56 }
 0x7cd   :  { %6738 = vst.msk [vmem:[%s11798_s7 + $0x1b0] sm:$0xff] %vm27_vm0, %v6674_v17  ;;  %6739 = vst.msk [vmem:[%s11798_s7 + $0x1b8] sm:$0xff] %vm27_vm0, %v6675_v23 }
 0x7ce   :  { %6740 = vst.msk [vmem:[%s11798_s7 + $0x1c0] sm:$0xff] %vm27_vm0, %v6676_v55  ;;  %6741 = vst.msk [vmem:[%s11798_s7 + $0x1c8] sm:$0xff] %vm27_vm0, %v6677_v27 }
 0x7cf   :  { %6742 = vst.msk [vmem:[%s11798_s7 + $0x1d0] sm:$0xff] %vm27_vm0, %v6678_v61  ;;  %6743 = vst.msk [vmem:[%s11798_s7 + $0x1d8] sm:$0xff] %vm27_vm0, %v6679_v13 }
 0x7d0   :  { %6744 = vst.msk [vmem:[%s11798_s7 + $0x1e0] sm:$0xff] %vm27_vm0, %v6680_v30  ;;  %6745 = vst.msk [vmem:[%s11798_s7 + $0x1e8] sm:$0xff] %vm27_vm0, %v6681_v40 }
 0x7d1   :  { %6746 = vst.msk [vmem:[%s11798_s7 + $0x1f0] sm:$0xff] %vm27_vm0, %v6682_v49  ;;  %6747 = vst.msk [vmem:[%s11798_s7 + $0x1f8] sm:$0xff] %vm27_vm0, %v6683_v34 }

</bundles_post_ra>
